<compile_context>
chip_gen: v7x
topology: tpu7x:2x2x1
jax: 0.10.0
libtpu: 0.0.40
codegen_flags: <defaults>
</compile_context>

<pallas_src>
import functools

import jax
import jax.numpy as jnp
from jax import lax
from jax.experimental import pallas as pl
from jax.experimental.pallas import tpu as pltpu

C_IN = 512
C_MID = 256


def bbpred_kernel(x_ref, w1_ref, b1_ref, wh_ref, bh_ref, o_ref, *, a2, w):
    # x_ref:  (Bt, H+2, Wp, Cin)  bf16, spatially zero-padded input tile
    # w1_ref: (3, 3*Cin, Cmid)    bf16, 3x3 conv weights indexed by dx, rows dy-major
    # b1_ref: (1, Cmid)           f32
    # wh_ref: (Cmid, Npad)        bf16, fused + zero-padded [wc | wyx | whw]
    # bh_ref: (1, Npad)           f32,  fused + zero-padded [bc | byx | bhw]
    # o_ref:  (Bt, H*W, Npad)     bf16, single lane-dense fused output
    bt, hp, wpp, cin = x_ref.shape
    h = hp - 2
    cmid = w1_ref.shape[2]
    npad = o_ref.shape[2]
    mw = bt * h * wpp          # rows of the wide (un-shifted) conv result
    mh = bt * h * w            # rows of the valid conv result

    # ---- dy folded into K: lane-axis concat of the three dy row-slabs (each
    # lane-aligned, Cin = 4*128 lanes) -> (mw, 3*Cin) bf16 LHS.
    lhs = jnp.concatenate(
        [x_ref[:, dy:dy + h, :, :].reshape(mw, cin) for dy in range(3)], axis=-1)

    # ---- One K=3*Cin matmul per dx tap; the MXU accumulates over dy internally
    # so each wide result is drained exactly once.  The dx shift is then folded
    # as three shifted adds on the 256-wide results (value chain, no scratch RMW).
    def tap(dx):
        wide = jnp.dot(lhs, w1_ref[dx], preferred_element_type=jnp.float32)
        return wide.reshape(bt * h, wpp, cmid)[:, dx:dx + w, :]

    conv = (tap(0) + tap(1) + tap(2)).reshape(mh, cmid)
    hidden = jnp.maximum(conv + b1_ref[0], 0.0).astype(jnp.bfloat16)   # ReLU, bf16 for MXU

    # ---- Fused 1x1 heads: one lane-dense matmul + masked per-head activations.
    vals = jnp.dot(hidden, wh_ref[...],
                   preferred_element_type=jnp.float32) + bh_ref[0]     # (mh, Npad) f32
    col = lax.broadcasted_iota(jnp.int32, vals.shape, 1)
    vals = jnp.where(col >= a2, jnp.maximum(vals, 0.0), vals)               # ReLU on yx/hw
    vals = vals + jnp.where((col >= 2 * a2) & (col < 3 * a2), 0.001, 0.0)   # +1e-3 on hw
    o_ref[...] = vals.reshape(bt, h * w, npad).astype(o_ref.dtype)


def _tpu_generation():
    """Best-effort (vmem_bytes_per_core, tensorcores_per_device); safe fallbacks."""
    vmem_bytes = 64 * 1024 * 1024          # conservative default (v7x per-TC)
    num_tc = 1
    try:
        info = pltpu.get_tpu_info()
        for attr in ("vmem_capacity_bytes", "vmem_bytes", "vmem_size_bytes"):
            v = getattr(info, attr, None)
            if v:
                vmem_bytes = int(v)
                break
        for attr in ("num_cores", "tensorcores_per_chip", "cores_per_chip",
                     "num_tensorcores"):
            v = getattr(info, attr, None)
            if v:
                num_tc = int(v)
                break
    except Exception:
        pass
    try:
        kind = jax.devices()[0].device_kind.lower()
        if "v7" in kind:
            num_tc = max(num_tc, 2)
            vmem_bytes = min(vmem_bytes, 64 * 1024 * 1024)
        elif "lite" in kind or "v5e" in kind or "v6e" in kind:
            num_tc = 1
            vmem_bytes = max(vmem_bytes, 128 * 1024 * 1024)
        elif "v4" in kind or "v5" in kind or "v6" in kind:
            num_tc = max(num_tc, 2)                       # megacore generations
            vmem_bytes = max(vmem_bytes, 128 * 1024 * 1024)
    except Exception:
        pass
    return vmem_bytes, num_tc


def _vmem_step_bytes(bt, h, w, wpp, cin, cmid, npad, out_bytes, double_buffer_consts):
    """Rough per-grid-step VMEM footprint of the kernel (bytes)."""
    mw = bt * h * wpp
    mh = bt * h * w
    x_tile = bt * (h + 2) * wpp * cin * 2 * 2             # bf16 input, double-buffered
    consts = 3 * 3 * cin * cmid * 2 + cmid * npad * 2 + (cmid + npad) * 4
    consts *= 2 if double_buffer_consts else 1
    lhs = mw * 3 * cin * 2                                 # bf16 dy-concat LHS
    wide = 2 * mw * cmid * 4                               # ~2 live f32 dx partials
    head = mh * cmid * 2 + mh * npad * 4                   # hidden bf16 + fused head f32
    out_tile = mh * npad * out_bytes * 2                   # double-buffered output
    return x_tile + consts + lhs + wide + head + out_tile


def _pick_batch_tile(b, h, w, wpp, cin, cmid, npad, out_bytes,
                     num_tc, vmem_budget, double_buffer_consts):
    """Largest batch tile Bt (dividing B) that fits the VMEM budget; on multi-TC
    chips prefer grid lengths that split evenly across the TensorCores."""
    best = None
    for bt in range(1, b + 1):
        if b % bt:
            continue
        if _vmem_step_bytes(bt, h, w, wpp, cin, cmid, npad, out_bytes,
                            double_buffer_consts) > vmem_budget:
            continue
        steps = b // bt
        if num_tc > 1:
            balance = 2 if steps % num_tc == 0 else (1 if steps >= num_tc else 0)
        else:
            balance = 0
        score = (balance, bt)
        if best is None or score > best[0]:
            best = (score, bt)
    if best is None:
        # TODO(synk): add an H (row) grid axis with a 1-row halo so feature maps
        # where even bt=1 exceeds the VMEM budget can still be tiled.
        return 1
    return best[1]


def bbpred_forward(x, params, num_anchor_types, *,
                   single_buffer_consts=True, x_layout="NCHW"):
    """BBPredNet forward. Returns (fmap_class, fmap_box_yx, fmap_box_hw), each
    shaped (B, 2, num_anchor_types, H, W) f32, exactly like the PyTorch module.
    Pass x_layout="NHWC" (bf16 ok) to skip the wrapper-side transpose/cast."""
    if x_layout == "NCHW":
        b, cin, h, w = x.shape
        x_nhwc = jnp.transpose(x, (0, 2, 3, 1)).astype(jnp.bfloat16)
    else:  # "NHWC": lets the producer avoid an extra HBM transpose round trip
        b, h, w, cin = x.shape
        x_nhwc = x.astype(jnp.bfloat16)

    a2 = 2 * num_anchor_types
    cmid = params["w1"].shape[3]
    npad = ((3 * a2 + 127) // 128) * 128        # lane-dense fused head width (>=128)
    wpp = ((w + 2 + 7) // 8) * 8                # padded width, multiple of 8
    out_dtype = jnp.bfloat16                    # halved HBM writeback (f32 acc in-kernel)
    out_bytes = jnp.dtype(out_dtype).itemsize

    vmem_phys, num_tc = _tpu_generation()
    vmem_limit = max(min(int(vmem_phys * 3 // 4), 112 * 1024 * 1024),
                     32 * 1024 * 1024)
    bt = _pick_batch_tile(b, h, w, wpp, cin, cmid, npad, out_bytes,
                          num_tc=num_tc, vmem_budget=int(0.8 * vmem_limit),
                          double_buffer_consts=not single_buffer_consts)

    # NHWC bf16 spatial zero pad (pad=1 "SAME" + right pad to a multiple of 8).
    # TODO(synk): for very large feature maps, fold this pad into the kernel and
    # add an H grid axis with a 1-row halo so the tile scales with Ht, not H.
    x_pad = jnp.pad(x_nhwc, ((0, 0), (1, 1), (1, wpp - w - 1), (0, 0)))

    # 3x3 weights (ky,kx,Cin,Cmid) -> (dx, dy-major*Cin, Cmid): dy rides K.
    w1 = jnp.transpose(params["w1"], (1, 0, 2, 3)).reshape(3, 3 * cin, cmid)
    w1 = w1.astype(jnp.bfloat16)
    b1 = params["b1"].reshape(1, cmid).astype(jnp.float32)

    # Fuse the three 1x1 heads into one zero-padded, lane-dense weight/bias.
    wh = jnp.concatenate([params["wc"], params["wyx"], params["whw"]], axis=1)
    wh = jnp.pad(wh, ((0, 0), (0, npad - 3 * a2))).astype(jnp.bfloat16)
    bh = jnp.concatenate([params["bc"], params["byx"], params["bhw"]])
    bh = jnp.pad(bh, (0, npad - 3 * a2)).reshape(1, npad).astype(jnp.float32)

    batch_map = lambda i: (i, 0, 0, 0)
    const3 = lambda i: (0, 0, 0)
    const2 = lambda i: (0, 0)

    def const_spec(shape, index_map):
        if single_buffer_consts:
            # Single-buffer constant-index blocks: reclaims the w1 double buffer.
            return pl.BlockSpec(shape, index_map, pipeline_mode=pl.Buffered(1))
        return pl.BlockSpec(shape, index_map)

    grid_spec = pltpu.PrefetchScalarGridSpec(
        num_scalar_prefetch=0,
        grid=(b // bt,),
        in_specs=[
            pl.BlockSpec((bt, h + 2, wpp, cin), batch_map),   # x_pad
            const_spec((3, 3 * cin, cmid), const3),           # w1 (dx, 3*Cin, Cmid)
            const_spec((1, cmid), const2),                     # b1
            const_spec((cmid, npad), const2),                  # fused head weight
            const_spec((1, npad), const2),                     # fused head bias
        ],
        out_specs=pl.BlockSpec((bt, h * w, npad), lambda i: (i, 0, 0)),
    )

    flops = 2 * b * h * w * (9 * cin * cmid + cmid * 3 * a2)
    bytes_accessed = (x_pad.size * 2 + w1.size * 2 + wh.size * 2
                      + (b1.size + bh.size) * 4 + b * h * w * npad * out_bytes)

    fused = pl.pallas_call(
        functools.partial(bbpred_kernel, a2=a2, w=w),
        out_shape=jax.ShapeDtypeStruct((b, h * w, npad), out_dtype),
        grid_spec=grid_spec,
        compiler_params=pltpu.CompilerParams(
            dimension_semantics=("parallel",),
            vmem_limit_bytes=int(vmem_limit)),
        cost_estimate=pl.CostEstimate(flops=int(flops), transcendentals=0,
                                      bytes_accessed=int(bytes_accessed)),
    )(x_pad, w1, b1, wh, bh)

    # (B, H*W, Npad) -> three (B, 2, A, H, W) f32 maps (same as PyTorch's .view).
    # TODO(synk): if the consumer can take (B, H, W, 2A) bf16 directly, skip these
    # transposes/casts (a full extra HBM round trip on memory-bound shapes).
    fused = fused.reshape(b, h, w, npad)

    def to_torch_layout(lo, hi):
        o = fused[..., lo:hi]                                    # (B, H, W, 2A) bf16
        o = jnp.transpose(o, (0, 3, 1, 2)).astype(jnp.float32)   # cast fuses w/ transpose
        return o.reshape(b, 2, num_anchor_types, h, w)

    return (to_torch_layout(0, a2),
            to_torch_layout(a2, 2 * a2),
            to_torch_layout(2 * a2, 3 * a2))


def init_params(key, num_anchor_types):
    a2 = 2 * num_anchor_types
    ks = jax.random.split(key, 8)
    scale3, scale1 = 0.02, 0.05
    return {
        "w1": scale3 * jax.random.normal(ks[0], (3, 3, C_IN, C_MID), jnp.float32),
        "b1": 0.01 * jax.random.normal(ks[1], (C_MID,), jnp.float32),
        "wc": scale1 * jax.random.normal(ks[2], (C_MID, a2), jnp.float32),
        "bc": 0.01 * jax.random.normal(ks[3], (a2,), jnp.float32),
        "wyx": scale1 * jax.random.normal(ks[4], (C_MID, a2), jnp.float32),
        "byx": 0.01 * jax.random.normal(ks[5], (a2,), jnp.float32),
        "whw": scale1 * jax.random.normal(ks[6], (C_MID, a2), jnp.float32),
        "bhw": 0.01 * jax.random.normal(ks[7], (a2,), jnp.float32),
    }


def reference_forward(x_nchw, params, num_anchor_types, compute_dtype=jnp.float32):
    """Pure-JAX reference (XLA conv). compute_dtype=bfloat16 mirrors the kernel's
    bf16-input / f32-accumulate numerics; float32 mirrors the PyTorch module."""
    b, _, h, w = x_nchw.shape
    a2 = 2 * num_anchor_types
    x = jnp.transpose(x_nchw, (0, 2, 3, 1)).astype(compute_dtype)
    hidden = lax.conv_general_dilated(
        x, params["w1"].astype(compute_dtype), window_strides=(1, 1), padding="SAME",
        dimension_numbers=("NHWC", "HWIO", "NHWC"),
        preferred_element_type=jnp.float32)
    hidden = jnp.maximum(hidden + params["b1"], 0.0)
    flat = hidden.astype(compute_dtype).reshape(b * h * w, C_MID)

    def head(wk, bk):
        o = jnp.dot(flat, params[wk].astype(compute_dtype),
                    preferred_element_type=jnp.float32) + params[bk]
        return o.reshape(b, h, w, a2)

    co = head("wc", "bc")
    yx = jnp.maximum(head("wyx", "byx"), 0.0)
    hw = jnp.maximum(head("whw", "bhw"), 0.0) + 0.001

    def to_torch_layout(o):
        return jnp.transpose(o, (0, 3, 1, 2)).reshape(b, 2, num_anchor_types, h, w)

    return to_torch_layout(co), to_torch_layout(yx), to_torch_layout(hw)


if __name__ == "__main__":
    num_anchor_types = 4
    B, H, W = 2, 8, 8

    key = jax.random.PRNGKey(0)
    kx, kp = jax.random.split(key)
    x = jax.random.normal(kx, (B, C_IN, H, W), jnp.float32)
    params = init_params(kp, num_anchor_types)

    def run(single_buffer_consts):
        fwd = jax.jit(functools.partial(bbpred_forward,
                                        num_anchor_types=num_anchor_types,
                                        single_buffer_consts=single_buffer_consts))
        return jax.block_until_ready(fwd(x, params))

    try:
        outs = run(True)           # preferred: single-buffered constant weights
    except Exception:
        outs = run(False)          # fallback if pipeline_mode=Buffered(1) unsupported

    # Tight-ish check vs a reference using the same bf16-input / f32-accumulate
    # numerics (kernel additionally rounds the final store to bf16).
    refs_bf16 = reference_forward(x, params, num_anchor_types, jnp.bfloat16)
    # Looser check vs the pure-f32 module semantics.
    refs_f32 = reference_forward(x, params, num_anchor_types, jnp.float32)

    for o, rb, rf in zip(outs, refs_bf16, refs_f32):
        assert o.shape == (B, 2, num_anchor_types, H, W)
        assert o.dtype == jnp.float32
        assert jnp.allclose(o, rb, atol=2e-2, rtol=2e-2)
        assert jnp.allclose(o, rf, atol=4e-2, rtol=4e-2)

    print("KERNEL_OK")
</pallas_src>

<mosaic_0001>
module attributes {stable_mosaic.version = 11 : i64} {
  func.func @bbpred_kernel(%arg0: i32, %arg1: memref<2x10x16x512xbf16, #tpu.memory_space<vmem>>, %arg2: memref<3x1536x256xbf16, #tpu.memory_space<vmem>>, %arg3: memref<1x256xf32, #tpu.memory_space<vmem>>, %arg4: memref<256x128xbf16, #tpu.memory_space<vmem>>, %arg5: memref<1x128xf32, #tpu.memory_space<vmem>>, %arg6: memref<2x64x128xbf16, #tpu.memory_space<vmem>>) attributes {dimension_semantics = [#tpu.dimension_semantics<parallel>], iteration_bounds = array<i64: 1>, scalar_prefetch = 0 : i64, scratch_operands = 0 : i64, tpu.core_type = #tpu.core_type<tc>, window_params = [{transform_indices = @transform_0, window_bounds = array<i64: 2, 10, 16, 512>}, {pipeline_mode = #tpu.pipeline_mode<synchronous>, transform_indices = @transform_1, window_bounds = array<i64: 3, 1536, 256>}, {pipeline_mode = #tpu.pipeline_mode<synchronous>, transform_indices = @transform_2, window_bounds = array<i64: 1, 256>}, {pipeline_mode = #tpu.pipeline_mode<synchronous>, transform_indices = @transform_3, window_bounds = array<i64: 256, 128>}, {pipeline_mode = #tpu.pipeline_mode<synchronous>, transform_indices = @transform_4, window_bounds = array<i64: 1, 128>}, {transform_indices = @transform_5, window_bounds = array<i64: 2, 64, 128>}]} {
    %c0 = arith.constant 0 : index
    %c0_0 = arith.constant 0 : index
    %c0_1 = arith.constant 0 : index
    %c0_2 = arith.constant 0 : index
    %0 = vector.load %arg1[%c0, %c0_0, %c0_1, %c0_2] : memref<2x10x16x512xbf16, #tpu.memory_space<vmem>>, vector<2x8x16x512xbf16>
    %1 = vector.shape_cast %0 : vector<2x8x16x512xbf16> to vector<256x512xbf16>
    %c0_3 = arith.constant 0 : index
    %c1 = arith.constant 1 : index
    %c0_4 = arith.constant 0 : index
    %c0_5 = arith.constant 0 : index
    %2 = vector.load %arg1[%c0_3, %c1, %c0_4, %c0_5] : memref<2x10x16x512xbf16, #tpu.memory_space<vmem>>, vector<2x8x16x512xbf16>
    %3 = vector.shape_cast %2 : vector<2x8x16x512xbf16> to vector<256x512xbf16>
    %c0_6 = arith.constant 0 : index
    %c2 = arith.constant 2 : index
    %c0_7 = arith.constant 0 : index
    %c0_8 = arith.constant 0 : index
    %4 = vector.load %arg1[%c0_6, %c2, %c0_7, %c0_8] : memref<2x10x16x512xbf16, #tpu.memory_space<vmem>>, vector<2x8x16x512xbf16>
    %5 = vector.shape_cast %4 : vector<2x8x16x512xbf16> to vector<256x512xbf16>
    %6 = tpu.concatenate %1, %3, %5 in 1 : vector<256x512xbf16>, vector<256x512xbf16>, vector<256x512xbf16> -> vector<256x1536xbf16>
    %c0_9 = arith.constant 0 : index
    %c0_10 = arith.constant 0 : index
    %c0_11 = arith.constant 0 : index
    %7 = vector.load %arg2[%c0_9, %c0_10, %c0_11] : memref<3x1536x256xbf16, #tpu.memory_space<vmem>>, vector<1x1536x256xbf16>
    %8 = vector.shape_cast %7 : vector<1x1536x256xbf16> to vector<1536x256xbf16>
    %cst = arith.constant dense<0.000000e+00> : vector<256x256xf32>
    %9 = tpu.matmul %6, %8, %cst {dimension_numbers = #tpu.dot_dimension_numbers<[1], [0], [0], [1], [0, 0, 1, 1], [], []>} : vector<256x1536xbf16>, vector<1536x256xbf16>, vector<256x256xf32> -> vector<256x256xf32>
    %10 = vector.shape_cast %9 : vector<256x256xf32> to vector<16x16x256xf32>
    %11 = vector.extract_strided_slice %10 {offsets = [0, 0, 0], sizes = [16, 8, 256], strides = [1, 1, 1]} : vector<16x16x256xf32> to vector<16x8x256xf32>
    %c1_12 = arith.constant 1 : index
    %c0_13 = arith.constant 0 : index
    %c0_14 = arith.constant 0 : index
    %12 = vector.load %arg2[%c1_12, %c0_13, %c0_14] : memref<3x1536x256xbf16, #tpu.memory_space<vmem>>, vector<1x1536x256xbf16>
    %13 = vector.shape_cast %12 : vector<1x1536x256xbf16> to vector<1536x256xbf16>
    %cst_15 = arith.constant dense<0.000000e+00> : vector<256x256xf32>
    %14 = tpu.matmul %6, %13, %cst_15 {dimension_numbers = #tpu.dot_dimension_numbers<[1], [0], [0], [1], [0, 0, 1, 1], [], []>} : vector<256x1536xbf16>, vector<1536x256xbf16>, vector<256x256xf32> -> vector<256x256xf32>
    %15 = vector.shape_cast %14 : vector<256x256xf32> to vector<16x16x256xf32>
    %16 = vector.extract_strided_slice %15 {offsets = [0, 1, 0], sizes = [16, 8, 256], strides = [1, 1, 1]} : vector<16x16x256xf32> to vector<16x8x256xf32>
    %17 = arith.addf %11, %16 : vector<16x8x256xf32>
    %c2_16 = arith.constant 2 : index
    %c0_17 = arith.constant 0 : index
    %c0_18 = arith.constant 0 : index
    %18 = vector.load %arg2[%c2_16, %c0_17, %c0_18] : memref<3x1536x256xbf16, #tpu.memory_space<vmem>>, vector<1x1536x256xbf16>
    %19 = vector.shape_cast %18 : vector<1x1536x256xbf16> to vector<1536x256xbf16>
    %cst_19 = arith.constant dense<0.000000e+00> : vector<256x256xf32>
    %20 = tpu.matmul %6, %19, %cst_19 {dimension_numbers = #tpu.dot_dimension_numbers<[1], [0], [0], [1], [0, 0, 1, 1], [], []>} : vector<256x1536xbf16>, vector<1536x256xbf16>, vector<256x256xf32> -> vector<256x256xf32>
    %21 = vector.shape_cast %20 : vector<256x256xf32> to vector<16x16x256xf32>
    %22 = vector.extract_strided_slice %21 {offsets = [0, 2, 0], sizes = [16, 8, 256], strides = [1, 1, 1]} : vector<16x16x256xf32> to vector<16x8x256xf32>
    %23 = arith.addf %17, %22 : vector<16x8x256xf32>
    %24 = vector.shape_cast %23 : vector<16x8x256xf32> to vector<128x256xf32>
    %c0_20 = arith.constant 0 : index
    %c0_21 = arith.constant 0 : index
    %25 = vector.load %arg3[%c0_20, %c0_21] : memref<1x256xf32, #tpu.memory_space<vmem>>, vector<1x256xf32>
    %26 = vector.shape_cast %25 : vector<1x256xf32> to vector<256xf32>
    %27 = vector.shape_cast %26 : vector<256xf32> to vector<1x256xf32>
    %28 = vector.broadcast %27 : vector<1x256xf32> to vector<128x256xf32>
    %29 = arith.addf %24, %28 : vector<128x256xf32>
    %cst_22 = arith.constant 0.000000e+00 : f32
    %30 = vector.broadcast %cst_22 : f32 to vector<128x256xf32>
    %31 = arith.maximumf %29, %30 : vector<128x256xf32>
    %32 = arith.truncf %31 : vector<128x256xf32> to vector<128x256xbf16>
    %c0_23 = arith.constant 0 : index
    %c0_24 = arith.constant 0 : index
    %33 = vector.load %arg4[%c0_23, %c0_24] : memref<256x128xbf16, #tpu.memory_space<vmem>>, vector<256x128xbf16>
    %cst_25 = arith.constant dense<0.000000e+00> : vector<128x128xf32>
    %34 = tpu.matmul %32, %33, %cst_25 {dimension_numbers = #tpu.dot_dimension_numbers<[1], [0], [0], [1], [0, 0, 1, 1], [], []>} : vector<128x256xbf16>, vector<256x128xbf16>, vector<128x128xf32> -> vector<128x128xf32>
    %c0_26 = arith.constant 0 : index
    %c0_27 = arith.constant 0 : index
    %35 = vector.load %arg5[%c0_26, %c0_27] : memref<1x128xf32, #tpu.memory_space<vmem>>, vector<1x128xf32>
    %36 = vector.shape_cast %35 : vector<1x128xf32> to vector<128xf32>
    %37 = vector.shape_cast %36 : vector<128xf32> to vector<1x128xf32>
    %38 = vector.broadcast %37 : vector<1x128xf32> to vector<128x128xf32>
    %39 = arith.addf %34, %38 : vector<128x128xf32>
    %40 = tpu.iota {dimensions = array<i32: 1>} : vector<128x128xi32>
    %c8_i32 = arith.constant 8 : i32
    %41 = vector.broadcast %c8_i32 : i32 to vector<128x128xi32>
    %42 = arith.cmpi sge, %40, %41 : vector<128x128xi32>
    %cst_28 = arith.constant 0.000000e+00 : f32
    %43 = vector.broadcast %cst_28 : f32 to vector<128x128xf32>
    %44 = arith.maximumf %39, %43 : vector<128x128xf32>
    %45 = arith.select %42, %44, %39 : vector<128x128xi1>, vector<128x128xf32>
    %c16_i32 = arith.constant 16 : i32
    %46 = vector.broadcast %c16_i32 : i32 to vector<128x128xi32>
    %47 = arith.cmpi sge, %40, %46 : vector<128x128xi32>
    %c24_i32 = arith.constant 24 : i32
    %48 = vector.broadcast %c24_i32 : i32 to vector<128x128xi32>
    %49 = arith.cmpi slt, %40, %48 : vector<128x128xi32>
    %50 = arith.andi %47, %49 : vector<128x128xi1>
    %cst_29 = arith.constant 1.000000e-03 : f32
    %cst_30 = arith.constant 0.000000e+00 : f32
    %51 = vector.broadcast %cst_29 : f32 to vector<128x128xf32>
    %52 = vector.broadcast %cst_30 : f32 to vector<128x128xf32>
    %53 = arith.select %50, %51, %52 : vector<128x128xi1>, vector<128x128xf32>
    %54 = arith.addf %45, %53 : vector<128x128xf32>
    %55 = vector.shape_cast %54 : vector<128x128xf32> to vector<2x64x128xf32>
    %56 = arith.truncf %55 : vector<2x64x128xf32> to vector<2x64x128xbf16>
    %c0_31 = arith.constant 0 : index
    %c0_32 = arith.constant 0 : index
    %c0_33 = arith.constant 0 : index
    %57 = vector.load %arg6[%c0_31, %c0_32, %c0_33] : memref<2x64x128xbf16, #tpu.memory_space<vmem>>, vector<2x64x128xbf16>
    tpu.vector_store %arg6[%c0_31, %c0_32, %c0_33], %56 {strides = array<i32>} : memref<2x64x128xbf16, #tpu.memory_space<vmem>>, vector<2x64x128xbf16>,
    return
  }
  func.func @transform_0(%arg0: i32) -> (i32, i32, i32, i32) {
    %c0_i32 = arith.constant 0 : i32
    %c0_i32_0 = arith.constant 0 : i32
    %c0_i32_1 = arith.constant 0 : i32
    %c0_i32_2 = arith.constant 0 : i32
    return %arg0, %c0_i32, %c0_i32_0, %c0_i32_1 : i32, i32, i32, i32
  }
  func.func @transform_1(%arg0: i32) -> (i32, i32, i32) {
    %c0_i32 = arith.constant 0 : i32
    %c0_i32_0 = arith.constant 0 : i32
    %c0_i32_1 = arith.constant 0 : i32
    %c0_i32_2 = arith.constant 0 : i32
    return %c0_i32, %c0_i32_0, %c0_i32_1 : i32, i32, i32
  }
  func.func @transform_2(%arg0: i32) -> (i32, i32) {
    %c0_i32 = arith.constant 0 : i32
    %c0_i32_0 = arith.constant 0 : i32
    %c0_i32_1 = arith.constant 0 : i32
    return %c0_i32, %c0_i32_0 : i32, i32
  }
  func.func @transform_3(%arg0: i32) -> (i32, i32) {
    %c0_i32 = arith.constant 0 : i32
    %c0_i32_0 = arith.constant 0 : i32
    %c0_i32_1 = arith.constant 0 : i32
    return %c0_i32, %c0_i32_0 : i32, i32
  }
  func.func @transform_4(%arg0: i32) -> (i32, i32) {
    %c0_i32 = arith.constant 0 : i32
    %c0_i32_0 = arith.constant 0 : i32
    %c0_i32_1 = arith.constant 0 : i32
    return %c0_i32, %c0_i32_0 : i32, i32
  }
  func.func @transform_5(%arg0: i32) -> (i32, i32, i32) {
    %c0_i32 = arith.constant 0 : i32
    %c0_i32_0 = arith.constant 0 : i32
    %c0_i32_1 = arith.constant 0 : i32
    return %arg0, %c0_i32, %c0_i32_0 : i32, i32, i32
  }
}

module attributes {stable_mosaic.version = 11 : i64} {
  func.func @bbpred_kernel(%arg0: i32, %arg1: memref<2x10x16x512xbf16, #tpu.memory_space<vmem>>, %arg2: memref<3x1536x256xbf16, #tpu.memory_space<vmem>>, %arg3: memref<1x256xf32, #tpu.memory_space<vmem>>, %arg4: memref<256x128xbf16, #tpu.memory_space<vmem>>, %arg5: memref<1x128xf32, #tpu.memory_space<vmem>>, %arg6: memref<2x64x128xbf16, #tpu.memory_space<vmem>>) attributes {dimension_semantics = [#tpu.dimension_semantics<parallel>], iteration_bounds = array<i64: 1>, scalar_prefetch = 0 : i64, scratch_operands = 0 : i64, tpu.core_type = #tpu.core_type<tc>, window_params = [{transform_indices = @transform_0, window_bounds = array<i64: 2, 10, 16, 512>}, {pipeline_mode = #tpu.pipeline_mode<synchronous>, transform_indices = @transform_1, window_bounds = array<i64: 3, 1536, 256>}, {pipeline_mode = #tpu.pipeline_mode<synchronous>, transform_indices = @transform_2, window_bounds = array<i64: 1, 256>}, {pipeline_mode = #tpu.pipeline_mode<synchronous>, transform_indices = @transform_3, window_bounds = array<i64: 256, 128>}, {pipeline_mode = #tpu.pipeline_mode<synchronous>, transform_indices = @transform_4, window_bounds = array<i64: 1, 128>}, {transform_indices = @transform_5, window_bounds = array<i64: 2, 64, 128>}]} {
    %c0 = arith.constant 0 : index
    %c0_0 = arith.constant 0 : index
    %c0_1 = arith.constant 0 : index
    %c0_2 = arith.constant 0 : index
    %0 = vector.load %arg1[%c0, %c0_0, %c0_1, %c0_2] : memref<2x10x16x512xbf16, #tpu.memory_space<vmem>>, vector<2x8x16x512xbf16>
    %1 = vector.shape_cast %0 : vector<2x8x16x512xbf16> to vector<256x512xbf16>
    %c0_3 = arith.constant 0 : index
    %c1 = arith.constant 1 : index
    %c0_4 = arith.constant 0 : index
    %c0_5 = arith.constant 0 : index
    %2 = vector.load %arg1[%c0_3, %c1, %c0_4, %c0_5] : memref<2x10x16x512xbf16, #tpu.memory_space<vmem>>, vector<2x8x16x512xbf16>
    %3 = vector.shape_cast %2 : vector<2x8x16x512xbf16> to vector<256x512xbf16>
    %c0_6 = arith.constant 0 : index
    %c2 = arith.constant 2 : index
    %c0_7 = arith.constant 0 : index
    %c0_8 = arith.constant 0 : index
    %4 = vector.load %arg1[%c0_6, %c2, %c0_7, %c0_8] : memref<2x10x16x512xbf16, #tpu.memory_space<vmem>>, vector<2x8x16x512xbf16>
    %5 = vector.shape_cast %4 : vector<2x8x16x512xbf16> to vector<256x512xbf16>
    %6 = tpu.concatenate %1, %3, %5 in 1 : vector<256x512xbf16>, vector<256x512xbf16>, vector<256x512xbf16> -> vector<256x1536xbf16>
    %c0_9 = arith.constant 0 : index
    %c0_10 = arith.constant 0 : index
    %c0_11 = arith.constant 0 : index
    %7 = vector.load %arg2[%c0_9, %c0_10, %c0_11] : memref<3x1536x256xbf16, #tpu.memory_space<vmem>>, vector<1x1536x256xbf16>
    %8 = vector.shape_cast %7 : vector<1x1536x256xbf16> to vector<1536x256xbf16>
    %cst = arith.constant dense<0.000000e+00> : vector<256x256xf32>
    %9 = tpu.matmul %6, %8, %cst {dimension_numbers = #tpu.dot_dimension_numbers<[1], [0], [0], [1], [0, 0, 1, 1], [], []>} : vector<256x1536xbf16>, vector<1536x256xbf16>, vector<256x256xf32> -> vector<256x256xf32>
    %10 = vector.shape_cast %9 : vector<256x256xf32> to vector<16x16x256xf32>
    %11 = vector.extract_strided_slice %10 {offsets = [0, 0, 0], sizes = [16, 8, 256], strides = [1, 1, 1]} : vector<16x16x256xf32> to vector<16x8x256xf32>
    %c1_12 = arith.constant 1 : index
    %c0_13 = arith.constant 0 : index
    %c0_14 = arith.constant 0 : index
    %12 = vector.load %arg2[%c1_12, %c0_13, %c0_14] : memref<3x1536x256xbf16, #tpu.memory_space<vmem>>, vector<1x1536x256xbf16>
    %13 = vector.shape_cast %12 : vector<1x1536x256xbf16> to vector<1536x256xbf16>
    %cst_15 = arith.constant dense<0.000000e+00> : vector<256x256xf32>
    %14 = tpu.matmul %6, %13, %cst_15 {dimension_numbers = #tpu.dot_dimension_numbers<[1], [0], [0], [1], [0, 0, 1, 1], [], []>} : vector<256x1536xbf16>, vector<1536x256xbf16>, vector<256x256xf32> -> vector<256x256xf32>
    %15 = vector.shape_cast %14 : vector<256x256xf32> to vector<16x16x256xf32>
    %16 = vector.extract_strided_slice %15 {offsets = [0, 1, 0], sizes = [16, 8, 256], strides = [1, 1, 1]} : vector<16x16x256xf32> to vector<16x8x256xf32>
    %17 = arith.addf %11, %16 : vector<16x8x256xf32>
    %c2_16 = arith.constant 2 : index
    %c0_17 = arith.constant 0 : index
    %c0_18 = arith.constant 0 : index
    %18 = vector.load %arg2[%c2_16, %c0_17, %c0_18] : memref<3x1536x256xbf16, #tpu.memory_space<vmem>>, vector<1x1536x256xbf16>
    %19 = vector.shape_cast %18 : vector<1x1536x256xbf16> to vector<1536x256xbf16>
    %cst_19 = arith.constant dense<0.000000e+00> : vector<256x256xf32>
    %20 = tpu.matmul %6, %19, %cst_19 {dimension_numbers = #tpu.dot_dimension_numbers<[1], [0], [0], [1], [0, 0, 1, 1], [], []>} : vector<256x1536xbf16>, vector<1536x256xbf16>, vector<256x256xf32> -> vector<256x256xf32>
    %21 = vector.shape_cast %20 : vector<256x256xf32> to vector<16x16x256xf32>
    %22 = vector.extract_strided_slice %21 {offsets = [0, 2, 0], sizes = [16, 8, 256], strides = [1, 1, 1]} : vector<16x16x256xf32> to vector<16x8x256xf32>
    %23 = arith.addf %17, %22 : vector<16x8x256xf32>
    %24 = vector.shape_cast %23 : vector<16x8x256xf32> to vector<128x256xf32>
    %c0_20 = arith.constant 0 : index
    %c0_21 = arith.constant 0 : index
    %25 = vector.load %arg3[%c0_20, %c0_21] : memref<1x256xf32, #tpu.memory_space<vmem>>, vector<1x256xf32>
    %26 = vector.shape_cast %25 : vector<1x256xf32> to vector<256xf32>
    %27 = vector.shape_cast %26 : vector<256xf32> to vector<1x256xf32>
    %28 = vector.broadcast %27 : vector<1x256xf32> to vector<128x256xf32>
    %29 = arith.addf %24, %28 : vector<128x256xf32>
    %cst_22 = arith.constant 0.000000e+00 : f32
    %30 = vector.broadcast %cst_22 : f32 to vector<128x256xf32>
    %31 = arith.maximumf %29, %30 : vector<128x256xf32>
    %32 = arith.truncf %31 : vector<128x256xf32> to vector<128x256xbf16>
    %c0_23 = arith.constant 0 : index
    %c0_24 = arith.constant 0 : index
    %33 = vector.load %arg4[%c0_23, %c0_24] : memref<256x128xbf16, #tpu.memory_space<vmem>>, vector<256x128xbf16>
    %cst_25 = arith.constant dense<0.000000e+00> : vector<128x128xf32>
    %34 = tpu.matmul %32, %33, %cst_25 {dimension_numbers = #tpu.dot_dimension_numbers<[1], [0], [0], [1], [0, 0, 1, 1], [], []>} : vector<128x256xbf16>, vector<256x128xbf16>, vector<128x128xf32> -> vector<128x128xf32>
    %c0_26 = arith.constant 0 : index
    %c0_27 = arith.constant 0 : index
    %35 = vector.load %arg5[%c0_26, %c0_27] : memref<1x128xf32, #tpu.memory_space<vmem>>, vector<1x128xf32>
    %36 = vector.shape_cast %35 : vector<1x128xf32> to vector<128xf32>
    %37 = vector.shape_cast %36 : vector<128xf32> to vector<1x128xf32>
    %38 = vector.broadcast %37 : vector<1x128xf32> to vector<128x128xf32>
    %39 = arith.addf %34, %38 : vector<128x128xf32>
    %40 = tpu.iota {dimensions = array<i32: 1>} : vector<128x128xi32>
    %c8_i32 = arith.constant 8 : i32
    %41 = vector.broadcast %c8_i32 : i32 to vector<128x128xi32>
    %42 = arith.cmpi sge, %40, %41 : vector<128x128xi32>
    %cst_28 = arith.constant 0.000000e+00 : f32
    %43 = vector.broadcast %cst_28 : f32 to vector<128x128xf32>
    %44 = arith.maximumf %39, %43 : vector<128x128xf32>
    %45 = arith.select %42, %44, %39 : vector<128x128xi1>, vector<128x128xf32>
    %c16_i32 = arith.constant 16 : i32
    %46 = vector.broadcast %c16_i32 : i32 to vector<128x128xi32>
    %47 = arith.cmpi sge, %40, %46 : vector<128x128xi32>
    %c24_i32 = arith.constant 24 : i32
    %48 = vector.broadcast %c24_i32 : i32 to vector<128x128xi32>
    %49 = arith.cmpi slt, %40, %48 : vector<128x128xi32>
    %50 = arith.andi %47, %49 : vector<128x128xi1>
    %cst_29 = arith.constant 1.000000e-03 : f32
    %cst_30 = arith.constant 0.000000e+00 : f32
    %51 = vector.broadcast %cst_29 : f32 to vector<128x128xf32>
    %52 = vector.broadcast %cst_30 : f32 to vector<128x128xf32>
    %53 = arith.select %50, %51, %52 : vector<128x128xi1>, vector<128x128xf32>
    %54 = arith.addf %45, %53 : vector<128x128xf32>
    %55 = vector.shape_cast %54 : vector<128x128xf32> to vector<2x64x128xf32>
    %56 = arith.truncf %55 : vector<2x64x128xf32> to vector<2x64x128xbf16>
    %c0_31 = arith.constant 0 : index
    %c0_32 = arith.constant 0 : index
    %c0_33 = arith.constant 0 : index
    %57 = vector.load %arg6[%c0_31, %c0_32, %c0_33] : memref<2x64x128xbf16, #tpu.memory_space<vmem>>, vector<2x64x128xbf16>
    tpu.vector_store %arg6[%c0_31, %c0_32, %c0_33], %56 {strides = array<i32>} : memref<2x64x128xbf16, #tpu.memory_space<vmem>>, vector<2x64x128xbf16>,
    return
  }
  func.func @transform_0(%arg0: i32) -> (i32, i32, i32, i32) {
    %c0_i32 = arith.constant 0 : i32
    %c0_i32_0 = arith.constant 0 : i32
    %c0_i32_1 = arith.constant 0 : i32
    %c0_i32_2 = arith.constant 0 : i32
    return %arg0, %c0_i32, %c0_i32_0, %c0_i32_1 : i32, i32, i32, i32
  }
  func.func @transform_1(%arg0: i32) -> (i32, i32, i32) {
    %c0_i32 = arith.constant 0 : i32
    %c0_i32_0 = arith.constant 0 : i32
    %c0_i32_1 = arith.constant 0 : i32
    %c0_i32_2 = arith.constant 0 : i32
    return %c0_i32, %c0_i32_0, %c0_i32_1 : i32, i32, i32
  }
  func.func @transform_2(%arg0: i32) -> (i32, i32) {
    %c0_i32 = arith.constant 0 : i32
    %c0_i32_0 = arith.constant 0 : i32
    %c0_i32_1 = arith.constant 0 : i32
    return %c0_i32, %c0_i32_0 : i32, i32
  }
  func.func @transform_3(%arg0: i32) -> (i32, i32) {
    %c0_i32 = arith.constant 0 : i32
    %c0_i32_0 = arith.constant 0 : i32
    %c0_i32_1 = arith.constant 0 : i32
    return %c0_i32, %c0_i32_0 : i32, i32
  }
  func.func @transform_4(%arg0: i32) -> (i32, i32) {
    %c0_i32 = arith.constant 0 : i32
    %c0_i32_0 = arith.constant 0 : i32
    %c0_i32_1 = arith.constant 0 : i32
    return %c0_i32, %c0_i32_0 : i32, i32
  }
  func.func @transform_5(%arg0: i32) -> (i32, i32, i32) {
    %c0_i32 = arith.constant 0 : i32
    %c0_i32_0 = arith.constant 0 : i32
    %c0_i32_1 = arith.constant 0 : i32
    return %arg0, %c0_i32, %c0_i32_0 : i32, i32, i32
  }
}

</mosaic_0001>

<bundles_post_ra>
// kernel: bbpred_forward.1
= control target key start
LH: loop header
LB: loop body
LE: loop exit
PB: predicated region body
PF: predicated region fallthrough
CT: control target
= control target key end

     0   :  { %vm5668_vm0 = vcmask 1046528   ;;  %vm8204_vm1 = vcmask 1045504   ;;  %s15771_s1 = inlined_call_operand.vmem [shape: bf16[3,1536,256], index: 1, kind: input, shape index: {}]   ;;  %s15772_s0 = inlined_call_operand.vmem [shape: bf16[2,10,16,512], index: 0, kind: input, shape index: {}]   ;;  %s15773_s3 = inlined_call_operand.vmem [shape: bf16[256,128], index: 3, kind: input, shape index: {}]   ;;  %s15774_s2 = inlined_call_operand.vmem [shape: f32[1,256], index: 2, kind: input, shape index: {}]   ;;  %s15775_s4 = inlined_call_operand.vmem [shape: f32[1,128], index: 4, kind: input, shape index: {}]   ;;  %s15776_s5 = inlined_call_operand.vmem [shape: bf16[2,64,128], index: 5, kind: output, shape index: {}]  }
   0x1   :  { %v10925_v0 = vld [vmem:[%s15771_s1 + $0x4] ss:$8 sps:$4 sm:$0xff]   ;;  %v10929_v2 = vld [vmem:[%s15771_s1] ss:$8 sps:$4 sm:$0xff]   ;;  %v10931_v4 = vld [vmem:[%s15771_s1 + $0x14] ss:$8 sps:$4 sm:$0xff]  }
   0x2   :  { %v10927_v1 = vld [vmem:[%s15771_s1 + $0x104] ss:$8 sps:$4 sm:$0xff]   ;;  %2327 = vmatprep.subr.bf16.mxu0 %v10925_v0  ;;  %v10930_v3 = vld [vmem:[%s15771_s1 + $0x100] ss:$8 sps:$4 sm:$0xff]   ;;  %v10933_v5 = vld [vmem:[%s15771_s1 + $0x114] ss:$8 sps:$4 sm:$0xff]  }
   0x3   :  { %2488 = vmatprep.subr.bf16.mxu1 %v10927_v1  ;;  %2328 = vmatpush1.bf16.msra.mxu0 %v10929_v2  ;;  %v10935_v6 = vld [vmem:[%s15771_s1 + $0x10] ss:$8 sps:$4 sm:$0xff]   ;;  %v10937_v8 = vld [vmem:[%s15771_s1 + $0x24] ss:$8 sps:$4 sm:$0xff]   ;;  %v10941_v10 = vld [vmem:[%s15771_s1 + $0x20] ss:$8 sps:$4 sm:$0xff]  }
   0x4   :  { %2489 = vmatpush1.bf16.msra.mxu1 %v10930_v3  ;;  %2329 = vmatprep.subr.bf16.mxu0 %v10931_v4  ;;  %v10936_v7 = vld [vmem:[%s15771_s1 + $0x110] ss:$8 sps:$4 sm:$0xff]   ;;  %v10939_v9 = vld [vmem:[%s15771_s1 + $0x124] ss:$8 sps:$4 sm:$0xff]   ;;  %v10942_v11 = vld [vmem:[%s15771_s1 + $0x120] ss:$8 sps:$4 sm:$0xff]  }
   0x5   :  { %2490 = vmatprep.subr.bf16.mxu1 %v10933_v5  ;;  %v10943_v12 = vld [vmem:[%s15771_s1 + $0x34] ss:$8 sps:$4 sm:$0xff]   ;;  %v10947_v14 = vld [vmem:[%s15771_s1 + $0x30] ss:$8 sps:$4 sm:$0xff]   ;;  %v10949_v16 = vld [vmem:[%s15771_s1 + $0x44] ss:$8 sps:$4 sm:$0xff]  }
   0x6   :  { %v10945_v13 = vld [vmem:[%s15771_s1 + $0x134] ss:$8 sps:$4 sm:$0xff]   ;;  %v10948_v15 = vld [vmem:[%s15771_s1 + $0x130] ss:$8 sps:$4 sm:$0xff]   ;;  %v10951_v17 = vld [vmem:[%s15771_s1 + $0x144] ss:$8 sps:$4 sm:$0xff]  }
   0x7   :  { %2330 = vmatpush1.bf16.msra.mxu0 %v10935_v6  ;;  %v10953_v18 = vld [vmem:[%s15771_s1 + $0x40] ss:$8 sps:$4 sm:$0xff]   ;;  %v10955_v20 = vld [vmem:[%s15771_s1 + $0x54] ss:$8 sps:$4 sm:$0xff]   ;;  %v10959_v22 = vld [vmem:[%s15771_s1 + $0x50] ss:$8 sps:$4 sm:$0xff]  }
   0x8   :  { %2491 = vmatpush1.bf16.msra.mxu1 %v10936_v7  ;;  %2331 = vmatprep.subr.bf16.mxu0 %v10937_v8  ;;  %v10954_v19 = vld [vmem:[%s15771_s1 + $0x140] ss:$8 sps:$4 sm:$0xff]   ;;  %v10957_v21 = vld [vmem:[%s15771_s1 + $0x154] ss:$8 sps:$4 sm:$0xff]   ;;  %v10960_v23 = vld [vmem:[%s15771_s1 + $0x150] ss:$8 sps:$4 sm:$0xff]  }
   0x9   :  { %2492 = vmatprep.subr.bf16.mxu1 %v10939_v9  ;;  %v10961_v24 = vld [vmem:[%s15771_s1 + $0x64] ss:$8 sps:$4 sm:$0xff]   ;;  %v10965_v26 = vld [vmem:[%s15771_s1 + $0x60] ss:$8 sps:$4 sm:$0xff]   ;;  %v10967_v28 = vld [vmem:[%s15771_s1 + $0x74] ss:$8 sps:$4 sm:$0xff]  }
   0xa   :  { %v10963_v25 = vld [vmem:[%s15771_s1 + $0x164] ss:$8 sps:$4 sm:$0xff]   ;;  %v10966_v27 = vld [vmem:[%s15771_s1 + $0x160] ss:$8 sps:$4 sm:$0xff]   ;;  %v10969_v29 = vld [vmem:[%s15771_s1 + $0x174] ss:$8 sps:$4 sm:$0xff]  }
   0xb   :  { %2332 = vmatpush1.bf16.msra.mxu0 %v10941_v10  ;;  %v10971_v30 = vld [vmem:[%s15771_s1 + $0x70] ss:$8 sps:$4 sm:$0xff]   ;;  %v10973_v32 = vld [vmem:[%s15771_s1 + $0x84] ss:$8 sps:$4 sm:$0xff]   ;;  %v10977_v34 = vld [vmem:[%s15771_s1 + $0x80] ss:$8 sps:$4 sm:$0xff]  }
   0xc   :  { %2493 = vmatpush1.bf16.msra.mxu1 %v10942_v11  ;;  %2333 = vmatprep.subr.bf16.mxu0 %v10943_v12  ;;  %v10972_v31 = vld [vmem:[%s15771_s1 + $0x170] ss:$8 sps:$4 sm:$0xff]   ;;  %v10975_v33 = vld [vmem:[%s15771_s1 + $0x184] ss:$8 sps:$4 sm:$0xff]   ;;  %v10978_v35 = vld [vmem:[%s15771_s1 + $0x180] ss:$8 sps:$4 sm:$0xff]  }
   0xd   :  { %2494 = vmatprep.subr.bf16.mxu1 %v10945_v13  ;;  %v10979_v36 = vld [vmem:[%s15771_s1 + $0x94] ss:$8 sps:$4 sm:$0xff]   ;;  %v10983_v38 = vld [vmem:[%s15771_s1 + $0x90] ss:$8 sps:$4 sm:$0xff]   ;;  %v10985_v40 = vld [vmem:[%s15771_s1 + $0xa4] ss:$8 sps:$4 sm:$0xff]  }
   0xe   :  { %v10981_v37 = vld [vmem:[%s15771_s1 + $0x194] ss:$8 sps:$4 sm:$0xff]   ;;  %v10984_v39 = vld [vmem:[%s15771_s1 + $0x190] ss:$8 sps:$4 sm:$0xff]   ;;  %v10987_v41 = vld [vmem:[%s15771_s1 + $0x1a4] ss:$8 sps:$4 sm:$0xff]  }
   0xf   :  { %2334 = vmatpush1.bf16.msra.mxu0 %v10947_v14  ;;  %v10989_v42 = vld [vmem:[%s15771_s1 + $0xa0] ss:$8 sps:$4 sm:$0xff]   ;;  %v10991_v44 = vld [vmem:[%s15771_s1 + $0xb4] ss:$8 sps:$4 sm:$0xff]   ;;  %v10995_v46 = vld [vmem:[%s15771_s1 + $0xb0] ss:$8 sps:$4 sm:$0xff]  }
  0x10   :  { %2495 = vmatpush1.bf16.msra.mxu1 %v10948_v15  ;;  %2335 = vmatprep.subr.bf16.mxu0 %v10949_v16  ;;  %v10990_v43 = vld [vmem:[%s15771_s1 + $0x1a0] ss:$8 sps:$4 sm:$0xff]   ;;  %v10993_v45 = vld [vmem:[%s15771_s1 + $0x1b4] ss:$8 sps:$4 sm:$0xff]   ;;  %v10996_v47 = vld [vmem:[%s15771_s1 + $0x1b0] ss:$8 sps:$4 sm:$0xff]  }
  0x11   :  { %2496 = vmatprep.subr.bf16.mxu1 %v10951_v17  ;;  %v11021_v48 = vld [vmem:[%s15772_s0 + $0x4] ss:$16 sps:$4 sm:$0xff]   ;;  %v11023_v50 = vld [vmem:[%s15772_s0 + $0xc] ss:$16 sps:$4 sm:$0xff]   ;;  %v11001_v52 = vld [vmem:[%s15771_s1 + $0xc0] ss:$8 sps:$4 sm:$0xff]  }
  0x12   :  { %v10997_v49 = vld [vmem:[%s15771_s1 + $0xc4] ss:$8 sps:$4 sm:$0xff]   ;;  %2359 = vmatprep.mubr.bf16.mxu0 %v11021_v48  ;;  %2520 = vmatprep.mubr.bf16.mxu1 %v11023_v50  ;;  %v11002_v53 = vld [vmem:[%s15771_s1 + $0x1c0] ss:$8 sps:$4 sm:$0xff]   ;;  %v11003_v54 = vld [vmem:[%s15771_s1 + $0xd4] ss:$8 sps:$4 sm:$0xff]  }
  0x13   :  { %2336 = vmatpush1.bf16.msra.mxu0 %v10953_v18  ;;  %v10999_v51 = vld [vmem:[%s15771_s1 + $0x1c4] ss:$8 sps:$4 sm:$0xff]   ;;  %v11005_v55 = vld [vmem:[%s15771_s1 + $0x1d4] ss:$8 sps:$4 sm:$0xff]   ;;  %v11007_v56 = vld [vmem:[%s15771_s1 + $0xd0] ss:$8 sps:$4 sm:$0xff]  }
  0x14   :  { %2497 = vmatpush1.bf16.msra.mxu1 %v10954_v19  ;;  %2337 = vmatprep.subr.bf16.mxu0 %v10955_v20  ;;  %v11008_v57 = vld [vmem:[%s15771_s1 + $0x1d0] ss:$8 sps:$4 sm:$0xff]   ;;  %v11009_v58 = vld [vmem:[%s15771_s1 + $0xe4] ss:$8 sps:$4 sm:$0xff]   ;;  %v11013_v60 = vld [vmem:[%s15771_s1 + $0xe0] ss:$8 sps:$4 sm:$0xff]  }
  0x15   :  { %2498 = vmatprep.subr.bf16.mxu1 %v10957_v21  ;;  %v11011_v59 = vld [vmem:[%s15771_s1 + $0x1e4] ss:$8 sps:$4 sm:$0xff]   ;;  %v11014_v61 = vld [vmem:[%s15771_s1 + $0x1e0] ss:$8 sps:$4 sm:$0xff]   ;;  %v11015_v62 = vld [vmem:[%s15771_s1 + $0xf4] ss:$8 sps:$4 sm:$0xff]  }
  0x16   :  { %v11017_v63 = vld [vmem:[%s15771_s1 + $0x1f4] ss:$8 sps:$4 sm:$0xff]   ;;  %v11019_v0 = vld [vmem:[%s15771_s1 + $0xf0] ss:$8 sps:$4 sm:$0xff]   ;;  %v11029_v2 = vld [vmem:[%s15771_s1 + $0x204] ss:$8 sps:$4 sm:$0xff]  }
  0x17   :  { %2338 = vmatpush1.bf16.msra.mxu0 %v10959_v22  ;;  %v11020_v1 = vld [vmem:[%s15771_s1 + $0x1f0] ss:$8 sps:$4 sm:$0xff]   ;;  %v11032_v3 = vld [vmem:[%s15771_s1 + $0x304] ss:$8 sps:$4 sm:$0xff]   ;;  %v11027_v6 = vld [vmem:[%s15771_s1 + $0x200] ss:$8 sps:$4 sm:$0xff]  }
  0x18   :  { %2499 = vmatpush1.bf16.msra.mxu1 %v10960_v23  ;;  %2339 = vmatprep.subr.bf16.mxu0 %v10961_v24  ;;  %v11025_v4 = vld [vmem:[%s15772_s0] ss:$16 sps:$4 sm:$0xff]   ;;  %v11026_v5 = vld [vmem:[%s15772_s0 + $0x8] ss:$16 sps:$4 sm:$0xff]   ;;  %v12417_v8 = vld [vmem:[%s15772_s0 + $0x24] ss:$16 sps:$4 sm:$0xff]  }
  0x19   :  { %2500 = vmatprep.subr.bf16.mxu1 %v10963_v25  ;;  %v11030_v7 = vld [vmem:[%s15771_s1 + $0x300] ss:$8 sps:$4 sm:$0xff]   ;;  %v12422_v9 = vld [vmem:[%s15772_s0 + $0x2c] ss:$16 sps:$4 sm:$0xff]   ;;  %v11039_v12 = vld [vmem:[%s15771_s1 + $0x210] ss:$8 sps:$4 sm:$0xff]  }
  0x1a   :  { %v11041_v10 = vld [vmem:[%s15771_s1 + $0x214] ss:$8 sps:$4 sm:$0xff]   ;;  %v11042_v13 = vld [vmem:[%s15771_s1 + $0x310] ss:$8 sps:$4 sm:$0xff]   ;;  %v11053_v14 = vld [vmem:[%s15771_s1 + $0x224] ss:$8 sps:$4 sm:$0xff]  }
  0x1b   :  { %2340 = vmatpush1.bf16.msra.mxu0 %v10965_v26  ;;  %v11044_v11 = vld [vmem:[%s15771_s1 + $0x314] ss:$8 sps:$4 sm:$0xff]   ;;  %v11056_v15 = vld [vmem:[%s15771_s1 + $0x324] ss:$8 sps:$4 sm:$0xff]   ;;  %v12447_v16 = vld [vmem:[%s15772_s0 + $0x20] ss:$16 sps:$4 sm:$0xff]  }
  0x1c   :  { %2501 = vmatpush1.bf16.msra.mxu1 %v10966_v27  ;;  %2341 = vmatprep.subr.bf16.mxu0 %v10967_v28  ;;  %v12452_v17 = vld [vmem:[%s15772_s0 + $0x28] ss:$16 sps:$4 sm:$0xff]   ;;  %v12457_v18 = vld [vmem:[%s15772_s0 + $0x44] ss:$16 sps:$4 sm:$0xff]   ;;  %v12462_v19 = vld [vmem:[%s15772_s0 + $0x4c] ss:$16 sps:$4 sm:$0xff]  }
  0x1d   :  { %2502 = vmatprep.subr.bf16.mxu1 %v10969_v29  ;;  %v11051_v20 = vld [vmem:[%s15771_s1 + $0x220] ss:$8 sps:$4 sm:$0xff]   ;;  %v11065_v22 = vld [vmem:[%s15771_s1 + $0x234] ss:$8 sps:$4 sm:$0xff]   ;;  %v11063_v24 = vld [vmem:[%s15771_s1 + $0x230] ss:$8 sps:$4 sm:$0xff]  }
  0x1e   :  { %v11054_v21 = vld [vmem:[%s15771_s1 + $0x320] ss:$8 sps:$4 sm:$0xff]   ;;  %v11068_v23 = vld [vmem:[%s15771_s1 + $0x334] ss:$8 sps:$4 sm:$0xff]   ;;  %v11066_v27 = vld [vmem:[%s15771_s1 + $0x330] ss:$8 sps:$4 sm:$0xff]  }
  0x1f   :  { %2342 = vmatpush1.bf16.msra.mxu0 %v10971_v30  ;;  %v12486_v25 = vld [vmem:[%s15772_s0 + $0x40] ss:$16 sps:$4 sm:$0xff]   ;;  %v12491_v26 = vld [vmem:[%s15772_s0 + $0x48] ss:$16 sps:$4 sm:$0xff]   ;;  %v11077_v28 = vld [vmem:[%s15771_s1 + $0x244] ss:$8 sps:$4 sm:$0xff]  }
  0x20   :  { %2503 = vmatpush1.bf16.msra.mxu1 %v10972_v31  ;;  %2343 = vmatprep.subr.bf16.mxu0 %v10973_v32  ;;  %v11080_v29 = vld [vmem:[%s15771_s1 + $0x344] ss:$8 sps:$4 sm:$0xff]   ;;  %v11075_v32 = vld [vmem:[%s15771_s1 + $0x240] ss:$8 sps:$4 sm:$0xff]   ;;  %v11111_v48 = vld [vmem:[%s15771_s1 + $0x270] ss:$8 sps:$4 sm:$0xff]  }
  0x21   :  { %2504 = vmatprep.subr.bf16.mxu1 %v10975_v33  ;;  %v12505_v30 = vld [vmem:[%s15772_s0 + $0x64] ss:$16 sps:$4 sm:$0xff]   ;;  %v12510_v31 = vld [vmem:[%s15772_s0 + $0x6c] ss:$16 sps:$4 sm:$0xff]   ;;  %v11078_v33 = vld [vmem:[%s15771_s1 + $0x340] ss:$8 sps:$4 sm:$0xff]  }
  0x22   :  { %v12587_v50 = vld [vmem:[%s15772_s0 + $0x88] ss:$16 sps:$4 sm:$0xff]  }
  0x23   :  { %2344 = vmatpush1.bf16.msra.mxu0 %v10977_v34  ;;  %v11089_v34 = vld [vmem:[%s15771_s1 + $0x254] ss:$8 sps:$4 sm:$0xff]  }
  0x24   :  { %2505 = vmatpush1.bf16.msra.mxu1 %v10978_v35  ;;  %2345 = vmatprep.subr.bf16.mxu0 %v10979_v36  ;;  %v11092_v35 = vld [vmem:[%s15771_s1 + $0x354] ss:$8 sps:$4 sm:$0xff]   ;;  %v11087_v36 = vld [vmem:[%s15771_s1 + $0x250] ss:$8 sps:$4 sm:$0xff]  }
  0x25   :  { %2506 = vmatprep.subr.bf16.mxu1 %v10981_v37  ;;  %v11090_v37 = vld [vmem:[%s15771_s1 + $0x350] ss:$8 sps:$4 sm:$0xff]  }
  0x27   :  { %2346 = vmatpush1.bf16.msra.mxu0 %v10983_v38  ;;  %v12537_v38 = vld [vmem:[%s15772_s0 + $0x60] ss:$16 sps:$4 sm:$0xff]  }
  0x28   :  { %2507 = vmatpush1.bf16.msra.mxu1 %v10984_v39  ;;  %2347 = vmatprep.subr.bf16.mxu0 %v10985_v40  ;;  %v11101_v39 = vld [vmem:[%s15771_s1 + $0x264] ss:$8 sps:$4 sm:$0xff]  }
  0x29   :  { %2508 = vmatprep.subr.bf16.mxu1 %v10987_v41  ;;  %v11104_v40 = vld [vmem:[%s15771_s1 + $0x364] ss:$8 sps:$4 sm:$0xff]   ;;  %v12548_v41 = vld [vmem:[%s15772_s0 + $0x68] ss:$16 sps:$4 sm:$0xff]  }
  0x2b   :  { %2348 = vmatpush1.bf16.msra.mxu0 %v10989_v42  ;;  %v12553_v42 = vld [vmem:[%s15772_s0 + $0x84] ss:$16 sps:$4 sm:$0xff]  }
  0x2c   :  { %2509 = vmatpush1.bf16.msra.mxu1 %v10990_v43  ;;  %2349 = vmatprep.subr.bf16.mxu0 %v10991_v44  ;;  %v12558_v43 = vld [vmem:[%s15772_s0 + $0x8c] ss:$16 sps:$4 sm:$0xff]   ;;  %v11099_v44 = vld [vmem:[%s15771_s1 + $0x260] ss:$8 sps:$4 sm:$0xff]  }
  0x2d   :  { %2510 = vmatprep.subr.bf16.mxu1 %v10993_v45  ;;  %v11102_v45 = vld [vmem:[%s15771_s1 + $0x360] ss:$8 sps:$4 sm:$0xff]  }
  0x2f   :  { %2350 = vmatpush1.bf16.msra.mxu0 %v10995_v46  ;;  %v11113_v46 = vld [vmem:[%s15771_s1 + $0x274] ss:$8 sps:$4 sm:$0xff]  }
  0x30   :  { %2511 = vmatpush1.bf16.msra.mxu1 %v10996_v47  ;;  %2351 = vmatprep.subr.bf16.mxu0 %v10997_v49  ;;  %v11116_v47 = vld [vmem:[%s15771_s1 + $0x374] ss:$8 sps:$4 sm:$0xff]   ;;  %v12582_v49 = vld [vmem:[%s15772_s0 + $0x80] ss:$16 sps:$4 sm:$0xff]  }
  0x31   :  { %2512 = vmatprep.subr.bf16.mxu1 %v10999_v51  ;;  %v11114_v51 = vld [vmem:[%s15771_s1 + $0x370] ss:$8 sps:$4 sm:$0xff]  }
  0x33   :  { %2352 = vmatpush1.bf16.msra.mxu0 %v11001_v52  ;;  %v11125_v52 = vld [vmem:[%s15771_s1 + $0x284] ss:$8 sps:$4 sm:$0xff]  }
  0x34   :  { %2513 = vmatpush1.bf16.msra.mxu1 %v11002_v53  ;;  %2353 = vmatprep.subr.bf16.mxu0 %v11003_v54  ;;  %v11128_v53 = vld [vmem:[%s15771_s1 + $0x384] ss:$8 sps:$4 sm:$0xff]  }
  0x35   :  { %2514 = vmatprep.subr.bf16.mxu1 %v11005_v55  ;;  %v12601_v54 = vld [vmem:[%s15772_s0 + $0xa4] ss:$16 sps:$4 sm:$0xff]   ;;  %v12606_v55 = vld [vmem:[%s15772_s0 + $0xac] ss:$16 sps:$4 sm:$0xff]  }
  0x37   :  { %2354 = vmatpush1.bf16.msra.mxu0 %v11007_v56  ;;  %v11123_v56 = vld [vmem:[%s15771_s1 + $0x280] ss:$8 sps:$4 sm:$0xff]  }
  0x38   :  { %2515 = vmatpush1.bf16.msra.mxu1 %v11008_v57  ;;  %2355 = vmatprep.subr.bf16.mxu0 %v11009_v58  ;;  %v11126_v57 = vld [vmem:[%s15771_s1 + $0x380] ss:$8 sps:$4 sm:$0xff]   ;;  %v11137_v58 = vld [vmem:[%s15771_s1 + $0x294] ss:$8 sps:$4 sm:$0xff]  }
  0x39   :  { %2516 = vmatprep.subr.bf16.mxu1 %v11011_v59  ;;  %v11140_v59 = vld [vmem:[%s15771_s1 + $0x394] ss:$8 sps:$4 sm:$0xff]  }
  0x3b   :  { %2356 = vmatpush1.bf16.msra.mxu0 %v11013_v60  ;;  %v11135_v60 = vld [vmem:[%s15771_s1 + $0x290] ss:$8 sps:$4 sm:$0xff]  }
  0x3c   :  { %2517 = vmatpush1.bf16.msra.mxu1 %v11014_v61  ;;  %2357 = vmatprep.subr.bf16.mxu0 %v11015_v62  ;;  %v11138_v61 = vld [vmem:[%s15771_s1 + $0x390] ss:$8 sps:$4 sm:$0xff]  }
  0x3d   :  { %2518 = vmatprep.subr.bf16.mxu1 %v11017_v63  ;;  %v12633_v62 = vld [vmem:[%s15772_s0 + $0xa0] ss:$16 sps:$4 sm:$0xff]   ;;  %v11149_v63 = vld [vmem:[%s15771_s1 + $0x2a4] ss:$8 sps:$4 sm:$0xff]  }
  0x3f   :  { %2358 = vmatpush1.bf16.msra.mxu0 %v11019_v0  ;;  %v11152_v0 = vld [vmem:[%s15771_s1 + $0x3a4] ss:$8 sps:$4 sm:$0xff]  }
  0x40   :  { %2519 = vmatpush1.bf16.msra.mxu1 %v11020_v1  ;;  %2649 = vmatprep.subr.bf16.mxu0 %v11029_v2  ;;  %v12644_v1 = vld [vmem:[%s15772_s0 + $0xa8] ss:$16 sps:$4 sm:$0xff]   ;;  %v12649_v2 = vld [vmem:[%s15772_s0 + $0xc4] ss:$16 sps:$4 sm:$0xff]  }
  0x41   :  { %2810 = vmatprep.subr.bf16.mxu1 %v11032_v3  ;;  %v12654_v3 = vld [vmem:[%s15772_s0 + $0xcc] ss:$16 sps:$4 sm:$0xff]  }
  0x42   :  { %2360 = vmatmul.mubr.bf16.vlgmr.msra.gmra.mrb[0].mxu0 %v11025_v4  ;;  %v11147_v4 = vld [vmem:[%s15771_s1 + $0x2a0] ss:$8 sps:$4 sm:$0xff]  }
  0x43   :  { %2521 = vmatmul.mubr.bf16.vlgmr.msra.gmra.mrb[0].mxu1 %v11026_v5  ;;  %2650 = vmatpush1.bf16.msra.mxu0 %v11027_v6  ;;  %v11150_v5 = vld [vmem:[%s15771_s1 + $0x3a0] ss:$8 sps:$4 sm:$0xff]   ;;  %v11161_v6 = vld [vmem:[%s15771_s1 + $0x2b4] ss:$8 sps:$4 sm:$0xff]  }
  0x44   :  { %2811 = vmatpush1.bf16.msra.mxu1 %v11030_v7  ;;  %2367 = vmatprep.mubr.bf16.mxu0 %v12417_v8  ;;  %v11164_v7 = vld [vmem:[%s15771_s1 + $0x3b4] ss:$8 sps:$4 sm:$0xff]  }
  0x45   :  { %2528 = vmatprep.mubr.bf16.mxu1 %v12422_v9  ;;  %2651 = vmatprep.subr.bf16.mxu0 %v11041_v10  ;;  %v11159_v10 = vld [vmem:[%s15771_s1 + $0x2b0] ss:$8 sps:$4 sm:$0xff]  }
  0x46   :  { %2812 = vmatprep.subr.bf16.mxu1 %v11044_v11  ;;  %v12678_v11 = vld [vmem:[%s15772_s0 + $0xc0] ss:$16 sps:$4 sm:$0xff]  }
  0x47   :  { %2652 = vmatpush1.bf16.msra.mxu0 %v11039_v12  ;;  %v12683_v12 = vld [vmem:[%s15772_s0 + $0xc8] ss:$16 sps:$4 sm:$0xff]  }
  0x48   :  { %2813 = vmatpush1.bf16.msra.mxu1 %v11042_v13  ;;  %2653 = vmatprep.subr.bf16.mxu0 %v11053_v14  ;;  %v11162_v13 = vld [vmem:[%s15771_s1 + $0x3b0] ss:$8 sps:$4 sm:$0xff]   ;;  %v12691_v14 = vld [vmem:[%s15772_s0 + $0xe4] ss:$16 sps:$4 sm:$0xff]  }
  0x49   :  { %2814 = vmatprep.subr.bf16.mxu1 %v11056_v15  ;;  %v11173_v15 = vld [vmem:[%s15771_s1 + $0x2c4] ss:$8 sps:$4 sm:$0xff]  }
  0x4a   :  { %2368 = vmatmul.mubr.bf16.gmra.mrb[4].mxu0 %v12447_v16 }
  0x4b   :  { %2529 = vmatmul.mubr.bf16.gmra.mrb[4].mxu1 %v12452_v17  ;;  %2375 = vmatprep.mubr.bf16.mxu0 %v12457_v18 }
  0x4c   :  { %2536 = vmatprep.mubr.bf16.mxu1 %v12462_v19  ;;  %2654 = vmatpush1.bf16.msra.mxu0 %v11051_v20  ;;  %v12699_v20 = vld [vmem:[%s15772_s0 + $0xec] ss:$16 sps:$4 sm:$0xff]  }
  0x4d   :  { %2815 = vmatpush1.bf16.msra.mxu1 %v11054_v21  ;;  %2655 = vmatprep.subr.bf16.mxu0 %v11065_v22  ;;  %v11176_v21 = vld [vmem:[%s15771_s1 + $0x3c4] ss:$8 sps:$4 sm:$0xff]   ;;  %v11171_v22 = vld [vmem:[%s15771_s1 + $0x2c0] ss:$8 sps:$4 sm:$0xff]  }
  0x4e   :  { %2816 = vmatprep.subr.bf16.mxu1 %v11068_v23  ;;  %v11174_v23 = vld [vmem:[%s15771_s1 + $0x3c0] ss:$8 sps:$4 sm:$0xff]  }
  0x50   :  { %2656 = vmatpush1.bf16.msra.mxu0 %v11063_v24  ;;  %v11183_v24 = vld [vmem:[%s15771_s1 + $0x2d0] ss:$8 sps:$4 sm:$0xff]  }
  0x51   :  { %2817 = vmatpush1.bf16.msra.mxu1 %v11066_v27  ;;  %2657 = vmatprep.subr.bf16.mxu0 %v11077_v28  ;;  %v11185_v27 = vld [vmem:[%s15771_s1 + $0x2d4] ss:$8 sps:$4 sm:$0xff]   ;;  %v11186_v28 = vld [vmem:[%s15771_s1 + $0x3d0] ss:$8 sps:$4 sm:$0xff]  }
  0x52   :  { %2818 = vmatprep.subr.bf16.mxu1 %v11080_v29  ;;  %2376 = vmatmul.mubr.bf16.gmra.mrb[8].mxu0 %v12486_v25  ;;  %v11188_v29 = vld [vmem:[%s15771_s1 + $0x3d4] ss:$8 sps:$4 sm:$0xff]  }
  0x53   :  { %2537 = vmatmul.mubr.bf16.gmra.mrb[8].mxu1 %v12491_v26  ;;  %2383 = vmatprep.mubr.bf16.mxu0 %v12505_v30 }
  0x54   :  { %2544 = vmatprep.mubr.bf16.mxu1 %v12510_v31  ;;  %2658 = vmatpush1.bf16.msra.mxu0 %v11075_v32  ;;  %v12729_v32 = vld [vmem:[%s15772_s0 + $0xe0] ss:$16 sps:$4 sm:$0xff]  }
  0x55   :  { %2819 = vmatpush1.bf16.msra.mxu1 %v11078_v33  ;;  %2659 = vmatprep.subr.bf16.mxu0 %v11089_v34  ;;  %v12734_v33 = vld [vmem:[%s15772_s0 + $0xe8] ss:$16 sps:$4 sm:$0xff]   ;;  %v11117_v34 = vld [vmem:[%s15772_s0 + $0x144] ss:$16 sps:$4 sm:$0xff]  }
  0x56   :  { %2820 = vmatprep.subr.bf16.mxu1 %v11092_v35  ;;  %v11119_v35 = vld [vmem:[%s15772_s0 + $0x14c] ss:$16 sps:$4 sm:$0xff]  }
  0x58   :  { %2660 = vmatpush1.bf16.msra.mxu0 %v11087_v36  ;;  %v11195_v36 = vld [vmem:[%s15771_s1 + $0x2e0] ss:$8 sps:$4 sm:$0xff]  }
  0x59   :  { %2821 = vmatpush1.bf16.msra.mxu1 %v11090_v37  ;;  %2661 = vmatprep.subr.bf16.mxu0 %v11101_v39  ;;  %v11197_v37 = vld [vmem:[%s15771_s1 + $0x2e4] ss:$8 sps:$4 sm:$0xff]   ;;  %v11198_v39 = vld [vmem:[%s15771_s1 + $0x3e0] ss:$8 sps:$4 sm:$0xff]  }
  0x5a   :  { %2822 = vmatprep.subr.bf16.mxu1 %v11104_v40  ;;  %2384 = vmatmul.mubr.bf16.gmra.mrb[12].mxu0 %v12537_v38  ;;  %v11200_v40 = vld [vmem:[%s15771_s1 + $0x3e4] ss:$8 sps:$4 sm:$0xff]  }
  0x5b   :  { %2545 = vmatmul.mubr.bf16.gmra.mrb[12].mxu1 %v12548_v41  ;;  %2391 = vmatprep.mubr.bf16.mxu0 %v12553_v42 }
  0x5c   :  { %2552 = vmatprep.mubr.bf16.mxu1 %v12558_v43  ;;  %2662 = vmatpush1.bf16.msra.mxu0 %v11099_v44  ;;  %v11121_v44 = vld [vmem:[%s15772_s0 + $0x140] ss:$16 sps:$4 sm:$0xff]  }
  0x5d   :  { %2823 = vmatpush1.bf16.msra.mxu1 %v11102_v45  ;;  %2663 = vmatprep.subr.bf16.mxu0 %v11113_v46  ;;  %v11122_v45 = vld [vmem:[%s15772_s0 + $0x148] ss:$16 sps:$4 sm:$0xff]   ;;  %v12765_v46 = vld [vmem:[%s15772_s0 + $0x164] ss:$16 sps:$4 sm:$0xff]  }
  0x5e   :  { %2824 = vmatprep.subr.bf16.mxu1 %v11116_v47  ;;  %v11207_v47 = vld [vmem:[%s15771_s1 + $0x2f0] ss:$8 sps:$4 sm:$0xff]  }
  0x60   :  { %2664 = vmatpush1.bf16.msra.mxu0 %v11111_v48  ;;  %v11209_v48 = vld [vmem:[%s15771_s1 + $0x2f4] ss:$8 sps:$4 sm:$0xff]  }
  0x61   :  { %2825 = vmatpush1.bf16.msra.mxu1 %v11114_v51  ;;  %2665 = vmatprep.subr.bf16.mxu0 %v11125_v52  ;;  %v11210_v51 = vld [vmem:[%s15771_s1 + $0x3f0] ss:$8 sps:$4 sm:$0xff]   ;;  %v11212_v52 = vld [vmem:[%s15771_s1 + $0x3f4] ss:$8 sps:$4 sm:$0xff]  }
  0x62   :  { %2826 = vmatprep.subr.bf16.mxu1 %v11128_v53  ;;  %2392 = vmatmul.mubr.bf16.gmra.mrb[16].mxu0 %v12582_v49  ;;  %v12782_v53 = vld [vmem:[%s15772_s0 + $0x16c] ss:$16 sps:$4 sm:$0xff]  }
  0x63   :  { %2553 = vmatmul.mubr.bf16.gmra.mrb[16].mxu1 %v12587_v50  ;;  %2399 = vmatprep.mubr.bf16.mxu0 %v12601_v54 }
  0x64   :  { %2560 = vmatprep.mubr.bf16.mxu1 %v12606_v55  ;;  %2666 = vmatpush1.bf16.msra.mxu0 %v11123_v56  ;;  %v11215_v56 = vld [vmem:[%s15771_s1 + $0x404] ss:$8 sps:$4 sm:$0xff]  }
  0x65   :  { %2827 = vmatpush1.bf16.msra.mxu1 %v11126_v57  ;;  %2667 = vmatprep.subr.bf16.mxu0 %v11137_v58  ;;  %v11218_v57 = vld [vmem:[%s15771_s1 + $0x504] ss:$8 sps:$4 sm:$0xff]   ;;  %v12795_v58 = vld [vmem:[%s15772_s0 + $0x160] ss:$16 sps:$4 sm:$0xff]  }
  0x66   :  { %2828 = vmatprep.subr.bf16.mxu1 %v11140_v59  ;;  %v12800_v59 = vld [vmem:[%s15772_s0 + $0x168] ss:$16 sps:$4 sm:$0xff]  }
  0x68   :  { %2668 = vmatpush1.bf16.msra.mxu0 %v11135_v60  ;;  %v12805_v60 = vld [vmem:[%s15772_s0 + $0x184] ss:$16 sps:$4 sm:$0xff]  }
  0x69   :  { %2829 = vmatpush1.bf16.msra.mxu1 %v11138_v61  ;;  %2669 = vmatprep.subr.bf16.mxu0 %v11149_v63  ;;  %v12810_v61 = vld [vmem:[%s15772_s0 + $0x18c] ss:$16 sps:$4 sm:$0xff]   ;;  %v12819_v63 = vld [vmem:[%s15772_s0 + $0x180] ss:$16 sps:$4 sm:$0xff]  }
  0x6a   :  { %2830 = vmatprep.subr.bf16.mxu1 %v11152_v0  ;;  %2400 = vmatmul.mubr.bf16.gmra.mrb[20].mxu0 %v12633_v62  ;;  %v12824_v0 = vld [vmem:[%s15772_s0 + $0x188] ss:$16 sps:$4 sm:$0xff]  }
  0x6b   :  { %2561 = vmatmul.mubr.bf16.gmra.mrb[20].mxu1 %v12644_v1  ;;  %2407 = vmatprep.mubr.bf16.mxu0 %v12649_v2 }
  0x6c   :  { %2568 = vmatprep.mubr.bf16.mxu1 %v12654_v3  ;;  %2670 = vmatpush1.bf16.msra.mxu0 %v11147_v4  ;;  %v12829_v4 = vld [vmem:[%s15772_s0 + $0x1a4] ss:$16 sps:$4 sm:$0xff]  }
  0x6d   :  { %2831 = vmatpush1.bf16.msra.mxu1 %v11150_v5  ;;  %2671 = vmatprep.subr.bf16.mxu0 %v11161_v6  ;;  %v12834_v5 = vld [vmem:[%s15772_s0 + $0x1ac] ss:$16 sps:$4 sm:$0xff]   ;;  %v12843_v6 = vld [vmem:[%s15772_s0 + $0x1a0] ss:$16 sps:$4 sm:$0xff]  }
  0x6e   :  { %2832 = vmatprep.subr.bf16.mxu1 %v11164_v7  ;;  %v12848_v7 = vld [vmem:[%s15772_s0 + $0x1a8] ss:$16 sps:$4 sm:$0xff]  }
  0x70   :  { %2672 = vmatpush1.bf16.msra.mxu0 %v11159_v10  ;;  %v12853_v10 = vld [vmem:[%s15772_s0 + $0x1c4] ss:$16 sps:$4 sm:$0xff]  }
  0x71   :  { %2833 = vmatpush1.bf16.msra.mxu1 %v11162_v13  ;;  %2673 = vmatprep.subr.bf16.mxu0 %v11173_v15  ;;  %v12858_v13 = vld [vmem:[%s15772_s0 + $0x1cc] ss:$16 sps:$4 sm:$0xff]   ;;  %v12867_v15 = vld [vmem:[%s15772_s0 + $0x1c0] ss:$16 sps:$4 sm:$0xff]  }
  0x72   :  { %2834 = vmatprep.subr.bf16.mxu1 %v11176_v21  ;;  %2408 = vmatmul.mubr.bf16.gmra.mrb[24].mxu0 %v12678_v11  ;;  %v12872_v21 = vld [vmem:[%s15772_s0 + $0x1c8] ss:$16 sps:$4 sm:$0xff]  }
  0x73   :  { %2569 = vmatmul.mubr.bf16.gmra.mrb[24].mxu1 %v12683_v12  ;;  %2415 = vmatprep.mubr.bf16.mxu0 %v12691_v14 }
  0x74   :  { %2576 = vmatprep.mubr.bf16.mxu1 %v12699_v20  ;;  %2674 = vmatpush1.bf16.msra.mxu0 %v11171_v22  ;;  %v12877_v22 = vld [vmem:[%s15772_s0 + $0x1e4] ss:$16 sps:$4 sm:$0xff]  }
  0x75   :  { %2835 = vmatpush1.bf16.msra.mxu1 %v11174_v23  ;;  %2675 = vmatprep.subr.bf16.mxu0 %v11185_v27  ;;  %v12882_v23 = vld [vmem:[%s15772_s0 + $0x1ec] ss:$16 sps:$4 sm:$0xff]   ;;  %v12896_v27 = vld [vmem:[%s15772_s0 + $0x1e8] ss:$16 sps:$4 sm:$0xff]  }
  0x76   :  { %2836 = vmatprep.subr.bf16.mxu1 %v11188_v29  ;;  %v12906_v29 = vld [vmem:[%s15772_s0 + $0x20c] ss:$16 sps:$4 sm:$0xff]  }
  0x78   :  { %2676 = vmatpush1.bf16.msra.mxu0 %v11183_v24  ;;  %v12891_v24 = vld [vmem:[%s15772_s0 + $0x1e0] ss:$16 sps:$4 sm:$0xff]  }
  0x79   :  { %2837 = vmatpush1.bf16.msra.mxu1 %v11186_v28  ;;  %2677 = vmatprep.subr.bf16.mxu0 %v11197_v37  ;;  %v12901_v28 = vld [vmem:[%s15772_s0 + $0x204] ss:$16 sps:$4 sm:$0xff]   ;;  %v12930_v37 = vld [vmem:[%s15772_s0 + $0x22c] ss:$16 sps:$4 sm:$0xff]  }
  0x7a   :  { %2416 = vmatmul.mubr.bf16.gmra.mrb[28].mxu0 %v12729_v32  ;;  %2838 = vmatprep.subr.bf16.mxu1 %v11200_v40  ;;  %v12944_v40 = vld [vmem:[%s15772_s0 + $0x228] ss:$16 sps:$4 sm:$0xff]  }
  0x7b   :  { %2577 = vmatmul.mubr.bf16.gmra.mrb[28].mxu1 %v12734_v33  ;;  %2423 = vmatprep.mubr.bf16.mxu0 %v11117_v34  ;;  %v12915_v34 = vld [vmem:[%s15772_s0 + $0x200] ss:$16 sps:$4 sm:$0xff]  }
  0x7c   :  { %2584 = vmatprep.mubr.bf16.mxu1 %v11119_v35  ;;  %2678 = vmatpush1.bf16.msra.mxu0 %v11195_v36  ;;  %v12920_v35 = vld [vmem:[%s15772_s0 + $0x208] ss:$16 sps:$4 sm:$0xff]   ;;  %v12925_v36 = vld [vmem:[%s15772_s0 + $0x224] ss:$16 sps:$4 sm:$0xff]  }
  0x7d   :  { %2839 = vmatpush1.bf16.msra.mxu1 %v11198_v39  ;;  %2679 = vmatprep.subr.bf16.mxu0 %v11209_v48  ;;  %v12939_v39 = vld [vmem:[%s15772_s0 + $0x220] ss:$16 sps:$4 sm:$0xff]   ;;  %v11224_v48 = vld [vmem:[%s15771_s1 + $0x514] ss:$8 sps:$4 sm:$0xff]  }
  0x7e   :  { %2840 = vmatprep.subr.bf16.mxu1 %v11212_v52  ;;  %v11228_v52 = vld [vmem:[%s15771_s1 + $0x520] ss:$8 sps:$4 sm:$0xff]  }
  0x80   :  { %2680 = vmatpush1.bf16.msra.mxu0 %v11207_v47  ;;  %v11221_v47 = vld [vmem:[%s15771_s1 + $0x414] ss:$8 sps:$4 sm:$0xff]  }
  0x81   :  { %2841 = vmatpush1.bf16.msra.mxu1 %v11210_v51  ;;  %2971 = vmatprep.subr.bf16.mxu0 %v11215_v56  ;;  %v11227_v51 = vld [vmem:[%s15771_s1 + $0x424] ss:$8 sps:$4 sm:$0xff]   ;;  %v11231_v56 = vld [vmem:[%s15771_s1 + $0x430] ss:$8 sps:$4 sm:$0xff]  }
  0x82   :  { %2424 = vmatmul.mubr.bf16.gmra.mrb[32].mxu0 %v11121_v44  ;;  %3132 = vmatprep.subr.bf16.mxu1 %v11218_v57  ;;  %v11213_v44 = vld [vmem:[%s15771_s1 + $0x400] ss:$8 sps:$4 sm:$0xff]   ;;  %v11234_v57 = vld [vmem:[%s15771_s1 + $0x530] ss:$8 sps:$4 sm:$0xff]  }
  0x83   :  { %2585 = vmatmul.mubr.bf16.gmra.mrb[32].mxu1 %v11122_v45  ;;  %2431 = vmatprep.mubr.bf16.mxu0 %v12765_v46  ;;  %v11216_v45 = vld [vmem:[%s15771_s1 + $0x500] ss:$8 sps:$4 sm:$0xff]  }
  0x84   :  { %2592 = vmatprep.mubr.bf16.mxu1 %v12782_v53 }
  0x8a   :  { %2432 = vmatmul.mubr.bf16.gmra.mrb[36].mxu0 %v12795_v58 }
  0x8b   :  { %2593 = vmatmul.mubr.bf16.gmra.mrb[36].mxu1 %v12800_v59  ;;  %2439 = vmatprep.mubr.bf16.mxu0 %v12805_v60 }
  0x8c   :  { %2600 = vmatprep.mubr.bf16.mxu1 %v12810_v61 }
  0x92   :  { %2440 = vmatmul.mubr.bf16.gmra.mrb[40].mxu0 %v12819_v63 }
  0x93   :  { %2601 = vmatmul.mubr.bf16.gmra.mrb[40].mxu1 %v12824_v0  ;;  %2447 = vmatprep.mubr.bf16.mxu0 %v12829_v4 }
  0x94   :  { %2608 = vmatprep.mubr.bf16.mxu1 %v12834_v5 }
  0x9a   :  { %2448 = vmatmul.mubr.bf16.gmra.mrb[44].mxu0 %v12843_v6 }
  0x9b   :  { %2609 = vmatmul.mubr.bf16.gmra.mrb[44].mxu1 %v12848_v7  ;;  %2455 = vmatprep.mubr.bf16.mxu0 %v12853_v10 }
  0x9c   :  { %2616 = vmatprep.mubr.bf16.mxu1 %v12858_v13 }
  0xa2   :  { %2456 = vmatmul.mubr.bf16.gmra.mrb[48].mxu0 %v12867_v15 }
  0xa3   :  { %2617 = vmatmul.mubr.bf16.gmra.mrb[48].mxu1 %v12872_v21  ;;  %2463 = vmatprep.mubr.bf16.mxu0 %v12877_v22 }
  0xa4   :  { %2624 = vmatprep.mubr.bf16.mxu1 %v12882_v23 }
  0xaa   :  { %2464 = vmatmul.mubr.bf16.gmra.mrb[52].mxu0 %v12891_v24 }
  0xab   :  { %2625 = vmatmul.mubr.bf16.gmra.mrb[52].mxu1 %v12896_v27  ;;  %2471 = vmatprep.mubr.bf16.mxu0 %v12901_v28 }
  0xac   :  { %2632 = vmatprep.mubr.bf16.mxu1 %v12906_v29 }
  0xb2   :  { %2472 = vmatmul.mubr.bf16.gmra.mrb[56].mxu0 %v12915_v34 }
  0xb3   :  { %2633 = vmatmul.mubr.bf16.gmra.mrb[56].mxu1 %v12920_v35  ;;  %2479 = vmatprep.mubr.bf16.mxu0 %v12925_v36 }
  0xb4   :  { %2640 = vmatprep.mubr.bf16.mxu1 %v12930_v37 }
  0xba   :  { %2480 = vmatmul.mubr.bf16.gmra.mrb[60].mxu0 %v12939_v39 }
  0xbb   :  { %2641 = vmatmul.mubr.bf16.gmra.mrb[60].mxu1 %v12944_v40  ;;  %2681 = vmatprep.mubr.bf16.mxu0 %v12417_v8  ;;  %v11219_v8 = vld [vmem:[%s15771_s1 + $0x410] ss:$8 sps:$4 sm:$0xff]  }
  0xbc   :  { %2842 = vmatprep.mubr.bf16.mxu1 %v12422_v9  ;;  %v11222_v9 = vld [vmem:[%s15771_s1 + $0x510] ss:$8 sps:$4 sm:$0xff]  }
  0xc2   :  { %2682 = vmatmul.mubr.bf16.vlgmr.msra.gmra.mrb[64].mxu0 %v12447_v16  ;;  %v11230_v16 = vld [vmem:[%s15771_s1 + $0x524] ss:$8 sps:$4 sm:$0xff]  }
  0xc3   :  { %2843 = vmatmul.mubr.bf16.vlgmr.msra.gmra.mrb[64].mxu1 %v12452_v17  ;;  %2972 = vmatpush1.bf16.msra.mxu0 %v11213_v44  ;;  %v11225_v17 = vld [vmem:[%s15771_s1 + $0x420] ss:$8 sps:$4 sm:$0xff]   ;;  %v11239_v44 = vld [vmem:[%s15771_s1 + $0x444] ss:$8 sps:$4 sm:$0xff]  }
  0xc4   :  { %3133 = vmatpush1.bf16.msra.mxu1 %v11216_v45  ;;  %2689 = vmatprep.mubr.bf16.mxu0 %v12457_v18  ;;  %v11233_v18 = vld [vmem:[%s15771_s1 + $0x434] ss:$8 sps:$4 sm:$0xff]  }
  0xc5   :  { %2850 = vmatprep.mubr.bf16.mxu1 %v12462_v19  ;;  %2973 = vmatprep.subr.bf16.mxu0 %v11221_v47  ;;  %v11236_v19 = vld [vmem:[%s15771_s1 + $0x534] ss:$8 sps:$4 sm:$0xff]   ;;  %v11243_v47 = vld [vmem:[%s15771_s1 + $0x450] ss:$8 sps:$4 sm:$0xff]  }
  0xc6   :  { %3134 = vmatprep.subr.bf16.mxu1 %v11224_v48  ;;  %v11248_v45 = vld [vmem:[%s15771_s1 + $0x554] ss:$8 sps:$4 sm:$0xff]   ;;  %v11246_v48 = vld [vmem:[%s15771_s1 + $0x550] ss:$8 sps:$4 sm:$0xff]  }
  0xc7   :  { %2974 = vmatpush1.bf16.msra.mxu0 %v11219_v8  ;;  %v11251_v8 = vld [vmem:[%s15771_s1 + $0x464] ss:$8 sps:$4 sm:$0xff]  }
  0xc8   :  { %3135 = vmatpush1.bf16.msra.mxu1 %v11222_v9  ;;  %2975 = vmatprep.subr.bf16.mxu0 %v11227_v51  ;;  %v11266_v9 = vld [vmem:[%s15771_s1 + $0x574] ss:$8 sps:$4 sm:$0xff]   ;;  %v11261_v51 = vld [vmem:[%s15771_s1 + $0x470] ss:$8 sps:$4 sm:$0xff]  }
  0xc9   :  { %3136 = vmatprep.subr.bf16.mxu1 %v11230_v16  ;;  %v11264_v16 = vld [vmem:[%s15771_s1 + $0x570] ss:$8 sps:$4 sm:$0xff]  }
  0xca   :  { %2690 = vmatmul.mubr.bf16.gmra.mrb[68].mxu0 %v12486_v25  ;;  %v11242_v25 = vld [vmem:[%s15771_s1 + $0x544] ss:$8 sps:$4 sm:$0xff]  }
  0xcb   :  { %2851 = vmatmul.mubr.bf16.gmra.mrb[68].mxu1 %v12491_v26  ;;  %2697 = vmatprep.mubr.bf16.mxu0 %v12505_v30  ;;  %v11237_v26 = vld [vmem:[%s15771_s1 + $0x440] ss:$8 sps:$4 sm:$0xff]  }
  0xcc   :  { %2858 = vmatprep.mubr.bf16.mxu1 %v12510_v31  ;;  %2976 = vmatpush1.bf16.msra.mxu0 %v11225_v17  ;;  %v11240_v30 = vld [vmem:[%s15771_s1 + $0x540] ss:$8 sps:$4 sm:$0xff]   ;;  %v11245_v31 = vld [vmem:[%s15771_s1 + $0x454] ss:$8 sps:$4 sm:$0xff]   ;;  %v11269_v17 = vld [vmem:[%s15771_s1 + $0x484] ss:$8 sps:$4 sm:$0xff]  }
  0xcd   :  { %3137 = vmatpush1.bf16.msra.mxu1 %v11228_v52  ;;  %2977 = vmatprep.subr.bf16.mxu0 %v11233_v18  ;;  %v11278_v52 = vld [vmem:[%s15771_s1 + $0x594] ss:$8 sps:$4 sm:$0xff]   ;;  %v11273_v18 = vld [vmem:[%s15771_s1 + $0x490] ss:$8 sps:$4 sm:$0xff]  }
  0xce   :  { %3138 = vmatprep.subr.bf16.mxu1 %v11236_v19  ;;  %v11276_v19 = vld [vmem:[%s15771_s1 + $0x590] ss:$8 sps:$4 sm:$0xff]  }
  0xd0   :  { %2978 = vmatpush1.bf16.msra.mxu0 %v11231_v56  ;;  %v11281_v56 = vld [vmem:[%s15771_s1 + $0x4a4] ss:$8 sps:$4 sm:$0xff]  }
  0xd1   :  { %3139 = vmatpush1.bf16.msra.mxu1 %v11234_v57  ;;  %2979 = vmatprep.subr.bf16.mxu0 %v11239_v44  ;;  %v11290_v57 = vld [vmem:[%s15771_s1 + $0x5b4] ss:$8 sps:$4 sm:$0xff]   ;;  %v11285_v44 = vld [vmem:[%s15771_s1 + $0x4b0] ss:$8 sps:$4 sm:$0xff]  }
  0xd2   :  { %3140 = vmatprep.subr.bf16.mxu1 %v11242_v25  ;;  %2698 = vmatmul.mubr.bf16.gmra.mrb[72].mxu0 %v12537_v38  ;;  %v11254_v38 = vld [vmem:[%s15771_s1 + $0x564] ss:$8 sps:$4 sm:$0xff]   ;;  %v11288_v25 = vld [vmem:[%s15771_s1 + $0x5b0] ss:$8 sps:$4 sm:$0xff]  }
  0xd3   :  { %2859 = vmatmul.mubr.bf16.gmra.mrb[72].mxu1 %v12548_v41  ;;  %2705 = vmatprep.mubr.bf16.mxu0 %v12553_v42  ;;  %v11249_v41 = vld [vmem:[%s15771_s1 + $0x460] ss:$8 sps:$4 sm:$0xff]  }
  0xd4   :  { %2866 = vmatprep.mubr.bf16.mxu1 %v12558_v43  ;;  %2980 = vmatpush1.bf16.msra.mxu0 %v11237_v26  ;;  %v11252_v42 = vld [vmem:[%s15771_s1 + $0x560] ss:$8 sps:$4 sm:$0xff]   ;;  %v11263_v43 = vld [vmem:[%s15771_s1 + $0x474] ss:$8 sps:$4 sm:$0xff]   ;;  %v11293_v26 = vld [vmem:[%s15771_s1 + $0x4c4] ss:$8 sps:$4 sm:$0xff]  }
  0xd5   :  { %3141 = vmatpush1.bf16.msra.mxu1 %v11240_v30  ;;  %2981 = vmatprep.subr.bf16.mxu0 %v11245_v31  ;;  %v11294_v30 = vld [vmem:[%s15771_s1 + $0x5c0] ss:$8 sps:$4 sm:$0xff]   ;;  %v11299_v31 = vld [vmem:[%s15771_s1 + $0x4d4] ss:$8 sps:$4 sm:$0xff]  }
  0xd6   :  { %3142 = vmatprep.subr.bf16.mxu1 %v11248_v45  ;;  %v11302_v45 = vld [vmem:[%s15771_s1 + $0x5d4] ss:$8 sps:$4 sm:$0xff]  }
  0xd8   :  { %2982 = vmatpush1.bf16.msra.mxu0 %v11243_v47  ;;  %v11297_v47 = vld [vmem:[%s15771_s1 + $0x4d0] ss:$8 sps:$4 sm:$0xff]  }
  0xd9   :  { %3143 = vmatpush1.bf16.msra.mxu1 %v11246_v48  ;;  %2983 = vmatprep.subr.bf16.mxu0 %v11251_v8  ;;  %v11300_v48 = vld [vmem:[%s15771_s1 + $0x5d0] ss:$8 sps:$4 sm:$0xff]   ;;  %v11305_v8 = vld [vmem:[%s15771_s1 + $0x4e4] ss:$8 sps:$4 sm:$0xff]  }
  0xda   :  { %3144 = vmatprep.subr.bf16.mxu1 %v11254_v38  ;;  %2706 = vmatmul.mubr.bf16.gmra.mrb[76].mxu0 %v12582_v49  ;;  %v11272_v49 = vld [vmem:[%s15771_s1 + $0x584] ss:$8 sps:$4 sm:$0xff]   ;;  %v11260_v38 = vld [vmem:[%s15772_s0 + $0x108] ss:$16 sps:$4 sm:$0xff]  }
  0xdb   :  { %2867 = vmatmul.mubr.bf16.gmra.mrb[76].mxu1 %v12587_v50  ;;  %2713 = vmatprep.mubr.bf16.mxu0 %v12601_v54  ;;  %v11267_v50 = vld [vmem:[%s15771_s1 + $0x480] ss:$8 sps:$4 sm:$0xff]  }
  0xdc   :  { %2874 = vmatprep.mubr.bf16.mxu1 %v12606_v55  ;;  %2984 = vmatpush1.bf16.msra.mxu0 %v11249_v41  ;;  %v11270_v54 = vld [vmem:[%s15771_s1 + $0x580] ss:$8 sps:$4 sm:$0xff]   ;;  %v11275_v55 = vld [vmem:[%s15771_s1 + $0x494] ss:$8 sps:$4 sm:$0xff]  }
  0xdd   :  { %3145 = vmatpush1.bf16.msra.mxu1 %v11252_v42  ;;  %2985 = vmatprep.subr.bf16.mxu0 %v11263_v43  ;;  %v11303_v41 = vld [vmem:[%s15771_s1 + $0x4e0] ss:$8 sps:$4 sm:$0xff]   ;;  %v11317_v43 = vld [vmem:[%s15771_s1 + $0x4f4] ss:$8 sps:$4 sm:$0xff]  }
  0xde   :  { %3146 = vmatprep.subr.bf16.mxu1 %v11266_v9  ;;  %v11306_v42 = vld [vmem:[%s15771_s1 + $0x5e0] ss:$8 sps:$4 sm:$0xff]   ;;  %v11320_v9 = vld [vmem:[%s15771_s1 + $0x5f4] ss:$8 sps:$4 sm:$0xff]  }
  0xe0   :  { %2986 = vmatpush1.bf16.msra.mxu0 %v11261_v51  ;;  %v11315_v51 = vld [vmem:[%s15771_s1 + $0x4f0] ss:$8 sps:$4 sm:$0xff]  }
  0xe1   :  { %3147 = vmatpush1.bf16.msra.mxu1 %v11264_v16  ;;  %2987 = vmatprep.subr.bf16.mxu0 %v11269_v17  ;;  %v11318_v16 = vld [vmem:[%s15771_s1 + $0x5f0] ss:$8 sps:$4 sm:$0xff]   ;;  %v11329_v17 = vld [vmem:[%s15771_s1 + $0x604] ss:$8 sps:$4 sm:$0xff]  }
  0xe2   :  { %3148 = vmatprep.subr.bf16.mxu1 %v11272_v49  ;;  %2714 = vmatmul.mubr.bf16.gmra.mrb[80].mxu0 %v12633_v62  ;;  %v11284_v62 = vld [vmem:[%s15771_s1 + $0x5a4] ss:$8 sps:$4 sm:$0xff]  }
  0xe3   :  { %2875 = vmatmul.mubr.bf16.gmra.mrb[80].mxu1 %v12644_v1  ;;  %2721 = vmatprep.mubr.bf16.mxu0 %v12649_v2  ;;  %v11279_v1 = vld [vmem:[%s15771_s1 + $0x4a0] ss:$8 sps:$4 sm:$0xff]   ;;  %v11332_v49 = vld [vmem:[%s15771_s1 + $0xc04] ss:$8 sps:$4 sm:$0xff]  }
  0xe4   :  { %2882 = vmatprep.mubr.bf16.mxu1 %v12654_v3  ;;  %2988 = vmatpush1.bf16.msra.mxu0 %v11267_v50  ;;  %v11282_v2 = vld [vmem:[%s15771_s1 + $0x5a0] ss:$8 sps:$4 sm:$0xff]   ;;  %v11287_v3 = vld [vmem:[%s15771_s1 + $0x4b4] ss:$8 sps:$4 sm:$0xff]  }
  0xe5   :  { %3149 = vmatpush1.bf16.msra.mxu1 %v11270_v54  ;;  %2989 = vmatprep.subr.bf16.mxu0 %v11275_v55 }
  0xe6   :  { %3150 = vmatprep.subr.bf16.mxu1 %v11278_v52 }
  0xe8   :  { %2990 = vmatpush1.bf16.msra.mxu0 %v11273_v18 }
  0xe9   :  { %3151 = vmatpush1.bf16.msra.mxu1 %v11276_v19  ;;  %2991 = vmatprep.subr.bf16.mxu0 %v11281_v56 }
  0xea   :  { %3152 = vmatprep.subr.bf16.mxu1 %v11284_v62  ;;  %2722 = vmatmul.mubr.bf16.gmra.mrb[84].mxu0 %v12678_v11  ;;  %v11296_v11 = vld [vmem:[%s15771_s1 + $0x5c4] ss:$8 sps:$4 sm:$0xff]  }
  0xeb   :  { %2883 = vmatmul.mubr.bf16.gmra.mrb[84].mxu1 %v12683_v12  ;;  %2729 = vmatprep.mubr.bf16.mxu0 %v12691_v14  ;;  %v11255_v12 = vld [vmem:[%s15772_s0 + $0x104] ss:$16 sps:$4 sm:$0xff]   ;;  %v11257_v14 = vld [vmem:[%s15772_s0 + $0x10c] ss:$16 sps:$4 sm:$0xff]  }
  0xec   :  { %2890 = vmatprep.mubr.bf16.mxu1 %v12699_v20  ;;  %2992 = vmatpush1.bf16.msra.mxu0 %v11279_v1  ;;  %v11291_v20 = vld [vmem:[%s15771_s1 + $0x4c0] ss:$8 sps:$4 sm:$0xff]  }
  0xed   :  { %3153 = vmatpush1.bf16.msra.mxu1 %v11282_v2  ;;  %2993 = vmatprep.subr.bf16.mxu0 %v11287_v3 }
  0xee   :  { %3154 = vmatprep.subr.bf16.mxu1 %v11290_v57 }
  0xf0   :  { %2994 = vmatpush1.bf16.msra.mxu0 %v11285_v44 }
  0xf1   :  { %3155 = vmatpush1.bf16.msra.mxu1 %v11288_v25  ;;  %2995 = vmatprep.subr.bf16.mxu0 %v11293_v26 }
  0xf2   :  { %3156 = vmatprep.subr.bf16.mxu1 %v11296_v11  ;;  %2730 = vmatmul.mubr.bf16.gmra.mrb[88].mxu0 %v12729_v32  ;;  %v11308_v32 = vld [vmem:[%s15771_s1 + $0x5e4] ss:$8 sps:$4 sm:$0xff]  }
  0xf3   :  { %2891 = vmatmul.mubr.bf16.gmra.mrb[88].mxu1 %v12734_v33  ;;  %2737 = vmatprep.mubr.bf16.mxu0 %v11255_v12  ;;  %v11259_v33 = vld [vmem:[%s15772_s0 + $0x100] ss:$16 sps:$4 sm:$0xff]   ;;  %v11309_v11 = vld [vmem:[%s15772_s0 + $0x244] ss:$16 sps:$4 sm:$0xff]  }
  0xf4   :  { %2898 = vmatprep.mubr.bf16.mxu1 %v11257_v14  ;;  %2996 = vmatpush1.bf16.msra.mxu0 %v11291_v20  ;;  %v11313_v12 = vld [vmem:[%s15772_s0 + $0x240] ss:$16 sps:$4 sm:$0xff]   ;;  %v11314_v14 = vld [vmem:[%s15772_s0 + $0x248] ss:$16 sps:$4 sm:$0xff]  }
  0xf5   :  { %3157 = vmatpush1.bf16.msra.mxu1 %v11294_v30  ;;  %2997 = vmatprep.subr.bf16.mxu0 %v11299_v31 }
  0xf6   :  { %3158 = vmatprep.subr.bf16.mxu1 %v11302_v45 }
  0xf8   :  { %2998 = vmatpush1.bf16.msra.mxu0 %v11297_v47 }
  0xf9   :  { %3159 = vmatpush1.bf16.msra.mxu1 %v11300_v48  ;;  %2999 = vmatprep.subr.bf16.mxu0 %v11305_v8  ;;  %v11323_v8 = vld [vmem:[%s15772_s0 + $0x44] ss:$16 sps:$4 sm:$0xff]  }
  0xfa   :  { %3160 = vmatprep.subr.bf16.mxu1 %v11308_v32  ;;  %2738 = vmatmul.mubr.bf16.gmra.mrb[92].mxu0 %v11259_v33  ;;  %v11326_v32 = vld [vmem:[%s15772_s0 + $0x4c] ss:$16 sps:$4 sm:$0xff]  }
  0xfb   :  { %2899 = vmatmul.mubr.bf16.gmra.mrb[92].mxu1 %v11260_v38  ;;  %2745 = vmatprep.mubr.bf16.mxu0 %v12765_v46 }
  0xfc   :  { %2906 = vmatprep.mubr.bf16.mxu1 %v12782_v53  ;;  %3000 = vmatpush1.bf16.msra.mxu0 %v11303_v41  ;;  %v11321_v41 = vld [vmem:[%s15772_s0 + $0x40] ss:$16 sps:$4 sm:$0xff]  }
  0xfd   :  { %3161 = vmatpush1.bf16.msra.mxu1 %v11306_v42  ;;  %3001 = vmatprep.subr.bf16.mxu0 %v11317_v43  ;;  %v11324_v42 = vld [vmem:[%s15772_s0 + $0x48] ss:$16 sps:$4 sm:$0xff]  }
  0xfe   :  { %3162 = vmatprep.subr.bf16.mxu1 %v11320_v9 }
 0x100   :  { %3002 = vmatpush1.bf16.msra.mxu0 %v11315_v51  ;;  %v11327_v51 = vld [vmem:[%s15771_s1 + $0x600] ss:$8 sps:$4 sm:$0xff]  }
 0x101   :  { %3163 = vmatpush1.bf16.msra.mxu1 %v11318_v16  ;;  %4446 = vmatprep.subr.bf16.mxu0 %v11329_v17  ;;  %v11330_v16 = vld [vmem:[%s15771_s1 + $0xc00] ss:$8 sps:$4 sm:$0xff]  }
 0x102   :  { %6982 = vmatprep.subr.bf16.mxu1 %v11332_v49  ;;  %2746 = vmatmul.mubr.bf16.gmra.mrb[96].mxu0 %v12795_v58 }
 0x103   :  { %2907 = vmatmul.mubr.bf16.gmra.mrb[96].mxu1 %v12800_v59  ;;  %2753 = vmatprep.mubr.bf16.mxu0 %v12805_v60 }
 0x104   :  { %2914 = vmatprep.mubr.bf16.mxu1 %v12810_v61 }
 0x10a   :  { %2754 = vmatmul.mubr.bf16.gmra.mrb[100].mxu0 %v12819_v63 }
 0x10b   :  { %2915 = vmatmul.mubr.bf16.gmra.mrb[100].mxu1 %v12824_v0  ;;  %2761 = vmatprep.mubr.bf16.mxu0 %v12829_v4 }
 0x10c   :  { %2922 = vmatprep.mubr.bf16.mxu1 %v12834_v5 }
 0x112   :  { %2762 = vmatmul.mubr.bf16.gmra.mrb[104].mxu0 %v12843_v6 }
 0x113   :  { %2923 = vmatmul.mubr.bf16.gmra.mrb[104].mxu1 %v12848_v7  ;;  %2769 = vmatprep.mubr.bf16.mxu0 %v12853_v10 }
 0x114   :  { %2930 = vmatprep.mubr.bf16.mxu1 %v12858_v13 }
 0x115   :  { %v2361_v46 = vpop.f32.mrb[0].mxu0 }
 0x116   :  { %v2522_v53 = vpop.f32.mrb[0].mxu1  ;;  %v2363_v58 = vpop.f32.mrb[1].mxu0 }
 0x117   :  { %v2524_v59 = vpop.f32.mrb[1].mxu1  ;;  %v13194_v60 = vadd.f32 %v2522_v53, %v2361_v46  ;;  %v2365_v61 = vpop.f32.mrb[2].mxu0  ;;  %v11333_v53 = vld [vmem:[%s15772_s0 + $0x64] ss:$16 sps:$4 sm:$0xff]  }
 0x118   :  { %v2526_v63 = vpop.f32.mrb[2].mxu1  ;;  %v13196_v0 = vadd.f32 %v2524_v59, %v2363_v58  ;;  %v2366_v4 = vpop.f32.mrb[3].mxu0  ;;  %v11335_v58 = vld [vmem:[%s15772_s0 + $0x6c] ss:$16 sps:$4 sm:$0xff]  }
 0x119   :  { %v2527_v5 = vpop.f32.mrb[3].mxu1  ;;  %v11341_v4 = vld [vmem:[%s15771_s1 + $0x614] ss:$8 sps:$4 sm:$0xff]  }
 0x11a   :  { %2770 = vmatmul.mubr.bf16.gmra.mrb[108].mxu0 %v12867_v15  ;;  %v11344_v5 = vld [vmem:[%s15771_s1 + $0xc14] ss:$8 sps:$4 sm:$0xff]  }
 0x11b   :  { %2931 = vmatmul.mubr.bf16.gmra.mrb[108].mxu1 %v12872_v21  ;;  %2777 = vmatprep.mubr.bf16.mxu0 %v12877_v22 }
 0x11c   :  { %2938 = vmatprep.mubr.bf16.mxu1 %v12882_v23 }
 0x11d   :  { %v2369_v6 = vpop.f32.mrb[4].mxu0 }
 0x11e   :  { %v2530_v7 = vpop.f32.mrb[4].mxu1  ;;  %v2371_v10 = vpop.f32.mrb[5].mxu0 }
 0x11f   :  { %v2532_v13 = vpop.f32.mrb[5].mxu1  ;;  %v13202_v50 = vadd.f32 %v2530_v7, %v2369_v6  ;;  %v2373_v54 = vpop.f32.mrb[6].mxu0 }
 0x120   :  { %v2534_v55 = vpop.f32.mrb[6].mxu1  ;;  %v13204_v52 = vadd.f32 %v2532_v13, %v2371_v10  ;;  %v2374_v18 = vpop.f32.mrb[7].mxu0  ;;  %v11339_v10 = vld [vmem:[%s15771_s1 + $0x610] ss:$8 sps:$4 sm:$0xff]   ;;  %v11353_v54 = vld [vmem:[%s15771_s1 + $0x624] ss:$8 sps:$4 sm:$0xff]  }
 0x121   :  { %v2535_v19 = vpop.f32.mrb[7].mxu1  ;;  %v11342_v13 = vld [vmem:[%s15771_s1 + $0xc10] ss:$8 sps:$4 sm:$0xff]   ;;  %v11356_v55 = vld [vmem:[%s15771_s1 + $0xc24] ss:$8 sps:$4 sm:$0xff]  }
 0x122   :  { %2778 = vmatmul.mubr.bf16.gmra.mrb[112].mxu0 %v12891_v24  ;;  %v11337_v18 = vld [vmem:[%s15772_s0 + $0x60] ss:$16 sps:$4 sm:$0xff]   ;;  %v11338_v19 = vld [vmem:[%s15772_s0 + $0x68] ss:$16 sps:$4 sm:$0xff]  }
 0x123   :  { %2939 = vmatmul.mubr.bf16.gmra.mrb[112].mxu1 %v12896_v27  ;;  %2785 = vmatprep.mubr.bf16.mxu0 %v12901_v28 }
 0x124   :  { %2946 = vmatprep.mubr.bf16.mxu1 %v12906_v29 }
 0x125   :  { %v2377_v15 = vpop.f32.mrb[8].mxu0 }
 0x126   :  { %v2538_v21 = vpop.f32.mrb[8].mxu1  ;;  %v2379_v22 = vpop.f32.mrb[9].mxu0 }
 0x127   :  { %v2540_v23 = vpop.f32.mrb[9].mxu1  ;;  %v13210_v56 = vadd.f32 %v2538_v21, %v2377_v15  ;;  %v2381_v62 = vpop.f32.mrb[10].mxu0 }
 0x128   :  { %v2542_v1 = vpop.f32.mrb[10].mxu1  ;;  %v13212_v2 = vadd.f32 %v2540_v23, %v2379_v22  ;;  %v2382_v3 = vpop.f32.mrb[11].mxu0  ;;  %v11345_v22 = vld [vmem:[%s15772_s0 + $0x84] ss:$16 sps:$4 sm:$0xff]   ;;  %v11347_v23 = vld [vmem:[%s15772_s0 + $0x8c] ss:$16 sps:$4 sm:$0xff]  }
 0x129   :  { %v2543_v57 = vpop.f32.mrb[11].mxu1 }
 0x12a   :  { %2786 = vmatmul.mubr.bf16.gmra.mrb[116].mxu0 %v12915_v34  ;;  %v11311_v34 = vld [vmem:[%s15772_s0 + $0x24c] ss:$16 sps:$4 sm:$0xff]   ;;  %v11351_v57 = vld [vmem:[%s15771_s1 + $0x620] ss:$8 sps:$4 sm:$0xff]  }
 0x12b   :  { %2947 = vmatmul.mubr.bf16.gmra.mrb[116].mxu1 %v12920_v35  ;;  %2793 = vmatprep.mubr.bf16.mxu0 %v12925_v36 }
 0x12c   :  { %2954 = vmatprep.mubr.bf16.mxu1 %v12930_v37 }
 0x12d   :  { %v2385_v24 = vpop.f32.mrb[12].mxu0 }
 0x12e   :  { %v2546_v27 = vpop.f32.mrb[12].mxu1  ;;  %v2387_v28 = vpop.f32.mrb[13].mxu0 }
 0x12f   :  { %v2548_v29 = vpop.f32.mrb[13].mxu1  ;;  %v13218_v44 = vadd.f32 %v2546_v27, %v2385_v24  ;;  %v2389_v25 = vpop.f32.mrb[14].mxu0  ;;  %v11354_v24 = vld [vmem:[%s15771_s1 + $0xc20] ss:$8 sps:$4 sm:$0xff]  }
 0x130   :  { %v2550_v26 = vpop.f32.mrb[14].mxu1  ;;  %v13226_v35 = vadd.f32 %v2548_v29, %v2387_v28  ;;  %v2390_v36 = vpop.f32.mrb[15].mxu0  ;;  %v11365_v25 = vld [vmem:[%s15771_s1 + $0x634] ss:$8 sps:$4 sm:$0xff]  }
 0x131   :  { %v2551_v37 = vpop.f32.mrb[15].mxu1  ;;  %v11368_v26 = vld [vmem:[%s15771_s1 + $0xc34] ss:$8 sps:$4 sm:$0xff]   ;;  %v11363_v36 = vld [vmem:[%s15771_s1 + $0x630] ss:$8 sps:$4 sm:$0xff]  }
 0x132   :  { %2794 = vmatmul.mubr.bf16.gmra.mrb[120].mxu0 %v12939_v39  ;;  %v11366_v37 = vld [vmem:[%s15771_s1 + $0xc30] ss:$8 sps:$4 sm:$0xff]  }
 0x133   :  { %2955 = vmatmul.mubr.bf16.gmra.mrb[120].mxu1 %v12944_v40  ;;  %2801 = vmatprep.mubr.bf16.mxu0 %v11309_v11 }
 0x134   :  { %2962 = vmatprep.mubr.bf16.mxu1 %v11311_v34 }
 0x135   :  { %v2393_v20 = vpop.f32.mrb[16].mxu0 }
 0x136   :  { %v2554_v30 = vpop.f32.mrb[16].mxu1  ;;  %v2395_v45 = vpop.f32.mrb[17].mxu0 }
 0x137   :  { %v13236_v31 = vadd.f32 %v2554_v30, %v2393_v20  ;;  %v2556_v47 = vpop.f32.mrb[17].mxu1  ;;  %v2397_v39 = vpop.f32.mrb[18].mxu0  ;;  %v11349_v20 = vld [vmem:[%s15772_s0 + $0x80] ss:$16 sps:$4 sm:$0xff]   ;;  %v11350_v30 = vld [vmem:[%s15772_s0 + $0x88] ss:$16 sps:$4 sm:$0xff]  }
 0x138   :  { %v13238_v48 = vadd.f32 %v2556_v47, %v2395_v45  ;;  %v2558_v40 = vpop.f32.mrb[18].mxu1  ;;  %v2398_v33 = vpop.f32.mrb[19].mxu0  ;;  %v11357_v39 = vld [vmem:[%s15772_s0 + $0xa4] ss:$16 sps:$4 sm:$0xff]  }
 0x139   :  { %v2559_v38 = vpop.f32.mrb[19].mxu1  ;;  %v11359_v40 = vld [vmem:[%s15772_s0 + $0xac] ss:$16 sps:$4 sm:$0xff]  }
 0x13a   :  { %2802 = vmatmul.mubr.bf16.gmra.mrb[124].mxu0 %v11313_v12  ;;  %v11377_v12 = vld [vmem:[%s15771_s1 + $0x644] ss:$8 sps:$4 sm:$0xff]   ;;  %v11375_v38 = vld [vmem:[%s15771_s1 + $0x640] ss:$8 sps:$4 sm:$0xff]  }
 0x13b   :  { %2963 = vmatmul.mubr.bf16.gmra.mrb[124].mxu1 %v11314_v14  ;;  %3003 = vmatprep.mubr.bf16.mxu0 %v11323_v8  ;;  %v11380_v14 = vld [vmem:[%s15771_s1 + $0xc44] ss:$8 sps:$4 sm:$0xff]  }
 0x13c   :  { %3164 = vmatprep.mubr.bf16.mxu1 %v11326_v32 }
 0x13d   :  { %v2401_v43 = vpop.f32.mrb[20].mxu0 }
 0x13e   :  { %v2562_v9 = vpop.f32.mrb[20].mxu1  ;;  %v2403_v49 = vpop.f32.mrb[21].mxu0 }
 0x13f   :  { %v13258_v17 = vadd.f32 %v2562_v9, %v2401_v43  ;;  %v2564_v46 = vpop.f32.mrb[21].mxu1  ;;  %v2405_v61 = vpop.f32.mrb[22].mxu0 }
 0x140   :  { %v13266_v59 = vadd.f32 %v2564_v46, %v2403_v49  ;;  %v2566_v63 = vpop.f32.mrb[22].mxu1  ;;  %v2406_v6 = vpop.f32.mrb[23].mxu0  ;;  %v11395_v61 = vld [vmem:[%s15771_s1 + $0x664] ss:$8 sps:$4 sm:$0xff]  }
 0x141   :  { %v2567_v7 = vpop.f32.mrb[23].mxu1  ;;  %v11398_v63 = vld [vmem:[%s15771_s1 + $0xc64] ss:$8 sps:$4 sm:$0xff]  }
 0x142   :  { %3004 = vmatmul.mubr.bf16.vlgmr.msra.gmra.mrb[128].mxu0 %v11321_v41  ;;  %v11378_v41 = vld [vmem:[%s15771_s1 + $0xc40] ss:$8 sps:$4 sm:$0xff]  }
 0x143   :  { %3165 = vmatmul.mubr.bf16.vlgmr.msra.gmra.mrb[128].mxu1 %v11324_v42  ;;  %4447 = vmatpush1.bf16.msra.mxu0 %v11327_v51  ;;  %v11389_v51 = vld [vmem:[%s15771_s1 + $0x654] ss:$8 sps:$4 sm:$0xff]  }
 0x144   :  { %6983 = vmatpush1.bf16.msra.mxu1 %v11330_v16  ;;  %3011 = vmatprep.mubr.bf16.mxu0 %v11333_v53  ;;  %v11392_v16 = vld [vmem:[%s15771_s1 + $0xc54] ss:$8 sps:$4 sm:$0xff]   ;;  %v11387_v53 = vld [vmem:[%s15771_s1 + $0x650] ss:$8 sps:$4 sm:$0xff]  }
 0x145   :  { %3172 = vmatprep.mubr.bf16.mxu1 %v11335_v58  ;;  %v2409_v15 = vpop.f32.mrb[24].mxu0  ;;  %4448 = vmatprep.subr.bf16.mxu0 %v11341_v4  ;;  %v11390_v58 = vld [vmem:[%s15771_s1 + $0xc50] ss:$8 sps:$4 sm:$0xff]  }
 0x146   :  { %v2570_v21 = vpop.f32.mrb[24].mxu1  ;;  %6984 = vmatprep.subr.bf16.mxu1 %v11344_v5  ;;  %v2411_v1 = vpop.f32.mrb[25].mxu0  ;;  %v11361_v4 = vld [vmem:[%s15772_s0 + $0xa0] ss:$16 sps:$4 sm:$0xff]   ;;  %v11362_v5 = vld [vmem:[%s15772_s0 + $0xa8] ss:$16 sps:$4 sm:$0xff]  }
 0x147   :  { %v13298_v62 = vadd.f32 %v2570_v21, %v2409_v15  ;;  %v2572_v3 = vpop.f32.mrb[25].mxu1  ;;  %v2413_v28 = vpop.f32.mrb[26].mxu0  ;;  %4449 = vmatpush1.bf16.msra.mxu0 %v11339_v10  ;;  %v11369_v10 = vld [vmem:[%s15772_s0 + $0xc4] ss:$16 sps:$4 sm:$0xff]   ;;  %v11396_v15 = vld [vmem:[%s15771_s1 + $0xc60] ss:$8 sps:$4 sm:$0xff]  }
 0x148   :  { %v13306_v27 = vadd.f32 %v2572_v3, %v2411_v1  ;;  %v2574_v29 = vpop.f32.mrb[26].mxu1  ;;  %6985 = vmatpush1.bf16.msra.mxu1 %v11342_v13  ;;  %v2414_v11 = vpop.f32.mrb[27].mxu0  ;;  %4450 = vmatprep.subr.bf16.mxu0 %v11353_v54  ;;  %v11371_v13 = vld [vmem:[%s15772_s0 + $0xcc] ss:$16 sps:$4 sm:$0xff]   ;;  %v11405_v28 = vld [vmem:[%s15771_s1 + $0x670] ss:$8 sps:$4 sm:$0xff]  }
 0x149   :  { %v2575_v34 = vpop.f32.mrb[27].mxu1  ;;  %6986 = vmatprep.subr.bf16.mxu1 %v11356_v55  ;;  %v11407_v1 = vld [vmem:[%s15771_s1 + $0x674] ss:$8 sps:$4 sm:$0xff]   ;;  %v11408_v29 = vld [vmem:[%s15771_s1 + $0xc70] ss:$8 sps:$4 sm:$0xff]  }
 0x14a   :  { %3012 = vmatmul.mubr.bf16.gmra.mrb[132].mxu0 %v11337_v18  ;;  %v11410_v3 = vld [vmem:[%s15771_s1 + $0xc74] ss:$8 sps:$4 sm:$0xff]   ;;  %v11373_v11 = vld [vmem:[%s15772_s0 + $0xc0] ss:$16 sps:$4 sm:$0xff]   ;;  %v11374_v34 = vld [vmem:[%s15772_s0 + $0xc8] ss:$16 sps:$4 sm:$0xff]  }
 0x14b   :  { %3173 = vmatmul.mubr.bf16.gmra.mrb[132].mxu1 %v11338_v19  ;;  %3019 = vmatprep.mubr.bf16.mxu0 %v11345_v22  ;;  %v11393_v19 = vld [vmem:[%s15771_s1 + $0x660] ss:$8 sps:$4 sm:$0xff]  }
 0x14c   :  { %3180 = vmatprep.mubr.bf16.mxu1 %v11347_v23  ;;  %4451 = vmatpush1.bf16.msra.mxu0 %v11351_v57 }
 0x14d   :  { %6987 = vmatpush1.bf16.msra.mxu1 %v11354_v24  ;;  %v2417_v45 = vpop.f32.mrb[28].mxu0  ;;  %4452 = vmatprep.subr.bf16.mxu0 %v11365_v25  ;;  %v11419_v25 = vld [vmem:[%s15771_s1 + $0x684] ss:$8 sps:$4 sm:$0xff]  }
 0x14e   :  { %v2578_v47 = vpop.f32.mrb[28].mxu1  ;;  %6988 = vmatprep.subr.bf16.mxu1 %v11368_v26  ;;  %v2419_v32 = vpop.f32.mrb[29].mxu0  ;;  %v11422_v26 = vld [vmem:[%s15771_s1 + $0xc84] ss:$8 sps:$4 sm:$0xff]  }
 0x14f   :  { %v13338_v8 = vadd.f32 %v2578_v47, %v2417_v45  ;;  %v2580_v33 = vpop.f32.mrb[29].mxu1  ;;  %v2421_v43 = vpop.f32.mrb[30].mxu0  ;;  %v11417_v47 = vld [vmem:[%s15771_s1 + $0x680] ss:$8 sps:$4 sm:$0xff]  }
 0x150   :  { %v13346_v42 = vadd.f32 %v2580_v33, %v2419_v32  ;;  %v2582_v9 = vpop.f32.mrb[30].mxu1  ;;  %v2422_v49 = vpop.f32.mrb[31].mxu0  ;;  %4453 = vmatpush1.bf16.msra.mxu0 %v11363_v36 }
 0x151   :  { %v2583_v46 = vpop.f32.mrb[31].mxu1  ;;  %6989 = vmatpush1.bf16.msra.mxu1 %v11366_v37  ;;  %4454 = vmatprep.subr.bf16.mxu0 %v11377_v12  ;;  %v11381_v12 = vld [vmem:[%s15772_s0 + $0xe4] ss:$16 sps:$4 sm:$0xff]  }
 0x152   :  { %6990 = vmatprep.subr.bf16.mxu1 %v11380_v14  ;;  %3020 = vmatmul.mubr.bf16.gmra.mrb[136].mxu0 %v11349_v20  ;;  %v11383_v14 = vld [vmem:[%s15772_s0 + $0xec] ss:$16 sps:$4 sm:$0xff]  }
 0x153   :  { %3181 = vmatmul.mubr.bf16.gmra.mrb[136].mxu1 %v11350_v30  ;;  %3027 = vmatprep.mubr.bf16.mxu0 %v11357_v39  ;;  %v11420_v39 = vld [vmem:[%s15771_s1 + $0xc80] ss:$8 sps:$4 sm:$0xff]   ;;  %v11443_v49 = vld [vmem:[%s15771_s1 + $0x6a4] ss:$8 sps:$4 sm:$0xff]  }
 0x154   :  { %3188 = vmatprep.mubr.bf16.mxu1 %v11359_v40  ;;  %4455 = vmatpush1.bf16.msra.mxu0 %v11375_v38  ;;  %v11431_v38 = vld [vmem:[%s15771_s1 + $0x694] ss:$8 sps:$4 sm:$0xff]   ;;  %v11446_v46 = vld [vmem:[%s15771_s1 + $0xca4] ss:$8 sps:$4 sm:$0xff]  }
 0x155   :  { %6991 = vmatpush1.bf16.msra.mxu1 %v11378_v41  ;;  %v2425_v6 = vpop.f32.mrb[32].mxu0  ;;  %4456 = vmatprep.subr.bf16.mxu0 %v11389_v51  ;;  %v11434_v41 = vld [vmem:[%s15771_s1 + $0xc94] ss:$8 sps:$4 sm:$0xff]   ;;  %v11429_v51 = vld [vmem:[%s15771_s1 + $0x690] ss:$8 sps:$4 sm:$0xff]  }
 0x156   :  { %v2586_v7 = vpop.f32.mrb[32].mxu1  ;;  %6992 = vmatprep.subr.bf16.mxu1 %v11392_v16  ;;  %v2427_v55 = vpop.f32.mrb[33].mxu0  ;;  %v11432_v16 = vld [vmem:[%s15771_s1 + $0xc90] ss:$8 sps:$4 sm:$0xff]  }
 0x157   :  { %v13378_v54 = vadd.f32 %v2586_v7, %v2425_v6  ;;  %v2588_v18 = vpop.f32.mrb[33].mxu1  ;;  %v2429_v22 = vpop.f32.mrb[34].mxu0  ;;  %v11441_v7 = vld [vmem:[%s15771_s1 + $0x6a0] ss:$8 sps:$4 sm:$0xff]  }
 0x158   :  { %v13386_v21 = vadd.f32 %v2588_v18, %v2427_v55  ;;  %v2590_v23 = vpop.f32.mrb[34].mxu1  ;;  %v2430_v57 = vpop.f32.mrb[35].mxu0  ;;  %4457 = vmatpush1.bf16.msra.mxu0 %v11387_v53  ;;  %v11385_v53 = vld [vmem:[%s15772_s0 + $0xe0] ss:$16 sps:$4 sm:$0xff]  }
 0x159   :  { %v2591_v24 = vpop.f32.mrb[35].mxu1  ;;  %6993 = vmatpush1.bf16.msra.mxu1 %v11390_v58  ;;  %4458 = vmatprep.subr.bf16.mxu0 %v11395_v61  ;;  %v11386_v58 = vld [vmem:[%s15772_s0 + $0xe8] ss:$16 sps:$4 sm:$0xff]   ;;  %v12003_v57 = vld [vmem:[%s15772_s0 + $0x104] ss:$16 sps:$4 sm:$0xff]  }
 0x15a   :  { %6994 = vmatprep.subr.bf16.mxu1 %v11398_v63  ;;  %3028 = vmatmul.mubr.bf16.gmra.mrb[140].mxu0 %v11361_v4  ;;  %v12004_v24 = vld [vmem:[%s15772_s0 + $0x10c] ss:$16 sps:$4 sm:$0xff]  }
 0x15b   :  { %3189 = vmatmul.mubr.bf16.gmra.mrb[140].mxu1 %v11362_v5  ;;  %3035 = vmatprep.mubr.bf16.mxu0 %v11369_v10  ;;  %v11444_v10 = vld [vmem:[%s15771_s1 + $0xca0] ss:$8 sps:$4 sm:$0xff]  }
 0x15c   :  { %3196 = vmatprep.mubr.bf16.mxu1 %v11371_v13  ;;  %4459 = vmatpush1.bf16.msra.mxu0 %v11393_v19  ;;  %v11455_v19 = vld [vmem:[%s15771_s1 + $0x6b4] ss:$8 sps:$4 sm:$0xff]  }
 0x15d   :  { %6995 = vmatpush1.bf16.msra.mxu1 %v11396_v15  ;;  %v2433_v36 = vpop.f32.mrb[36].mxu0  ;;  %4460 = vmatprep.subr.bf16.mxu0 %v11407_v1  ;;  %v11458_v15 = vld [vmem:[%s15771_s1 + $0xcb4] ss:$8 sps:$4 sm:$0xff]   ;;  %v11453_v1 = vld [vmem:[%s15771_s1 + $0x6b0] ss:$8 sps:$4 sm:$0xff]  }
 0x15e   :  { %v2594_v37 = vpop.f32.mrb[36].mxu1  ;;  %6996 = vmatprep.subr.bf16.mxu1 %v11410_v3  ;;  %v2435_v30 = vpop.f32.mrb[37].mxu0  ;;  %v11456_v3 = vld [vmem:[%s15771_s1 + $0xcb0] ss:$8 sps:$4 sm:$0xff]  }
 0x15f   :  { %v13418_v20 = vadd.f32 %v2594_v37, %v2433_v36  ;;  %v2596_v45 = vpop.f32.mrb[37].mxu1  ;;  %v2437_v32 = vpop.f32.mrb[38].mxu0 }
 0x160   :  { %v13426_v40 = vadd.f32 %v2596_v45, %v2435_v30  ;;  %v2598_v33 = vpop.f32.mrb[38].mxu1  ;;  %v2438_v43 = vpop.f32.mrb[39].mxu0  ;;  %4461 = vmatpush1.bf16.msra.mxu0 %v11405_v28  ;;  %v11467_v28 = vld [vmem:[%s15771_s1 + $0x6c4] ss:$8 sps:$4 sm:$0xff]   ;;  %v11468_v30 = vld [vmem:[%s15771_s1 + $0xcc0] ss:$8 sps:$4 sm:$0xff]  }
 0x161   :  { %v2599_v9 = vpop.f32.mrb[39].mxu1  ;;  %6997 = vmatpush1.bf16.msra.mxu1 %v11408_v29  ;;  %4462 = vmatprep.subr.bf16.mxu0 %v11419_v25  ;;  %v11470_v29 = vld [vmem:[%s15771_s1 + $0xcc4] ss:$8 sps:$4 sm:$0xff]   ;;  %v11479_v32 = vld [vmem:[%s15771_s1 + $0x6d4] ss:$8 sps:$4 sm:$0xff]  }
 0x162   :  { %6998 = vmatprep.subr.bf16.mxu1 %v11422_v26  ;;  %3036 = vmatmul.mubr.bf16.gmra.mrb[144].mxu0 %v11373_v11  ;;  %v11399_v11 = vld [vmem:[%s15772_s0 + $0x124] ss:$16 sps:$4 sm:$0xff]   ;;  %v12005_v43 = vld [vmem:[%s15772_s0 + $0x100] ss:$16 sps:$4 sm:$0xff]   ;;  %v12006_v9 = vld [vmem:[%s15772_s0 + $0x108] ss:$16 sps:$4 sm:$0xff]  }
 0x163   :  { %3197 = vmatmul.mubr.bf16.gmra.mrb[144].mxu1 %v11374_v34  ;;  %3043 = vmatprep.mubr.bf16.mxu0 %v11381_v12  ;;  %v11401_v34 = vld [vmem:[%s15772_s0 + $0x12c] ss:$16 sps:$4 sm:$0xff]  }
 0x164   :  { %3204 = vmatprep.mubr.bf16.mxu1 %v11383_v14  ;;  %4463 = vmatpush1.bf16.msra.mxu0 %v11417_v47  ;;  %v11465_v14 = vld [vmem:[%s15771_s1 + $0x6c0] ss:$8 sps:$4 sm:$0xff]   ;;  %v11482_v33 = vld [vmem:[%s15771_s1 + $0xcd4] ss:$8 sps:$4 sm:$0xff]  }
 0x165   :  { %6999 = vmatpush1.bf16.msra.mxu1 %v11420_v39  ;;  %v2441_v61 = vpop.f32.mrb[40].mxu0  ;;  %4464 = vmatprep.subr.bf16.mxu0 %v11431_v38 }
 0x166   :  { %v2602_v63 = vpop.f32.mrb[40].mxu1  ;;  %7000 = vmatprep.subr.bf16.mxu1 %v11434_v41  ;;  %v2443_v5 = vpop.f32.mrb[41].mxu0 }
 0x167   :  { %v13452_v4 = vadd.f32 %v2602_v63, %v2441_v61  ;;  %v2604_v6 = vpop.f32.mrb[41].mxu1  ;;  %v2445_v55 = vpop.f32.mrb[42].mxu0 }
 0x168   :  { %v13460_v13 = vadd.f32 %v2604_v6, %v2443_v5  ;;  %v2606_v18 = vpop.f32.mrb[42].mxu1  ;;  %v2446_v22 = vpop.f32.mrb[43].mxu0  ;;  %4465 = vmatpush1.bf16.msra.mxu0 %v11429_v51  ;;  %v11477_v51 = vld [vmem:[%s15771_s1 + $0x6d0] ss:$8 sps:$4 sm:$0xff]   ;;  %v11411_v5 = vld [vmem:[%s15772_s0 + $0x184] ss:$16 sps:$4 sm:$0xff]  }
 0x169   :  { %v2607_v23 = vpop.f32.mrb[43].mxu1  ;;  %7001 = vmatpush1.bf16.msra.mxu1 %v11432_v16  ;;  %4466 = vmatprep.subr.bf16.mxu0 %v11443_v49  ;;  %v11480_v16 = vld [vmem:[%s15771_s1 + $0xcd0] ss:$8 sps:$4 sm:$0xff]   ;;  %v11491_v49 = vld [vmem:[%s15771_s1 + $0x6e4] ss:$8 sps:$4 sm:$0xff]  }
 0x16a   :  { %7002 = vmatprep.subr.bf16.mxu1 %v11446_v46  ;;  %3044 = vmatmul.mubr.bf16.gmra.mrb[148].mxu0 %v11385_v53  ;;  %v11494_v46 = vld [vmem:[%s15771_s1 + $0xce4] ss:$8 sps:$4 sm:$0xff]   ;;  %v11403_v53 = vld [vmem:[%s15772_s0 + $0x120] ss:$16 sps:$4 sm:$0xff]  }
 0x16b   :  { %3205 = vmatmul.mubr.bf16.gmra.mrb[148].mxu1 %v11386_v58  ;;  %3051 = vmatprep.mubr.bf16.mxu0 %v12003_v57  ;;  %v11404_v58 = vld [vmem:[%s15772_s0 + $0x128] ss:$16 sps:$4 sm:$0xff]   ;;  %v11413_v6 = vld [vmem:[%s15772_s0 + $0x18c] ss:$16 sps:$4 sm:$0xff]  }
 0x16c   :  { %3212 = vmatprep.mubr.bf16.mxu1 %v12004_v24  ;;  %4467 = vmatpush1.bf16.msra.mxu0 %v11441_v7  ;;  %v11489_v18 = vld [vmem:[%s15771_s1 + $0x6e0] ss:$8 sps:$4 sm:$0xff]   ;;  %v11503_v57 = vld [vmem:[%s15771_s1 + $0x6f4] ss:$8 sps:$4 sm:$0xff]  }
 0x16d   :  { %7003 = vmatpush1.bf16.msra.mxu1 %v11444_v10  ;;  %v2449_v25 = vpop.f32.mrb[44].mxu0  ;;  %4468 = vmatprep.subr.bf16.mxu0 %v11455_v19  ;;  %v11492_v19 = vld [vmem:[%s15771_s1 + $0xce0] ss:$8 sps:$4 sm:$0xff]   ;;  %v11506_v24 = vld [vmem:[%s15771_s1 + $0xcf4] ss:$8 sps:$4 sm:$0xff]  }
 0x16e   :  { %v2610_v26 = vpop.f32.mrb[44].mxu1  ;;  %7004 = vmatprep.subr.bf16.mxu1 %v11458_v15  ;;  %v2451_v37 = vpop.f32.mrb[45].mxu0 }
 0x16f   :  { %v13492_v36 = vadd.f32 %v2610_v26, %v2449_v25  ;;  %v2612_v12 = vpop.f32.mrb[45].mxu1  ;;  %v2453_v47 = vpop.f32.mrb[46].mxu0 }
 0x170   :  { %v13500_v45 = vadd.f32 %v2612_v12, %v2451_v37  ;;  %v2614_v39 = vpop.f32.mrb[46].mxu1  ;;  %v2454_v38 = vpop.f32.mrb[47].mxu0  ;;  %4469 = vmatpush1.bf16.msra.mxu0 %v11453_v1  ;;  %v11416_v47 = vld [vmem:[%s15772_s0 + $0x188] ss:$16 sps:$4 sm:$0xff]  }
 0x171   :  { %v2615_v41 = vpop.f32.mrb[47].mxu1  ;;  %7005 = vmatpush1.bf16.msra.mxu1 %v11456_v3  ;;  %4470 = vmatprep.subr.bf16.mxu0 %v11467_v28  ;;  %v11501_v28 = vld [vmem:[%s15771_s1 + $0x6f0] ss:$8 sps:$4 sm:$0xff]   ;;  %v11423_v38 = vld [vmem:[%s15772_s0 + $0x1a4] ss:$16 sps:$4 sm:$0xff]  }
 0x172   :  { %7006 = vmatprep.subr.bf16.mxu1 %v11470_v29  ;;  %3052 = vmatmul.mubr.bf16.gmra.mrb[152].mxu0 %v12005_v43  ;;  %v11504_v29 = vld [vmem:[%s15771_s1 + $0xcf0] ss:$8 sps:$4 sm:$0xff]   ;;  %v11425_v41 = vld [vmem:[%s15772_s0 + $0x1ac] ss:$16 sps:$4 sm:$0xff]  }
 0x173   :  { %3213 = vmatmul.mubr.bf16.gmra.mrb[152].mxu1 %v12006_v9  ;;  %3059 = vmatprep.mubr.bf16.mxu0 %v11399_v11  ;;  %v11509_v11 = vld [vmem:[%s15771_s1 + $0x704] ss:$8 sps:$4 sm:$0xff]  }
 0x174   :  { %3220 = vmatprep.mubr.bf16.mxu1 %v11401_v34  ;;  %4471 = vmatpush1.bf16.msra.mxu0 %v11465_v14  ;;  %v11512_v34 = vld [vmem:[%s15771_s1 + $0xd04] ss:$8 sps:$4 sm:$0xff]  }
 0x175   :  { %7007 = vmatpush1.bf16.msra.mxu1 %v11468_v30  ;;  %v2457_v61 = vpop.f32.mrb[48].mxu0  ;;  %4472 = vmatprep.subr.bf16.mxu0 %v11479_v32  ;;  %v11415_v30 = vld [vmem:[%s15772_s0 + $0x180] ss:$16 sps:$4 sm:$0xff]  }
 0x176   :  { %v2618_v63 = vpop.f32.mrb[48].mxu1  ;;  %7008 = vmatprep.subr.bf16.mxu1 %v11482_v33  ;;  %v2459_v10 = vpop.f32.mrb[49].mxu0 }
 0x177   :  { %v13538_v7 = vadd.f32 %v2618_v63, %v2457_v61  ;;  %v2620_v55 = vpop.f32.mrb[49].mxu1  ;;  %v2461_v22 = vpop.f32.mrb[50].mxu0  ;;  %v11428_v61 = vld [vmem:[%s15772_s0 + $0x1a8] ss:$16 sps:$4 sm:$0xff]  }
 0x178   :  { %v13546_v15 = vadd.f32 %v2620_v55, %v2459_v10  ;;  %v2622_v23 = vpop.f32.mrb[50].mxu1  ;;  %v2462_v1 = vpop.f32.mrb[51].mxu0  ;;  %4473 = vmatpush1.bf16.msra.mxu0 %v11477_v51  ;;  %v11435_v10 = vld [vmem:[%s15772_s0 + $0x1c4] ss:$16 sps:$4 sm:$0xff]   ;;  %v11437_v55 = vld [vmem:[%s15772_s0 + $0x1cc] ss:$16 sps:$4 sm:$0xff]  }
 0x179   :  { %v2623_v3 = vpop.f32.mrb[51].mxu1  ;;  %7009 = vmatpush1.bf16.msra.mxu1 %v11480_v16  ;;  %4474 = vmatprep.subr.bf16.mxu0 %v11491_v49 }
 0x17a   :  { %7010 = vmatprep.subr.bf16.mxu1 %v11494_v46  ;;  %3060 = vmatmul.mubr.bf16.gmra.mrb[156].mxu0 %v11403_v53 }
 0x17b   :  { %3221 = vmatmul.mubr.bf16.gmra.mrb[156].mxu1 %v11404_v58  ;;  %3067 = vmatprep.mubr.bf16.mxu0 %v11411_v5  ;;  %v11427_v58 = vld [vmem:[%s15772_s0 + $0x1a0] ss:$16 sps:$4 sm:$0xff]  }
 0x17c   :  { %3228 = vmatprep.mubr.bf16.mxu1 %v11413_v6  ;;  %4475 = vmatpush1.bf16.msra.mxu0 %v11489_v18 }
 0x17d   :  { %7011 = vmatpush1.bf16.msra.mxu1 %v11492_v19  ;;  %v2465_v25 = vpop.f32.mrb[52].mxu0  ;;  %4476 = vmatprep.subr.bf16.mxu0 %v11503_v57 }
 0x17e   :  { %v2626_v26 = vpop.f32.mrb[52].mxu1  ;;  %7012 = vmatprep.subr.bf16.mxu1 %v11506_v24  ;;  %v2467_v12 = vpop.f32.mrb[53].mxu0  ;;  %v11439_v24 = vld [vmem:[%s15772_s0 + $0x1c0] ss:$16 sps:$4 sm:$0xff]  }
 0x17f   :  { %v13566_v37 = vadd.f32 %v2626_v26, %v2465_v25  ;;  %v2628_v14 = vpop.f32.mrb[53].mxu1  ;;  %v2469_v32 = vpop.f32.mrb[54].mxu0 }
 0x180   :  { %v13574_v39 = vadd.f32 %v2628_v14, %v2467_v12  ;;  %v2630_v33 = vpop.f32.mrb[54].mxu1  ;;  %v2470_v43 = vpop.f32.mrb[55].mxu0  ;;  %4477 = vmatpush1.bf16.msra.mxu0 %v11501_v28  ;;  %v11440_v28 = vld [vmem:[%s15772_s0 + $0x1c8] ss:$16 sps:$4 sm:$0xff]  }
 0x181   :  { %v2631_v9 = vpop.f32.mrb[55].mxu1  ;;  %7013 = vmatpush1.bf16.msra.mxu1 %v11504_v29  ;;  %4639 = vmatprep.subr.bf16.mxu0 %v11509_v11  ;;  %v11447_v11 = vld [vmem:[%s15772_s0 + $0x1e4] ss:$16 sps:$4 sm:$0xff]   ;;  %v11452_v43 = vld [vmem:[%s15772_s0 + $0x1e8] ss:$16 sps:$4 sm:$0xff]  }
 0x182   :  { %7175 = vmatprep.subr.bf16.mxu1 %v11512_v34  ;;  %3068 = vmatmul.mubr.bf16.gmra.mrb[160].mxu0 %v11415_v30  ;;  %v11449_v34 = vld [vmem:[%s15772_s0 + $0x1ec] ss:$16 sps:$4 sm:$0xff]  }
 0x183   :  { %3229 = vmatmul.mubr.bf16.gmra.mrb[160].mxu1 %v11416_v47  ;;  %3075 = vmatprep.mubr.bf16.mxu0 %v11423_v38 }
 0x184   :  { %3236 = vmatprep.mubr.bf16.mxu1 %v11425_v41  ;;  %v11451_v41 = vld [vmem:[%s15772_s0 + $0x1e0] ss:$16 sps:$4 sm:$0xff]  }
 0x185   :  { %v2473_v51 = vpop.f32.mrb[56].mxu0 }
 0x186   :  { %v2634_v16 = vpop.f32.mrb[56].mxu1  ;;  %v2475_v46 = vpop.f32.mrb[57].mxu0 }
 0x187   :  { %v13582_v49 = vadd.f32 %v2634_v16, %v2473_v51  ;;  %v2636_v53 = vpop.f32.mrb[57].mxu1  ;;  %v2477_v5 = vpop.f32.mrb[58].mxu0 }
 0x188   :  { %v13590_v63 = vadd.f32 %v2636_v53, %v2475_v46  ;;  %v2638_v6 = vpop.f32.mrb[58].mxu1  ;;  %v2478_v18 = vpop.f32.mrb[59].mxu0  ;;  %v11459_v46 = vld [vmem:[%s15772_s0 + $0x204] ss:$16 sps:$4 sm:$0xff]  }
 0x189   :  { %v2639_v19 = vpop.f32.mrb[59].mxu1 }
 0x18a   :  { %3076 = vmatmul.mubr.bf16.gmra.mrb[164].mxu0 %v11427_v58  ;;  %v11463_v19 = vld [vmem:[%s15772_s0 + $0x200] ss:$16 sps:$4 sm:$0xff]  }
 0x18b   :  { %3237 = vmatmul.mubr.bf16.gmra.mrb[164].mxu1 %v11428_v61  ;;  %3083 = vmatprep.mubr.bf16.mxu0 %v11435_v10 }
 0x18c   :  { %3244 = vmatprep.mubr.bf16.mxu1 %v11437_v55 }
 0x18d   :  { %v2481_v22 = vpop.f32.mrb[60].mxu0 }
 0x18e   :  { %v2642_v23 = vpop.f32.mrb[60].mxu1  ;;  %v2483_v3 = vpop.f32.mrb[61].mxu0 }
 0x18f   :  { %v13598_v1 = vadd.f32 %v2642_v23, %v2481_v22  ;;  %v2644_v57 = vpop.f32.mrb[61].mxu1  ;;  %v2485_v25 = vpop.f32.mrb[62].mxu0  ;;  %v11464_v22 = vld [vmem:[%s15772_s0 + $0x208] ss:$16 sps:$4 sm:$0xff]  }
 0x190   :  { %v13606_v29 = vadd.f32 %v2644_v57, %v2483_v3  ;;  %v2646_v26 = vpop.f32.mrb[62].mxu1  ;;  %v2486_v12 = vpop.f32.mrb[63].mxu0 }
 0x191   :  { %v2647_v14 = vpop.f32.mrb[63].mxu1 }
 0x192   :  { %3084 = vmatmul.mubr.bf16.gmra.mrb[168].mxu0 %v11439_v24  ;;  %v11471_v24 = vld [vmem:[%s15772_s0 + $0x224] ss:$16 sps:$4 sm:$0xff]  }
 0x193   :  { %3245 = vmatmul.mubr.bf16.gmra.mrb[168].mxu1 %v11440_v28  ;;  %3091 = vmatprep.mubr.bf16.mxu0 %v11447_v11 }
 0x194   :  { %3252 = vmatprep.mubr.bf16.mxu1 %v11449_v34 }
 0x195   :  { %v2683_v30 = vpop.f32.mrb[64].mxu0 }
 0x196   :  { %v2844_v47 = vpop.f32.mrb[64].mxu1  ;;  %v2684_v32 = vadd.f32 %v2683_v30, %v13194_v60  ;;  %v2685_v33 = vpop.f32.mrb[65].mxu0  ;;  %v11461_v60 = vld [vmem:[%s15772_s0 + $0x20c] ss:$16 sps:$4 sm:$0xff]  }
 0x197   :  { %v2846_v38 = vpop.f32.mrb[65].mxu1  ;;  %v2686_v9 = vadd.f32 %v2685_v33, %v13196_v0  ;;  %v2687_v51 = vpop.f32.mrb[66].mxu0 }
 0x198   :  { %v2848_v16 = vpop.f32.mrb[66].mxu1  ;;  %v13628_v53 = vadd.f32 %v2844_v47, %v2684_v32  ;;  %v2688_v58 = vpop.f32.mrb[67].mxu0  ;;  %v11475_v47 = vld [vmem:[%s15772_s0 + $0x220] ss:$16 sps:$4 sm:$0xff]   ;;  %v11476_v32 = vld [vmem:[%s15772_s0 + $0x228] ss:$16 sps:$4 sm:$0xff]  }
 0x199   :  { %v2849_v61 = vpop.f32.mrb[67].mxu1  ;;  %v13630_v5 = vadd.f32 %v2846_v38, %v2686_v9 }
 0x19a   :  { %3092 = vmatmul.mubr.bf16.gmra.mrb[172].mxu0 %v11451_v41 }
 0x19b   :  { %3253 = vmatmul.mubr.bf16.gmra.mrb[172].mxu1 %v11452_v43  ;;  %3099 = vmatprep.mubr.bf16.mxu0 %v11459_v46  ;;  %v11483_v43 = vld [vmem:[%s15772_s0 + $0x244] ss:$16 sps:$4 sm:$0xff]  }
 0x19c   :  { %3260 = vmatprep.mubr.bf16.mxu1 %v11461_v60 }
 0x19d   :  { %v2691_v0 = vpop.f32.mrb[68].mxu0 }
 0x19e   :  { %v2852_v6 = vpop.f32.mrb[68].mxu1  ;;  %v2692_v10 = vadd.f32 %v2691_v0, %v13202_v50  ;;  %v2693_v55 = vpop.f32.mrb[69].mxu0  ;;  %v11473_v50 = vld [vmem:[%s15772_s0 + $0x22c] ss:$16 sps:$4 sm:$0xff]  }
 0x19f   :  { %v2854_v18 = vpop.f32.mrb[69].mxu1  ;;  %v2694_v23 = vadd.f32 %v2693_v55, %v13204_v52  ;;  %v2695_v3 = vpop.f32.mrb[70].mxu0 }
 0x1a0   :  { %v2856_v57 = vpop.f32.mrb[70].mxu1  ;;  %v13646_v28 = vadd.f32 %v2852_v6, %v2692_v10  ;;  %v2696_v25 = vpop.f32.mrb[71].mxu0  ;;  %v11487_v6 = vld [vmem:[%s15772_s0 + $0x240] ss:$16 sps:$4 sm:$0xff]   ;;  %v11488_v10 = vld [vmem:[%s15772_s0 + $0x248] ss:$16 sps:$4 sm:$0xff]  }
 0x1a1   :  { %v2857_v26 = vpop.f32.mrb[71].mxu1  ;;  %v13648_v11 = vadd.f32 %v2854_v18, %v2694_v23 }
 0x1a2   :  { %3100 = vmatmul.mubr.bf16.gmra.mrb[176].mxu0 %v11463_v19 }
 0x1a3   :  { %3261 = vmatmul.mubr.bf16.gmra.mrb[176].mxu1 %v11464_v22  ;;  %3107 = vmatprep.mubr.bf16.mxu0 %v11471_v24  ;;  %v11495_v22 = vld [vmem:[%s15772_s0 + $0x264] ss:$16 sps:$4 sm:$0xff]  }
 0x1a4   :  { %3268 = vmatprep.mubr.bf16.mxu1 %v11473_v50 }
 0x1a5   :  { %v2699_v52 = vpop.f32.mrb[72].mxu0 }
 0x1a6   :  { %v2860_v34 = vpop.f32.mrb[72].mxu1  ;;  %v2700_v12 = vadd.f32 %v2699_v52, %v13210_v56  ;;  %v2701_v14 = vpop.f32.mrb[73].mxu0  ;;  %v11485_v56 = vld [vmem:[%s15772_s0 + $0x24c] ss:$16 sps:$4 sm:$0xff]  }
 0x1a7   :  { %v2862_v30 = vpop.f32.mrb[73].mxu1  ;;  %v2702_v33 = vadd.f32 %v2701_v14, %v13212_v2  ;;  %v2703_v38 = vpop.f32.mrb[74].mxu0 }
 0x1a8   :  { %v2864_v41 = vpop.f32.mrb[74].mxu1  ;;  %v13664_v9 = vadd.f32 %v2860_v34, %v2700_v12  ;;  %v2704_v51 = vpop.f32.mrb[75].mxu0  ;;  %v11499_v34 = vld [vmem:[%s15772_s0 + $0x260] ss:$16 sps:$4 sm:$0xff]   ;;  %v11500_v12 = vld [vmem:[%s15772_s0 + $0x268] ss:$16 sps:$4 sm:$0xff]  }
 0x1a9   :  { %v2865_v16 = vpop.f32.mrb[75].mxu1  ;;  %v13666_v46 = vadd.f32 %v2862_v30, %v2702_v33 }
 0x1aa   :  { %3108 = vmatmul.mubr.bf16.gmra.mrb[180].mxu0 %v11475_v47 }
 0x1ab   :  { %3269 = vmatmul.mubr.bf16.gmra.mrb[180].mxu1 %v11476_v32  ;;  %3115 = vmatprep.mubr.bf16.mxu0 %v11483_v43 }
 0x1ac   :  { %3276 = vmatprep.mubr.bf16.mxu1 %v11485_v56 }
 0x1ad   :  { %v2707_v2 = vpop.f32.mrb[76].mxu0 }
 0x1ae   :  { %v2868_v60 = vpop.f32.mrb[76].mxu1  ;;  %v2708_v58 = vadd.f32 %v2707_v2, %v13218_v44  ;;  %v2709_v61 = vpop.f32.mrb[77].mxu0  ;;  %v11497_v44 = vld [vmem:[%s15772_s0 + $0x26c] ss:$16 sps:$4 sm:$0xff]  }
 0x1af   :  { %v2870_v0 = vpop.f32.mrb[77].mxu1  ;;  %v2710_v55 = vadd.f32 %v2709_v61, %v13226_v35  ;;  %v2711_v18 = vpop.f32.mrb[78].mxu0  ;;  %v11507_v61 = vld [vmem:[%s15771_s1 + $0x700] ss:$8 sps:$4 sm:$0xff]  }
 0x1b0   :  { %v2872_v19 = vpop.f32.mrb[78].mxu1  ;;  %v13682_v23 = vadd.f32 %v2868_v60, %v2708_v58  ;;  %v2712_v3 = vpop.f32.mrb[79].mxu0 }
 0x1b1   :  { %v2873_v57 = vpop.f32.mrb[79].mxu1  ;;  %v13684_v24 = vadd.f32 %v2870_v0, %v2710_v55  ;;  %v11510_v0 = vld [vmem:[%s15771_s1 + $0xd00] ss:$8 sps:$4 sm:$0xff]   ;;  %v12009_v3 = vld [vmem:[%s15772_s0 + $0x24] ss:$16 sps:$4 sm:$0xff]  }
 0x1b2   :  { %3116 = vmatmul.mubr.bf16.gmra.mrb[184].mxu0 %v11487_v6  ;;  %v12008_v19 = vld [vmem:[%s15772_s0] ss:$16 sps:$4 sm:$0xff]   ;;  %v11521_v57 = vld [vmem:[%s15771_s1 + $0x724] ss:$8 sps:$4 sm:$0xff]  }
 0x1b3   :  { %3277 = vmatmul.mubr.bf16.gmra.mrb[184].mxu1 %v11488_v10  ;;  %3123 = vmatprep.mubr.bf16.mxu0 %v11495_v22  ;;  %v11513_v22 = vld [vmem:[%s15771_s1 + $0x710] ss:$8 sps:$4 sm:$0xff]  }
 0x1b4   :  { %3284 = vmatprep.mubr.bf16.mxu1 %v11497_v44  ;;  %v11516_v44 = vld [vmem:[%s15771_s1 + $0xd10] ss:$8 sps:$4 sm:$0xff]  }
 0x1b5   :  { %v2715_v35 = vpop.f32.mrb[80].mxu0 }
 0x1b6   :  { %v2876_v50 = vpop.f32.mrb[80].mxu1  ;;  %v2716_v25 = vadd.f32 %v2715_v35, %v13236_v31  ;;  %v2717_v26 = vpop.f32.mrb[81].mxu0  ;;  %v12007_v31 = vld [vmem:[%s15772_s0 + $0x4] ss:$16 sps:$4 sm:$0xff]  }
 0x1b7   :  { %v2878_v52 = vpop.f32.mrb[81].mxu1  ;;  %v2718_v14 = vadd.f32 %v2717_v26, %v13238_v48  ;;  %v2719_v30 = vpop.f32.mrb[82].mxu0  ;;  %v11524_v35 = vld [vmem:[%s15771_s1 + $0xd24] ss:$8 sps:$4 sm:$0xff]  }
 0x1b8   :  { %v2880_v47 = vpop.f32.mrb[82].mxu1  ;;  %v13694_v32 = vadd.f32 %v2876_v50, %v2716_v25  ;;  %v2720_v33 = vpop.f32.mrb[83].mxu0 }
 0x1b9   :  { %v2881_v38 = vpop.f32.mrb[83].mxu1  ;;  %v13696_v41 = vadd.f32 %v2878_v52, %v2718_v14 }
 0x1ba   :  { %3124 = vmatmul.mubr.bf16.gmra.mrb[188].mxu0 %v11499_v34 }
 0x1bb   :  { %3285 = vmatmul.mubr.bf16.gmra.mrb[188].mxu1 %v11500_v12  ;;  %4478 = vmatprep.mubr.bf16.mxu0 %v12007_v31 }
 0x1bc   :  { %7014 = vmatprep.mubr.bf16.mxu1 %v12007_v31  ;;  %v11519_v31 = vld [vmem:[%s15771_s1 + $0x720] ss:$8 sps:$4 sm:$0xff]  }
 0x1bd   :  { %v2723_v43 = vpop.f32.mrb[84].mxu0 }
 0x1be   :  { %v2884_v56 = vpop.f32.mrb[84].mxu1  ;;  %v2724_v48 = vadd.f32 %v2723_v43, %v13258_v17  ;;  %v2725_v51 = vpop.f32.mrb[85].mxu0  ;;  %v11515_v17 = vld [vmem:[%s15771_s1 + $0x714] ss:$8 sps:$4 sm:$0xff]  }
 0x1bf   :  { %v2886_v16 = vpop.f32.mrb[85].mxu1  ;;  %v2726_v2 = vadd.f32 %v2725_v51, %v13266_v59  ;;  %v2727_v60 = vpop.f32.mrb[86].mxu0  ;;  %v11518_v59 = vld [vmem:[%s15771_s1 + $0xd14] ss:$8 sps:$4 sm:$0xff]  }
 0x1c0   :  { %v2888_v58 = vpop.f32.mrb[86].mxu1  ;;  %v13709_v6 = vadd.f32 %v2884_v56, %v2724_v48  ;;  %v2728_v10 = vpop.f32.mrb[87].mxu0  ;;  %v11530_v56 = vld [vmem:[%s15771_s1 + $0xd34] ss:$8 sps:$4 sm:$0xff]   ;;  %v12010_v48 = vld [vmem:[%s15772_s0 + $0x20] ss:$16 sps:$4 sm:$0xff]  }
 0x1c1   :  { %v2889_v55 = vpop.f32.mrb[87].mxu1  ;;  %v13711_v18 = vadd.f32 %v2886_v16, %v2726_v2  ;;  %v12011_v51 = vld [vmem:[%s15772_s0 + $0x44] ss:$16 sps:$4 sm:$0xff]   ;;  %v11525_v16 = vld [vmem:[%s15771_s1 + $0x730] ss:$8 sps:$4 sm:$0xff]  }
 0x1c2   :  { %4479 = vmatmul.mubr.bf16.vlgmr.msra.gmra.mrb[192].mxu0 %v12008_v19  ;;  %v11528_v2 = vld [vmem:[%s15771_s1 + $0xd30] ss:$8 sps:$4 sm:$0xff]  }
 0x1c3   :  { %7015 = vmatmul.mubr.bf16.vlgmr.msra.gmra.mrb[192].mxu1 %v12008_v19  ;;  %4640 = vmatpush1.bf16.msra.mxu0 %v11507_v61  ;;  %v11533_v61 = vld [vmem:[%s15771_s1 + $0x744] ss:$8 sps:$4 sm:$0xff]  }
 0x1c4   :  { %7176 = vmatpush1.bf16.msra.mxu1 %v11510_v0  ;;  %4488 = vmatprep.mubr.bf16.mxu0 %v12009_v3  ;;  %v11536_v0 = vld [vmem:[%s15771_s1 + $0xd44] ss:$8 sps:$4 sm:$0xff]  }
 0x1c5   :  { %7024 = vmatprep.mubr.bf16.mxu1 %v12009_v3  ;;  %v2731_v50 = vpop.f32.mrb[88].mxu0  ;;  %4641 = vmatprep.subr.bf16.mxu0 %v11515_v17 }
 0x1c6   :  { %v2892_v25 = vpop.f32.mrb[88].mxu1  ;;  %7177 = vmatprep.subr.bf16.mxu1 %v11518_v59  ;;  %v2732_v26 = vadd.f32 %v2731_v50, %v13298_v62  ;;  %v2733_v52 = vpop.f32.mrb[89].mxu0  ;;  %v11522_v62 = vld [vmem:[%s15771_s1 + $0xd20] ss:$8 sps:$4 sm:$0xff]  }
 0x1c7   :  { %v2894_v34 = vpop.f32.mrb[89].mxu1  ;;  %v2734_v12 = vadd.f32 %v2733_v52, %v13306_v27  ;;  %v2735_v14 = vpop.f32.mrb[90].mxu0  ;;  %4642 = vmatpush1.bf16.msra.mxu0 %v11513_v22  ;;  %v11527_v27 = vld [vmem:[%s15771_s1 + $0x734] ss:$8 sps:$4 sm:$0xff]  }
 0x1c8   :  { %v2896_v30 = vpop.f32.mrb[90].mxu1  ;;  %7178 = vmatpush1.bf16.msra.mxu1 %v11516_v44  ;;  %v13739_v47 = vadd.f32 %v2892_v25, %v2732_v26  ;;  %v2736_v33 = vpop.f32.mrb[91].mxu0  ;;  %4643 = vmatprep.subr.bf16.mxu0 %v11521_v57  ;;  %v11542_v25 = vld [vmem:[%s15771_s1 + $0xd54] ss:$8 sps:$4 sm:$0xff]   ;;  %v12012_v26 = vld [vmem:[%s15772_s0 + $0x40] ss:$16 sps:$4 sm:$0xff]  }
 0x1c9   :  { %v2897_v38 = vpop.f32.mrb[91].mxu1  ;;  %7179 = vmatprep.subr.bf16.mxu1 %v11524_v35  ;;  %v13747_v43 = vadd.f32 %v2894_v34, %v2734_v12  ;;  %v11531_v35 = vld [vmem:[%s15771_s1 + $0x740] ss:$8 sps:$4 sm:$0xff]   ;;  %v12013_v52 = vld [vmem:[%s15772_s0 + $0x64] ss:$16 sps:$4 sm:$0xff]  }
 0x1ca   :  { %4489 = vmatmul.mubr.bf16.gmra.mrb[196].mxu0 %v12010_v48  ;;  %v11537_v34 = vld [vmem:[%s15771_s1 + $0x750] ss:$8 sps:$4 sm:$0xff]   ;;  %v11545_v33 = vld [vmem:[%s15771_s1 + $0x764] ss:$8 sps:$4 sm:$0xff]  }
 0x1cb   :  { %7025 = vmatmul.mubr.bf16.gmra.mrb[196].mxu1 %v12010_v48  ;;  %4498 = vmatprep.mubr.bf16.mxu0 %v12011_v51  ;;  %v11540_v12 = vld [vmem:[%s15771_s1 + $0xd50] ss:$8 sps:$4 sm:$0xff]   ;;  %v11548_v38 = vld [vmem:[%s15771_s1 + $0xd64] ss:$8 sps:$4 sm:$0xff]  }
 0x1cc   :  { %7034 = vmatprep.mubr.bf16.mxu1 %v12011_v51  ;;  %4644 = vmatpush1.bf16.msra.mxu0 %v11519_v31 }
 0x1cd   :  { %7180 = vmatpush1.bf16.msra.mxu1 %v11522_v62  ;;  %v2739_v60 = vpop.f32.mrb[92].mxu0  ;;  %4645 = vmatprep.subr.bf16.mxu0 %v11527_v27 }
 0x1ce   :  { %v2900_v58 = vpop.f32.mrb[92].mxu1  ;;  %7181 = vmatprep.subr.bf16.mxu1 %v11530_v56  ;;  %v2740_v10 = vadd.f32 %v2739_v60, %v13338_v8  ;;  %v2741_v55 = vpop.f32.mrb[93].mxu0  ;;  %v11534_v8 = vld [vmem:[%s15771_s1 + $0xd40] ss:$8 sps:$4 sm:$0xff]  }
 0x1cf   :  { %v2902_v17 = vpop.f32.mrb[93].mxu1  ;;  %v2742_v59 = vadd.f32 %v2741_v55, %v13346_v42  ;;  %v2743_v19 = vpop.f32.mrb[94].mxu0  ;;  %v11539_v42 = vld [vmem:[%s15771_s1 + $0x754] ss:$8 sps:$4 sm:$0xff]  }
 0x1d0   :  { %v2904_v22 = vpop.f32.mrb[94].mxu1  ;;  %v13775_v44 = vadd.f32 %v2900_v58, %v2740_v10  ;;  %v2744_v3 = vpop.f32.mrb[95].mxu0  ;;  %4646 = vmatpush1.bf16.msra.mxu0 %v11525_v16  ;;  %v11543_v58 = vld [vmem:[%s15771_s1 + $0x760] ss:$8 sps:$4 sm:$0xff]   ;;  %v12015_v55 = vld [vmem:[%s15772_s0 + $0x84] ss:$16 sps:$4 sm:$0xff]  }
 0x1d1   :  { %v2905_v57 = vpop.f32.mrb[95].mxu1  ;;  %7182 = vmatpush1.bf16.msra.mxu1 %v11528_v2  ;;  %v13783_v50 = vadd.f32 %v2902_v17, %v2742_v59  ;;  %4647 = vmatprep.subr.bf16.mxu0 %v11533_v61  ;;  %v12014_v10 = vld [vmem:[%s15772_s0 + $0x60] ss:$16 sps:$4 sm:$0xff]   ;;  %v11557_v3 = vld [vmem:[%s15771_s1 + $0x784] ss:$8 sps:$4 sm:$0xff]  }
 0x1d2   :  { %7183 = vmatprep.subr.bf16.mxu1 %v11536_v0  ;;  %4499 = vmatmul.mubr.bf16.gmra.mrb[200].mxu0 %v12012_v26  ;;  %v11554_v0 = vld [vmem:[%s15771_s1 + $0xd74] ss:$8 sps:$4 sm:$0xff]   ;;  %v11549_v17 = vld [vmem:[%s15771_s1 + $0x770] ss:$8 sps:$4 sm:$0xff]   ;;  %v11560_v57 = vld [vmem:[%s15771_s1 + $0xd84] ss:$8 sps:$4 sm:$0xff]  }
 0x1d3   :  { %7035 = vmatmul.mubr.bf16.gmra.mrb[200].mxu1 %v12012_v26  ;;  %4508 = vmatprep.mubr.bf16.mxu0 %v12013_v52  ;;  %v11552_v59 = vld [vmem:[%s15771_s1 + $0xd70] ss:$8 sps:$4 sm:$0xff]  }
 0x1d4   :  { %7044 = vmatprep.mubr.bf16.mxu1 %v12013_v52  ;;  %4648 = vmatpush1.bf16.msra.mxu0 %v11531_v35 }
 0x1d5   :  { %7184 = vmatpush1.bf16.msra.mxu1 %v11534_v8  ;;  %v2747_v14 = vpop.f32.mrb[96].mxu0  ;;  %4649 = vmatprep.subr.bf16.mxu0 %v11539_v42 }
 0x1d6   :  { %v2908_v30 = vpop.f32.mrb[96].mxu1  ;;  %7185 = vmatprep.subr.bf16.mxu1 %v11542_v25  ;;  %v2748_v31 = vadd.f32 %v2747_v14, %v13378_v54  ;;  %v2749_v62 = vpop.f32.mrb[97].mxu0  ;;  %v11546_v54 = vld [vmem:[%s15771_s1 + $0xd60] ss:$8 sps:$4 sm:$0xff]  }
 0x1d7   :  { %v2910_v27 = vpop.f32.mrb[97].mxu1  ;;  %v2750_v56 = vadd.f32 %v2749_v62, %v13386_v21  ;;  %v2751_v48 = vpop.f32.mrb[98].mxu0  ;;  %v11551_v21 = vld [vmem:[%s15771_s1 + $0x774] ss:$8 sps:$4 sm:$0xff]  }
 0x1d8   :  { %v2912_v51 = vpop.f32.mrb[98].mxu1  ;;  %v13811_v16 = vadd.f32 %v2908_v30, %v2748_v31  ;;  %v2752_v2 = vpop.f32.mrb[99].mxu0  ;;  %4650 = vmatpush1.bf16.msra.mxu0 %v11537_v34  ;;  %v11555_v30 = vld [vmem:[%s15771_s1 + $0x780] ss:$8 sps:$4 sm:$0xff]   ;;  %v12017_v62 = vld [vmem:[%s15772_s0 + $0xa4] ss:$16 sps:$4 sm:$0xff]  }
 0x1d9   :  { %v2913_v60 = vpop.f32.mrb[99].mxu1  ;;  %7186 = vmatpush1.bf16.msra.mxu1 %v11540_v12  ;;  %v13819_v61 = vadd.f32 %v2910_v27, %v2750_v56  ;;  %4651 = vmatprep.subr.bf16.mxu0 %v11545_v33  ;;  %v12016_v31 = vld [vmem:[%s15772_s0 + $0x80] ss:$16 sps:$4 sm:$0xff]   ;;  %v11569_v2 = vld [vmem:[%s15771_s1 + $0x7a4] ss:$8 sps:$4 sm:$0xff]  }
 0x1da   :  { %7187 = vmatprep.subr.bf16.mxu1 %v11548_v38  ;;  %4509 = vmatmul.mubr.bf16.gmra.mrb[204].mxu0 %v12014_v10  ;;  %v11566_v38 = vld [vmem:[%s15771_s1 + $0xd94] ss:$8 sps:$4 sm:$0xff]   ;;  %v11561_v27 = vld [vmem:[%s15771_s1 + $0x790] ss:$8 sps:$4 sm:$0xff]   ;;  %v11572_v60 = vld [vmem:[%s15771_s1 + $0xda4] ss:$8 sps:$4 sm:$0xff]  }
 0x1db   :  { %7045 = vmatmul.mubr.bf16.gmra.mrb[204].mxu1 %v12014_v10  ;;  %4518 = vmatprep.mubr.bf16.mxu0 %v12015_v55  ;;  %v11564_v56 = vld [vmem:[%s15771_s1 + $0xd90] ss:$8 sps:$4 sm:$0xff]  }
 0x1dc   :  { %7054 = vmatprep.mubr.bf16.mxu1 %v12015_v55  ;;  %4652 = vmatpush1.bf16.msra.mxu0 %v11543_v58 }
 0x1dd   :  { %7188 = vmatpush1.bf16.msra.mxu1 %v11546_v54  ;;  %v2755_v19 = vpop.f32.mrb[100].mxu0  ;;  %4653 = vmatprep.subr.bf16.mxu0 %v11551_v21 }
 0x1de   :  { %v2916_v22 = vpop.f32.mrb[100].mxu1  ;;  %7189 = vmatprep.subr.bf16.mxu1 %v11554_v0  ;;  %v2756_v35 = vadd.f32 %v2755_v19, %v13418_v20  ;;  %v2757_v8 = vpop.f32.mrb[101].mxu0  ;;  %v11558_v20 = vld [vmem:[%s15771_s1 + $0xd80] ss:$8 sps:$4 sm:$0xff]  }
 0x1df   :  { %v2918_v42 = vpop.f32.mrb[101].mxu1  ;;  %v2758_v25 = vadd.f32 %v2757_v8, %v13426_v40  ;;  %v2759_v26 = vpop.f32.mrb[102].mxu0  ;;  %v11563_v40 = vld [vmem:[%s15771_s1 + $0x794] ss:$8 sps:$4 sm:$0xff]  }
 0x1e0   :  { %v2920_v52 = vpop.f32.mrb[102].mxu1  ;;  %v13847_v34 = vadd.f32 %v2916_v22, %v2756_v35  ;;  %v2760_v12 = vpop.f32.mrb[103].mxu0  ;;  %4654 = vmatpush1.bf16.msra.mxu0 %v11549_v17  ;;  %v11567_v22 = vld [vmem:[%s15771_s1 + $0x7a0] ss:$8 sps:$4 sm:$0xff]   ;;  %v12019_v8 = vld [vmem:[%s15772_s0 + $0xc4] ss:$16 sps:$4 sm:$0xff]  }
 0x1e1   :  { %v2921_v14 = vpop.f32.mrb[103].mxu1  ;;  %7190 = vmatpush1.bf16.msra.mxu1 %v11552_v59  ;;  %v13855_v33 = vadd.f32 %v2918_v42, %v2758_v25  ;;  %4655 = vmatprep.subr.bf16.mxu0 %v11557_v3  ;;  %v12018_v35 = vld [vmem:[%s15772_s0 + $0xa0] ss:$16 sps:$4 sm:$0xff]   ;;  %v11581_v12 = vld [vmem:[%s15771_s1 + $0x7c4] ss:$8 sps:$4 sm:$0xff]  }
 0x1e2   :  { %7191 = vmatprep.subr.bf16.mxu1 %v11560_v57  ;;  %4519 = vmatmul.mubr.bf16.gmra.mrb[208].mxu0 %v12016_v31  ;;  %v11578_v57 = vld [vmem:[%s15771_s1 + $0xdb4] ss:$8 sps:$4 sm:$0xff]   ;;  %v11573_v42 = vld [vmem:[%s15771_s1 + $0x7b0] ss:$8 sps:$4 sm:$0xff]   ;;  %v11584_v14 = vld [vmem:[%s15771_s1 + $0xdc4] ss:$8 sps:$4 sm:$0xff]  }
 0x1e3   :  { %7055 = vmatmul.mubr.bf16.gmra.mrb[208].mxu1 %v12016_v31  ;;  %4528 = vmatprep.mubr.bf16.mxu0 %v12017_v62  ;;  %v11576_v25 = vld [vmem:[%s15771_s1 + $0xdb0] ss:$8 sps:$4 sm:$0xff]  }
 0x1e4   :  { %7064 = vmatprep.mubr.bf16.mxu1 %v12017_v62  ;;  %4656 = vmatpush1.bf16.msra.mxu0 %v11555_v30 }
 0x1e5   :  { %7192 = vmatpush1.bf16.msra.mxu1 %v11558_v20  ;;  %v2763_v48 = vpop.f32.mrb[104].mxu0  ;;  %4657 = vmatprep.subr.bf16.mxu0 %v11563_v40 }
 0x1e6   :  { %v2924_v51 = vpop.f32.mrb[104].mxu1  ;;  %7193 = vmatprep.subr.bf16.mxu1 %v11566_v38  ;;  %v2764_v58 = vadd.f32 %v2763_v48, %v13452_v4  ;;  %v2765_v54 = vpop.f32.mrb[105].mxu0  ;;  %v11570_v4 = vld [vmem:[%s15771_s1 + $0xda0] ss:$8 sps:$4 sm:$0xff]  }
 0x1e7   :  { %v2926_v21 = vpop.f32.mrb[105].mxu1  ;;  %v2766_v0 = vadd.f32 %v2765_v54, %v13460_v13  ;;  %v2767_v10 = vpop.f32.mrb[106].mxu0  ;;  %v11575_v13 = vld [vmem:[%s15771_s1 + $0x7b4] ss:$8 sps:$4 sm:$0xff]  }
 0x1e8   :  { %v2928_v55 = vpop.f32.mrb[106].mxu1  ;;  %v13883_v17 = vadd.f32 %v2924_v51, %v2764_v58  ;;  %v2768_v59 = vpop.f32.mrb[107].mxu0  ;;  %4658 = vmatpush1.bf16.msra.mxu0 %v11561_v27  ;;  %v11579_v51 = vld [vmem:[%s15771_s1 + $0x7c0] ss:$8 sps:$4 sm:$0xff]   ;;  %v12021_v54 = vld [vmem:[%s15772_s0 + $0xe4] ss:$16 sps:$4 sm:$0xff]  }
 0x1e9   :  { %v2929_v19 = vpop.f32.mrb[107].mxu1  ;;  %7194 = vmatpush1.bf16.msra.mxu1 %v11564_v56  ;;  %v13891_v3 = vadd.f32 %v2926_v21, %v2766_v0  ;;  %4659 = vmatprep.subr.bf16.mxu0 %v11569_v2  ;;  %v12020_v58 = vld [vmem:[%s15772_s0 + $0xc0] ss:$16 sps:$4 sm:$0xff]   ;;  %v11593_v59 = vld [vmem:[%s15771_s1 + $0x7e4] ss:$8 sps:$4 sm:$0xff]  }
 0x1ea   :  { %7195 = vmatprep.subr.bf16.mxu1 %v11572_v60  ;;  %4529 = vmatmul.mubr.bf16.gmra.mrb[212].mxu0 %v12018_v35  ;;  %v11590_v60 = vld [vmem:[%s15771_s1 + $0xdd4] ss:$8 sps:$4 sm:$0xff]   ;;  %v11585_v21 = vld [vmem:[%s15771_s1 + $0x7d0] ss:$8 sps:$4 sm:$0xff]   ;;  %v11596_v19 = vld [vmem:[%s15771_s1 + $0xde4] ss:$8 sps:$4 sm:$0xff]  }
 0x1eb   :  { %7065 = vmatmul.mubr.bf16.gmra.mrb[212].mxu1 %v12018_v35  ;;  %4538 = vmatprep.mubr.bf16.mxu0 %v12019_v8  ;;  %v11588_v0 = vld [vmem:[%s15771_s1 + $0xdd0] ss:$8 sps:$4 sm:$0xff]  }
 0x1ec   :  { %7074 = vmatprep.mubr.bf16.mxu1 %v12019_v8  ;;  %4660 = vmatpush1.bf16.msra.mxu0 %v11567_v22 }
 0x1ed   :  { %7196 = vmatpush1.bf16.msra.mxu1 %v11570_v4  ;;  %v2771_v26 = vpop.f32.mrb[108].mxu0  ;;  %4661 = vmatprep.subr.bf16.mxu0 %v11575_v13 }
 0x1ee   :  { %v2932_v52 = vpop.f32.mrb[108].mxu1  ;;  %7197 = vmatprep.subr.bf16.mxu1 %v11578_v57  ;;  %v2772_v30 = vadd.f32 %v2771_v26, %v13492_v36  ;;  %v2773_v20 = vpop.f32.mrb[109].mxu0  ;;  %v11582_v36 = vld [vmem:[%s15771_s1 + $0xdc0] ss:$8 sps:$4 sm:$0xff]  }
 0x1ef   :  { %v2934_v40 = vpop.f32.mrb[109].mxu1  ;;  %v2774_v38 = vadd.f32 %v2773_v20, %v13500_v45  ;;  %v2775_v31 = vpop.f32.mrb[110].mxu0  ;;  %v11587_v45 = vld [vmem:[%s15771_s1 + $0x7d4] ss:$8 sps:$4 sm:$0xff]  }
 0x1f0   :  { %v2936_v62 = vpop.f32.mrb[110].mxu1  ;;  %v13919_v27 = vadd.f32 %v2932_v52, %v2772_v30  ;;  %v2776_v56 = vpop.f32.mrb[111].mxu0  ;;  %4662 = vmatpush1.bf16.msra.mxu0 %v11573_v42  ;;  %v11591_v52 = vld [vmem:[%s15771_s1 + $0x7e0] ss:$8 sps:$4 sm:$0xff]   ;;  %v12023_v20 = vld [vmem:[%s15772_s0 + $0x144] ss:$16 sps:$4 sm:$0xff]  }
 0x1f1   :  { %v2937_v48 = vpop.f32.mrb[111].mxu1  ;;  %7198 = vmatpush1.bf16.msra.mxu1 %v11576_v25  ;;  %v13927_v2 = vadd.f32 %v2934_v40, %v2774_v38  ;;  %4663 = vmatprep.subr.bf16.mxu0 %v11581_v12  ;;  %v12022_v30 = vld [vmem:[%s15772_s0 + $0xe0] ss:$16 sps:$4 sm:$0xff]   ;;  %v11605_v56 = vld [vmem:[%s15771_s1 + $0x804] ss:$8 sps:$4 sm:$0xff]  }
 0x1f2   :  { %7199 = vmatprep.subr.bf16.mxu1 %v11584_v14  ;;  %4539 = vmatmul.mubr.bf16.gmra.mrb[216].mxu0 %v12020_v58  ;;  %v11602_v14 = vld [vmem:[%s15771_s1 + $0xdf4] ss:$8 sps:$4 sm:$0xff]   ;;  %v11597_v40 = vld [vmem:[%s15771_s1 + $0x7f0] ss:$8 sps:$4 sm:$0xff]   ;;  %v11608_v48 = vld [vmem:[%s15771_s1 + $0xe04] ss:$8 sps:$4 sm:$0xff]  }
 0x1f3   :  { %7075 = vmatmul.mubr.bf16.gmra.mrb[216].mxu1 %v12020_v58  ;;  %4548 = vmatprep.mubr.bf16.mxu0 %v12021_v54  ;;  %v11600_v38 = vld [vmem:[%s15771_s1 + $0xdf0] ss:$8 sps:$4 sm:$0xff]  }
 0x1f4   :  { %7084 = vmatprep.mubr.bf16.mxu1 %v12021_v54  ;;  %4664 = vmatpush1.bf16.msra.mxu0 %v11579_v51 }
 0x1f5   :  { %7200 = vmatpush1.bf16.msra.mxu1 %v11582_v36  ;;  %v2779_v10 = vpop.f32.mrb[112].mxu0  ;;  %4665 = vmatprep.subr.bf16.mxu0 %v11587_v45 }
 0x1f6   :  { %v2940_v55 = vpop.f32.mrb[112].mxu1  ;;  %7201 = vmatprep.subr.bf16.mxu1 %v11590_v60  ;;  %v2780_v22 = vadd.f32 %v2779_v10, %v13538_v7  ;;  %v2781_v4 = vpop.f32.mrb[113].mxu0  ;;  %v11594_v7 = vld [vmem:[%s15771_s1 + $0xde0] ss:$8 sps:$4 sm:$0xff]  }
 0x1f7   :  { %v2942_v13 = vpop.f32.mrb[113].mxu1  ;;  %v2782_v57 = vadd.f32 %v2781_v4, %v13546_v15  ;;  %v2783_v35 = vpop.f32.mrb[114].mxu0  ;;  %v11599_v15 = vld [vmem:[%s15771_s1 + $0x7f4] ss:$8 sps:$4 sm:$0xff]  }
 0x1f8   :  { %v2944_v8 = vpop.f32.mrb[114].mxu1  ;;  %v13955_v42 = vadd.f32 %v2940_v55, %v2780_v22  ;;  %v2784_v25 = vpop.f32.mrb[115].mxu0  ;;  %4666 = vmatpush1.bf16.msra.mxu0 %v11585_v21 }
 0x1f9   :  { %v2945_v26 = vpop.f32.mrb[115].mxu1  ;;  %7202 = vmatpush1.bf16.msra.mxu1 %v11588_v0  ;;  %v13963_v12 = vadd.f32 %v2942_v13, %v2782_v57  ;;  %4667 = vmatprep.subr.bf16.mxu0 %v11593_v59 }
 0x1fa   :  { %7203 = vmatprep.subr.bf16.mxu1 %v11596_v19  ;;  %4549 = vmatmul.mubr.bf16.gmra.mrb[220].mxu0 %v12022_v30 }
 0x1fb   :  { %7085 = vmatmul.mubr.bf16.gmra.mrb[220].mxu1 %v12022_v30  ;;  %4558 = vmatprep.mubr.bf16.mxu0 %v12023_v20 }
 0x1fc   :  { %7094 = vmatprep.mubr.bf16.mxu1 %v12023_v20  ;;  %4668 = vmatpush1.bf16.msra.mxu0 %v11591_v52 }
 0x1fd   :  { %7204 = vmatpush1.bf16.msra.mxu1 %v11594_v7  ;;  %v2787_v31 = vpop.f32.mrb[116].mxu0  ;;  %4669 = vmatprep.subr.bf16.mxu0 %v11599_v15  ;;  %v12026_v15 = vld [vmem:[%s15772_s0 + $0x160] ss:$16 sps:$4 sm:$0xff]  }
 0x1fe   :  { %v2948_v62 = vpop.f32.mrb[116].mxu1  ;;  %7205 = vmatprep.subr.bf16.mxu1 %v11602_v14  ;;  %v2788_v51 = vadd.f32 %v2787_v31, %v13566_v37  ;;  %v2789_v36 = vpop.f32.mrb[117].mxu0  ;;  %v12024_v37 = vld [vmem:[%s15772_s0 + $0x140] ss:$16 sps:$4 sm:$0xff]  }
 0x1ff   :  { %v2950_v45 = vpop.f32.mrb[117].mxu1  ;;  %v2790_v60 = vadd.f32 %v2789_v36, %v13574_v39  ;;  %v2791_v58 = vpop.f32.mrb[118].mxu0  ;;  %v12025_v39 = vld [vmem:[%s15772_s0 + $0x164] ss:$16 sps:$4 sm:$0xff]  }
 0x200   :  { %v2952_v54 = vpop.f32.mrb[118].mxu1  ;;  %v13991_v21 = vadd.f32 %v2948_v62, %v2788_v51  ;;  %v2792_v0 = vpop.f32.mrb[119].mxu0  ;;  %4670 = vmatpush1.bf16.msra.mxu0 %v11597_v40 }
 0x201   :  { %v2953_v10 = vpop.f32.mrb[119].mxu1  ;;  %7206 = vmatpush1.bf16.msra.mxu1 %v11600_v38  ;;  %v13993_v55 = vadd.f32 %v2950_v45, %v2790_v60  ;;  %4832 = vmatprep.subr.bf16.mxu0 %v11605_v56  ;;  %v12028_v45 = vld [vmem:[%s15772_s0 + $0x180] ss:$16 sps:$4 sm:$0xff]  }
 0x202   :  { %7368 = vmatprep.subr.bf16.mxu1 %v11608_v48  ;;  %4559 = vmatmul.mubr.bf16.gmra.mrb[224].mxu0 %v12024_v37 }
 0x203   :  { %7095 = vmatmul.mubr.bf16.gmra.mrb[224].mxu1 %v12024_v37  ;;  %4568 = vmatprep.mubr.bf16.mxu0 %v12025_v39 }
 0x204   :  { %7104 = vmatprep.mubr.bf16.mxu1 %v12025_v39 }
 0x205   :  { %v2795_v59 = vpop.f32.mrb[120].mxu0 }
 0x206   :  { %v2956_v19 = vpop.f32.mrb[120].mxu1  ;;  %v2796_v22 = vadd.f32 %v2795_v59, %v13582_v49  ;;  %v2797_v4 = vpop.f32.mrb[121].mxu0  ;;  %v12027_v49 = vld [vmem:[%s15772_s0 + $0x184] ss:$16 sps:$4 sm:$0xff]  }
 0x207   :  { %v2958_v13 = vpop.f32.mrb[121].mxu1  ;;  %v2798_v57 = vadd.f32 %v2797_v4, %v13590_v63  ;;  %v2799_v35 = vpop.f32.mrb[122].mxu0 }
 0x208   :  { %v2960_v8 = vpop.f32.mrb[122].mxu1  ;;  %v14003_v25 = vadd.f32 %v2956_v19, %v2796_v22  ;;  %v2800_v26 = vpop.f32.mrb[123].mxu0 }
 0x209   :  { %v2961_v52 = vpop.f32.mrb[123].mxu1  ;;  %v14005_v7 = vadd.f32 %v2958_v13, %v2798_v57  ;;  %v12030_v13 = vld [vmem:[%s15772_s0 + $0x1a0] ss:$16 sps:$4 sm:$0xff]  }
 0x20a   :  { %4569 = vmatmul.mubr.bf16.gmra.mrb[228].mxu0 %v12026_v15 }
 0x20b   :  { %7105 = vmatmul.mubr.bf16.gmra.mrb[228].mxu1 %v12026_v15  ;;  %4578 = vmatprep.mubr.bf16.mxu0 %v12027_v49 }
 0x20c   :  { %7114 = vmatprep.mubr.bf16.mxu1 %v12027_v49 }
 0x20d   :  { %v2803_v63 = vpop.f32.mrb[124].mxu0 }
 0x20e   :  { %v2964_v14 = vpop.f32.mrb[124].mxu1  ;;  %v2804_v30 = vadd.f32 %v2803_v63, %v13598_v1  ;;  %v2805_v20 = vpop.f32.mrb[125].mxu0  ;;  %v12029_v1 = vld [vmem:[%s15772_s0 + $0x1a4] ss:$16 sps:$4 sm:$0xff]  }
 0x20f   :  { %v2966_v40 = vpop.f32.mrb[125].mxu1  ;;  %v2806_v38 = vadd.f32 %v2805_v20, %v13606_v29  ;;  %v2807_v31 = vpop.f32.mrb[126].mxu0 }
 0x210   :  { %v2968_v62 = vpop.f32.mrb[126].mxu1  ;;  %v14015_v56 = vadd.f32 %v2964_v14, %v2804_v30  ;;  %v2808_v48 = vpop.f32.mrb[127].mxu0 }
 0x211   :  { %v2969_v51 = vpop.f32.mrb[127].mxu1  ;;  %v14017_v36 = vadd.f32 %v2966_v40, %v2806_v38  ;;  %v12032_v40 = vld [vmem:[%s15772_s0 + $0x1c0] ss:$16 sps:$4 sm:$0xff]  }
 0x212   :  { %4579 = vmatmul.mubr.bf16.gmra.mrb[232].mxu0 %v12028_v45 }
 0x213   :  { %7115 = vmatmul.mubr.bf16.gmra.mrb[232].mxu1 %v12028_v45  ;;  %4588 = vmatprep.mubr.bf16.mxu0 %v12029_v1 }
 0x214   :  { %7124 = vmatprep.mubr.bf16.mxu1 %v12029_v1 }
 0x215   :  { %v3005_v29 = vpop.f32.mrb[128].mxu0 }
 0x216   :  { %v3166_v60 = vpop.f32.mrb[128].mxu1  ;;  %v3006_v58 = vadd.f32 %v3005_v29, %v13628_v53  ;;  %v3007_v54 = vpop.f32.mrb[129].mxu0  ;;  %v12031_v53 = vld [vmem:[%s15772_s0 + $0x1c4] ss:$16 sps:$4 sm:$0xff]  }
 0x217   :  { %v3168_v0 = vpop.f32.mrb[129].mxu1  ;;  %v3008_v10 = vadd.f32 %v3007_v54, %v13630_v5  ;;  %v3009_v37 = vpop.f32.mrb[130].mxu0 }
 0x218   :  { %v3170_v39 = vpop.f32.mrb[130].mxu1  ;;  %v14027_v59 = vadd.f32 %v3166_v60, %v3006_v58  ;;  %v3010_v19 = vpop.f32.mrb[131].mxu0 }
 0x219   :  { %v3171_v22 = vpop.f32.mrb[131].mxu1  ;;  %v14029_v4 = vadd.f32 %v3168_v0, %v3008_v10  ;;  %v12034_v0 = vld [vmem:[%s15772_s0 + $0x1e0] ss:$16 sps:$4 sm:$0xff]  }
 0x21a   :  { %4589 = vmatmul.mubr.bf16.gmra.mrb[236].mxu0 %v12030_v13 }
 0x21b   :  { %7125 = vmatmul.mubr.bf16.gmra.mrb[236].mxu1 %v12030_v13  ;;  %4598 = vmatprep.mubr.bf16.mxu0 %v12031_v53 }
 0x21c   :  { %7134 = vmatprep.mubr.bf16.mxu1 %v12031_v53 }
 0x21d   :  { %v3013_v5 = vpop.f32.mrb[132].mxu0 }
 0x21e   :  { %v3174_v57 = vpop.f32.mrb[132].mxu1  ;;  %v3014_v35 = vadd.f32 %v3013_v5, %v13646_v28  ;;  %v3015_v8 = vpop.f32.mrb[133].mxu0  ;;  %v12033_v28 = vld [vmem:[%s15772_s0 + $0x1e4] ss:$16 sps:$4 sm:$0xff]  }
 0x21f   :  { %v3176_v26 = vpop.f32.mrb[133].mxu1  ;;  %v3016_v52 = vadd.f32 %v3015_v8, %v13648_v11  ;;  %v3017_v15 = vpop.f32.mrb[134].mxu0 }
 0x220   :  { %v3178_v49 = vpop.f32.mrb[134].mxu1  ;;  %v14039_v63 = vadd.f32 %v3174_v57, %v3014_v35  ;;  %v3018_v14 = vpop.f32.mrb[135].mxu0 }
 0x221   :  { %v3179_v30 = vpop.f32.mrb[135].mxu1  ;;  %v14041_v20 = vadd.f32 %v3176_v26, %v3016_v52  ;;  %v12036_v26 = vld [vmem:[%s15772_s0 + $0x200] ss:$16 sps:$4 sm:$0xff]  }
 0x222   :  { %4599 = vmatmul.mubr.bf16.gmra.mrb[240].mxu0 %v12032_v40 }
 0x223   :  { %7135 = vmatmul.mubr.bf16.gmra.mrb[240].mxu1 %v12032_v40  ;;  %4608 = vmatprep.mubr.bf16.mxu0 %v12033_v28 }
 0x224   :  { %7144 = vmatprep.mubr.bf16.mxu1 %v12033_v28 }
 0x225   :  { %v3021_v11 = vpop.f32.mrb[136].mxu0 }
 0x226   :  { %v3182_v38 = vpop.f32.mrb[136].mxu1  ;;  %v3022_v31 = vadd.f32 %v3021_v11, %v13664_v9  ;;  %v3023_v62 = vpop.f32.mrb[137].mxu0  ;;  %v12035_v9 = vld [vmem:[%s15772_s0 + $0x204] ss:$16 sps:$4 sm:$0xff]  }
 0x227   :  { %v3184_v48 = vpop.f32.mrb[137].mxu1  ;;  %v3024_v51 = vadd.f32 %v3023_v62, %v13666_v46  ;;  %v3025_v45 = vpop.f32.mrb[138].mxu0 }
 0x228   :  { %v3186_v1 = vpop.f32.mrb[138].mxu1  ;;  %v14051_v29 = vadd.f32 %v3182_v38, %v3022_v31  ;;  %v3026_v60 = vpop.f32.mrb[139].mxu0 }
 0x229   :  { %v3187_v58 = vpop.f32.mrb[139].mxu1  ;;  %v14053_v54 = vadd.f32 %v3184_v48, %v3024_v51  ;;  %v12038_v48 = vld [vmem:[%s15772_s0 + $0x220] ss:$16 sps:$4 sm:$0xff]  }
 0x22a   :  { %4609 = vmatmul.mubr.bf16.gmra.mrb[244].mxu0 %v12034_v0 }
 0x22b   :  { %7145 = vmatmul.mubr.bf16.gmra.mrb[244].mxu1 %v12034_v0  ;;  %4618 = vmatprep.mubr.bf16.mxu0 %v12035_v9 }
 0x22c   :  { %7154 = vmatprep.mubr.bf16.mxu1 %v12035_v9 }
 0x22d   :  { %v3029_v46 = vpop.f32.mrb[140].mxu0 }
 0x22e   :  { %v3190_v10 = vpop.f32.mrb[140].mxu1  ;;  %v3030_v37 = vadd.f32 %v3029_v46, %v13682_v23  ;;  %v3031_v39 = vpop.f32.mrb[141].mxu0  ;;  %v12037_v23 = vld [vmem:[%s15772_s0 + $0x224] ss:$16 sps:$4 sm:$0xff]   ;;  %v11603_v46 = vld [vmem:[%s15771_s1 + $0x800] ss:$8 sps:$4 sm:$0xff]  }
 0x22f   :  { %v3192_v19 = vpop.f32.mrb[141].mxu1  ;;  %v3032_v22 = vadd.f32 %v3031_v39, %v13684_v24  ;;  %v3033_v13 = vpop.f32.mrb[142].mxu0 }
 0x230   :  { %v3194_v53 = vpop.f32.mrb[142].mxu1  ;;  %v14063_v5 = vadd.f32 %v3190_v10, %v3030_v37  ;;  %v3034_v57 = vpop.f32.mrb[143].mxu0  ;;  %v11606_v10 = vld [vmem:[%s15771_s1 + $0xe00] ss:$8 sps:$4 sm:$0xff]  }
 0x231   :  { %v3195_v35 = vpop.f32.mrb[143].mxu1  ;;  %v14065_v8 = vadd.f32 %v3192_v19, %v3032_v22  ;;  %v12040_v13 = vld [vmem:[%s15772_s0 + $0x8] ss:$16 sps:$4 sm:$0xff]  }
 0x232   :  { %4619 = vmatmul.mubr.bf16.gmra.mrb[248].mxu0 %v12036_v26  ;;  %v11609_v53 = vld [vmem:[%s15771_s1 + $0x810] ss:$8 sps:$4 sm:$0xff]   ;;  %v14115_v35 = vld [vmem:[%s15772_s0 + $0x2c] ss:$16 sps:$4 sm:$0xff]  }
 0x233   :  { %7155 = vmatmul.mubr.bf16.gmra.mrb[248].mxu1 %v12036_v26  ;;  %4628 = vmatprep.mubr.bf16.mxu0 %v12037_v23  ;;  %v11612_v57 = vld [vmem:[%s15771_s1 + $0xe10] ss:$8 sps:$4 sm:$0xff]   ;;  %v11617_v26 = vld [vmem:[%s15771_s1 + $0x824] ss:$8 sps:$4 sm:$0xff]  }
 0x234   :  { %7164 = vmatprep.mubr.bf16.mxu1 %v12037_v23  ;;  %v11620_v23 = vld [vmem:[%s15771_s1 + $0xe24] ss:$8 sps:$4 sm:$0xff]  }
 0x235   :  { %v3037_v24 = vpop.f32.mrb[144].mxu0 }
 0x236   :  { %v3198_v52 = vpop.f32.mrb[144].mxu1  ;;  %v3038_v15 = vadd.f32 %v3037_v24, %v13694_v32  ;;  %v3039_v49 = vpop.f32.mrb[145].mxu0  ;;  %v12039_v32 = vld [vmem:[%s15772_s0 + $0xc] ss:$16 sps:$4 sm:$0xff]  }
 0x237   :  { %v3200_v14 = vpop.f32.mrb[145].mxu1  ;;  %v3040_v30 = vadd.f32 %v3039_v49, %v13696_v41  ;;  %v3041_v40 = vpop.f32.mrb[146].mxu0 }
 0x238   :  { %v3202_v28 = vpop.f32.mrb[146].mxu1  ;;  %v14075_v11 = vadd.f32 %v3198_v52, %v3038_v15  ;;  %v3042_v38 = vpop.f32.mrb[147].mxu0 }
 0x239   :  { %v3203_v31 = vpop.f32.mrb[147].mxu1  ;;  %v14077_v62 = vadd.f32 %v3200_v14, %v3040_v30 }
 0x23a   :  { %4629 = vmatmul.mubr.bf16.gmra.mrb[252].mxu0 %v12038_v48 }
 0x23b   :  { %7165 = vmatmul.mubr.bf16.gmra.mrb[252].mxu1 %v12038_v48  ;;  %4671 = vmatprep.mubr.bf16.mxu0 %v12039_v32 }
 0x23c   :  { %7207 = vmatprep.mubr.bf16.mxu1 %v12039_v32  ;;  %v11615_v32 = vld [vmem:[%s15771_s1 + $0x820] ss:$8 sps:$4 sm:$0xff]  }
 0x23d   :  { %v3045_v41 = vpop.f32.mrb[148].mxu0 }
 0x23e   :  { %v3206_v51 = vpop.f32.mrb[148].mxu1  ;;  %v3046_v45 = vadd.f32 %v3045_v41, %v13709_v6  ;;  %v3047_v1 = vpop.f32.mrb[149].mxu0  ;;  %v11611_v6 = vld [vmem:[%s15771_s1 + $0x814] ss:$8 sps:$4 sm:$0xff]  }
 0x23f   :  { %v3208_v60 = vpop.f32.mrb[149].mxu1  ;;  %v3048_v58 = vadd.f32 %v3047_v1, %v13711_v18  ;;  %v3049_v0 = vpop.f32.mrb[150].mxu0  ;;  %v11614_v18 = vld [vmem:[%s15771_s1 + $0xe14] ss:$8 sps:$4 sm:$0xff]  }
 0x240   :  { %v3210_v9 = vpop.f32.mrb[150].mxu1  ;;  %v14093_v37 = vadd.f32 %v3206_v51, %v3046_v45  ;;  %v3050_v39 = vpop.f32.mrb[151].mxu0  ;;  %v11626_v51 = vld [vmem:[%s15771_s1 + $0xe34] ss:$8 sps:$4 sm:$0xff]   ;;  %v14146_v45 = vld [vmem:[%s15772_s0 + $0x28] ss:$16 sps:$4 sm:$0xff]  }
 0x241   :  { %v3211_v19 = vpop.f32.mrb[151].mxu1  ;;  %v14095_v22 = vadd.f32 %v3208_v60, %v3048_v58  ;;  %v14153_v1 = vld [vmem:[%s15772_s0 + $0x4c] ss:$16 sps:$4 sm:$0xff]   ;;  %v11621_v60 = vld [vmem:[%s15771_s1 + $0x830] ss:$8 sps:$4 sm:$0xff]  }
 0x242   :  { %4672 = vmatmul.mubr.bf16.vlgmr.msra.gmra.mrb[192].mxu0 %v12040_v13  ;;  %v11624_v58 = vld [vmem:[%s15771_s1 + $0xe30] ss:$8 sps:$4 sm:$0xff]  }
 0x243   :  { %7208 = vmatmul.mubr.bf16.vlgmr.msra.gmra.mrb[192].mxu1 %v12040_v13  ;;  %4833 = vmatpush1.bf16.msra.mxu0 %v11603_v46  ;;  %v11629_v46 = vld [vmem:[%s15771_s1 + $0x844] ss:$8 sps:$4 sm:$0xff]  }
 0x244   :  { %7369 = vmatpush1.bf16.msra.mxu1 %v11606_v10  ;;  %4681 = vmatprep.mubr.bf16.mxu0 %v14115_v35  ;;  %v11632_v10 = vld [vmem:[%s15771_s1 + $0xe44] ss:$8 sps:$4 sm:$0xff]  }
 0x245   :  { %7217 = vmatprep.mubr.bf16.mxu1 %v14115_v35  ;;  %v3053_v24 = vpop.f32.mrb[152].mxu0  ;;  %4834 = vmatprep.subr.bf16.mxu0 %v11611_v6 }
 0x246   :  { %v3214_v52 = vpop.f32.mrb[152].mxu1  ;;  %7370 = vmatprep.subr.bf16.mxu1 %v11614_v18  ;;  %v3054_v15 = vadd.f32 %v3053_v24, %v13739_v47  ;;  %v3055_v49 = vpop.f32.mrb[153].mxu0  ;;  %v11618_v47 = vld [vmem:[%s15771_s1 + $0xe20] ss:$8 sps:$4 sm:$0xff]  }
 0x247   :  { %v3216_v14 = vpop.f32.mrb[153].mxu1  ;;  %v3056_v30 = vadd.f32 %v3055_v49, %v13747_v43  ;;  %v3057_v40 = vpop.f32.mrb[154].mxu0  ;;  %4835 = vmatpush1.bf16.msra.mxu0 %v11609_v53  ;;  %v11623_v43 = vld [vmem:[%s15771_s1 + $0x834] ss:$8 sps:$4 sm:$0xff]   ;;  %v11627_v24 = vld [vmem:[%s15771_s1 + $0x840] ss:$8 sps:$4 sm:$0xff]  }
 0x248   :  { %v3218_v28 = vpop.f32.mrb[154].mxu1  ;;  %7371 = vmatpush1.bf16.msra.mxu1 %v11612_v57  ;;  %v14127_v38 = vadd.f32 %v3214_v52, %v3054_v15  ;;  %v3058_v31 = vpop.f32.mrb[155].mxu0  ;;  %4836 = vmatprep.subr.bf16.mxu0 %v11617_v26  ;;  %v11638_v15 = vld [vmem:[%s15771_s1 + $0xe54] ss:$8 sps:$4 sm:$0xff]   ;;  %v14190_v49 = vld [vmem:[%s15772_s0 + $0x48] ss:$16 sps:$4 sm:$0xff]  }
 0x249   :  { %v3219_v48 = vpop.f32.mrb[155].mxu1  ;;  %7372 = vmatprep.subr.bf16.mxu1 %v11620_v23  ;;  %v14135_v41 = vadd.f32 %v3216_v14, %v3056_v30  ;;  %v14197_v14 = vld [vmem:[%s15772_s0 + $0x6c] ss:$16 sps:$4 sm:$0xff]   ;;  %v11633_v30 = vld [vmem:[%s15771_s1 + $0x850] ss:$8 sps:$4 sm:$0xff]  }
 0x24a   :  { %4682 = vmatmul.mubr.bf16.gmra.mrb[196].mxu0 %v14146_v45  ;;  %v11636_v40 = vld [vmem:[%s15771_s1 + $0xe50] ss:$8 sps:$4 sm:$0xff]   ;;  %v11641_v48 = vld [vmem:[%s15771_s1 + $0x864] ss:$8 sps:$4 sm:$0xff]  }
 0x24b   :  { %7218 = vmatmul.mubr.bf16.gmra.mrb[196].mxu1 %v14146_v45  ;;  %4691 = vmatprep.mubr.bf16.mxu0 %v14153_v1 }
 0x24c   :  { %7227 = vmatprep.mubr.bf16.mxu1 %v14153_v1  ;;  %4837 = vmatpush1.bf16.msra.mxu0 %v11615_v32  ;;  %v11644_v32 = vld [vmem:[%s15771_s1 + $0xe64] ss:$8 sps:$4 sm:$0xff]  }
 0x24d   :  { %7373 = vmatpush1.bf16.msra.mxu1 %v11618_v47  ;;  %v3061_v0 = vpop.f32.mrb[156].mxu0  ;;  %4838 = vmatprep.subr.bf16.mxu0 %v11623_v43 }
 0x24e   :  { %v3222_v9 = vpop.f32.mrb[156].mxu1  ;;  %7374 = vmatprep.subr.bf16.mxu1 %v11626_v51  ;;  %v3062_v39 = vadd.f32 %v3061_v0, %v13775_v44  ;;  %v3063_v19 = vpop.f32.mrb[157].mxu0  ;;  %v11630_v44 = vld [vmem:[%s15771_s1 + $0xe40] ss:$8 sps:$4 sm:$0xff]  }
 0x24f   :  { %v3224_v6 = vpop.f32.mrb[157].mxu1  ;;  %v3064_v18 = vadd.f32 %v3063_v19, %v13783_v50  ;;  %v3065_v13 = vpop.f32.mrb[158].mxu0  ;;  %v11635_v50 = vld [vmem:[%s15771_s1 + $0x854] ss:$8 sps:$4 sm:$0xff]  }
 0x250   :  { %v3226_v53 = vpop.f32.mrb[158].mxu1  ;;  %v14171_v57 = vadd.f32 %v3222_v9, %v3062_v39  ;;  %v3066_v26 = vpop.f32.mrb[159].mxu0  ;;  %4839 = vmatpush1.bf16.msra.mxu0 %v11621_v60  ;;  %v11639_v39 = vld [vmem:[%s15771_s1 + $0x860] ss:$8 sps:$4 sm:$0xff]   ;;  %v14241_v13 = vld [vmem:[%s15772_s0 + $0x8c] ss:$16 sps:$4 sm:$0xff]  }
 0x251   :  { %v3227_v23 = vpop.f32.mrb[159].mxu1  ;;  %7375 = vmatpush1.bf16.msra.mxu1 %v11624_v58  ;;  %v14179_v52 = vadd.f32 %v3224_v6, %v3064_v18  ;;  %4840 = vmatprep.subr.bf16.mxu0 %v11629_v46  ;;  %v11650_v6 = vld [vmem:[%s15771_s1 + $0xe74] ss:$8 sps:$4 sm:$0xff]   ;;  %v14234_v18 = vld [vmem:[%s15772_s0 + $0x68] ss:$16 sps:$4 sm:$0xff]  }
 0x252   :  { %7376 = vmatprep.subr.bf16.mxu1 %v11632_v10  ;;  %4692 = vmatmul.mubr.bf16.gmra.mrb[200].mxu0 %v14190_v49  ;;  %v11645_v53 = vld [vmem:[%s15771_s1 + $0x870] ss:$8 sps:$4 sm:$0xff]  }
 0x253   :  { %7228 = vmatmul.mubr.bf16.gmra.mrb[200].mxu1 %v14190_v49  ;;  %4701 = vmatprep.mubr.bf16.mxu0 %v14197_v14  ;;  %v11648_v26 = vld [vmem:[%s15771_s1 + $0xe70] ss:$8 sps:$4 sm:$0xff]  }
 0x254   :  { %7237 = vmatprep.mubr.bf16.mxu1 %v14197_v14  ;;  %4841 = vmatpush1.bf16.msra.mxu0 %v11627_v24 }
 0x255   :  { %7377 = vmatpush1.bf16.msra.mxu1 %v11630_v44  ;;  %v3069_v28 = vpop.f32.mrb[160].mxu0  ;;  %4842 = vmatprep.subr.bf16.mxu0 %v11635_v50  ;;  %v11653_v44 = vld [vmem:[%s15771_s1 + $0x884] ss:$8 sps:$4 sm:$0xff]  }
 0x256   :  { %v3230_v31 = vpop.f32.mrb[160].mxu1  ;;  %7378 = vmatprep.subr.bf16.mxu1 %v11638_v15  ;;  %v3070_v47 = vadd.f32 %v3069_v28, %v13811_v16  ;;  %v3071_v43 = vpop.f32.mrb[161].mxu0  ;;  %v11642_v16 = vld [vmem:[%s15771_s1 + $0xe60] ss:$8 sps:$4 sm:$0xff]   ;;  %v11656_v50 = vld [vmem:[%s15771_s1 + $0xe84] ss:$8 sps:$4 sm:$0xff]  }
 0x257   :  { %v3232_v51 = vpop.f32.mrb[161].mxu1  ;;  %v3072_v60 = vadd.f32 %v3071_v43, %v13819_v61  ;;  %v3073_v58 = vpop.f32.mrb[162].mxu0  ;;  %v11647_v61 = vld [vmem:[%s15771_s1 + $0x874] ss:$8 sps:$4 sm:$0xff]  }
 0x258   :  { %v3234_v0 = vpop.f32.mrb[162].mxu1  ;;  %v14215_v9 = vadd.f32 %v3230_v31, %v3070_v47  ;;  %v3074_v46 = vpop.f32.mrb[163].mxu0  ;;  %4843 = vmatpush1.bf16.msra.mxu0 %v11633_v30  ;;  %v11662_v58 = vld [vmem:[%s15771_s1 + $0xe94] ss:$8 sps:$4 sm:$0xff]  }
 0x259   :  { %v3235_v10 = vpop.f32.mrb[163].mxu1  ;;  %7379 = vmatpush1.bf16.msra.mxu1 %v11636_v40  ;;  %v14223_v19 = vadd.f32 %v3232_v51, %v3072_v60  ;;  %4844 = vmatprep.subr.bf16.mxu0 %v11641_v48  ;;  %v11651_v51 = vld [vmem:[%s15771_s1 + $0x880] ss:$8 sps:$4 sm:$0xff]   ;;  %v14285_v46 = vld [vmem:[%s15772_s0 + $0xac] ss:$16 sps:$4 sm:$0xff]  }
 0x25a   :  { %7380 = vmatprep.subr.bf16.mxu1 %v11644_v32  ;;  %4702 = vmatmul.mubr.bf16.gmra.mrb[204].mxu0 %v14234_v18  ;;  %v14278_v0 = vld [vmem:[%s15772_s0 + $0x88] ss:$16 sps:$4 sm:$0xff]  }
 0x25b   :  { %7238 = vmatmul.mubr.bf16.gmra.mrb[204].mxu1 %v14234_v18  ;;  %4711 = vmatprep.mubr.bf16.mxu0 %v14241_v13  ;;  %v11657_v10 = vld [vmem:[%s15771_s1 + $0x890] ss:$8 sps:$4 sm:$0xff]  }
 0x25c   :  { %7247 = vmatprep.mubr.bf16.mxu1 %v14241_v13  ;;  %4845 = vmatpush1.bf16.msra.mxu0 %v11639_v39  ;;  %v11660_v39 = vld [vmem:[%s15771_s1 + $0xe90] ss:$8 sps:$4 sm:$0xff]  }
 0x25d   :  { %7381 = vmatpush1.bf16.msra.mxu1 %v11642_v16  ;;  %v3077_v23 = vpop.f32.mrb[164].mxu0  ;;  %4846 = vmatprep.subr.bf16.mxu0 %v11647_v61 }
 0x25e   :  { %v3238_v24 = vpop.f32.mrb[164].mxu1  ;;  %7382 = vmatprep.subr.bf16.mxu1 %v11650_v6  ;;  %v3078_v15 = vadd.f32 %v3077_v23, %v13847_v34  ;;  %v3079_v30 = vpop.f32.mrb[165].mxu0  ;;  %v11654_v34 = vld [vmem:[%s15771_s1 + $0xe80] ss:$8 sps:$4 sm:$0xff]   ;;  %v11665_v6 = vld [vmem:[%s15771_s1 + $0x8a4] ss:$8 sps:$4 sm:$0xff]  }
 0x25f   :  { %v3240_v40 = vpop.f32.mrb[165].mxu1  ;;  %v3080_v28 = vadd.f32 %v3079_v30, %v13855_v33  ;;  %v3081_v31 = vpop.f32.mrb[166].mxu0  ;;  %v11659_v33 = vld [vmem:[%s15771_s1 + $0x894] ss:$8 sps:$4 sm:$0xff]  }
 0x260   :  { %v3242_v48 = vpop.f32.mrb[166].mxu1  ;;  %v14259_v32 = vadd.f32 %v3238_v24, %v3078_v15  ;;  %v3082_v47 = vpop.f32.mrb[167].mxu0  ;;  %4847 = vmatpush1.bf16.msra.mxu0 %v11645_v53  ;;  %v11668_v53 = vld [vmem:[%s15771_s1 + $0xea4] ss:$8 sps:$4 sm:$0xff]   ;;  %v11663_v31 = vld [vmem:[%s15771_s1 + $0x8a0] ss:$8 sps:$4 sm:$0xff]  }
 0x261   :  { %v3243_v43 = vpop.f32.mrb[167].mxu1  ;;  %7383 = vmatpush1.bf16.msra.mxu1 %v11648_v26  ;;  %v14267_v60 = vadd.f32 %v3240_v40, %v3080_v28  ;;  %4848 = vmatprep.subr.bf16.mxu0 %v11653_v44  ;;  %v11674_v47 = vld [vmem:[%s15771_s1 + $0xeb4] ss:$8 sps:$4 sm:$0xff]  }
 0x262   :  { %7384 = vmatprep.subr.bf16.mxu1 %v11656_v50  ;;  %4712 = vmatmul.mubr.bf16.gmra.mrb[208].mxu0 %v14278_v0  ;;  %v14322_v43 = vld [vmem:[%s15772_s0 + $0xa8] ss:$16 sps:$4 sm:$0xff]  }
 0x263   :  { %7248 = vmatmul.mubr.bf16.gmra.mrb[208].mxu1 %v14278_v0  ;;  %4721 = vmatprep.mubr.bf16.mxu0 %v14285_v46 }
 0x264   :  { %7257 = vmatprep.mubr.bf16.mxu1 %v14285_v46  ;;  %4849 = vmatpush1.bf16.msra.mxu0 %v11651_v51  ;;  %v14329_v51 = vld [vmem:[%s15772_s0 + $0xcc] ss:$16 sps:$4 sm:$0xff]  }
 0x265   :  { %7385 = vmatpush1.bf16.msra.mxu1 %v11654_v34  ;;  %v3085_v16 = vpop.f32.mrb[168].mxu0  ;;  %4850 = vmatprep.subr.bf16.mxu0 %v11659_v33  ;;  %v11669_v34 = vld [vmem:[%s15771_s1 + $0x8b0] ss:$8 sps:$4 sm:$0xff]  }
 0x266   :  { %v3246_v61 = vpop.f32.mrb[168].mxu1  ;;  %7386 = vmatprep.subr.bf16.mxu1 %v11662_v58  ;;  %v3086_v26 = vadd.f32 %v3085_v16, %v13883_v17  ;;  %v3087_v23 = vpop.f32.mrb[169].mxu0  ;;  %v11666_v17 = vld [vmem:[%s15771_s1 + $0xea0] ss:$8 sps:$4 sm:$0xff]   ;;  %v11672_v33 = vld [vmem:[%s15771_s1 + $0xeb0] ss:$8 sps:$4 sm:$0xff]  }
 0x267   :  { %v3248_v24 = vpop.f32.mrb[169].mxu1  ;;  %v3088_v44 = vadd.f32 %v3087_v23, %v13891_v3  ;;  %v3089_v50 = vpop.f32.mrb[170].mxu0  ;;  %v11671_v3 = vld [vmem:[%s15771_s1 + $0x8b4] ss:$8 sps:$4 sm:$0xff]   ;;  %v11680_v16 = vld [vmem:[%s15771_s1 + $0xec4] ss:$8 sps:$4 sm:$0xff]  }
 0x268   :  { %v3250_v15 = vpop.f32.mrb[170].mxu1  ;;  %v14303_v30 = vadd.f32 %v3246_v61, %v3086_v26  ;;  %v3090_v40 = vpop.f32.mrb[171].mxu0  ;;  %4851 = vmatpush1.bf16.msra.mxu0 %v11657_v10 }
 0x269   :  { %v3251_v28 = vpop.f32.mrb[171].mxu1  ;;  %7387 = vmatpush1.bf16.msra.mxu1 %v11660_v39  ;;  %v14311_v48 = vadd.f32 %v3248_v24, %v3088_v44  ;;  %4852 = vmatprep.subr.bf16.mxu0 %v11665_v6  ;;  %v11677_v39 = vld [vmem:[%s15771_s1 + $0x8c4] ss:$8 sps:$4 sm:$0xff]   ;;  %v11675_v40 = vld [vmem:[%s15771_s1 + $0x8c0] ss:$8 sps:$4 sm:$0xff]  }
 0x26a   :  { %7388 = vmatprep.subr.bf16.mxu1 %v11668_v53  ;;  %4722 = vmatmul.mubr.bf16.gmra.mrb[212].mxu0 %v14322_v43 }
 0x26b   :  { %7258 = vmatmul.mubr.bf16.gmra.mrb[212].mxu1 %v14322_v43  ;;  %4731 = vmatprep.mubr.bf16.mxu0 %v14329_v51 }
 0x26c   :  { %7267 = vmatprep.mubr.bf16.mxu1 %v14329_v51  ;;  %4853 = vmatpush1.bf16.msra.mxu0 %v11663_v31  ;;  %v11686_v31 = vld [vmem:[%s15771_s1 + $0xed4] ss:$8 sps:$4 sm:$0xff]  }
 0x26d   :  { %7389 = vmatpush1.bf16.msra.mxu1 %v11666_v17  ;;  %v3093_v58 = vpop.f32.mrb[172].mxu0  ;;  %4854 = vmatprep.subr.bf16.mxu0 %v11671_v3  ;;  %v14366_v17 = vld [vmem:[%s15772_s0 + $0xc8] ss:$16 sps:$4 sm:$0xff]   ;;  %v14373_v3 = vld [vmem:[%s15772_s0 + $0xec] ss:$16 sps:$4 sm:$0xff]  }
 0x26e   :  { %v3254_v10 = vpop.f32.mrb[172].mxu1  ;;  %7390 = vmatprep.subr.bf16.mxu1 %v11674_v47  ;;  %v3094_v61 = vadd.f32 %v3093_v58, %v13919_v27  ;;  %v3095_v6 = vpop.f32.mrb[173].mxu0  ;;  %v11678_v27 = vld [vmem:[%s15771_s1 + $0xec0] ss:$8 sps:$4 sm:$0xff]   ;;  %v11681_v47 = vld [vmem:[%s15771_s1 + $0x8d0] ss:$8 sps:$4 sm:$0xff]  }
 0x26f   :  { %v3256_v53 = vpop.f32.mrb[173].mxu1  ;;  %v3096_v26 = vadd.f32 %v3095_v6, %v13927_v2  ;;  %v3097_v23 = vpop.f32.mrb[174].mxu0  ;;  %v11683_v2 = vld [vmem:[%s15771_s1 + $0x8d4] ss:$8 sps:$4 sm:$0xff]  }
 0x270   :  { %v3258_v24 = vpop.f32.mrb[174].mxu1  ;;  %v14347_v44 = vadd.f32 %v3254_v10, %v3094_v61  ;;  %v3098_v50 = vpop.f32.mrb[175].mxu0  ;;  %4855 = vmatpush1.bf16.msra.mxu0 %v11669_v34  ;;  %v11684_v34 = vld [vmem:[%s15771_s1 + $0xed0] ss:$8 sps:$4 sm:$0xff]   ;;  %v11689_v10 = vld [vmem:[%s15771_s1 + $0x8e4] ss:$8 sps:$4 sm:$0xff]  }
 0x271   :  { %v3259_v15 = vpop.f32.mrb[175].mxu1  ;;  %7391 = vmatpush1.bf16.msra.mxu1 %v11672_v33  ;;  %v14355_v28 = vadd.f32 %v3256_v53, %v3096_v26  ;;  %4856 = vmatprep.subr.bf16.mxu0 %v11677_v39  ;;  %v11692_v39 = vld [vmem:[%s15771_s1 + $0xee4] ss:$8 sps:$4 sm:$0xff]  }
 0x272   :  { %7392 = vmatprep.subr.bf16.mxu1 %v11680_v16  ;;  %4732 = vmatmul.mubr.bf16.gmra.mrb[216].mxu0 %v14366_v17 }
 0x273   :  { %7268 = vmatmul.mubr.bf16.gmra.mrb[216].mxu1 %v14366_v17  ;;  %4741 = vmatprep.mubr.bf16.mxu0 %v14373_v3 }
 0x274   :  { %7277 = vmatprep.mubr.bf16.mxu1 %v14373_v3  ;;  %4857 = vmatpush1.bf16.msra.mxu0 %v11675_v40  ;;  %v11687_v40 = vld [vmem:[%s15771_s1 + $0x8e0] ss:$8 sps:$4 sm:$0xff]  }
 0x275   :  { %7393 = vmatpush1.bf16.msra.mxu1 %v11678_v27  ;;  %v3101_v33 = vpop.f32.mrb[176].mxu0  ;;  %4858 = vmatprep.subr.bf16.mxu0 %v11683_v2  ;;  %v11698_v2 = vld [vmem:[%s15771_s1 + $0xef4] ss:$8 sps:$4 sm:$0xff]  }
 0x276   :  { %v3262_v58 = vpop.f32.mrb[176].mxu1  ;;  %7394 = vmatprep.subr.bf16.mxu1 %v11686_v31  ;;  %v3102_v16 = vadd.f32 %v3101_v33, %v13955_v42  ;;  %v3103_v61 = vpop.f32.mrb[177].mxu0  ;;  %v11690_v42 = vld [vmem:[%s15771_s1 + $0xee0] ss:$8 sps:$4 sm:$0xff]   ;;  %v11696_v33 = vld [vmem:[%s15771_s1 + $0xef0] ss:$8 sps:$4 sm:$0xff]  }
 0x277   :  { %v3264_v6 = vpop.f32.mrb[177].mxu1  ;;  %v3104_v53 = vadd.f32 %v3103_v61, %v13963_v12  ;;  %v3105_v26 = vpop.f32.mrb[178].mxu0  ;;  %v11695_v12 = vld [vmem:[%s15771_s1 + $0x8f4] ss:$8 sps:$4 sm:$0xff]   ;;  %v14410_v31 = vld [vmem:[%s15772_s0 + $0xe8] ss:$16 sps:$4 sm:$0xff]  }
 0x278   :  { %v3266_v23 = vpop.f32.mrb[178].mxu1  ;;  %v14391_v24 = vadd.f32 %v3262_v58, %v3102_v16  ;;  %v3106_v50 = vpop.f32.mrb[179].mxu0  ;;  %4859 = vmatpush1.bf16.msra.mxu0 %v11681_v47  ;;  %v12055_v47 = vld [vmem:[%s15772_s0 + $0x14c] ss:$16 sps:$4 sm:$0xff]  }
 0x279   :  { %v3267_v15 = vpop.f32.mrb[179].mxu1  ;;  %7395 = vmatpush1.bf16.msra.mxu1 %v11684_v34  ;;  %v14399_v27 = vadd.f32 %v3264_v6, %v3104_v53  ;;  %4860 = vmatprep.subr.bf16.mxu0 %v11689_v10  ;;  %v11693_v34 = vld [vmem:[%s15771_s1 + $0x8f0] ss:$8 sps:$4 sm:$0xff]   ;;  %v11704_v16 = vld [vmem:[%s15771_s1 + $0xf04] ss:$8 sps:$4 sm:$0xff]  }
 0x27a   :  { %7396 = vmatprep.subr.bf16.mxu1 %v11692_v39  ;;  %4742 = vmatmul.mubr.bf16.gmra.mrb[220].mxu0 %v14410_v31  ;;  %v11701_v39 = vld [vmem:[%s15771_s1 + $0x904] ss:$8 sps:$4 sm:$0xff]  }
 0x27b   :  { %7278 = vmatmul.mubr.bf16.gmra.mrb[220].mxu1 %v14410_v31  ;;  %4751 = vmatprep.mubr.bf16.mxu0 %v12055_v47 }
 0x27c   :  { %7287 = vmatprep.mubr.bf16.mxu1 %v12055_v47  ;;  %4861 = vmatpush1.bf16.msra.mxu0 %v11687_v40 }
 0x27d   :  { %7397 = vmatpush1.bf16.msra.mxu1 %v11690_v42  ;;  %v3109_v58 = vpop.f32.mrb[180].mxu0  ;;  %4862 = vmatprep.subr.bf16.mxu0 %v11695_v12 }
 0x27e   :  { %v3270_v10 = vpop.f32.mrb[180].mxu1  ;;  %7398 = vmatprep.subr.bf16.mxu1 %v11698_v2  ;;  %v3110_v61 = vadd.f32 %v3109_v58, %v13991_v21  ;;  %v3111_v6 = vpop.f32.mrb[181].mxu0  ;;  %v12056_v21 = vld [vmem:[%s15772_s0 + $0x148] ss:$16 sps:$4 sm:$0xff]  }
 0x27f   :  { %v3272_v53 = vpop.f32.mrb[181].mxu1  ;;  %v3112_v26 = vadd.f32 %v3111_v6, %v13993_v55  ;;  %v3113_v23 = vpop.f32.mrb[182].mxu0  ;;  %v14441_v55 = vld [vmem:[%s15772_s0 + $0x16c] ss:$16 sps:$4 sm:$0xff]  }
 0x280   :  { %v3274_v50 = vpop.f32.mrb[182].mxu1  ;;  %v14431_v15 = vadd.f32 %v3270_v10, %v3110_v61  ;;  %v3114_v40 = vpop.f32.mrb[183].mxu0  ;;  %4863 = vmatpush1.bf16.msra.mxu0 %v11693_v34  ;;  %v14454_v23 = vld [vmem:[%s15772_s0 + $0x168] ss:$16 sps:$4 sm:$0xff]  }
 0x281   :  { %v3275_v42 = vpop.f32.mrb[183].mxu1  ;;  %7399 = vmatpush1.bf16.msra.mxu1 %v11696_v33  ;;  %v14433_v12 = vadd.f32 %v3272_v53, %v3112_v26  ;;  %5025 = vmatprep.subr.bf16.mxu0 %v11701_v39 }
 0x282   :  { %15777 = vst [vmem:[#allocation2_spill] sm:$0xff] %v14431_v15  ;;  %7561 = vmatprep.subr.bf16.mxu1 %v11704_v16  ;;  %4752 = vmatmul.mubr.bf16.gmra.mrb[224].mxu0 %v12056_v21  ;;  %v11797_v15 = vld [vmem:[%s15771_s1 + $0xa04] ss:$8 sps:$4 sm:$0xff]  }
 0x283   :  { %15778 = vst [vmem:[#allocation3_spill] sm:$0xff] %v14433_v12  ;;  %7288 = vmatmul.mubr.bf16.gmra.mrb[224].mxu1 %v12056_v21  ;;  %4761 = vmatprep.mubr.bf16.mxu0 %v14441_v55  ;;  %v11719_v12 = vld [vmem:[%s15771_s1 + $0x934] ss:$8 sps:$4 sm:$0xff]  }
 0x284   :  { %7297 = vmatprep.mubr.bf16.mxu1 %v14441_v55 }
 0x285   :  { %v3117_v2 = vpop.f32.mrb[184].mxu0 }
 0x286   :  { %v3278_v47 = vpop.f32.mrb[184].mxu1  ;;  %v3118_v34 = vadd.f32 %v3117_v2, %v14003_v25  ;;  %v3119_v33 = vpop.f32.mrb[185].mxu0  ;;  %v14461_v25 = vld [vmem:[%s15772_s0 + $0x18c] ss:$16 sps:$4 sm:$0xff]  }
 0x287   :  { %v3280_v58 = vpop.f32.mrb[185].mxu1  ;;  %v3120_v10 = vadd.f32 %v3119_v33, %v14005_v7  ;;  %v3121_v39 = vpop.f32.mrb[186].mxu0 }
 0x288   :  { %v3282_v16 = vpop.f32.mrb[186].mxu1  ;;  %v14447_v61 = vadd.f32 %v3278_v47, %v3118_v34  ;;  %v3122_v6 = vpop.f32.mrb[187].mxu0 }
 0x289   :  { %v3283_v53 = vpop.f32.mrb[187].mxu1  ;;  %v14449_v26 = vadd.f32 %v3280_v58, %v3120_v10  ;;  %v14474_v16 = vld [vmem:[%s15772_s0 + $0x188] ss:$16 sps:$4 sm:$0xff]   ;;  %v14495_v6 = vld [vmem:[%s15772_s0 + $0x1cc] ss:$16 sps:$4 sm:$0xff]  }
 0x28a   :  { %15779 = vst [vmem:[#allocation4_spill] sm:$0xff] %v14447_v61  ;;  %4762 = vmatmul.mubr.bf16.gmra.mrb[228].mxu0 %v14454_v23  ;;  %v14502_v53 = vld [vmem:[%s15772_s0 + $0x1c8] ss:$16 sps:$4 sm:$0xff]   ;;  %v12073_v61 = vld [vmem:[%s15772_s0 + $0x44] ss:$16 sps:$4 sm:$0xff]  }
 0x28b   :  { %15780 = vst [vmem:[#allocation5_spill] sm:$0xff] %v14449_v26  ;;  %7298 = vmatmul.mubr.bf16.gmra.mrb[228].mxu1 %v14454_v23  ;;  %4771 = vmatprep.mubr.bf16.mxu0 %v14461_v25  ;;  %v11708_v26 = vld [vmem:[%s15771_s1 + $0xf10] ss:$8 sps:$4 sm:$0xff]  }
 0x28c   :  { %7307 = vmatprep.mubr.bf16.mxu1 %v14461_v25 }
 0x28d   :  { %v3125_v7 = vpop.f32.mrb[188].mxu0 }
 0x28e   :  { %v3286_v50 = vpop.f32.mrb[188].mxu1  ;;  %v3126_v40 = vadd.f32 %v3125_v7, %v14015_v56  ;;  %v3127_v42 = vpop.f32.mrb[189].mxu0  ;;  %v14481_v56 = vld [vmem:[%s15772_s0 + $0x1ac] ss:$16 sps:$4 sm:$0xff]  }
 0x28f   :  { %v3288_v21 = vpop.f32.mrb[189].mxu1  ;;  %v3128_v2 = vadd.f32 %v3127_v42, %v14017_v36  ;;  %v3129_v47 = vpop.f32.mrb[190].mxu0  ;;  %v14488_v36 = vld [vmem:[%s15772_s0 + $0x1a8] ss:$16 sps:$4 sm:$0xff]   ;;  %v14509_v7 = vld [vmem:[%s15772_s0 + $0x1ec] ss:$16 sps:$4 sm:$0xff]  }
 0x290   :  { %v3290_v34 = vpop.f32.mrb[190].mxu1  ;;  %v14467_v33 = vadd.f32 %v3286_v50, %v3126_v40  ;;  %v3130_v58 = vpop.f32.mrb[191].mxu0  ;;  %v14516_v50 = vld [vmem:[%s15772_s0 + $0x1e8] ss:$16 sps:$4 sm:$0xff]   ;;  %v14523_v40 = vld [vmem:[%s15772_s0 + $0x20c] ss:$16 sps:$4 sm:$0xff]  }
 0x291   :  { %v3291_v10 = vpop.f32.mrb[191].mxu1  ;;  %v14469_v39 = vadd.f32 %v3288_v21, %v3128_v2  ;;  %v14530_v42 = vld [vmem:[%s15772_s0 + $0x208] ss:$16 sps:$4 sm:$0xff]   ;;  %v14537_v21 = vld [vmem:[%s15772_s0 + $0x22c] ss:$16 sps:$4 sm:$0xff]  }
 0x292   :  { %15781 = vst [vmem:[#allocation6_spill] sm:$0xff] %v14467_v33  ;;  %4772 = vmatmul.mubr.bf16.gmra.mrb[232].mxu0 %v14474_v16  ;;  %v14544_v2 = vld [vmem:[%s15772_s0 + $0x228] ss:$16 sps:$4 sm:$0xff]   ;;  %v12071_v47 = vld [vmem:[%s15772_s0 + $0x24] ss:$16 sps:$4 sm:$0xff]  }
 0x293   :  { %15782 = vst [vmem:[#allocation7_spill] sm:$0xff] %v14469_v39  ;;  %7308 = vmatmul.mubr.bf16.gmra.mrb[232].mxu1 %v14474_v16  ;;  %4781 = vmatprep.mubr.bf16.mxu0 %v14481_v56  ;;  %v11699_v34 = vld [vmem:[%s15771_s1 + $0x900] ss:$8 sps:$4 sm:$0xff]   ;;  %v11707_v10 = vld [vmem:[%s15771_s1 + $0x914] ss:$8 sps:$4 sm:$0xff]  }
 0x294   :  { %7317 = vmatprep.mubr.bf16.mxu1 %v14481_v56  ;;  %v11702_v58 = vld [vmem:[%s15771_s1 + $0xf00] ss:$8 sps:$4 sm:$0xff]   ;;  %v11710_v39 = vld [vmem:[%s15771_s1 + $0xf14] ss:$8 sps:$4 sm:$0xff]   ;;  %v11705_v33 = vld [vmem:[%s15771_s1 + $0x910] ss:$8 sps:$4 sm:$0xff]  }
 0x29a   :  { %4782 = vmatmul.mubr.bf16.gmra.mrb[236].mxu0 %v14488_v36 }
 0x29b   :  { %7318 = vmatmul.mubr.bf16.gmra.mrb[236].mxu1 %v14488_v36  ;;  %4791 = vmatprep.mubr.bf16.mxu0 %v14495_v6 }
 0x29c   :  { %7327 = vmatprep.mubr.bf16.mxu1 %v14495_v6 }
 0x2a2   :  { %4792 = vmatmul.mubr.bf16.gmra.mrb[240].mxu0 %v14502_v53 }
 0x2a3   :  { %7328 = vmatmul.mubr.bf16.gmra.mrb[240].mxu1 %v14502_v53  ;;  %4801 = vmatprep.mubr.bf16.mxu0 %v14509_v7 }
 0x2a4   :  { %7337 = vmatprep.mubr.bf16.mxu1 %v14509_v7 }
 0x2aa   :  { %4802 = vmatmul.mubr.bf16.gmra.mrb[244].mxu0 %v14516_v50 }
 0x2ab   :  { %7338 = vmatmul.mubr.bf16.gmra.mrb[244].mxu1 %v14516_v50  ;;  %4811 = vmatprep.mubr.bf16.mxu0 %v14523_v40 }
 0x2ac   :  { %7347 = vmatprep.mubr.bf16.mxu1 %v14523_v40 }
 0x2b2   :  { %4812 = vmatmul.mubr.bf16.gmra.mrb[248].mxu0 %v14530_v42 }
 0x2b3   :  { %7348 = vmatmul.mubr.bf16.gmra.mrb[248].mxu1 %v14530_v42  ;;  %4821 = vmatprep.mubr.bf16.mxu0 %v14537_v21 }
 0x2b4   :  { %7357 = vmatprep.mubr.bf16.mxu1 %v14537_v21 }
 0x2ba   :  { %4822 = vmatmul.mubr.bf16.gmra.mrb[252].mxu0 %v14544_v2 }
 0x2bb   :  { %7358 = vmatmul.mubr.bf16.gmra.mrb[252].mxu1 %v14544_v2  ;;  %4864 = vmatprep.mubr.bf16.mxu0 %v12071_v47 }
 0x2bc   :  { %7400 = vmatprep.mubr.bf16.mxu1 %v12071_v47  ;;  %v12072_v47 = vld [vmem:[%s15772_s0 + $0x20] ss:$16 sps:$4 sm:$0xff]  }
 0x2c2   :  { %4865 = vmatmul.mubr.bf16.vlgmr.msra.gmra.mrb[192].mxu0 %v12072_v47 }
 0x2c3   :  { %7401 = vmatmul.mubr.bf16.vlgmr.msra.gmra.mrb[192].mxu1 %v12072_v47  ;;  %5026 = vmatpush1.bf16.msra.mxu0 %v11699_v34  ;;  %v11713_v47 = vld [vmem:[%s15771_s1 + $0x924] ss:$8 sps:$4 sm:$0xff]  }
 0x2c4   :  { %7562 = vmatpush1.bf16.msra.mxu1 %v11702_v58  ;;  %4874 = vmatprep.mubr.bf16.mxu0 %v12073_v61  ;;  %v11716_v34 = vld [vmem:[%s15771_s1 + $0xf24] ss:$8 sps:$4 sm:$0xff]   ;;  %v11711_v58 = vld [vmem:[%s15771_s1 + $0x920] ss:$8 sps:$4 sm:$0xff]  }
 0x2c5   :  { %7410 = vmatprep.mubr.bf16.mxu1 %v12073_v61  ;;  %5027 = vmatprep.subr.bf16.mxu0 %v11707_v10  ;;  %v11714_v61 = vld [vmem:[%s15771_s1 + $0xf20] ss:$8 sps:$4 sm:$0xff]   ;;  %v11717_v10 = vld [vmem:[%s15771_s1 + $0x930] ss:$8 sps:$4 sm:$0xff]  }
 0x2c6   :  { %7563 = vmatprep.subr.bf16.mxu1 %v11710_v39  ;;  %v11722_v39 = vld [vmem:[%s15771_s1 + $0xf34] ss:$8 sps:$4 sm:$0xff]  }
 0x2c7   :  { %5028 = vmatpush1.bf16.msra.mxu0 %v11705_v33  ;;  %v12075_v33 = vld [vmem:[%s15772_s0 + $0x64] ss:$16 sps:$4 sm:$0xff]  }
 0x2c8   :  { %7564 = vmatpush1.bf16.msra.mxu1 %v11708_v26  ;;  %5029 = vmatprep.subr.bf16.mxu0 %v11713_v47  ;;  %v12074_v26 = vld [vmem:[%s15772_s0 + $0x40] ss:$16 sps:$4 sm:$0xff]  }
 0x2c9   :  { %7565 = vmatprep.subr.bf16.mxu1 %v11716_v34  ;;  %v11720_v47 = vld [vmem:[%s15771_s1 + $0xf30] ss:$8 sps:$4 sm:$0xff]   ;;  %v11725_v34 = vld [vmem:[%s15771_s1 + $0x944] ss:$8 sps:$4 sm:$0xff]  }
 0x2ca   :  { %4875 = vmatmul.mubr.bf16.gmra.mrb[196].mxu0 %v12074_v26 }
 0x2cb   :  { %7411 = vmatmul.mubr.bf16.gmra.mrb[196].mxu1 %v12074_v26  ;;  %4884 = vmatprep.mubr.bf16.mxu0 %v12075_v33  ;;  %v11728_v26 = vld [vmem:[%s15771_s1 + $0xf44] ss:$8 sps:$4 sm:$0xff]  }
 0x2cc   :  { %7420 = vmatprep.mubr.bf16.mxu1 %v12075_v33  ;;  %5030 = vmatpush1.bf16.msra.mxu0 %v11711_v58  ;;  %v11723_v58 = vld [vmem:[%s15771_s1 + $0x940] ss:$8 sps:$4 sm:$0xff]  }
 0x2cd   :  { %7566 = vmatpush1.bf16.msra.mxu1 %v11714_v61  ;;  %5031 = vmatprep.subr.bf16.mxu0 %v11719_v12  ;;  %v11726_v61 = vld [vmem:[%s15771_s1 + $0xf40] ss:$8 sps:$4 sm:$0xff]   ;;  %v11731_v12 = vld [vmem:[%s15771_s1 + $0x954] ss:$8 sps:$4 sm:$0xff]  }
 0x2ce   :  { %7567 = vmatprep.subr.bf16.mxu1 %v11722_v39  ;;  %v11734_v39 = vld [vmem:[%s15771_s1 + $0xf54] ss:$8 sps:$4 sm:$0xff]   ;;  %v12076_v33 = vld [vmem:[%s15772_s0 + $0x60] ss:$16 sps:$4 sm:$0xff]  }
 0x2d0   :  { %5032 = vmatpush1.bf16.msra.mxu0 %v11717_v10  ;;  %v12077_v10 = vld [vmem:[%s15772_s0 + $0x84] ss:$16 sps:$4 sm:$0xff]  }
 0x2d1   :  { %7568 = vmatpush1.bf16.msra.mxu1 %v11720_v47  ;;  %5033 = vmatprep.subr.bf16.mxu0 %v11725_v34  ;;  %v11729_v47 = vld [vmem:[%s15771_s1 + $0x950] ss:$8 sps:$4 sm:$0xff]  }
 0x2d2   :  { %7569 = vmatprep.subr.bf16.mxu1 %v11728_v26  ;;  %4885 = vmatmul.mubr.bf16.gmra.mrb[200].mxu0 %v12076_v33  ;;  %v11732_v34 = vld [vmem:[%s15771_s1 + $0xf50] ss:$8 sps:$4 sm:$0xff]   ;;  %v11737_v26 = vld [vmem:[%s15771_s1 + $0x964] ss:$8 sps:$4 sm:$0xff]  }
 0x2d3   :  { %7421 = vmatmul.mubr.bf16.gmra.mrb[200].mxu1 %v12076_v33  ;;  %4894 = vmatprep.mubr.bf16.mxu0 %v12077_v10  ;;  %v11740_v33 = vld [vmem:[%s15771_s1 + $0xf64] ss:$8 sps:$4 sm:$0xff]  }
 0x2d4   :  { %7430 = vmatprep.mubr.bf16.mxu1 %v12077_v10  ;;  %5034 = vmatpush1.bf16.msra.mxu0 %v11723_v58  ;;  %v11735_v58 = vld [vmem:[%s15771_s1 + $0x960] ss:$8 sps:$4 sm:$0xff]  }
 0x2d5   :  { %7570 = vmatpush1.bf16.msra.mxu1 %v11726_v61  ;;  %5035 = vmatprep.subr.bf16.mxu0 %v11731_v12  ;;  %v11738_v61 = vld [vmem:[%s15771_s1 + $0xf60] ss:$8 sps:$4 sm:$0xff]   ;;  %v11743_v12 = vld [vmem:[%s15771_s1 + $0x974] ss:$8 sps:$4 sm:$0xff]  }
 0x2d6   :  { %7571 = vmatprep.subr.bf16.mxu1 %v11734_v39  ;;  %v11746_v39 = vld [vmem:[%s15771_s1 + $0xf74] ss:$8 sps:$4 sm:$0xff]   ;;  %v12078_v10 = vld [vmem:[%s15772_s0 + $0x80] ss:$16 sps:$4 sm:$0xff]  }
 0x2d8   :  { %5036 = vmatpush1.bf16.msra.mxu0 %v11729_v47  ;;  %v12079_v47 = vld [vmem:[%s15772_s0 + $0xa4] ss:$16 sps:$4 sm:$0xff]  }
 0x2d9   :  { %7572 = vmatpush1.bf16.msra.mxu1 %v11732_v34  ;;  %5037 = vmatprep.subr.bf16.mxu0 %v11737_v26  ;;  %v11741_v34 = vld [vmem:[%s15771_s1 + $0x970] ss:$8 sps:$4 sm:$0xff]  }
 0x2da   :  { %7573 = vmatprep.subr.bf16.mxu1 %v11740_v33  ;;  %4895 = vmatmul.mubr.bf16.gmra.mrb[204].mxu0 %v12078_v10  ;;  %v11744_v26 = vld [vmem:[%s15771_s1 + $0xf70] ss:$8 sps:$4 sm:$0xff]   ;;  %v11749_v33 = vld [vmem:[%s15771_s1 + $0x984] ss:$8 sps:$4 sm:$0xff]  }
 0x2db   :  { %7431 = vmatmul.mubr.bf16.gmra.mrb[204].mxu1 %v12078_v10  ;;  %4904 = vmatprep.mubr.bf16.mxu0 %v12079_v47  ;;  %v11752_v10 = vld [vmem:[%s15771_s1 + $0xf84] ss:$8 sps:$4 sm:$0xff]  }
 0x2dc   :  { %7440 = vmatprep.mubr.bf16.mxu1 %v12079_v47  ;;  %5038 = vmatpush1.bf16.msra.mxu0 %v11735_v58  ;;  %v11747_v58 = vld [vmem:[%s15771_s1 + $0x980] ss:$8 sps:$4 sm:$0xff]  }
 0x2dd   :  { %7574 = vmatpush1.bf16.msra.mxu1 %v11738_v61  ;;  %5039 = vmatprep.subr.bf16.mxu0 %v11743_v12  ;;  %v11750_v61 = vld [vmem:[%s15771_s1 + $0xf80] ss:$8 sps:$4 sm:$0xff]   ;;  %v11755_v12 = vld [vmem:[%s15771_s1 + $0x994] ss:$8 sps:$4 sm:$0xff]  }
 0x2de   :  { %7575 = vmatprep.subr.bf16.mxu1 %v11746_v39  ;;  %v11758_v39 = vld [vmem:[%s15771_s1 + $0xf94] ss:$8 sps:$4 sm:$0xff]   ;;  %v12080_v47 = vld [vmem:[%s15772_s0 + $0xa0] ss:$16 sps:$4 sm:$0xff]  }
 0x2e0   :  { %5040 = vmatpush1.bf16.msra.mxu0 %v11741_v34  ;;  %v12081_v34 = vld [vmem:[%s15772_s0 + $0xc4] ss:$16 sps:$4 sm:$0xff]  }
 0x2e1   :  { %7576 = vmatpush1.bf16.msra.mxu1 %v11744_v26  ;;  %5041 = vmatprep.subr.bf16.mxu0 %v11749_v33  ;;  %v11753_v26 = vld [vmem:[%s15771_s1 + $0x990] ss:$8 sps:$4 sm:$0xff]  }
 0x2e2   :  { %7577 = vmatprep.subr.bf16.mxu1 %v11752_v10  ;;  %4905 = vmatmul.mubr.bf16.gmra.mrb[208].mxu0 %v12080_v47  ;;  %v11756_v33 = vld [vmem:[%s15771_s1 + $0xf90] ss:$8 sps:$4 sm:$0xff]   ;;  %v11761_v10 = vld [vmem:[%s15771_s1 + $0x9a4] ss:$8 sps:$4 sm:$0xff]  }
 0x2e3   :  { %7441 = vmatmul.mubr.bf16.gmra.mrb[208].mxu1 %v12080_v47  ;;  %4914 = vmatprep.mubr.bf16.mxu0 %v12081_v34  ;;  %v11764_v47 = vld [vmem:[%s15771_s1 + $0xfa4] ss:$8 sps:$4 sm:$0xff]  }
 0x2e4   :  { %7450 = vmatprep.mubr.bf16.mxu1 %v12081_v34  ;;  %5042 = vmatpush1.bf16.msra.mxu0 %v11747_v58  ;;  %v11759_v58 = vld [vmem:[%s15771_s1 + $0x9a0] ss:$8 sps:$4 sm:$0xff]  }
 0x2e5   :  { %7578 = vmatpush1.bf16.msra.mxu1 %v11750_v61  ;;  %5043 = vmatprep.subr.bf16.mxu0 %v11755_v12  ;;  %v11762_v61 = vld [vmem:[%s15771_s1 + $0xfa0] ss:$8 sps:$4 sm:$0xff]   ;;  %v11767_v12 = vld [vmem:[%s15771_s1 + $0x9b4] ss:$8 sps:$4 sm:$0xff]  }
 0x2e6   :  { %7579 = vmatprep.subr.bf16.mxu1 %v11758_v39  ;;  %v11770_v39 = vld [vmem:[%s15771_s1 + $0xfb4] ss:$8 sps:$4 sm:$0xff]   ;;  %v12082_v34 = vld [vmem:[%s15772_s0 + $0xc0] ss:$16 sps:$4 sm:$0xff]  }
 0x2e8   :  { %5044 = vmatpush1.bf16.msra.mxu0 %v11753_v26  ;;  %v12083_v26 = vld [vmem:[%s15772_s0 + $0xe4] ss:$16 sps:$4 sm:$0xff]  }
 0x2e9   :  { %7580 = vmatpush1.bf16.msra.mxu1 %v11756_v33  ;;  %5045 = vmatprep.subr.bf16.mxu0 %v11761_v10  ;;  %v11765_v33 = vld [vmem:[%s15771_s1 + $0x9b0] ss:$8 sps:$4 sm:$0xff]  }
 0x2ea   :  { %7581 = vmatprep.subr.bf16.mxu1 %v11764_v47  ;;  %4915 = vmatmul.mubr.bf16.gmra.mrb[212].mxu0 %v12082_v34  ;;  %v11768_v10 = vld [vmem:[%s15771_s1 + $0xfb0] ss:$8 sps:$4 sm:$0xff]   ;;  %v11773_v47 = vld [vmem:[%s15771_s1 + $0x9c4] ss:$8 sps:$4 sm:$0xff]  }
 0x2eb   :  { %7451 = vmatmul.mubr.bf16.gmra.mrb[212].mxu1 %v12082_v34  ;;  %4924 = vmatprep.mubr.bf16.mxu0 %v12083_v26  ;;  %v11776_v34 = vld [vmem:[%s15771_s1 + $0xfc4] ss:$8 sps:$4 sm:$0xff]  }
 0x2ec   :  { %7460 = vmatprep.mubr.bf16.mxu1 %v12083_v26  ;;  %5046 = vmatpush1.bf16.msra.mxu0 %v11759_v58  ;;  %v11771_v58 = vld [vmem:[%s15771_s1 + $0x9c0] ss:$8 sps:$4 sm:$0xff]  }
 0x2ed   :  { %7582 = vmatpush1.bf16.msra.mxu1 %v11762_v61  ;;  %5047 = vmatprep.subr.bf16.mxu0 %v11767_v12  ;;  %v11774_v61 = vld [vmem:[%s15771_s1 + $0xfc0] ss:$8 sps:$4 sm:$0xff]   ;;  %v11779_v12 = vld [vmem:[%s15771_s1 + $0x9d4] ss:$8 sps:$4 sm:$0xff]  }
 0x2ee   :  { %7583 = vmatprep.subr.bf16.mxu1 %v11770_v39  ;;  %v11782_v39 = vld [vmem:[%s15771_s1 + $0xfd4] ss:$8 sps:$4 sm:$0xff]   ;;  %v12084_v26 = vld [vmem:[%s15772_s0 + $0xe0] ss:$16 sps:$4 sm:$0xff]  }
 0x2f0   :  { %5048 = vmatpush1.bf16.msra.mxu0 %v11765_v33  ;;  %v14749_v33 = vld [vmem:[%s15772_s0 + $0x104] ss:$16 sps:$4 sm:$0xff]  }
 0x2f1   :  { %7584 = vmatpush1.bf16.msra.mxu1 %v11768_v10  ;;  %5049 = vmatprep.subr.bf16.mxu0 %v11773_v47  ;;  %v11777_v10 = vld [vmem:[%s15771_s1 + $0x9d0] ss:$8 sps:$4 sm:$0xff]  }
 0x2f2   :  { %7585 = vmatprep.subr.bf16.mxu1 %v11776_v34  ;;  %4925 = vmatmul.mubr.bf16.gmra.mrb[216].mxu0 %v12084_v26  ;;  %v11780_v47 = vld [vmem:[%s15771_s1 + $0xfd0] ss:$8 sps:$4 sm:$0xff]   ;;  %v11785_v34 = vld [vmem:[%s15771_s1 + $0x9e4] ss:$8 sps:$4 sm:$0xff]  }
 0x2f3   :  { %7461 = vmatmul.mubr.bf16.gmra.mrb[216].mxu1 %v12084_v26  ;;  %4934 = vmatprep.mubr.bf16.mxu0 %v14749_v33  ;;  %v11788_v26 = vld [vmem:[%s15771_s1 + $0xfe4] ss:$8 sps:$4 sm:$0xff]  }
 0x2f4   :  { %7470 = vmatprep.mubr.bf16.mxu1 %v14749_v33  ;;  %5050 = vmatpush1.bf16.msra.mxu0 %v11771_v58  ;;  %v11783_v58 = vld [vmem:[%s15771_s1 + $0x9e0] ss:$8 sps:$4 sm:$0xff]  }
 0x2f5   :  { %7586 = vmatpush1.bf16.msra.mxu1 %v11774_v61  ;;  %5051 = vmatprep.subr.bf16.mxu0 %v11779_v12  ;;  %v11786_v61 = vld [vmem:[%s15771_s1 + $0xfe0] ss:$8 sps:$4 sm:$0xff]   ;;  %v11791_v12 = vld [vmem:[%s15771_s1 + $0x9f4] ss:$8 sps:$4 sm:$0xff]  }
 0x2f6   :  { %7587 = vmatprep.subr.bf16.mxu1 %v11782_v39  ;;  %v11794_v39 = vld [vmem:[%s15771_s1 + $0xff4] ss:$8 sps:$4 sm:$0xff]  }
 0x2f8   :  { %5052 = vmatpush1.bf16.msra.mxu0 %v11777_v10  ;;  %v14780_v10 = vld [vmem:[%s15772_s0 + $0x100] ss:$16 sps:$4 sm:$0xff]  }
 0x2f9   :  { %7588 = vmatpush1.bf16.msra.mxu1 %v11780_v47  ;;  %5053 = vmatprep.subr.bf16.mxu0 %v11785_v34  ;;  %v12087_v47 = vld [vmem:[%s15772_s0 + $0x164] ss:$16 sps:$4 sm:$0xff]   ;;  %v11789_v34 = vld [vmem:[%s15771_s1 + $0x9f0] ss:$8 sps:$4 sm:$0xff]  }
 0x2fa   :  { %7589 = vmatprep.subr.bf16.mxu1 %v11788_v26  ;;  %4935 = vmatmul.mubr.bf16.gmra.mrb[220].mxu0 %v14780_v10  ;;  %v11792_v26 = vld [vmem:[%s15771_s1 + $0xff0] ss:$8 sps:$4 sm:$0xff]  }
 0x2fb   :  { %7471 = vmatmul.mubr.bf16.gmra.mrb[220].mxu1 %v14780_v10  ;;  %4944 = vmatprep.mubr.bf16.mxu0 %v12087_v47 }
 0x2fc   :  { %7480 = vmatprep.mubr.bf16.mxu1 %v12087_v47  ;;  %5054 = vmatpush1.bf16.msra.mxu0 %v11783_v58  ;;  %v11800_v47 = vld [vmem:[%s15771_s1 + $0x1004] ss:$8 sps:$4 sm:$0xff]   ;;  %v12088_v58 = vld [vmem:[%s15772_s0 + $0x160] ss:$16 sps:$4 sm:$0xff]  }
 0x2fd   :  { %7590 = vmatpush1.bf16.msra.mxu1 %v11786_v61  ;;  %5055 = vmatprep.subr.bf16.mxu0 %v11791_v12  ;;  %v12089_v61 = vld [vmem:[%s15772_s0 + $0x184] ss:$16 sps:$4 sm:$0xff]   ;;  %v12090_v12 = vld [vmem:[%s15772_s0 + $0x180] ss:$16 sps:$4 sm:$0xff]  }
 0x2fe   :  { %7591 = vmatprep.subr.bf16.mxu1 %v11794_v39  ;;  %v12092_v39 = vld [vmem:[%s15772_s0 + $0x1a0] ss:$16 sps:$4 sm:$0xff]  }
 0x300   :  { %5056 = vmatpush1.bf16.msra.mxu0 %v11789_v34  ;;  %v12093_v34 = vld [vmem:[%s15772_s0 + $0x1c4] ss:$16 sps:$4 sm:$0xff]  }
 0x301   :  { %7592 = vmatpush1.bf16.msra.mxu1 %v11792_v26  ;;  %5218 = vmatprep.subr.bf16.mxu0 %v11797_v15  ;;  %v12091_v15 = vld [vmem:[%s15772_s0 + $0x1a4] ss:$16 sps:$4 sm:$0xff]   ;;  %v12094_v26 = vld [vmem:[%s15772_s0 + $0x1c0] ss:$16 sps:$4 sm:$0xff]  }
 0x302   :  { %7754 = vmatprep.subr.bf16.mxu1 %v11800_v47  ;;  %4945 = vmatmul.mubr.bf16.gmra.mrb[224].mxu0 %v12088_v58  ;;  %v12095_v47 = vld [vmem:[%s15772_s0 + $0x1e4] ss:$16 sps:$4 sm:$0xff]  }
 0x303   :  { %7481 = vmatmul.mubr.bf16.gmra.mrb[224].mxu1 %v12088_v58  ;;  %4954 = vmatprep.mubr.bf16.mxu0 %v12089_v61  ;;  %v12096_v58 = vld [vmem:[%s15772_s0 + $0x1e0] ss:$16 sps:$4 sm:$0xff]  }
 0x304   :  { %7490 = vmatprep.mubr.bf16.mxu1 %v12089_v61  ;;  %v12097_v61 = vld [vmem:[%s15772_s0 + $0x204] ss:$16 sps:$4 sm:$0xff]  }
 0x30a   :  { %4955 = vmatmul.mubr.bf16.gmra.mrb[228].mxu0 %v12090_v12 }
 0x30b   :  { %7491 = vmatmul.mubr.bf16.gmra.mrb[228].mxu1 %v12090_v12  ;;  %4964 = vmatprep.mubr.bf16.mxu0 %v12091_v15  ;;  %v12098_v12 = vld [vmem:[%s15772_s0 + $0x200] ss:$16 sps:$4 sm:$0xff]  }
 0x30c   :  { %7500 = vmatprep.mubr.bf16.mxu1 %v12091_v15  ;;  %v12099_v15 = vld [vmem:[%s15772_s0 + $0x224] ss:$16 sps:$4 sm:$0xff]  }
 0x312   :  { %4965 = vmatmul.mubr.bf16.gmra.mrb[232].mxu0 %v12092_v39 }
 0x313   :  { %7501 = vmatmul.mubr.bf16.gmra.mrb[232].mxu1 %v12092_v39  ;;  %4974 = vmatprep.mubr.bf16.mxu0 %v12093_v34  ;;  %v12100_v39 = vld [vmem:[%s15772_s0 + $0x220] ss:$16 sps:$4 sm:$0xff]  }
 0x314   :  { %7510 = vmatprep.mubr.bf16.mxu1 %v12093_v34  ;;  %v12101_v34 = vld [vmem:[%s15772_s0 + $0x244] ss:$16 sps:$4 sm:$0xff]  }
 0x31a   :  { %4975 = vmatmul.mubr.bf16.gmra.mrb[236].mxu0 %v12094_v26 }
 0x31b   :  { %7511 = vmatmul.mubr.bf16.gmra.mrb[236].mxu1 %v12094_v26  ;;  %4984 = vmatprep.mubr.bf16.mxu0 %v12095_v47  ;;  %v12102_v26 = vld [vmem:[%s15772_s0 + $0x240] ss:$16 sps:$4 sm:$0xff]  }
 0x31c   :  { %7520 = vmatprep.mubr.bf16.mxu1 %v12095_v47  ;;  %v11795_v47 = vld [vmem:[%s15771_s1 + $0xa00] ss:$8 sps:$4 sm:$0xff]  }
 0x322   :  { %4985 = vmatmul.mubr.bf16.gmra.mrb[240].mxu0 %v12096_v58 }
 0x323   :  { %7521 = vmatmul.mubr.bf16.gmra.mrb[240].mxu1 %v12096_v58  ;;  %4994 = vmatprep.mubr.bf16.mxu0 %v12097_v61  ;;  %v11798_v58 = vld [vmem:[%s15771_s1 + $0x1000] ss:$8 sps:$4 sm:$0xff]  }
 0x324   :  { %7530 = vmatprep.mubr.bf16.mxu1 %v12097_v61  ;;  %v11803_v61 = vld [vmem:[%s15771_s1 + $0xa14] ss:$8 sps:$4 sm:$0xff]  }
 0x32a   :  { %4995 = vmatmul.mubr.bf16.gmra.mrb[244].mxu0 %v12098_v12 }
 0x32b   :  { %7531 = vmatmul.mubr.bf16.gmra.mrb[244].mxu1 %v12098_v12  ;;  %5004 = vmatprep.mubr.bf16.mxu0 %v12099_v15  ;;  %v11806_v12 = vld [vmem:[%s15771_s1 + $0x1014] ss:$8 sps:$4 sm:$0xff]  }
 0x32c   :  { %7540 = vmatprep.mubr.bf16.mxu1 %v12099_v15  ;;  %v11804_v15 = vld [vmem:[%s15771_s1 + $0x1010] ss:$8 sps:$4 sm:$0xff]  }
 0x332   :  { %5005 = vmatmul.mubr.bf16.gmra.mrb[248].mxu0 %v12100_v39 }
 0x333   :  { %7541 = vmatmul.mubr.bf16.gmra.mrb[248].mxu1 %v12100_v39  ;;  %5014 = vmatprep.mubr.bf16.mxu0 %v12101_v34  ;;  %v11809_v39 = vld [vmem:[%s15771_s1 + $0xa24] ss:$8 sps:$4 sm:$0xff]  }
 0x334   :  { %7550 = vmatprep.mubr.bf16.mxu1 %v12101_v34  ;;  %v11807_v34 = vld [vmem:[%s15771_s1 + $0xa20] ss:$8 sps:$4 sm:$0xff]  }
 0x33a   :  { %5015 = vmatmul.mubr.bf16.gmra.mrb[252].mxu0 %v12102_v26 }
 0x33b   :  { %7551 = vmatmul.mubr.bf16.gmra.mrb[252].mxu1 %v12102_v26  ;;  %5057 = vmatprep.mubr.bf16.mxu0 %v14115_v35  ;;  %v11815_v26 = vld [vmem:[%s15771_s1 + $0xa34] ss:$8 sps:$4 sm:$0xff]  }
 0x33c   :  { %7593 = vmatprep.mubr.bf16.mxu1 %v14115_v35  ;;  %v11801_v35 = vld [vmem:[%s15771_s1 + $0xa10] ss:$8 sps:$4 sm:$0xff]  }
 0x342   :  { %5058 = vmatmul.mubr.bf16.vlgmr.msra.gmra.mrb[192].mxu0 %v14146_v45 }
 0x343   :  { %7594 = vmatmul.mubr.bf16.vlgmr.msra.gmra.mrb[192].mxu1 %v14146_v45  ;;  %5219 = vmatpush1.bf16.msra.mxu0 %v11795_v47  ;;  %v11812_v45 = vld [vmem:[%s15771_s1 + $0x1024] ss:$8 sps:$4 sm:$0xff]   ;;  %v11818_v47 = vld [vmem:[%s15771_s1 + $0x1034] ss:$8 sps:$4 sm:$0xff]  }
 0x344   :  { %7755 = vmatpush1.bf16.msra.mxu1 %v11798_v58  ;;  %5067 = vmatprep.mubr.bf16.mxu0 %v14153_v1  ;;  %v11813_v58 = vld [vmem:[%s15771_s1 + $0xa30] ss:$8 sps:$4 sm:$0xff]  }
 0x345   :  { %7603 = vmatprep.mubr.bf16.mxu1 %v14153_v1  ;;  %5220 = vmatprep.subr.bf16.mxu0 %v11803_v61  ;;  %v11810_v1 = vld [vmem:[%s15771_s1 + $0x1020] ss:$8 sps:$4 sm:$0xff]   ;;  %v11816_v61 = vld [vmem:[%s15771_s1 + $0x1030] ss:$8 sps:$4 sm:$0xff]  }
 0x346   :  { %7756 = vmatprep.subr.bf16.mxu1 %v11806_v12  ;;  %v11819_v12 = vld [vmem:[%s15771_s1 + $0xa40] ss:$8 sps:$4 sm:$0xff]  }
 0x347   :  { %5221 = vmatpush1.bf16.msra.mxu0 %v11801_v35  ;;  %v11822_v35 = vld [vmem:[%s15771_s1 + $0x1040] ss:$8 sps:$4 sm:$0xff]  }
 0x348   :  { %7757 = vmatpush1.bf16.msra.mxu1 %v11804_v15  ;;  %5222 = vmatprep.subr.bf16.mxu0 %v11809_v39  ;;  %v11827_v15 = vld [vmem:[%s15771_s1 + $0xa54] ss:$8 sps:$4 sm:$0xff]  }
 0x349   :  { %7758 = vmatprep.subr.bf16.mxu1 %v11812_v45  ;;  %v11830_v39 = vld [vmem:[%s15771_s1 + $0x1054] ss:$8 sps:$4 sm:$0xff]   ;;  %v11825_v45 = vld [vmem:[%s15771_s1 + $0xa50] ss:$8 sps:$4 sm:$0xff]  }
 0x34a   :  { %5068 = vmatmul.mubr.bf16.gmra.mrb[196].mxu0 %v14190_v49 }
 0x34b   :  { %7604 = vmatmul.mubr.bf16.gmra.mrb[196].mxu1 %v14190_v49  ;;  %5077 = vmatprep.mubr.bf16.mxu0 %v14197_v14  ;;  %v11821_v49 = vld [vmem:[%s15771_s1 + $0xa44] ss:$8 sps:$4 sm:$0xff]  }
 0x34c   :  { %7613 = vmatprep.mubr.bf16.mxu1 %v14197_v14  ;;  %5223 = vmatpush1.bf16.msra.mxu0 %v11807_v34  ;;  %v11824_v14 = vld [vmem:[%s15771_s1 + $0x1044] ss:$8 sps:$4 sm:$0xff]   ;;  %v11828_v34 = vld [vmem:[%s15771_s1 + $0x1050] ss:$8 sps:$4 sm:$0xff]  }
 0x34d   :  { %7759 = vmatpush1.bf16.msra.mxu1 %v11810_v1  ;;  %5224 = vmatprep.subr.bf16.mxu0 %v11815_v26  ;;  %v11831_v1 = vld [vmem:[%s15771_s1 + $0xa60] ss:$8 sps:$4 sm:$0xff]  }
 0x34e   :  { %7760 = vmatprep.subr.bf16.mxu1 %v11818_v47  ;;  %v11834_v26 = vld [vmem:[%s15771_s1 + $0x1060] ss:$8 sps:$4 sm:$0xff]   ;;  %v11839_v47 = vld [vmem:[%s15771_s1 + $0xa74] ss:$8 sps:$4 sm:$0xff]  }
 0x350   :  { %5225 = vmatpush1.bf16.msra.mxu0 %v11813_v58  ;;  %v11842_v58 = vld [vmem:[%s15771_s1 + $0x1074] ss:$8 sps:$4 sm:$0xff]  }
 0x351   :  { %7761 = vmatpush1.bf16.msra.mxu1 %v11816_v61  ;;  %5226 = vmatprep.subr.bf16.mxu0 %v11821_v49  ;;  %v11837_v61 = vld [vmem:[%s15771_s1 + $0xa70] ss:$8 sps:$4 sm:$0xff]  }
 0x352   :  { %7762 = vmatprep.subr.bf16.mxu1 %v11824_v14  ;;  %5078 = vmatmul.mubr.bf16.gmra.mrb[200].mxu0 %v14234_v18  ;;  %v11840_v49 = vld [vmem:[%s15771_s1 + $0x1070] ss:$8 sps:$4 sm:$0xff]   ;;  %v11843_v14 = vld [vmem:[%s15771_s1 + $0xa80] ss:$8 sps:$4 sm:$0xff]  }
 0x353   :  { %7614 = vmatmul.mubr.bf16.gmra.mrb[200].mxu1 %v14234_v18  ;;  %5087 = vmatprep.mubr.bf16.mxu0 %v14241_v13  ;;  %v11833_v18 = vld [vmem:[%s15771_s1 + $0xa64] ss:$8 sps:$4 sm:$0xff]  }
 0x354   :  { %7623 = vmatprep.mubr.bf16.mxu1 %v14241_v13  ;;  %5227 = vmatpush1.bf16.msra.mxu0 %v11819_v12  ;;  %v11836_v13 = vld [vmem:[%s15771_s1 + $0x1064] ss:$8 sps:$4 sm:$0xff]   ;;  %v11846_v12 = vld [vmem:[%s15771_s1 + $0x1080] ss:$8 sps:$4 sm:$0xff]  }
 0x355   :  { %7763 = vmatpush1.bf16.msra.mxu1 %v11822_v35  ;;  %5228 = vmatprep.subr.bf16.mxu0 %v11827_v15  ;;  %v11851_v35 = vld [vmem:[%s15771_s1 + $0xa94] ss:$8 sps:$4 sm:$0xff]  }
 0x356   :  { %7764 = vmatprep.subr.bf16.mxu1 %v11830_v39  ;;  %v11854_v15 = vld [vmem:[%s15771_s1 + $0x1094] ss:$8 sps:$4 sm:$0xff]   ;;  %v11849_v39 = vld [vmem:[%s15771_s1 + $0xa90] ss:$8 sps:$4 sm:$0xff]  }
 0x358   :  { %5229 = vmatpush1.bf16.msra.mxu0 %v11825_v45  ;;  %v11852_v45 = vld [vmem:[%s15771_s1 + $0x1090] ss:$8 sps:$4 sm:$0xff]  }
 0x359   :  { %7765 = vmatpush1.bf16.msra.mxu1 %v11828_v34  ;;  %5230 = vmatprep.subr.bf16.mxu0 %v11833_v18  ;;  %v11855_v34 = vld [vmem:[%s15771_s1 + $0xaa0] ss:$8 sps:$4 sm:$0xff]  }
 0x35a   :  { %7766 = vmatprep.subr.bf16.mxu1 %v11836_v13  ;;  %5088 = vmatmul.mubr.bf16.gmra.mrb[204].mxu0 %v14278_v0  ;;  %v11858_v18 = vld [vmem:[%s15771_s1 + $0x10a0] ss:$8 sps:$4 sm:$0xff]   ;;  %v11863_v13 = vld [vmem:[%s15771_s1 + $0xab4] ss:$8 sps:$4 sm:$0xff]  }
 0x35b   :  { %7624 = vmatmul.mubr.bf16.gmra.mrb[204].mxu1 %v14278_v0  ;;  %5097 = vmatprep.mubr.bf16.mxu0 %v14285_v46  ;;  %v11845_v0 = vld [vmem:[%s15771_s1 + $0xa84] ss:$8 sps:$4 sm:$0xff]  }
 0x35c   :  { %7633 = vmatprep.mubr.bf16.mxu1 %v14285_v46  ;;  %5231 = vmatpush1.bf16.msra.mxu0 %v11831_v1  ;;  %v11848_v46 = vld [vmem:[%s15771_s1 + $0x1084] ss:$8 sps:$4 sm:$0xff]   ;;  %v11866_v1 = vld [vmem:[%s15771_s1 + $0x10b4] ss:$8 sps:$4 sm:$0xff]  }
 0x35d   :  { %7767 = vmatpush1.bf16.msra.mxu1 %v11834_v26  ;;  %5232 = vmatprep.subr.bf16.mxu0 %v11839_v47  ;;  %v11861_v26 = vld [vmem:[%s15771_s1 + $0xab0] ss:$8 sps:$4 sm:$0xff]  }
 0x35e   :  { %7768 = vmatprep.subr.bf16.mxu1 %v11842_v58  ;;  %v11864_v47 = vld [vmem:[%s15771_s1 + $0x10b0] ss:$8 sps:$4 sm:$0xff]   ;;  %v11867_v58 = vld [vmem:[%s15771_s1 + $0xac0] ss:$8 sps:$4 sm:$0xff]  }
 0x360   :  { %5233 = vmatpush1.bf16.msra.mxu0 %v11837_v61  ;;  %v11870_v61 = vld [vmem:[%s15771_s1 + $0x10c0] ss:$8 sps:$4 sm:$0xff]  }
 0x361   :  { %7769 = vmatpush1.bf16.msra.mxu1 %v11840_v49  ;;  %5234 = vmatprep.subr.bf16.mxu0 %v11845_v0  ;;  %v11875_v49 = vld [vmem:[%s15771_s1 + $0xad4] ss:$8 sps:$4 sm:$0xff]  }
 0x362   :  { %7770 = vmatprep.subr.bf16.mxu1 %v11848_v46  ;;  %5098 = vmatmul.mubr.bf16.gmra.mrb[208].mxu0 %v14322_v43  ;;  %v11878_v0 = vld [vmem:[%s15771_s1 + $0x10d4] ss:$8 sps:$4 sm:$0xff]  }
 0x363   :  { %7634 = vmatmul.mubr.bf16.gmra.mrb[208].mxu1 %v14322_v43  ;;  %5107 = vmatprep.mubr.bf16.mxu0 %v14329_v51  ;;  %v11857_v43 = vld [vmem:[%s15771_s1 + $0xaa4] ss:$8 sps:$4 sm:$0xff]  }
 0x364   :  { %7643 = vmatprep.mubr.bf16.mxu1 %v14329_v51  ;;  %5235 = vmatpush1.bf16.msra.mxu0 %v11843_v14  ;;  %v11860_v51 = vld [vmem:[%s15771_s1 + $0x10a4] ss:$8 sps:$4 sm:$0xff]   ;;  %v11873_v14 = vld [vmem:[%s15771_s1 + $0xad0] ss:$8 sps:$4 sm:$0xff]  }
 0x365   :  { %7771 = vmatpush1.bf16.msra.mxu1 %v11846_v12  ;;  %5236 = vmatprep.subr.bf16.mxu0 %v11851_v35  ;;  %v15031_v46 = vld [vmem:[%s15772_s0 + $0x10c] ss:$16 sps:$4 sm:$0xff]   ;;  %v11876_v12 = vld [vmem:[%s15771_s1 + $0x10d0] ss:$8 sps:$4 sm:$0xff]  }
 0x366   :  { %7772 = vmatprep.subr.bf16.mxu1 %v11854_v15  ;;  %v11884_v35 = vld [vmem:[%s15771_s1 + $0x10e4] ss:$8 sps:$4 sm:$0xff]   ;;  %v11879_v15 = vld [vmem:[%s15771_s1 + $0xae0] ss:$8 sps:$4 sm:$0xff]  }
 0x368   :  { %5237 = vmatpush1.bf16.msra.mxu0 %v11849_v39  ;;  %v11882_v39 = vld [vmem:[%s15771_s1 + $0x10e0] ss:$8 sps:$4 sm:$0xff]  }
 0x369   :  { %7773 = vmatpush1.bf16.msra.mxu1 %v11852_v45  ;;  %5238 = vmatprep.subr.bf16.mxu0 %v11857_v43  ;;  %v11887_v45 = vld [vmem:[%s15771_s1 + $0xaf4] ss:$8 sps:$4 sm:$0xff]  }
 0x36a   :  { %7774 = vmatprep.subr.bf16.mxu1 %v11860_v51  ;;  %5108 = vmatmul.mubr.bf16.gmra.mrb[212].mxu0 %v14366_v17  ;;  %v11890_v43 = vld [vmem:[%s15771_s1 + $0x10f4] ss:$8 sps:$4 sm:$0xff]   ;;  %v15062_v51 = vld [vmem:[%s15772_s0 + $0x108] ss:$16 sps:$4 sm:$0xff]  }
 0x36b   :  { %7644 = vmatmul.mubr.bf16.gmra.mrb[212].mxu1 %v14366_v17  ;;  %5117 = vmatprep.mubr.bf16.mxu0 %v14373_v3  ;;  %v11869_v17 = vld [vmem:[%s15771_s1 + $0xac4] ss:$8 sps:$4 sm:$0xff]  }
 0x36c   :  { %7653 = vmatprep.mubr.bf16.mxu1 %v14373_v3  ;;  %5239 = vmatpush1.bf16.msra.mxu0 %v11855_v34  ;;  %v11872_v3 = vld [vmem:[%s15771_s1 + $0x10c4] ss:$8 sps:$4 sm:$0xff]   ;;  %v11885_v34 = vld [vmem:[%s15771_s1 + $0xaf0] ss:$8 sps:$4 sm:$0xff]  }
 0x36d   :  { %7775 = vmatpush1.bf16.msra.mxu1 %v11858_v18  ;;  %5240 = vmatprep.subr.bf16.mxu0 %v11863_v13  ;;  %v11888_v18 = vld [vmem:[%s15771_s1 + $0x10f0] ss:$8 sps:$4 sm:$0xff]   ;;  %v11893_v13 = vld [vmem:[%s15771_s1 + $0xb04] ss:$8 sps:$4 sm:$0xff]  }
 0x36e   :  { %7776 = vmatprep.subr.bf16.mxu1 %v11866_v1  ;;  %v11903_v1 = vld [vmem:[%s15771_s1 + $0xb20] ss:$8 sps:$4 sm:$0xff]  }
 0x370   :  { %5241 = vmatpush1.bf16.msra.mxu0 %v11861_v26  ;;  %v11906_v26 = vld [vmem:[%s15771_s1 + $0x1120] ss:$8 sps:$4 sm:$0xff]  }
 0x371   :  { %7777 = vmatpush1.bf16.msra.mxu1 %v11864_v47  ;;  %5242 = vmatprep.subr.bf16.mxu0 %v11869_v17  ;;  %v11911_v47 = vld [vmem:[%s15771_s1 + $0xb34] ss:$8 sps:$4 sm:$0xff]  }
 0x372   :  { %7778 = vmatprep.subr.bf16.mxu1 %v11872_v3  ;;  %5118 = vmatmul.mubr.bf16.gmra.mrb[216].mxu0 %v14410_v31  ;;  %v11914_v17 = vld [vmem:[%s15771_s1 + $0x1134] ss:$8 sps:$4 sm:$0xff]   ;;  %v12110_v3 = vld [vmem:[%s15772_s0 + $0x60] ss:$16 sps:$4 sm:$0xff]  }
 0x373   :  { %7654 = vmatmul.mubr.bf16.gmra.mrb[216].mxu1 %v14410_v31  ;;  %5127 = vmatprep.mubr.bf16.mxu0 %v15031_v46  ;;  %v11881_v31 = vld [vmem:[%s15771_s1 + $0xae4] ss:$8 sps:$4 sm:$0xff]  }
 0x374   :  { %7663 = vmatprep.mubr.bf16.mxu1 %v15031_v46  ;;  %5243 = vmatpush1.bf16.msra.mxu0 %v11867_v58  ;;  %v12111_v58 = vld [vmem:[%s15772_s0 + $0x84] ss:$16 sps:$4 sm:$0xff]  }
 0x375   :  { %7779 = vmatpush1.bf16.msra.mxu1 %v11870_v61  ;;  %5244 = vmatprep.subr.bf16.mxu0 %v11875_v49  ;;  %v11909_v61 = vld [vmem:[%s15771_s1 + $0xb30] ss:$8 sps:$4 sm:$0xff]  }
 0x376   :  { %7780 = vmatprep.subr.bf16.mxu1 %v11878_v0  ;;  %v11912_v49 = vld [vmem:[%s15771_s1 + $0x1130] ss:$8 sps:$4 sm:$0xff]   ;;  %v11917_v0 = vld [vmem:[%s15771_s1 + $0xb44] ss:$8 sps:$4 sm:$0xff]  }
 0x378   :  { %5245 = vmatpush1.bf16.msra.mxu0 %v11873_v14  ;;  %v11920_v14 = vld [vmem:[%s15771_s1 + $0x1144] ss:$8 sps:$4 sm:$0xff]  }
 0x379   :  { %7781 = vmatpush1.bf16.msra.mxu1 %v11876_v12  ;;  %5246 = vmatprep.subr.bf16.mxu0 %v11881_v31  ;;  %v11915_v12 = vld [vmem:[%s15771_s1 + $0xb40] ss:$8 sps:$4 sm:$0xff]  }
 0x37a   :  { %7782 = vmatprep.subr.bf16.mxu1 %v11884_v35  ;;  %5128 = vmatmul.mubr.bf16.gmra.mrb[220].mxu0 %v15062_v51  ;;  %v11918_v31 = vld [vmem:[%s15771_s1 + $0x1140] ss:$8 sps:$4 sm:$0xff]   ;;  %v11923_v35 = vld [vmem:[%s15771_s1 + $0xb54] ss:$8 sps:$4 sm:$0xff]  }
 0x37b   :  { %7664 = vmatmul.mubr.bf16.gmra.mrb[220].mxu1 %v15062_v51  ;;  %5137 = vmatprep.mubr.bf16.mxu0 %v14441_v55 }
 0x37c   :  { %7673 = vmatprep.mubr.bf16.mxu1 %v14441_v55  ;;  %5247 = vmatpush1.bf16.msra.mxu0 %v11879_v15  ;;  %v11896_v55 = vld [vmem:[%s15771_s1 + $0x1104] ss:$8 sps:$4 sm:$0xff]   ;;  %v11926_v15 = vld [vmem:[%s15771_s1 + $0x1154] ss:$8 sps:$4 sm:$0xff]  }
 0x37d   :  { %7783 = vmatpush1.bf16.msra.mxu1 %v11882_v39  ;;  %5248 = vmatprep.subr.bf16.mxu0 %v11887_v45  ;;  %v12112_v39 = vld [vmem:[%s15772_s0 + $0x80] ss:$16 sps:$4 sm:$0xff]   ;;  %v12113_v45 = vld [vmem:[%s15772_s0 + $0xa4] ss:$16 sps:$4 sm:$0xff]  }
 0x37e   :  { %7784 = vmatprep.subr.bf16.mxu1 %v11890_v43  ;;  %v11921_v43 = vld [vmem:[%s15771_s1 + $0xb50] ss:$8 sps:$4 sm:$0xff]  }
 0x380   :  { %5249 = vmatpush1.bf16.msra.mxu0 %v11885_v34  ;;  %v11924_v34 = vld [vmem:[%s15771_s1 + $0x1150] ss:$8 sps:$4 sm:$0xff]  }
 0x381   :  { %7785 = vmatpush1.bf16.msra.mxu1 %v11888_v18  ;;  %5411 = vmatprep.subr.bf16.mxu0 %v11893_v13  ;;  %v11929_v18 = vld [vmem:[%s15771_s1 + $0xb64] ss:$8 sps:$4 sm:$0xff]  }
 0x382   :  { %7947 = vmatprep.subr.bf16.mxu1 %v11896_v55  ;;  %5138 = vmatmul.mubr.bf16.gmra.mrb[224].mxu0 %v14454_v23  ;;  %v11932_v13 = vld [vmem:[%s15771_s1 + $0x1164] ss:$8 sps:$4 sm:$0xff]   ;;  %v11927_v55 = vld [vmem:[%s15771_s1 + $0xb60] ss:$8 sps:$4 sm:$0xff]  }
 0x383   :  { %7674 = vmatmul.mubr.bf16.gmra.mrb[224].mxu1 %v14454_v23  ;;  %5147 = vmatprep.mubr.bf16.mxu0 %v14461_v25  ;;  %v12105_v23 = vld [vmem:[%s15772_s0 + $0x24c] ss:$16 sps:$4 sm:$0xff]  }
 0x384   :  { %7683 = vmatprep.mubr.bf16.mxu1 %v14461_v25  ;;  %v12106_v25 = vld [vmem:[%s15772_s0 + $0x248] ss:$16 sps:$4 sm:$0xff]  }
 0x38a   :  { %5148 = vmatmul.mubr.bf16.gmra.mrb[228].mxu0 %v14474_v16 }
 0x38b   :  { %7684 = vmatmul.mubr.bf16.gmra.mrb[228].mxu1 %v14474_v16  ;;  %5157 = vmatprep.mubr.bf16.mxu0 %v14481_v56  ;;  %v12107_v16 = vld [vmem:[%s15772_s0 + $0x44] ss:$16 sps:$4 sm:$0xff]  }
 0x38c   :  { %7693 = vmatprep.mubr.bf16.mxu1 %v14481_v56  ;;  %v11891_v56 = vld [vmem:[%s15771_s1 + $0xb00] ss:$8 sps:$4 sm:$0xff]  }
 0x392   :  { %5158 = vmatmul.mubr.bf16.gmra.mrb[232].mxu0 %v14488_v36 }
 0x393   :  { %7694 = vmatmul.mubr.bf16.gmra.mrb[232].mxu1 %v14488_v36  ;;  %5167 = vmatprep.mubr.bf16.mxu0 %v14495_v6  ;;  %v11894_v36 = vld [vmem:[%s15771_s1 + $0x1100] ss:$8 sps:$4 sm:$0xff]  }
 0x394   :  { %7703 = vmatprep.mubr.bf16.mxu1 %v14495_v6  ;;  %v11899_v6 = vld [vmem:[%s15771_s1 + $0xb14] ss:$8 sps:$4 sm:$0xff]  }
 0x39a   :  { %5168 = vmatmul.mubr.bf16.gmra.mrb[236].mxu0 %v14502_v53 }
 0x39b   :  { %7704 = vmatmul.mubr.bf16.gmra.mrb[236].mxu1 %v14502_v53  ;;  %5177 = vmatprep.mubr.bf16.mxu0 %v14509_v7  ;;  %v11902_v53 = vld [vmem:[%s15771_s1 + $0x1114] ss:$8 sps:$4 sm:$0xff]  }
 0x39c   :  { %7713 = vmatprep.mubr.bf16.mxu1 %v14509_v7  ;;  %v12108_v7 = vld [vmem:[%s15772_s0 + $0x40] ss:$16 sps:$4 sm:$0xff]  }
 0x3a2   :  { %5178 = vmatmul.mubr.bf16.gmra.mrb[240].mxu0 %v14516_v50 }
 0x3a3   :  { %7714 = vmatmul.mubr.bf16.gmra.mrb[240].mxu1 %v14516_v50  ;;  %5187 = vmatprep.mubr.bf16.mxu0 %v14523_v40  ;;  %v11897_v50 = vld [vmem:[%s15771_s1 + $0xb10] ss:$8 sps:$4 sm:$0xff]  }
 0x3a4   :  { %7723 = vmatprep.mubr.bf16.mxu1 %v14523_v40  ;;  %v11900_v40 = vld [vmem:[%s15771_s1 + $0x1110] ss:$8 sps:$4 sm:$0xff]  }
 0x3aa   :  { %5188 = vmatmul.mubr.bf16.gmra.mrb[244].mxu0 %v14530_v42 }
 0x3ab   :  { %7724 = vmatmul.mubr.bf16.gmra.mrb[244].mxu1 %v14530_v42  ;;  %5197 = vmatprep.mubr.bf16.mxu0 %v14537_v21  ;;  %v12109_v42 = vld [vmem:[%s15772_s0 + $0x64] ss:$16 sps:$4 sm:$0xff]  }
 0x3ac   :  { %7733 = vmatprep.mubr.bf16.mxu1 %v14537_v21  ;;  %v11905_v21 = vld [vmem:[%s15771_s1 + $0xb24] ss:$8 sps:$4 sm:$0xff]  }
 0x3b2   :  { %5198 = vmatmul.mubr.bf16.gmra.mrb[248].mxu0 %v14544_v2 }
 0x3b3   :  { %7734 = vmatmul.mubr.bf16.gmra.mrb[248].mxu1 %v14544_v2  ;;  %5207 = vmatprep.mubr.bf16.mxu0 %v12105_v23  ;;  %v11908_v2 = vld [vmem:[%s15771_s1 + $0x1124] ss:$8 sps:$4 sm:$0xff]  }
 0x3b4   :  { %7743 = vmatprep.mubr.bf16.mxu1 %v12105_v23  ;;  %v11930_v23 = vld [vmem:[%s15771_s1 + $0x1160] ss:$8 sps:$4 sm:$0xff]  }
 0x3ba   :  { %5208 = vmatmul.mubr.bf16.gmra.mrb[252].mxu0 %v12106_v25 }
 0x3bb   :  { %7744 = vmatmul.mubr.bf16.gmra.mrb[252].mxu1 %v12106_v25  ;;  %5250 = vmatprep.mubr.bf16.mxu0 %v12107_v16  ;;  %v11935_v25 = vld [vmem:[%s15771_s1 + $0xb74] ss:$8 sps:$4 sm:$0xff]  }
 0x3bc   :  { %7786 = vmatprep.mubr.bf16.mxu1 %v12107_v16  ;;  %v11938_v16 = vld [vmem:[%s15771_s1 + $0x1174] ss:$8 sps:$4 sm:$0xff]  }
 0x3c2   :  { %5251 = vmatmul.mubr.bf16.vlgmr.msra.gmra.mrb[192].mxu0 %v12108_v7 }
 0x3c3   :  { %7787 = vmatmul.mubr.bf16.vlgmr.msra.gmra.mrb[192].mxu1 %v12108_v7  ;;  %5412 = vmatpush1.bf16.msra.mxu0 %v11891_v56  ;;  %v12114_v56 = vld [vmem:[%s15772_s0 + $0xa0] ss:$16 sps:$4 sm:$0xff]   ;;  %v11941_v7 = vld [vmem:[%s15771_s1 + $0xb84] ss:$8 sps:$4 sm:$0xff]  }
 0x3c4   :  { %7948 = vmatpush1.bf16.msra.mxu1 %v11894_v36  ;;  %5260 = vmatprep.mubr.bf16.mxu0 %v12109_v42  ;;  %v12115_v36 = vld [vmem:[%s15772_s0 + $0xc4] ss:$16 sps:$4 sm:$0xff]  }
 0x3c5   :  { %7796 = vmatprep.mubr.bf16.mxu1 %v12109_v42  ;;  %5413 = vmatprep.subr.bf16.mxu0 %v11899_v6  ;;  %v11933_v6 = vld [vmem:[%s15771_s1 + $0xb70] ss:$8 sps:$4 sm:$0xff]   ;;  %v11942_v42 = vld [vmem:[%s15771_s1 + $0x1180] ss:$8 sps:$4 sm:$0xff]  }
 0x3c6   :  { %7949 = vmatprep.subr.bf16.mxu1 %v11902_v53  ;;  %v11936_v53 = vld [vmem:[%s15771_s1 + $0x1170] ss:$8 sps:$4 sm:$0xff]  }
 0x3c7   :  { %5414 = vmatpush1.bf16.msra.mxu0 %v11897_v50  ;;  %v11944_v50 = vld [vmem:[%s15771_s1 + $0x1184] ss:$8 sps:$4 sm:$0xff]  }
 0x3c8   :  { %7950 = vmatpush1.bf16.msra.mxu1 %v11900_v40  ;;  %5415 = vmatprep.subr.bf16.mxu0 %v11905_v21  ;;  %v11939_v40 = vld [vmem:[%s15771_s1 + $0xb80] ss:$8 sps:$4 sm:$0xff]   ;;  %v11947_v21 = vld [vmem:[%s15771_s1 + $0xb94] ss:$8 sps:$4 sm:$0xff]  }
 0x3c9   :  { %7951 = vmatprep.subr.bf16.mxu1 %v11908_v2  ;;  %v11950_v2 = vld [vmem:[%s15771_s1 + $0x1194] ss:$8 sps:$4 sm:$0xff]  }
 0x3ca   :  { %5261 = vmatmul.mubr.bf16.gmra.mrb[196].mxu0 %v12110_v3 }
 0x3cb   :  { %7797 = vmatmul.mubr.bf16.gmra.mrb[196].mxu1 %v12110_v3  ;;  %5270 = vmatprep.mubr.bf16.mxu0 %v12111_v58  ;;  %v11953_v3 = vld [vmem:[%s15771_s1 + $0xba4] ss:$8 sps:$4 sm:$0xff]  }
 0x3cc   :  { %7806 = vmatprep.mubr.bf16.mxu1 %v12111_v58  ;;  %5416 = vmatpush1.bf16.msra.mxu0 %v11903_v1  ;;  %v12116_v1 = vld [vmem:[%s15772_s0 + $0xc0] ss:$16 sps:$4 sm:$0xff]   ;;  %v11956_v58 = vld [vmem:[%s15771_s1 + $0x11a4] ss:$8 sps:$4 sm:$0xff]  }
 0x3cd   :  { %7952 = vmatpush1.bf16.msra.mxu1 %v11906_v26  ;;  %5417 = vmatprep.subr.bf16.mxu0 %v11911_v47  ;;  %v12117_v26 = vld [vmem:[%s15772_s0 + $0xe4] ss:$16 sps:$4 sm:$0xff]   ;;  %v11945_v47 = vld [vmem:[%s15771_s1 + $0xb90] ss:$8 sps:$4 sm:$0xff]  }
 0x3ce   :  { %7953 = vmatprep.subr.bf16.mxu1 %v11914_v17  ;;  %v11948_v17 = vld [vmem:[%s15771_s1 + $0x1190] ss:$8 sps:$4 sm:$0xff]  }
 0x3d0   :  { %5418 = vmatpush1.bf16.msra.mxu0 %v11909_v61  ;;  %v11951_v61 = vld [vmem:[%s15771_s1 + $0xba0] ss:$8 sps:$4 sm:$0xff]  }
 0x3d1   :  { %7954 = vmatpush1.bf16.msra.mxu1 %v11912_v49  ;;  %5419 = vmatprep.subr.bf16.mxu0 %v11917_v0  ;;  %v11954_v49 = vld [vmem:[%s15771_s1 + $0x11a0] ss:$8 sps:$4 sm:$0xff]   ;;  %v11959_v0 = vld [vmem:[%s15771_s1 + $0xbb4] ss:$8 sps:$4 sm:$0xff]  }
 0x3d2   :  { %7955 = vmatprep.subr.bf16.mxu1 %v11920_v14  ;;  %5271 = vmatmul.mubr.bf16.gmra.mrb[200].mxu0 %v12112_v39  ;;  %v11962_v14 = vld [vmem:[%s15771_s1 + $0x11b4] ss:$8 sps:$4 sm:$0xff]  }
 0x3d3   :  { %7807 = vmatmul.mubr.bf16.gmra.mrb[200].mxu1 %v12112_v39  ;;  %5280 = vmatprep.mubr.bf16.mxu0 %v12113_v45  ;;  %v11963_v39 = vld [vmem:[%s15771_s1 + $0xbc0] ss:$8 sps:$4 sm:$0xff]  }
 0x3d4   :  { %7816 = vmatprep.mubr.bf16.mxu1 %v12113_v45  ;;  %5420 = vmatpush1.bf16.msra.mxu0 %v11915_v12  ;;  %v12118_v12 = vld [vmem:[%s15772_s0 + $0xe0] ss:$16 sps:$4 sm:$0xff]  }
 0x3d5   :  { %7956 = vmatpush1.bf16.msra.mxu1 %v11918_v31  ;;  %5421 = vmatprep.subr.bf16.mxu0 %v11923_v35  ;;  %v11957_v31 = vld [vmem:[%s15771_s1 + $0xbb0] ss:$8 sps:$4 sm:$0xff]   ;;  %v11966_v45 = vld [vmem:[%s15771_s1 + $0x11c0] ss:$8 sps:$4 sm:$0xff]  }
 0x3d6   :  { %7957 = vmatprep.subr.bf16.mxu1 %v11926_v15  ;;  %v11960_v35 = vld [vmem:[%s15771_s1 + $0x11b0] ss:$8 sps:$4 sm:$0xff]   ;;  %v11965_v15 = vld [vmem:[%s15771_s1 + $0xbc4] ss:$8 sps:$4 sm:$0xff]  }
 0x3d8   :  { %5422 = vmatpush1.bf16.msra.mxu0 %v11921_v43  ;;  %v11971_v43 = vld [vmem:[%s15771_s1 + $0xbd4] ss:$8 sps:$4 sm:$0xff]  }
 0x3d9   :  { %7958 = vmatpush1.bf16.msra.mxu1 %v11924_v34  ;;  %5423 = vmatprep.subr.bf16.mxu0 %v11929_v18  ;;  %v11974_v34 = vld [vmem:[%s15771_s1 + $0x11d4] ss:$8 sps:$4 sm:$0xff]  }
 0x3da   :  { %7959 = vmatprep.subr.bf16.mxu1 %v11932_v13  ;;  %5281 = vmatmul.mubr.bf16.gmra.mrb[204].mxu0 %v12114_v56  ;;  %v12119_v18 = vld [vmem:[%s15772_s0 + $0x124] ss:$16 sps:$4 sm:$0xff]   ;;  %v11969_v13 = vld [vmem:[%s15771_s1 + $0xbd0] ss:$8 sps:$4 sm:$0xff]  }
 0x3db   :  { %7817 = vmatmul.mubr.bf16.gmra.mrb[204].mxu1 %v12114_v56  ;;  %5290 = vmatprep.mubr.bf16.mxu0 %v12115_v36  ;;  %v11983_v56 = vld [vmem:[%s15771_s1 + $0xbf4] ss:$8 sps:$4 sm:$0xff]  }
 0x3dc   :  { %7826 = vmatprep.mubr.bf16.mxu1 %v12115_v36  ;;  %5424 = vmatpush1.bf16.msra.mxu0 %v11927_v55  ;;  %v11972_v55 = vld [vmem:[%s15771_s1 + $0x11d0] ss:$8 sps:$4 sm:$0xff]   ;;  %v11986_v36 = vld [vmem:[%s15771_s1 + $0x11f4] ss:$8 sps:$4 sm:$0xff]  }
 0x3dd   :  { %7960 = vmatpush1.bf16.msra.mxu1 %v11930_v23  ;;  %5425 = vmatprep.subr.bf16.mxu0 %v11935_v25  ;;  %v11980_v23 = vld [vmem:[%s15771_s1 + $0x11e4] ss:$8 sps:$4 sm:$0xff]   ;;  %v11975_v25 = vld [vmem:[%s15771_s1 + $0xbe0] ss:$8 sps:$4 sm:$0xff]  }
 0x3de   :  { %7961 = vmatprep.subr.bf16.mxu1 %v11938_v16  ;;  %v11978_v16 = vld [vmem:[%s15771_s1 + $0x11e0] ss:$8 sps:$4 sm:$0xff]  }
 0x3e0   :  { %5426 = vmatpush1.bf16.msra.mxu0 %v11933_v6  ;;  %v12120_v6 = vld [vmem:[%s15772_s0 + $0x120] ss:$16 sps:$4 sm:$0xff]  }
 0x3e1   :  { %7962 = vmatpush1.bf16.msra.mxu1 %v11936_v53  ;;  %5427 = vmatprep.subr.bf16.mxu0 %v11941_v7  ;;  %v12121_v53 = vld [vmem:[%s15772_s0 + $0x184] ss:$16 sps:$4 sm:$0xff]   ;;  %v11981_v7 = vld [vmem:[%s15771_s1 + $0xbf0] ss:$8 sps:$4 sm:$0xff]  }
 0x3e2   :  { %7963 = vmatprep.subr.bf16.mxu1 %v11944_v50  ;;  %5291 = vmatmul.mubr.bf16.gmra.mrb[208].mxu0 %v12116_v1  ;;  %v11984_v50 = vld [vmem:[%s15771_s1 + $0x11f0] ss:$8 sps:$4 sm:$0xff]  }
 0x3e3   :  { %7827 = vmatmul.mubr.bf16.gmra.mrb[208].mxu1 %v12116_v1  ;;  %5300 = vmatprep.mubr.bf16.mxu0 %v12117_v26  ;;  %v12126_v1 = vld [vmem:[%s15772_s0 + $0x1c0] ss:$16 sps:$4 sm:$0xff]  }
 0x3e4   :  { %7836 = vmatprep.mubr.bf16.mxu1 %v12117_v26  ;;  %5428 = vmatpush1.bf16.msra.mxu0 %v11939_v40  ;;  %v12122_v40 = vld [vmem:[%s15772_s0 + $0x180] ss:$16 sps:$4 sm:$0xff]   ;;  %v12127_v26 = vld [vmem:[%s15772_s0 + $0x1e4] ss:$16 sps:$4 sm:$0xff]  }
 0x3e5   :  { %7964 = vmatpush1.bf16.msra.mxu1 %v11942_v42  ;;  %5429 = vmatprep.subr.bf16.mxu0 %v11947_v21  ;;  %v12123_v42 = vld [vmem:[%s15772_s0 + $0x1a4] ss:$16 sps:$4 sm:$0xff]   ;;  %v12124_v21 = vld [vmem:[%s15772_s0 + $0x1a0] ss:$16 sps:$4 sm:$0xff]  }
 0x3e6   :  { %7965 = vmatprep.subr.bf16.mxu1 %v11950_v2  ;;  %v12125_v2 = vld [vmem:[%s15772_s0 + $0x1c4] ss:$16 sps:$4 sm:$0xff]  }
 0x3e8   :  { %5430 = vmatpush1.bf16.msra.mxu0 %v11945_v47  ;;  %v12128_v47 = vld [vmem:[%s15772_s0 + $0x1e0] ss:$16 sps:$4 sm:$0xff]  }
 0x3e9   :  { %7966 = vmatpush1.bf16.msra.mxu1 %v11948_v17  ;;  %5431 = vmatprep.subr.bf16.mxu0 %v11953_v3  ;;  %v12129_v17 = vld [vmem:[%s15772_s0 + $0x204] ss:$16 sps:$4 sm:$0xff]   ;;  %v12130_v3 = vld [vmem:[%s15772_s0 + $0x200] ss:$16 sps:$4 sm:$0xff]  }
 0x3ea   :  { %7967 = vmatprep.subr.bf16.mxu1 %v11956_v58  ;;  %5301 = vmatmul.mubr.bf16.gmra.mrb[212].mxu0 %v12118_v12  ;;  %v12131_v58 = vld [vmem:[%s15772_s0 + $0x224] ss:$16 sps:$4 sm:$0xff]  }
 0x3eb   :  { %7837 = vmatmul.mubr.bf16.gmra.mrb[212].mxu1 %v12118_v12  ;;  %5310 = vmatprep.mubr.bf16.mxu0 %v14749_v33  ;;  %v12136_v12 = vld [vmem:[%s15772_s0 + $0x260] ss:$16 sps:$4 sm:$0xff]  }
 0x3ec   :  { %7846 = vmatprep.mubr.bf16.mxu1 %v14749_v33  ;;  %5432 = vmatpush1.bf16.msra.mxu0 %v11951_v61  ;;  %v11968_v33 = vld [vmem:[%s15771_s1 + $0x11c4] ss:$8 sps:$4 sm:$0xff]   ;;  %v12132_v61 = vld [vmem:[%s15772_s0 + $0x220] ss:$16 sps:$4 sm:$0xff]  }
 0x3ed   :  { %7968 = vmatpush1.bf16.msra.mxu1 %v11954_v49  ;;  %5433 = vmatprep.subr.bf16.mxu0 %v11959_v0  ;;  %v12133_v49 = vld [vmem:[%s15772_s0 + $0x244] ss:$16 sps:$4 sm:$0xff]   ;;  %v12134_v0 = vld [vmem:[%s15772_s0 + $0x240] ss:$16 sps:$4 sm:$0xff]  }
 0x3ee   :  { %7969 = vmatprep.subr.bf16.mxu1 %v11962_v14  ;;  %v12135_v14 = vld [vmem:[%s15772_s0 + $0x264] ss:$16 sps:$4 sm:$0xff]  }
 0x3f0   :  { %5434 = vmatpush1.bf16.msra.mxu0 %v11957_v31  ;;  %v12137_v31 = vld [vmem:[%s15772_s0 + $0x4c] ss:$16 sps:$4 sm:$0xff]  }
 0x3f1   :  { %7970 = vmatpush1.bf16.msra.mxu1 %v11960_v35  ;;  %5435 = vmatprep.subr.bf16.mxu0 %v11965_v15  ;;  %v11987_v35 = vld [vmem:[%s15773_s3 + $0x40] sm:$0xff]  }
 0x3f2   :  { %7971 = vmatprep.subr.bf16.mxu1 %v11968_v33  ;;  %5311 = vmatmul.mubr.bf16.gmra.mrb[216].mxu0 %v14780_v10  ;;  %v11988_v15 = vld [vmem:[%s15773_s3] sm:$0xff]   ;;  %v11989_v33 = vld [vmem:[%s15773_s3 + $0x48] sm:$0xff]  }
 0x3f3   :  { %7847 = vmatmul.mubr.bf16.gmra.mrb[216].mxu1 %v14780_v10  ;;  %5320 = vmatprep.mubr.bf16.mxu0 %v12119_v18  ;;  %v11977_v10 = vld [vmem:[%s15771_s1 + $0xbe4] ss:$8 sps:$4 sm:$0xff]  }
 0x3f4   :  { %7856 = vmatprep.mubr.bf16.mxu1 %v12119_v18  ;;  %5436 = vmatpush1.bf16.msra.mxu0 %v11963_v39  ;;  %v12138_v39 = vld [vmem:[%s15772_s0 + $0x48] ss:$16 sps:$4 sm:$0xff]   ;;  %v12141_v18 = vld [vmem:[%s15772_s0 + $0x8c] ss:$16 sps:$4 sm:$0xff]  }
 0x3f5   :  { %7972 = vmatpush1.bf16.msra.mxu1 %v11966_v45  ;;  %5437 = vmatprep.subr.bf16.mxu0 %v11971_v43  ;;  %v11990_v45 = vld [vmem:[%s15773_s3 + $0x8] sm:$0xff]  }
 0x3f6   :  { %7973 = vmatprep.subr.bf16.mxu1 %v11974_v34  ;;  %v12139_v43 = vld [vmem:[%s15772_s0 + $0x6c] ss:$16 sps:$4 sm:$0xff]   ;;  %v12140_v34 = vld [vmem:[%s15772_s0 + $0x68] ss:$16 sps:$4 sm:$0xff]  }
 0x3f8   :  { %5438 = vmatpush1.bf16.msra.mxu0 %v11969_v13  ;;  %v12142_v13 = vld [vmem:[%s15772_s0 + $0x88] ss:$16 sps:$4 sm:$0xff]  }
 0x3f9   :  { %7974 = vmatpush1.bf16.msra.mxu1 %v11972_v55  ;;  %5439 = vmatprep.subr.bf16.mxu0 %v11977_v10  ;;  %v12143_v55 = vld [vmem:[%s15772_s0 + $0xac] ss:$16 sps:$4 sm:$0xff]   ;;  %v12144_v10 = vld [vmem:[%s15772_s0 + $0xa8] ss:$16 sps:$4 sm:$0xff]  }
 0x3fa   :  { %7975 = vmatprep.subr.bf16.mxu1 %v11980_v23  ;;  %5321 = vmatmul.mubr.bf16.gmra.mrb[220].mxu0 %v12120_v6  ;;  %v12145_v23 = vld [vmem:[%s15772_s0 + $0xcc] ss:$16 sps:$4 sm:$0xff]  }
 0x3fb   :  { %7857 = vmatmul.mubr.bf16.gmra.mrb[220].mxu1 %v12120_v6  ;;  %5330 = vmatprep.mubr.bf16.mxu0 %v12121_v53  ;;  %v12150_v6 = vld [vmem:[%s15772_s0 + $0x128] ss:$16 sps:$4 sm:$0xff]  }
 0x3fc   :  { %7866 = vmatprep.mubr.bf16.mxu1 %v12121_v53  ;;  %5440 = vmatpush1.bf16.msra.mxu0 %v11975_v25  ;;  %v12146_v25 = vld [vmem:[%s15772_s0 + $0xc8] ss:$16 sps:$4 sm:$0xff]   ;;  %v12153_v53 = vld [vmem:[%s15772_s0 + $0x1ac] ss:$16 sps:$4 sm:$0xff]  }
 0x3fd   :  { %7976 = vmatpush1.bf16.msra.mxu1 %v11978_v16  ;;  %5441 = vmatprep.subr.bf16.mxu0 %v11983_v56  ;;  %v12147_v16 = vld [vmem:[%s15772_s0 + $0xec] ss:$16 sps:$4 sm:$0xff]   ;;  %v12148_v56 = vld [vmem:[%s15772_s0 + $0xe8] ss:$16 sps:$4 sm:$0xff]  }
 0x3fe   :  { %7977 = vmatprep.subr.bf16.mxu1 %v11986_v36  ;;  %v12149_v36 = vld [vmem:[%s15772_s0 + $0x12c] ss:$16 sps:$4 sm:$0xff]  }
 0x400   :  { %5442 = vmatpush1.bf16.msra.mxu0 %v11981_v7  ;;  %v12154_v7 = vld [vmem:[%s15772_s0 + $0x1a8] ss:$16 sps:$4 sm:$0xff]  }
 0x401   :  { %7978 = vmatpush1.bf16.msra.mxu1 %v11984_v50  ;;  %10204 = vmatprep.subr.bf16.mxu0 %v11987_v35  ;;  %v12155_v50 = vld [vmem:[%s15772_s0 + $0x1cc] ss:$16 sps:$4 sm:$0xff]  }
 0x402   :  { %5331 = vmatmul.mubr.bf16.gmra.mrb[224].mxu0 %v12122_v40  ;;  %10268 = vmatprep.subr.bf16.mxu1 %v11987_v35  ;;  %v12001_v35 = vld [vmem:[%s15773_s3 + $0x78] sm:$0xff]  }
 0x403   :  { %7867 = vmatmul.mubr.bf16.gmra.mrb[224].mxu1 %v12122_v40  ;;  %5340 = vmatprep.mubr.bf16.mxu0 %v12123_v42  ;;  %v12156_v40 = vld [vmem:[%s15772_s0 + $0x1c8] ss:$16 sps:$4 sm:$0xff]  }
 0x404   :  { %7876 = vmatprep.mubr.bf16.mxu1 %v12123_v42  ;;  %v12157_v42 = vld [vmem:[%s15772_s0 + $0x1ec] ss:$16 sps:$4 sm:$0xff]  }
 0x40a   :  { %5341 = vmatmul.mubr.bf16.gmra.mrb[228].mxu0 %v12124_v21 }
 0x40b   :  { %7877 = vmatmul.mubr.bf16.gmra.mrb[228].mxu1 %v12124_v21  ;;  %5350 = vmatprep.mubr.bf16.mxu0 %v12125_v2  ;;  %v11991_v21 = vld [vmem:[%s15773_s3 + $0x50] sm:$0xff]  }
 0x40c   :  { %7886 = vmatprep.mubr.bf16.mxu1 %v12125_v2  ;;  %v11992_v2 = vld [vmem:[%s15773_s3 + $0x10] sm:$0xff]  }
 0x412   :  { %5351 = vmatmul.mubr.bf16.gmra.mrb[232].mxu0 %v12126_v1 }
 0x413   :  { %7887 = vmatmul.mubr.bf16.gmra.mrb[232].mxu1 %v12126_v1  ;;  %5360 = vmatprep.mubr.bf16.mxu0 %v12127_v26  ;;  %v11993_v1 = vld [vmem:[%s15773_s3 + $0x58] sm:$0xff]  }
 0x414   :  { %7896 = vmatprep.mubr.bf16.mxu1 %v12127_v26  ;;  %v12158_v26 = vld [vmem:[%s15772_s0 + $0x1e8] ss:$16 sps:$4 sm:$0xff]  }
 0x41a   :  { %5361 = vmatmul.mubr.bf16.gmra.mrb[236].mxu0 %v12128_v47 }
 0x41b   :  { %7897 = vmatmul.mubr.bf16.gmra.mrb[236].mxu1 %v12128_v47  ;;  %5370 = vmatprep.mubr.bf16.mxu0 %v12129_v17  ;;  %v11994_v47 = vld [vmem:[%s15773_s3 + $0x18] sm:$0xff]  }
 0x41c   :  { %7906 = vmatprep.mubr.bf16.mxu1 %v12129_v17  ;;  %v12159_v17 = vld [vmem:[%s15772_s0 + $0x20c] ss:$16 sps:$4 sm:$0xff]  }
 0x422   :  { %5371 = vmatmul.mubr.bf16.gmra.mrb[240].mxu0 %v12130_v3 }
 0x423   :  { %7907 = vmatmul.mubr.bf16.gmra.mrb[240].mxu1 %v12130_v3  ;;  %5380 = vmatprep.mubr.bf16.mxu0 %v12131_v58  ;;  %v11995_v3 = vld [vmem:[%s15773_s3 + $0x60] sm:$0xff]  }
 0x424   :  { %7916 = vmatprep.mubr.bf16.mxu1 %v12131_v58  ;;  %v11996_v58 = vld [vmem:[%s15773_s3 + $0x20] sm:$0xff]  }
 0x42a   :  { %5381 = vmatmul.mubr.bf16.gmra.mrb[244].mxu0 %v12132_v61 }
 0x42b   :  { %7917 = vmatmul.mubr.bf16.gmra.mrb[244].mxu1 %v12132_v61  ;;  %5390 = vmatprep.mubr.bf16.mxu0 %v12133_v49  ;;  %v11997_v61 = vld [vmem:[%s15773_s3 + $0x68] sm:$0xff]  }
 0x42c   :  { %7926 = vmatprep.mubr.bf16.mxu1 %v12133_v49  ;;  %v12160_v49 = vld [vmem:[%s15772_s0 + $0x208] ss:$16 sps:$4 sm:$0xff]  }
 0x432   :  { %5391 = vmatmul.mubr.bf16.gmra.mrb[248].mxu0 %v12134_v0 }
 0x433   :  { %7927 = vmatmul.mubr.bf16.gmra.mrb[248].mxu1 %v12134_v0  ;;  %5400 = vmatprep.mubr.bf16.mxu0 %v12135_v14  ;;  %v11998_v0 = vld [vmem:[%s15773_s3 + $0x28] sm:$0xff]  }
 0x434   :  { %7936 = vmatprep.mubr.bf16.mxu1 %v12135_v14  ;;  %v12161_v14 = vld [vmem:[%s15772_s0 + $0x22c] ss:$16 sps:$4 sm:$0xff]  }
 0x43a   :  { %5401 = vmatmul.mubr.bf16.gmra.mrb[252].mxu0 %v12136_v12 }
 0x43b   :  { %7937 = vmatmul.mubr.bf16.gmra.mrb[252].mxu1 %v12136_v12  ;;  %5443 = vmatprep.mubr.bf16.mxu0 %v12137_v31  ;;  %v11999_v12 = vld [vmem:[%s15773_s3 + $0x70] sm:$0xff]  }
 0x43c   :  { %7979 = vmatprep.mubr.bf16.mxu1 %v12137_v31  ;;  %v12000_v31 = vld [vmem:[%s15773_s3 + $0x30] sm:$0xff]  }
 0x442   :  { %5444 = vmatmul.mubr.bf16.vlgmr.msra.gmra.mrb[192].mxu0 %v12138_v39 }
 0x443   :  { %7980 = vmatmul.mubr.bf16.vlgmr.msra.gmra.mrb[192].mxu1 %v12138_v39  ;;  %5453 = vmatprep.mubr.bf16.mxu0 %v12139_v43  ;;  %v12163_v39 = vld [vmem:[%s15772_s0 + $0x24c] ss:$16 sps:$4 sm:$0xff]  }
 0x444   :  { %7989 = vmatprep.mubr.bf16.mxu1 %v12139_v43  ;;  %10205 = vmatpush3.bf16.msra.mxu0 %v11988_v15  ;;  %v12165_v43 = vld [vmem:[%s15772_s0 + $0x26c] ss:$16 sps:$4 sm:$0xff]  }
 0x445   :  { %10276 = vmatpush3.bf16.msra.mxu1 %v11988_v15  ;;  %10206 = vmatprep.subr.bf16.mxu0 %v11989_v33  ;;  %v12162_v15 = vld [vmem:[%s15772_s0 + $0x228] ss:$16 sps:$4 sm:$0xff]  }
 0x446   :  { %10269 = vmatprep.subr.bf16.mxu1 %v11989_v33  ;;  %v12002_v33 = vld [vmem:[%s15773_s3 + $0x38] sm:$0xff]  }
 0x448   :  { %10207 = vmatpush3.bf16.msra.mxu0 %v11990_v45 }
 0x449   :  { %10277 = vmatpush3.bf16.msra.mxu1 %v11990_v45  ;;  %10208 = vmatprep.subr.bf16.mxu0 %v11991_v21  ;;  %v12164_v45 = vld [vmem:[%s15772_s0 + $0x248] ss:$16 sps:$4 sm:$0xff]  }
 0x44a   :  { %5454 = vmatmul.mubr.bf16.gmra.mrb[196].mxu0 %v12140_v34  ;;  %10270 = vmatprep.subr.bf16.mxu1 %v11991_v21 }
 0x44b   :  { %7990 = vmatmul.mubr.bf16.gmra.mrb[196].mxu1 %v12140_v34  ;;  %5463 = vmatprep.mubr.bf16.mxu0 %v12141_v18  ;;  %v12166_v34 = vld [vmem:[%s15772_s0 + $0x268] ss:$16 sps:$4 sm:$0xff]  }
 0x44c   :  { %7999 = vmatprep.mubr.bf16.mxu1 %v12141_v18  ;;  %10209 = vmatpush3.bf16.msra.mxu0 %v11992_v2  ;;  %v8367_v18 = vlaneseq }
 0x44d   :  { %10278 = vmatpush3.bf16.msra.mxu1 %v11992_v2  ;;  %10210 = vmatprep.subr.bf16.mxu0 %v11993_v1 }
 0x44e   :  { %10271 = vmatprep.subr.bf16.mxu1 %v11993_v1 }
 0x450   :  { %10211 = vmatpush3.bf16.msra.mxu0 %v11994_v47 }
 0x451   :  { %10279 = vmatpush3.bf16.msra.mxu1 %v11994_v47  ;;  %10212 = vmatprep.subr.bf16.mxu0 %v11995_v3 }
 0x452   :  { %5464 = vmatmul.mubr.bf16.gmra.mrb[200].mxu0 %v12142_v13  ;;  %10272 = vmatprep.subr.bf16.mxu1 %v11995_v3 }
 0x453   :  { %8000 = vmatmul.mubr.bf16.gmra.mrb[200].mxu1 %v12142_v13  ;;  %5473 = vmatprep.mubr.bf16.mxu0 %v12143_v55 }
 0x454   :  { %8009 = vmatprep.mubr.bf16.mxu1 %v12143_v55  ;;  %10213 = vmatpush3.bf16.msra.mxu0 %v11996_v58 }
 0x455   :  { %10280 = vmatpush3.bf16.msra.mxu1 %v11996_v58  ;;  %10214 = vmatprep.subr.bf16.mxu0 %v11997_v61  ;;  %v8365_v58 = vld [vmem:[%s15774_s2] sm:$0x3] }
 0x456   :  { %10273 = vmatprep.subr.bf16.mxu1 %v11997_v61 }
 0x458   :  { %10215 = vmatpush3.bf16.msra.mxu0 %v11998_v0 }
 0x459   :  { %10281 = vmatpush3.bf16.msra.mxu1 %v11998_v0  ;;  %10216 = vmatprep.subr.bf16.mxu0 %v11999_v12 }
 0x45a   :  { %5474 = vmatmul.mubr.bf16.gmra.mrb[204].mxu0 %v12144_v10  ;;  %10274 = vmatprep.subr.bf16.mxu1 %v11999_v12 }
 0x45b   :  { %8010 = vmatmul.mubr.bf16.gmra.mrb[204].mxu1 %v12144_v10  ;;  %5483 = vmatprep.mubr.bf16.mxu0 %v12145_v23 }
 0x45c   :  { %8019 = vmatprep.mubr.bf16.mxu1 %v12145_v23  ;;  %10217 = vmatpush3.bf16.msra.mxu0 %v12000_v31 }
 0x45d   :  { %10282 = vmatpush3.bf16.msra.mxu1 %v12000_v31  ;;  %10218 = vmatprep.subr.bf16.mxu0 %v12001_v35 }
 0x45e   :  { %10275 = vmatprep.subr.bf16.mxu1 %v12001_v35 }
 0x460   :  { %10219 = vmatpush3.bf16.msra.mxu0 %v12002_v33 }
 0x461   :  { %10283 = vmatpush3.bf16.msra.mxu1 %v12002_v33 }
 0x462   :  { %5484 = vmatmul.mubr.bf16.gmra.mrb[208].mxu0 %v12146_v25 }
 0x463   :  { %8020 = vmatmul.mubr.bf16.gmra.mrb[208].mxu1 %v12146_v25  ;;  %5493 = vmatprep.mubr.bf16.mxu0 %v12147_v16 }
 0x464   :  { %8029 = vmatprep.mubr.bf16.mxu1 %v12147_v16 }
 0x46a   :  { %5494 = vmatmul.mubr.bf16.gmra.mrb[212].mxu0 %v12148_v56 }
 0x46b   :  { %8030 = vmatmul.mubr.bf16.gmra.mrb[212].mxu1 %v12148_v56  ;;  %5503 = vmatprep.mubr.bf16.mxu0 %v15031_v46  ;;  %v8368_v56 = vshrl.u32 %v8367_v18, 7 }
 0x46c   :  { %8039 = vmatprep.mubr.bf16.mxu1 %v15031_v46  ;;  %v12151_v46 = vld [vmem:[%s15772_s0 + $0x18c] ss:$16 sps:$4 sm:$0xff]  }
 0x46d   :  { %v8369_v47 = vsub.s32 0, %v8368_v56 }
 0x46f   :  { %v15544_v33 = vrot.slane %v8365_v58, %v8369_v47 }
 0x472   :  { %5504 = vmatmul.mubr.bf16.gmra.mrb[216].mxu0 %v15062_v51 }
 0x473   :  { %8040 = vmatmul.mubr.bf16.gmra.mrb[216].mxu1 %v15062_v51  ;;  %5513 = vmatprep.mubr.bf16.mxu0 %v12149_v36  ;;  %v12152_v51 = vld [vmem:[%s15772_s0 + $0x188] ss:$16 sps:$4 sm:$0xff]  }
 0x474   :  { %8049 = vmatprep.mubr.bf16.mxu1 %v12149_v36 }
 0x47a   :  { %5514 = vmatmul.mubr.bf16.gmra.mrb[220].mxu0 %v12150_v6 }
 0x47b   :  { %8050 = vmatmul.mubr.bf16.gmra.mrb[220].mxu1 %v12150_v6  ;;  %5523 = vmatprep.mubr.bf16.mxu0 %v12151_v46 }
 0x47c   :  { %8059 = vmatprep.mubr.bf16.mxu1 %v12151_v46 }
 0x482   :  { %5524 = vmatmul.mubr.bf16.gmra.mrb[224].mxu0 %v12152_v51 }
 0x483   :  { %8060 = vmatmul.mubr.bf16.gmra.mrb[224].mxu1 %v12152_v51  ;;  %5533 = vmatprep.mubr.bf16.mxu0 %v12153_v53 }
 0x484   :  { %8069 = vmatprep.mubr.bf16.mxu1 %v12153_v53 }
 0x48a   :  { %5534 = vmatmul.mubr.bf16.gmra.mrb[228].mxu0 %v12154_v7 }
 0x48b   :  { %8070 = vmatmul.mubr.bf16.gmra.mrb[228].mxu1 %v12154_v7  ;;  %5543 = vmatprep.mubr.bf16.mxu0 %v12155_v50 }
 0x48c   :  { %8079 = vmatprep.mubr.bf16.mxu1 %v12155_v50 }
 0x492   :  { %5544 = vmatmul.mubr.bf16.gmra.mrb[232].mxu0 %v12156_v40 }
 0x493   :  { %8080 = vmatmul.mubr.bf16.gmra.mrb[232].mxu1 %v12156_v40  ;;  %5553 = vmatprep.mubr.bf16.mxu0 %v12157_v42 }
 0x494   :  { %8089 = vmatprep.mubr.bf16.mxu1 %v12157_v42 }
 0x49a   :  { %5554 = vmatmul.mubr.bf16.gmra.mrb[236].mxu0 %v12158_v26 }
 0x49b   :  { %8090 = vmatmul.mubr.bf16.gmra.mrb[236].mxu1 %v12158_v26  ;;  %5563 = vmatprep.mubr.bf16.mxu0 %v12159_v17 }
 0x49c   :  { %8099 = vmatprep.mubr.bf16.mxu1 %v12159_v17 }
 0x4a2   :  { %5564 = vmatmul.mubr.bf16.gmra.mrb[240].mxu0 %v12160_v49 }
 0x4a3   :  { %8100 = vmatmul.mubr.bf16.gmra.mrb[240].mxu1 %v12160_v49  ;;  %5573 = vmatprep.mubr.bf16.mxu0 %v12161_v14 }
 0x4a4   :  { %8109 = vmatprep.mubr.bf16.mxu1 %v12161_v14 }
 0x4aa   :  { %5574 = vmatmul.mubr.bf16.gmra.mrb[244].mxu0 %v12162_v15 }
 0x4ab   :  { %8110 = vmatmul.mubr.bf16.gmra.mrb[244].mxu1 %v12162_v15  ;;  %5583 = vmatprep.mubr.bf16.mxu0 %v12163_v39  ;;  %v8373_v15 = vsub.s32 1, %v8368_v56 }
 0x4ac   :  { %8119 = vmatprep.mubr.bf16.mxu1 %v12163_v39 }
 0x4b2   :  { %5584 = vmatmul.mubr.bf16.gmra.mrb[248].mxu0 %v12164_v45 }
 0x4b3   :  { %8120 = vmatmul.mubr.bf16.gmra.mrb[248].mxu1 %v12164_v45  ;;  %5593 = vmatprep.mubr.bf16.mxu0 %v12165_v43 }
 0x4b4   :  { %8129 = vmatprep.mubr.bf16.mxu1 %v12165_v43 }
 0x4ba   :  { %5594 = vmatmul.mubr.bf16.gmra.mrb[252].mxu0 %v12166_v34 }
 0x4bb   :  { %8130 = vmatmul.mubr.bf16.gmra.mrb[252].mxu1 %v12166_v34 }
 0x515   :  { %v5445_v13 = vpop.f32.mrb[192].mxu0 }
 0x516   :  { %v7981_v55 = vpop.f32.mrb[192].mxu1  ;;  %v5447_v10 = vpop.f32.mrb[193].mxu0  ;;  %v5669_v36 = vrot.slane %v5445_v13, 1 }
 0x517   :  { %v7983_v23 = vpop.f32.mrb[193].mxu1  ;;  %v5449_v25 = vpop.f32.mrb[194].mxu0  ;;  %v8205_v6 = vrot.slane %v7981_v55, 2  ;;  %v5672_v50 = vrot.slane %v5447_v10, 1 }
 0x518   :  { %v7985_v16 = vpop.f32.mrb[194].mxu1  ;;  %v5670_v46 = vrot.slane %v5449_v25, 1  ;;  %v5451_v53 = vpop.f32.mrb[195].mxu0  ;;  %v8208_v40 = vrot.slane %v7983_v23, 2 }
 0x519   :  { %v8206_v51 = vrot.slane %v7985_v16, 2  ;;  %v7987_v7 = vpop.f32.mrb[195].mxu1  ;;  %v5673_v42 = vrot.slane %v5451_v53, 1 }
 0x51a   :  { %v8209_v21 = vrot.slane %v7987_v7, 2  ;;  %v5671_v2 = vsel %vm5668_vm0, %v5669_v36, %v5670_v46  ;;  %v15548_v46 = vrot.slane %v8365_v58, %v8373_v15 }
 0x51b   :  { %v8207_v1 = vsel %vm8204_vm1, %v8205_v6, %v8206_v51  ;;  %v5797_v26 = vadd.f32 %v5671_v2, %v14027_v59  ;;  %v5674_v17 = vsel %vm5668_vm0, %v5672_v50, %v5673_v42 }
 0x51c   :  { %v8210_v3 = vsel %vm8204_vm1, %v8208_v40, %v8209_v21  ;;  %v5798_v61 = vadd.f32 %v5674_v17, %v14029_v4 }
 0x51d   :  { %v8333_v49 = vadd.f32 %v8207_v1, %v5797_v26  ;;  %v5455_v0 = vpop.f32.mrb[196].mxu0 }
 0x51e   :  { %v7991_v14 = vpop.f32.mrb[196].mxu1  ;;  %v8334_v12 = vadd.f32 %v8210_v3, %v5798_v61  ;;  %v5457_v31 = vpop.f32.mrb[197].mxu0  ;;  %v5675_v45 = vrot.slane %v5455_v0, 1 }
 0x51f   :  { %v7993_v35 = vpop.f32.mrb[197].mxu1  ;;  %v5459_v59 = vpop.f32.mrb[198].mxu0  ;;  %v8211_v43 = vrot.slane %v7991_v14, 2  ;;  %v5678_v23 = vrot.slane %v5457_v31, 1  ;;  %v8377_v56 = vadd.f32 %v15544_v33, %v8333_v49 }
 0x520   :  { %v7995_v39 = vpop.f32.mrb[198].mxu1  ;;  %v5676_v34 = vrot.slane %v5459_v59, 1  ;;  %v5461_v55 = vpop.f32.mrb[199].mxu0  ;;  %v8214_v25 = vrot.slane %v7993_v35, 2  ;;  %v8378_v47 = vadd.f32 %v15548_v46, %v8334_v12 }
 0x521   :  { %v8212_v13 = vrot.slane %v7995_v39, 2  ;;  %v7997_v10 = vpop.f32.mrb[199].mxu1  ;;  %v5679_v4 = vrot.slane %v5461_v55, 1  ;;  %v8409_v17 = vmax.f32 %v8377_v56, 0.0 }
 0x522   :  { %v8215_v16 = vrot.slane %v7997_v10, 2  ;;  %v5677_v36 = vsel %vm5668_vm0, %v5675_v45, %v5676_v34 }
 0x523   :  { %v8213_v6 = vsel %vm8204_vm1, %v8211_v43, %v8212_v13  ;;  %v5799_v51 = vadd.f32 %v5677_v36, %v14039_v63  ;;  %v5680_v53 = vsel %vm5668_vm0, %v5678_v23, %v5679_v4  ;;  %v8410_v13 = vmax.f32 %v8378_v47, 0.0 }
 0x524   :  { %v8216_v7 = vsel %vm8204_vm1, %v8214_v25, %v8215_v16  ;;  %v5800_v50 = vadd.f32 %v5680_v53, %v14041_v20 }
 0x525   :  { %v8335_v40 = vadd.f32 %v8213_v6, %v5799_v51  ;;  %v5465_v42 = vpop.f32.mrb[200].mxu0 }
 0x526   :  { %v8001_v21 = vpop.f32.mrb[200].mxu1  ;;  %v8336_v2 = vadd.f32 %v8216_v7, %v5800_v50  ;;  %v5467_v1 = vpop.f32.mrb[201].mxu0  ;;  %v5681_v58 = vrot.slane %v5465_v42, 1 }
 0x527   :  { %v8003_v26 = vpop.f32.mrb[201].mxu1  ;;  %v8379_v3 = vadd.f32 %v15544_v33, %v8335_v40  ;;  %v8217_v61 = vrot.slane %v8001_v21, 2  ;;  %v5469_v63 = vpop.f32.mrb[202].mxu0  ;;  %v5684_v0 = vrot.slane %v5467_v1, 1 }
 0x528   :  { %v8005_v49 = vpop.f32.mrb[202].mxu1  ;;  %v5682_v14 = vrot.slane %v5469_v63, 1  ;;  %v5471_v35 = vpop.f32.mrb[203].mxu0  ;;  %v8380_v15 = vadd.f32 %v15548_v46, %v8336_v2  ;;  %v8220_v39 = vrot.slane %v8003_v26, 2 }
 0x529   :  { %v8218_v31 = vrot.slane %v8005_v49, 2  ;;  %v8007_v20 = vpop.f32.mrb[203].mxu1  ;;  %v8411_v59 = vmax.f32 %v8379_v3, 0.0  ;;  %v5685_v45 = vrot.slane %v5471_v35, 1 }
 0x52a   :  { %v8221_v43 = vrot.slane %v8007_v20, 2  ;;  %v5683_v12 = vsel %vm5668_vm0, %v5681_v58, %v5682_v14  ;;  %v8412_v55 = vmax.f32 %v8380_v15, 0.0 }
 0x52b   :  { %v8219_v34 = vsel %vm8204_vm1, %v8217_v61, %v8218_v31  ;;  %v8441_v10 = vpack.c.bf16 %v8411_v59, %v8409_v17  ;;  %v5801_v23 = vadd.f32 %v5683_v12, %v14051_v29  ;;  %v5686_v25 = vsel %vm5668_vm0, %v5684_v0, %v5685_v45 }
 0x52c   :  { %v8222_v4 = vsel %vm8204_vm1, %v8220_v39, %v8221_v43  ;;  %v5802_v16 = vadd.f32 %v5686_v25, %v14053_v54  ;;  %v8442_v36 = vpack.c.bf16 %v8412_v55, %v8410_v13 }
 0x52d   :  { %v8337_v6 = vadd.f32 %v8219_v34, %v5801_v23  ;;  %v5475_v56 = vpop.f32.mrb[204].mxu0 }
 0x52e   :  { %v8011_v51 = vpop.f32.mrb[204].mxu1  ;;  %v8338_v53 = vadd.f32 %v8222_v4, %v5802_v16  ;;  %v5477_v7 = vpop.f32.mrb[205].mxu0  ;;  %8624 = vmatprep.mubr.bf16.mxu0 %v8442_v36  ;;  %v5687_v21 = vrot.slane %v5475_v56, 1 }
 0x52f   :  { %v8013_v50 = vpop.f32.mrb[205].mxu1  ;;  %v5479_v40 = vpop.f32.mrb[206].mxu0  ;;  %8625 = vmatmul.mubr.bf16.vlgmr.msra.gmra.mrb[0].mxu0 %v8441_v10  ;;  %v8223_v2 = vrot.slane %v8011_v51, 2  ;;  %v5690_v17 = vrot.slane %v5477_v7, 1  ;;  %v8381_v49 = vadd.f32 %v15544_v33, %v8337_v6 }
 0x530   :  { %v8015_v42 = vpop.f32.mrb[206].mxu1  ;;  %v5688_v29 = vrot.slane %v5479_v40, 1  ;;  %v5481_v26 = vpop.f32.mrb[207].mxu0  ;;  %v8226_v3 = vrot.slane %v8013_v50, 2  ;;  %v8382_v12 = vadd.f32 %v15548_v46, %v8338_v53 }
 0x531   :  { %v8224_v1 = vrot.slane %v8015_v42, 2  ;;  %v8017_v47 = vpop.f32.mrb[207].mxu1  ;;  %v5691_v54 = vrot.slane %v5481_v26, 1  ;;  %v8413_v34 = vmax.f32 %v8381_v49, 0.0 }
 0x532   :  { %v8227_v58 = vrot.slane %v8017_v47, 2  ;;  %v5689_v61 = vsel %vm5668_vm0, %v5687_v21, %v5688_v29  ;;  %v8414_v42 = vmax.f32 %v8382_v12, 0.0 }
 0x533   :  { %v8225_v63 = vsel %vm8204_vm1, %v8223_v2, %v8224_v1  ;;  %v5803_v0 = vadd.f32 %v5689_v61, %v14063_v5  ;;  %v5692_v14 = vsel %vm5668_vm0, %v5690_v17, %v5691_v54 }
 0x534   :  { %v8228_v31 = vsel %vm8204_vm1, %v8226_v3, %v8227_v58  ;;  %v5804_v35 = vadd.f32 %v5692_v14, %v14065_v8 }
 0x535   :  { %v8339_v20 = vadd.f32 %v8225_v63, %v5803_v0  ;;  %v5485_v15 = vpop.f32.mrb[208].mxu0 }
 0x536   :  { %v8021_v59 = vpop.f32.mrb[208].mxu1  ;;  %v8340_v39 = vadd.f32 %v8228_v31, %v5804_v35  ;;  %v5487_v45 = vpop.f32.mrb[209].mxu0  ;;  %v5693_v55 = vrot.slane %v5485_v15, 1 }
 0x537   :  { %v8023_v43 = vpop.f32.mrb[209].mxu1  ;;  %v8383_v13 = vadd.f32 %v15544_v33, %v8339_v20  ;;  %v8229_v10 = vrot.slane %v8021_v59, 2  ;;  %v5489_v5 = vpop.f32.mrb[210].mxu0  ;;  %v5696_v25 = vrot.slane %v5487_v45, 1 }
 0x538   :  { %v8025_v23 = vpop.f32.mrb[210].mxu1  ;;  %v5694_v4 = vrot.slane %v5489_v5, 1  ;;  %v5491_v36 = vpop.f32.mrb[211].mxu0  ;;  %v8384_v6 = vadd.f32 %v15548_v46, %v8340_v39  ;;  %v8232_v51 = vrot.slane %v8023_v43, 2 }
 0x539   :  { %v8230_v16 = vrot.slane %v8025_v23, 2  ;;  %v8027_v8 = vpop.f32.mrb[211].mxu1  ;;  %v8415_v56 = vmax.f32 %v8383_v13, 0.0  ;;  %v5697_v7 = vrot.slane %v5491_v36, 1 }
 0x53a   :  { %v8233_v50 = vrot.slane %v8027_v8, 2  ;;  %v5695_v53 = vsel %vm5668_vm0, %v5693_v55, %v5694_v4  ;;  %v8416_v21 = vmax.f32 %v8384_v6, 0.0 }
 0x53b   :  { %v8231_v40 = vsel %vm8204_vm1, %v8229_v10, %v8230_v16  ;;  %v8443_v2 = vpack.c.bf16 %v8415_v56, %v8413_v34  ;;  %v5805_v29 = vadd.f32 %v5695_v53, %v14075_v11  ;;  %v5698_v1 = vsel %vm5668_vm0, %v5696_v25, %v5697_v7 }
 0x53c   :  { %v8234_v26 = vsel %vm8204_vm1, %v8232_v51, %v8233_v50  ;;  %v5806_v47 = vadd.f32 %v5698_v1, %v14077_v62  ;;  %v8444_v17 = vpack.c.bf16 %v8416_v21, %v8414_v42 }
 0x53d   :  { %v8341_v3 = vadd.f32 %v8231_v40, %v5805_v29  ;;  %v5495_v54 = vpop.f32.mrb[212].mxu0 }
 0x53e   :  { %v8031_v58 = vpop.f32.mrb[212].mxu1  ;;  %v8342_v61 = vadd.f32 %v8234_v26, %v5806_v47  ;;  %v5497_v63 = vpop.f32.mrb[213].mxu0  ;;  %8632 = vmatprep.mubr.bf16.mxu0 %v8444_v17  ;;  %v5699_v31 = vrot.slane %v5495_v54, 1 }
 0x53f   :  { %v8033_v49 = vpop.f32.mrb[213].mxu1  ;;  %v5499_v0 = vpop.f32.mrb[214].mxu0  ;;  %8633 = vmatmul.mubr.bf16.gmra.mrb[4].mxu0 %v8443_v2  ;;  %v8235_v35 = vrot.slane %v8031_v58, 2  ;;  %v5702_v39 = vrot.slane %v5497_v63, 1  ;;  %v8385_v13 = vadd.f32 %v15544_v33, %v8341_v3 }
 0x540   :  { %v8035_v14 = vpop.f32.mrb[214].mxu1  ;;  %v5700_v11 = vrot.slane %v5499_v0, 1  ;;  %v5501_v15 = vpop.f32.mrb[215].mxu0  ;;  %v8238_v45 = vrot.slane %v8033_v49, 2  ;;  %v8386_v56 = vadd.f32 %v15548_v46, %v8342_v61 }
 0x541   :  { %v8236_v20 = vrot.slane %v8035_v14, 2  ;;  %v8037_v59 = vpop.f32.mrb[215].mxu1  ;;  %v5703_v62 = vrot.slane %v5501_v15, 1  ;;  %v8417_v51 = vmax.f32 %v8385_v13, 0.0 }
 0x542   :  { %v8239_v43 = vrot.slane %v8037_v59, 2  ;;  %v5701_v12 = vsel %vm5668_vm0, %v5699_v31, %v5700_v11  ;;  %v8418_v61 = vmax.f32 %v8386_v56, 0.0 }
 0x543   :  { %v8237_v34 = vsel %vm8204_vm1, %v8235_v35, %v8236_v20  ;;  %v5807_v55 = vadd.f32 %v5701_v12, %v14093_v37  ;;  %v5704_v10 = vsel %vm5668_vm0, %v5702_v39, %v5703_v62 }
 0x544   :  { %v8240_v5 = vsel %vm8204_vm1, %v8238_v45, %v8239_v43  ;;  %v5808_v23 = vadd.f32 %v5704_v10, %v14095_v22 }
 0x545   :  { %v8343_v25 = vadd.f32 %v8237_v34, %v5807_v55  ;;  %v5505_v4 = vpop.f32.mrb[216].mxu0 }
 0x546   :  { %v8041_v16 = vpop.f32.mrb[216].mxu1  ;;  %v8344_v36 = vadd.f32 %v8240_v5, %v5808_v23  ;;  %v5507_v8 = vpop.f32.mrb[217].mxu0  ;;  %v5705_v50 = vrot.slane %v5505_v4, 1 }
 0x547   :  { %v8043_v6 = vpop.f32.mrb[217].mxu1  ;;  %v8387_v7 = vadd.f32 %v15544_v33, %v8343_v25  ;;  %v8241_v53 = vrot.slane %v8041_v16, 2  ;;  %v5509_v37 = vpop.f32.mrb[218].mxu0  ;;  %v5708_v42 = vrot.slane %v5507_v8, 1 }
 0x548   :  { %v8045_v40 = vpop.f32.mrb[218].mxu1  ;;  %v5706_v21 = vrot.slane %v5509_v37, 1  ;;  %v5511_v29 = vpop.f32.mrb[219].mxu0  ;;  %v8388_v1 = vadd.f32 %v15548_v46, %v8344_v36  ;;  %v8244_v47 = vrot.slane %v8043_v6, 2 }
 0x549   :  { %v8242_v2 = vrot.slane %v8045_v40, 2  ;;  %v8047_v22 = vpop.f32.mrb[219].mxu1  ;;  %v8419_v26 = vmax.f32 %v8387_v7, 0.0  ;;  %v5709_v17 = vrot.slane %v5511_v29, 1 }
 0x54a   :  { %v8245_v3 = vrot.slane %v8047_v22, 2  ;;  %v5707_v54 = vsel %vm5668_vm0, %v5705_v50, %v5706_v21  ;;  %v8420_v63 = vmax.f32 %v8388_v1, 0.0 }
 0x54b   :  { %v8243_v58 = vsel %vm8204_vm1, %v8241_v53, %v8242_v2  ;;  %v8445_v49 = vpack.c.bf16 %v8419_v26, %v8417_v51  ;;  %v5809_v0 = vadd.f32 %v5707_v54, %v14127_v38  ;;  %v5710_v14 = vsel %vm5668_vm0, %v5708_v42, %v5709_v17 }
 0x54c   :  { %v8246_v31 = vsel %vm8204_vm1, %v8244_v47, %v8245_v3  ;;  %v5810_v35 = vadd.f32 %v5710_v14, %v14135_v41  ;;  %v8446_v11 = vpack.c.bf16 %v8420_v63, %v8418_v61 }
 0x54d   :  { %v8345_v20 = vadd.f32 %v8243_v58, %v5809_v0  ;;  %v5515_v15 = vpop.f32.mrb[220].mxu0 }
 0x54e   :  { %v8051_v59 = vpop.f32.mrb[220].mxu1  ;;  %v8346_v39 = vadd.f32 %v8246_v31, %v5810_v35  ;;  %v5517_v45 = vpop.f32.mrb[221].mxu0  ;;  %8640 = vmatprep.mubr.bf16.mxu0 %v8446_v11  ;;  %v5711_v34 = vrot.slane %v5515_v15, 1 }
 0x54f   :  { %v8053_v62 = vpop.f32.mrb[221].mxu1  ;;  %v5519_v43 = vpop.f32.mrb[222].mxu0  ;;  %8641 = vmatmul.mubr.bf16.gmra.mrb[8].mxu0 %v8445_v49  ;;  %v8247_v13 = vrot.slane %v8051_v59, 2  ;;  %v5714_v23 = vrot.slane %v5517_v45, 1  ;;  %v8389_v8 = vadd.f32 %v15544_v33, %v8345_v20 }
 0x550   :  { %v8055_v12 = vpop.f32.mrb[222].mxu1  ;;  %v5712_v38 = vrot.slane %v5519_v43, 1  ;;  %v5521_v10 = vpop.f32.mrb[223].mxu0  ;;  %v8250_v25 = vrot.slane %v8053_v62, 2  ;;  %v8390_v2 = vadd.f32 %v15548_v46, %v8346_v39 }
 0x551   :  { %v8248_v55 = vrot.slane %v8055_v12, 2  ;;  %v8057_v5 = vpop.f32.mrb[223].mxu1  ;;  %v5715_v41 = vrot.slane %v5521_v10, 1  ;;  %v8421_v29 = vmax.f32 %v8389_v8, 0.0 }
 0x552   :  { %v8251_v4 = vrot.slane %v8057_v5, 2  ;;  %v5713_v16 = vsel %vm5668_vm0, %v5711_v34, %v5712_v38  ;;  %v8422_v11 = vmax.f32 %v8390_v2, 0.0 }
 0x553   :  { %v8249_v36 = vsel %vm8204_vm1, %v8247_v13, %v8248_v55  ;;  %v5811_v6 = vadd.f32 %v5713_v16, %v14171_v57  ;;  %v5716_v56 = vsel %vm5668_vm0, %v5714_v23, %v5715_v41 }
 0x554   :  { %v8252_v51 = vsel %vm8204_vm1, %v8250_v25, %v8251_v4  ;;  %v5812_v7 = vadd.f32 %v5716_v56, %v14179_v52 }
 0x555   :  { %v8347_v50 = vadd.f32 %v8249_v36, %v5811_v6  ;;  %v5525_v53 = vpop.f32.mrb[224].mxu0 }
 0x556   :  { %v8061_v37 = vpop.f32.mrb[224].mxu1  ;;  %v8348_v40 = vadd.f32 %v8252_v51, %v5812_v7  ;;  %v5527_v42 = vpop.f32.mrb[225].mxu0  ;;  %v5717_v1 = vrot.slane %v5525_v53, 1 }
 0x557   :  { %v8063_v21 = vpop.f32.mrb[225].mxu1  ;;  %v8391_v22 = vadd.f32 %v15544_v33, %v8347_v50  ;;  %v8253_v26 = vrot.slane %v8061_v37, 2  ;;  %v5529_v57 = vpop.f32.mrb[226].mxu0  ;;  %v5720_v17 = vrot.slane %v5527_v42, 1 }
 0x558   :  { %v8065_v47 = vpop.f32.mrb[226].mxu1  ;;  %v5718_v3 = vrot.slane %v5529_v57, 1  ;;  %v5531_v58 = vpop.f32.mrb[227].mxu0  ;;  %v8392_v61 = vadd.f32 %v15548_v46, %v8348_v40  ;;  %v8256_v49 = vrot.slane %v8063_v21, 2 }
 0x559   :  { %v8254_v54 = vrot.slane %v8065_v47, 2  ;;  %v8067_v52 = vpop.f32.mrb[227].mxu1  ;;  %v8423_v63 = vmax.f32 %v8391_v22, 0.0  ;;  %v5721_v0 = vrot.slane %v5531_v58, 1 }
 0x55a   :  { %v8257_v14 = vrot.slane %v8067_v52, 2  ;;  %v5719_v31 = vsel %vm5668_vm0, %v5717_v1, %v5718_v3  ;;  %v8424_v20 = vmax.f32 %v8392_v61, 0.0 }
 0x55b   :  { %v8255_v35 = vsel %vm8204_vm1, %v8253_v26, %v8254_v54  ;;  %v8447_v15 = vpack.c.bf16 %v8423_v63, %v8421_v29  ;;  %v5813_v59 = vadd.f32 %v5719_v31, %v14215_v9  ;;  %v5722_v39 = vsel %vm5668_vm0, %v5720_v17, %v5721_v0 }
 0x55c   :  { %v8258_v45 = vsel %vm8204_vm1, %v8256_v49, %v8257_v14  ;;  %v5814_v62 = vadd.f32 %v5722_v39, %v14223_v19  ;;  %v8448_v43 = vpack.c.bf16 %v8424_v20, %v8422_v11 }
 0x55d   :  { %v8349_v12 = vadd.f32 %v8255_v35, %v5813_v59  ;;  %v5535_v34 = vpop.f32.mrb[228].mxu0 }
 0x55e   :  { %v8071_v13 = vpop.f32.mrb[228].mxu1  ;;  %v8350_v38 = vadd.f32 %v8258_v45, %v5814_v62  ;;  %v5537_v55 = vpop.f32.mrb[229].mxu0  ;;  %8648 = vmatprep.mubr.bf16.mxu0 %v8448_v43  ;;  %v5723_v25 = vrot.slane %v5535_v34, 1 }
 0x55f   :  { %v8073_v10 = vpop.f32.mrb[229].mxu1  ;;  %v5539_v5 = vpop.f32.mrb[230].mxu0  ;;  %8649 = vmatmul.mubr.bf16.gmra.mrb[12].mxu0 %v8447_v15  ;;  %v8259_v41 = vrot.slane %v8071_v13, 2  ;;  %v5726_v8 = vrot.slane %v5537_v55, 1  ;;  %v8393_v50 = vadd.f32 %v15544_v33, %v8349_v12 }
 0x560   :  { %v8075_v23 = vpop.f32.mrb[230].mxu1  ;;  %v5724_v9 = vrot.slane %v5539_v5, 1  ;;  %v5541_v16 = vpop.f32.mrb[231].mxu0  ;;  %v8262_v6 = vrot.slane %v8073_v10, 2  ;;  %v8394_v57 = vadd.f32 %v15548_v46, %v8350_v38 }
 0x561   :  { %v8260_v4 = vrot.slane %v8075_v23, 2  ;;  %v8077_v36 = vpop.f32.mrb[231].mxu1  ;;  %v5727_v19 = vrot.slane %v5541_v16, 1  ;;  %v8425_v47 = vmax.f32 %v8393_v50, 0.0 }
 0x562   :  { %v8263_v56 = vrot.slane %v8077_v36, 2  ;;  %v5725_v51 = vsel %vm5668_vm0, %v5723_v25, %v5724_v9  ;;  %v8426_v59 = vmax.f32 %v8394_v57, 0.0 }
 0x563   :  { %v8261_v7 = vsel %vm8204_vm1, %v8259_v41, %v8260_v4  ;;  %v5815_v53 = vadd.f32 %v5725_v51, %v14259_v32  ;;  %v5728_v37 = vsel %vm5668_vm0, %v5726_v8, %v5727_v19 }
 0x564   :  { %v8264_v40 = vsel %vm8204_vm1, %v8262_v6, %v8263_v56  ;;  %v5816_v42 = vadd.f32 %v5728_v37, %v14267_v60 }
 0x565   :  { %v8351_v21 = vadd.f32 %v8261_v7, %v5815_v53  ;;  %v5545_v2 = vpop.f32.mrb[232].mxu0 }
 0x566   :  { %v8081_v29 = vpop.f32.mrb[232].mxu1  ;;  %v8352_v22 = vadd.f32 %v8264_v40, %v5816_v42  ;;  %v5547_v1 = vpop.f32.mrb[233].mxu0  ;;  %v5729_v3 = vrot.slane %v5545_v2, 1 }
 0x567   :  { %v8083_v26 = vpop.f32.mrb[233].mxu1  ;;  %v8395_v17 = vadd.f32 %v15544_v33, %v8351_v21  ;;  %v8265_v54 = vrot.slane %v8081_v29, 2  ;;  %v5549_v32 = vpop.f32.mrb[234].mxu0  ;;  %v5732_v52 = vrot.slane %v5547_v1, 1 }
 0x568   :  { %v8085_v58 = vpop.f32.mrb[234].mxu1  ;;  %v5730_v61 = vrot.slane %v5549_v32, 1  ;;  %v5551_v49 = vpop.f32.mrb[235].mxu0  ;;  %v8396_v0 = vadd.f32 %v15548_v46, %v8352_v22  ;;  %v8268_v31 = vrot.slane %v8083_v26, 2 }
 0x569   :  { %v8266_v63 = vrot.slane %v8085_v58, 2  ;;  %v8087_v60 = vpop.f32.mrb[235].mxu1  ;;  %v8427_v14 = vmax.f32 %v8395_v17, 0.0  ;;  %v5733_v35 = vrot.slane %v5551_v49, 1 }
 0x56a   :  { %v8269_v11 = vrot.slane %v8087_v60, 2  ;;  %v5731_v20 = vsel %vm5668_vm0, %v5729_v3, %v5730_v61  ;;  %v8428_v39 = vmax.f32 %v8396_v0, 0.0 }
 0x56b   :  { %v8267_v15 = vsel %vm8204_vm1, %v8265_v54, %v8266_v63  ;;  %v8449_v45 = vpack.c.bf16 %v8427_v14, %v8425_v47  ;;  %v5817_v62 = vadd.f32 %v5731_v20, %v14303_v30  ;;  %v5734_v43 = vsel %vm5668_vm0, %v5732_v52, %v5733_v35 }
 0x56c   :  { %v8270_v12 = vsel %vm8204_vm1, %v8268_v31, %v8269_v11  ;;  %v5818_v34 = vadd.f32 %v5734_v43, %v14311_v48  ;;  %v8450_v13 = vpack.c.bf16 %v8428_v39, %v8426_v59 }
 0x56d   :  { %v8353_v38 = vadd.f32 %v8267_v15, %v5817_v62  ;;  %v5555_v55 = vpop.f32.mrb[236].mxu0 }
 0x56e   :  { %v8091_v10 = vpop.f32.mrb[236].mxu1  ;;  %v8354_v5 = vadd.f32 %v8270_v12, %v5818_v34  ;;  %v5557_v23 = vpop.f32.mrb[237].mxu0  ;;  %8656 = vmatprep.mubr.bf16.mxu1 %v8450_v13  ;;  %v5735_v4 = vrot.slane %v5555_v55, 1 }
 0x56f   :  { %v8093_v25 = vpop.f32.mrb[237].mxu1  ;;  %v5559_v41 = vpop.f32.mrb[238].mxu0  ;;  %8657 = vmatmul.mubr.bf16.vlgmr.msra.gmra.mrb[0].mxu1 %v8449_v45  ;;  %v8271_v16 = vrot.slane %v8091_v10, 2  ;;  %v5738_v19 = vrot.slane %v5557_v23, 1  ;;  %v8397_v53 = vadd.f32 %v15544_v33, %v8353_v38 }
 0x570   :  { %v8095_v9 = vpop.f32.mrb[238].mxu1  ;;  %v5736_v30 = vrot.slane %v5559_v41, 1  ;;  %v5561_v8 = vpop.f32.mrb[239].mxu0  ;;  %v8274_v56 = vrot.slane %v8093_v25, 2  ;;  %v8398_v47 = vadd.f32 %v15548_v46, %v8354_v5 }
 0x571   :  { %v8272_v36 = vrot.slane %v8095_v9, 2  ;;  %v8097_v6 = vpop.f32.mrb[239].mxu1  ;;  %v5739_v48 = vrot.slane %v5561_v8, 1  ;;  %v8429_v17 = vmax.f32 %v8397_v53, 0.0 }
 0x572   :  { %v8275_v51 = vrot.slane %v8097_v6, 2  ;;  %v5737_v7 = vsel %vm5668_vm0, %v5735_v4, %v5736_v30  ;;  %v8430_v15 = vmax.f32 %v8398_v47, 0.0 }
 0x573   :  { %v8273_v50 = vsel %vm8204_vm1, %v8271_v16, %v8272_v36  ;;  %v5819_v37 = vadd.f32 %v5737_v7, %v14347_v44  ;;  %v5740_v40 = vsel %vm5668_vm0, %v5738_v19, %v5739_v48  ;;  %v15783_v7 = vld [vmem:[#allocation2_spill] sm:$0xff] }
 0x574   :  { %v8276_v42 = vsel %vm8204_vm1, %v8274_v56, %v8275_v51  ;;  %v5820_v21 = vadd.f32 %v5740_v40, %v14355_v28  ;;  %v15784_v40 = vld [vmem:[#allocation3_spill] sm:$0xff] }
 0x575   :  { %v8355_v2 = vadd.f32 %v8273_v50, %v5819_v37  ;;  %v5565_v29 = vpop.f32.mrb[240].mxu0 }
 0x576   :  { %v8101_v22 = vpop.f32.mrb[240].mxu1  ;;  %v8356_v1 = vadd.f32 %v8276_v42, %v5820_v21  ;;  %v5567_v26 = vpop.f32.mrb[241].mxu0  ;;  %v5741_v54 = vrot.slane %v5565_v29, 1 }
 0x577   :  { %v8103_v57 = vpop.f32.mrb[241].mxu1  ;;  %v8399_v3 = vadd.f32 %v15544_v33, %v8355_v2  ;;  %v8277_v32 = vrot.slane %v8101_v22, 2  ;;  %v5569_v44 = vpop.f32.mrb[242].mxu0  ;;  %v5744_v52 = vrot.slane %v5567_v26, 1 }
 0x578   :  { %v8105_v58 = vpop.f32.mrb[242].mxu1  ;;  %v5742_v61 = vrot.slane %v5569_v44, 1  ;;  %v5571_v49 = vpop.f32.mrb[243].mxu0  ;;  %v8400_v60 = vadd.f32 %v15548_v46, %v8356_v1  ;;  %v8280_v14 = vrot.slane %v8103_v57, 2 }
 0x579   :  { %v8278_v63 = vrot.slane %v8105_v58, 2  ;;  %v8107_v28 = vpop.f32.mrb[243].mxu1  ;;  %v8431_v0 = vmax.f32 %v8399_v3, 0.0  ;;  %v5745_v31 = vrot.slane %v5571_v49, 1 }
 0x57a   :  { %v8281_v35 = vrot.slane %v8107_v28, 2  ;;  %v5743_v11 = vsel %vm5668_vm0, %v5741_v54, %v5742_v61  ;;  %v8432_v59 = vmax.f32 %v8400_v60, 0.0 }
 0x57b   :  { %v8279_v20 = vsel %vm8204_vm1, %v8277_v32, %v8278_v63  ;;  %v8451_v39 = vpack.c.bf16 %v8431_v0, %v8429_v17  ;;  %v5821_v45 = vadd.f32 %v5743_v11, %v14391_v24  ;;  %v5746_v62 = vsel %vm5668_vm0, %v5744_v52, %v5745_v31 }
 0x57c   :  { %v8282_v43 = vsel %vm8204_vm1, %v8280_v14, %v8281_v35  ;;  %v5822_v12 = vadd.f32 %v5746_v62, %v14399_v27  ;;  %v8452_v34 = vpack.c.bf16 %v8432_v59, %v8430_v15 }
 0x57d   :  { %v8357_v13 = vadd.f32 %v8279_v20, %v5821_v45  ;;  %v5575_v38 = vpop.f32.mrb[244].mxu0 }
 0x57e   :  { %v8111_v55 = vpop.f32.mrb[244].mxu1  ;;  %v8358_v10 = vadd.f32 %v8282_v43, %v5822_v12  ;;  %v5577_v5 = vpop.f32.mrb[245].mxu0  ;;  %8664 = vmatprep.mubr.bf16.mxu1 %v8452_v34  ;;  %v5747_v9 = vrot.slane %v5575_v38, 1  ;;  %v15786_v12 = vld [vmem:[#allocation5_spill] sm:$0xff] }
 0x57f   :  { %v8113_v23 = vpop.f32.mrb[245].mxu1  ;;  %v5579_v25 = vpop.f32.mrb[246].mxu0  ;;  %8665 = vmatmul.mubr.bf16.gmra.mrb[4].mxu1 %v8451_v39  ;;  %v8283_v4 = vrot.slane %v8111_v55, 2  ;;  %v5750_v8 = vrot.slane %v5577_v5, 1  ;;  %v8401_v51 = vadd.f32 %v15544_v33, %v8357_v13  ;;  %v15785_v39 = vld [vmem:[#allocation4_spill] sm:$0xff] }
 0x580   :  { %v8115_v41 = vpop.f32.mrb[246].mxu1  ;;  %v5748_v24 = vrot.slane %v5579_v25, 1  ;;  %v5581_v30 = vpop.f32.mrb[247].mxu0  ;;  %v8286_v6 = vrot.slane %v8113_v23, 2  ;;  %v8402_v57 = vadd.f32 %v15548_v46, %v8358_v10 }
 0x581   :  { %v8284_v16 = vrot.slane %v8115_v41, 2  ;;  %v8117_v36 = vpop.f32.mrb[247].mxu1  ;;  %v5751_v27 = vrot.slane %v5581_v30, 1  ;;  %v8433_v47 = vmax.f32 %v8401_v51, 0.0 }
 0x582   :  { %v8287_v19 = vrot.slane %v8117_v36, 2  ;;  %v5749_v56 = vsel %vm5668_vm0, %v5747_v9, %v5748_v24  ;;  %v8434_v20 = vmax.f32 %v8402_v57, 0.0 }
 0x583   :  { %v8285_v48 = vsel %vm8204_vm1, %v8283_v4, %v8284_v16  ;;  %v5823_v50 = vadd.f32 %v5749_v56, %v15783_v7  ;;  %v5752_v53 = vsel %vm5668_vm0, %v5750_v8, %v5751_v27  ;;  %v15787_v7 = vld [vmem:[#allocation6_spill] sm:$0xff] }
 0x584   :  { %v8288_v37 = vsel %vm8204_vm1, %v8286_v6, %v8287_v19  ;;  %v5824_v42 = vadd.f32 %v5752_v53, %v15784_v40  ;;  %v15788_v40 = vld [vmem:[#allocation7_spill] sm:$0xff] }
 0x585   :  { %v8359_v21 = vadd.f32 %v8285_v48, %v5823_v50  ;;  %v5585_v2 = vpop.f32.mrb[248].mxu0 }
 0x586   :  { %v8121_v29 = vpop.f32.mrb[248].mxu1  ;;  %v8360_v22 = vadd.f32 %v8288_v37, %v5824_v42  ;;  %v5587_v1 = vpop.f32.mrb[249].mxu0  ;;  %v5753_v3 = vrot.slane %v5585_v2, 1 }
 0x587   :  { %v8123_v26 = vpop.f32.mrb[249].mxu1  ;;  %v8403_v17 = vadd.f32 %v15544_v33, %v8359_v21  ;;  %v8289_v54 = vrot.slane %v8121_v29, 2  ;;  %v5589_v32 = vpop.f32.mrb[250].mxu0  ;;  %v5756_v58 = vrot.slane %v5587_v1, 1 }
 0x588   :  { %v8125_v44 = vpop.f32.mrb[250].mxu1  ;;  %v5754_v52 = vrot.slane %v5589_v32, 1  ;;  %v5591_v63 = vpop.f32.mrb[251].mxu0  ;;  %v8404_v28 = vadd.f32 %v15548_v46, %v8360_v22  ;;  %v8292_v0 = vrot.slane %v8123_v26, 2 }
 0x589   :  { %v8290_v61 = vrot.slane %v8125_v44, 2  ;;  %v8127_v49 = vpop.f32.mrb[251].mxu1  ;;  %v8435_v60 = vmax.f32 %v8403_v17, 0.0  ;;  %v5757_v14 = vrot.slane %v5591_v63, 1  ;;  %v15671_v44 = vand.u32 127, %v8367_v18 }
 0x58a   :  { %v8293_v31 = vrot.slane %v8127_v49, 2  ;;  %v5755_v35 = vsel %vm5668_vm0, %v5753_v3, %v5754_v52  ;;  %v8436_v15 = vmax.f32 %v8404_v28, 0.0  ;;  %v15676_v52 = vld [vmem:[%s15775_s4] ss:$0 sm:$0xff] }
 0x58b   :  { %v8291_v11 = vsel %vm8204_vm1, %v8289_v54, %v8290_v61  ;;  %v8453_v59 = vpack.c.bf16 %v8435_v60, %v8433_v47  ;;  %v5825_v45 = vadd.f32 %v5755_v35, %v15785_v39  ;;  %v5758_v62 = vsel %vm5668_vm0, %v5756_v58, %v5757_v14 }
 0x58c   :  { %v8294_v43 = vsel %vm8204_vm1, %v8292_v0, %v8293_v31  ;;  %v5826_v34 = vadd.f32 %v5758_v62, %v15786_v12  ;;  %v8454_v13 = vpack.c.bf16 %v8436_v15, %v8434_v20  ;;  %vm8724_vm2 = vcmp.ge.s32.totalorder %v15671_v44, 16 }
 0x58d   :  { %v8361_v38 = vadd.f32 %v8291_v11, %v5825_v45  ;;  %v5595_v55 = vpop.f32.mrb[252].mxu0  ;;  %vm8725_vm3 = vcmp.lt.s32.totalorder %v15671_v44, 24  ;;  %vm8691_vm4 = vcmp.ge.s32.totalorder %v15671_v44, 8  ;;  %v12167_v14 = vmov 0.0  }
 0x58e   :  { %v8131_v10 = vpop.f32.mrb[252].mxu1  ;;  %v8362_v5 = vadd.f32 %v8294_v43, %v5826_v34  ;;  %v5597_v23 = vpop.f32.mrb[253].mxu0  ;;  %8672 = vmatprep.mubr.bf16.mxu1 %v8454_v13  ;;  %v5759_v4 = vrot.slane %v5595_v55, 1  ;;  %vm8726_vm5 = vmand %vm8724_vm2, %vm8725_vm3 }
 0x58f   :  { %v8133_v25 = vpop.f32.mrb[253].mxu1  ;;  %v5599_v41 = vpop.f32.mrb[254].mxu0  ;;  %8673 = vmatmul.mubr.bf16.gmra.mrb[8].mxu1 %v8453_v59  ;;  %v8295_v24 = vrot.slane %v8131_v10, 2  ;;  %v5762_v6 = vrot.slane %v5597_v23, 1  ;;  %v8405_v21 = vadd.f32 %v15544_v33, %v8361_v38  ;;  %v15685_v31 = vsel %vm8726_vm5, 0.001, %v12167_v14 }
 0x590   :  { %v8135_v9 = vpop.f32.mrb[254].mxu1  ;;  %v5760_v16 = vrot.slane %v5599_v41, 1  ;;  %v5601_v36 = vpop.f32.mrb[255].mxu0  ;;  %v8298_v27 = vrot.slane %v8133_v25, 2  ;;  %v8406_v22 = vadd.f32 %v15548_v46, %v8362_v5 }
 0x591   :  { %v8296_v30 = vrot.slane %v8135_v9, 2  ;;  %v8137_v8 = vpop.f32.mrb[255].mxu1  ;;  %v5763_v19 = vrot.slane %v5601_v36, 1  ;;  %v8437_v57 = vmax.f32 %v8405_v21, 0.0 }
 0x592   :  { %v8299_v56 = vrot.slane %v8137_v8, 2  ;;  %v5761_v48 = vsel %vm5668_vm0, %v5759_v4, %v5760_v16  ;;  %v8438_v17 = vmax.f32 %v8406_v22, 0.0 }
 0x593   :  { %v8297_v51 = vsel %vm8204_vm1, %v8295_v24, %v8296_v30  ;;  %v5827_v50 = vadd.f32 %v5761_v48, %v15787_v7  ;;  %v5764_v53 = vsel %vm5668_vm0, %v5762_v6, %v5763_v19 }
 0x594   :  { %v8300_v37 = vsel %vm8204_vm1, %v8298_v27, %v8299_v56  ;;  %v5828_v42 = vadd.f32 %v5764_v53, %v15788_v40 }
 0x595   :  { %v8363_v2 = vadd.f32 %v8297_v51, %v5827_v50 }
 0x596   :  { %v8364_v29 = vadd.f32 %v8300_v37, %v5828_v42 }
 0x597   :  { %v8407_v1 = vadd.f32 %v15544_v33, %v8363_v2 }
 0x598   :  { %v8408_v26 = vadd.f32 %v15548_v46, %v8364_v29 }
 0x599   :  { %v8439_v47 = vmax.f32 %v8407_v1, 0.0 }
 0x59a   :  { %v8440_v3 = vmax.f32 %v8408_v26, 0.0 }
 0x59b   :  { %v8455_v54 = vpack.c.bf16 %v8439_v47, %v8437_v57 }
 0x59c   :  { %v8456_v32 = vpack.c.bf16 %v8440_v3, %v8438_v17 }
 0x59e   :  { %8680 = vmatprep.mubr.bf16.mxu1 %v8456_v32 }
 0x59f   :  { %8681 = vmatmul.mubr.bf16.gmra.mrb[12].mxu1 %v8455_v54 }
 0x602   :  { %v10220_v58 = vpop.f32.mrb[0].mxu0 }
 0x603   :  { %v10221_v33 = vpop.f32.mrb[1].mxu0 }
 0x604   :  { %v10222_v61 = vadd.f32 %v10221_v33, %v10220_v58  ;;  %v10223_v46 = vpop.f32.mrb[2].mxu0 }
 0x605   :  { %v10224_v63 = vpop.f32.mrb[3].mxu0 }
 0x606   :  { %v8627_v49 = vadd.f32 %v10222_v61, %v15676_v52  ;;  %v10225_v28 = vadd.f32 %v10224_v63, %v10223_v46 }
 0x608   :  { %v8692_v18 = vmax.f32 %v8627_v49, 0.0  ;;  %v8630_v60 = vadd.f32 %v10225_v28, %v15676_v52 }
 0x60a   :  { %v8708_v0 = vsel %vm8691_vm4, %v8692_v18, %v8627_v49  ;;  %v8693_v35 = vmax.f32 %v8630_v60, 0.0 }
 0x60b   :  { %v8728_v20 = vadd.f32 %v15685_v31, %v8708_v0 }
 0x60c   :  { %v8709_v11 = vsel %vm8691_vm4, %v8693_v35, %v8630_v60 }
 0x60d   :  { %v8729_v15 = vadd.f32 %v15685_v31, %v8709_v11 }
 0x60f   :  { %v10160_v59 = vpack.c.bf16 %v8729_v15, %v8728_v20 }
 0x611   :  { %10161 = vst [vmem:[%s15776_s5] sm:$0xff] %v10160_v59  }
 0x612   :  { %v10226_v39 = vpop.f32.mrb[4].mxu0 }
 0x613   :  { %v10227_v45 = vpop.f32.mrb[5].mxu0 }
 0x614   :  { %v10228_v62 = vadd.f32 %v10227_v45, %v10226_v39  ;;  %v10229_v43 = vpop.f32.mrb[6].mxu0 }
 0x615   :  { %v10230_v12 = vpop.f32.mrb[7].mxu0 }
 0x616   :  { %v8635_v34 = vadd.f32 %v10228_v62, %v15676_v52  ;;  %v10231_v13 = vadd.f32 %v10230_v12, %v10229_v43 }
 0x618   :  { %v8694_v38 = vmax.f32 %v8635_v34, 0.0  ;;  %v8638_v55 = vadd.f32 %v10231_v13, %v15676_v52 }
 0x61a   :  { %v8710_v10 = vsel %vm8691_vm4, %v8694_v38, %v8635_v34  ;;  %v8695_v5 = vmax.f32 %v8638_v55, 0.0 }
 0x61b   :  { %v8730_v25 = vadd.f32 %v15685_v31, %v8710_v10 }
 0x61c   :  { %v8711_v23 = vsel %vm8691_vm4, %v8695_v5, %v8638_v55 }
 0x61d   :  { %v8731_v41 = vadd.f32 %v15685_v31, %v8711_v23 }
 0x61f   :  { %v10165_v9 = vpack.c.bf16 %v8731_v41, %v8730_v25 }
 0x621   :  { %10197 = vst [vmem:[%s15776_s5 + $0x8] sm:$0xff] %v10165_v9  }
 0x622   :  { %v10232_v4 = vpop.f32.mrb[8].mxu0 }
 0x623   :  { %v10233_v24 = vpop.f32.mrb[9].mxu0 }
 0x624   :  { %v10234_v16 = vadd.f32 %v10233_v24, %v10232_v4  ;;  %v10235_v30 = vpop.f32.mrb[10].mxu0 }
 0x625   :  { %v10236_v36 = vpop.f32.mrb[11].mxu0 }
 0x626   :  { %v8643_v8 = vadd.f32 %v10234_v16, %v15676_v52  ;;  %v10237_v6 = vadd.f32 %v10236_v36, %v10235_v30 }
 0x628   :  { %v8696_v27 = vmax.f32 %v8643_v8, 0.0  ;;  %v8646_v19 = vadd.f32 %v10237_v6, %v15676_v52 }
 0x62a   :  { %v8712_v56 = vsel %vm8691_vm4, %v8696_v27, %v8643_v8  ;;  %v8697_v48 = vmax.f32 %v8646_v19, 0.0 }
 0x62b   :  { %v8732_v7 = vadd.f32 %v15685_v31, %v8712_v56 }
 0x62c   :  { %v8713_v51 = vsel %vm8691_vm4, %v8697_v48, %v8646_v19 }
 0x62d   :  { %v8733_v50 = vadd.f32 %v15685_v31, %v8713_v51 }
 0x62f   :  { %v10170_v53 = vpack.c.bf16 %v8733_v50, %v8732_v7 }
 0x631   :  { %10198 = vst [vmem:[%s15776_s5 + $0x10] sm:$0xff] %v10170_v53  }
 0x632   :  { %v10238_v37 = vpop.f32.mrb[12].mxu0 }
 0x633   :  { %v10239_v40 = vpop.f32.mrb[13].mxu0 }
 0x634   :  { %v10240_v42 = vadd.f32 %v10239_v40, %v10238_v37  ;;  %v10241_v21 = vpop.f32.mrb[14].mxu0 }
 0x635   :  { %v10242_v2 = vpop.f32.mrb[15].mxu0 }
 0x636   :  { %v8651_v29 = vadd.f32 %v10240_v42, %v15676_v52  ;;  %v10243_v22 = vadd.f32 %v10242_v2, %v10241_v21 }
 0x638   :  { %v8698_v1 = vmax.f32 %v8651_v29, 0.0  ;;  %v8654_v26 = vadd.f32 %v10243_v22, %v15676_v52 }
 0x63a   :  { %v8714_v57 = vsel %vm8691_vm4, %v8698_v1, %v8651_v29  ;;  %v8699_v47 = vmax.f32 %v8654_v26, 0.0 }
 0x63b   :  { %v8734_v3 = vadd.f32 %v15685_v31, %v8714_v57 }
 0x63c   :  { %v8715_v17 = vsel %vm8691_vm4, %v8699_v47, %v8654_v26 }
 0x63d   :  { %v8735_v54 = vadd.f32 %v15685_v31, %v8715_v17 }
 0x63f   :  { %v10175_v32 = vpack.c.bf16 %v8735_v54, %v8734_v3 }
 0x641   :  { %10199 = vst [vmem:[%s15776_s5 + $0x18] sm:$0xff] %v10175_v32  }
 0x642   :  { %v10244_v58 = vpop.f32.mrb[0].mxu1 }
 0x643   :  { %v10245_v33 = vpop.f32.mrb[1].mxu1 }
 0x644   :  { %v10246_v61 = vadd.f32 %v10245_v33, %v10244_v58  ;;  %v10247_v46 = vpop.f32.mrb[2].mxu1 }
 0x645   :  { %v10248_v63 = vpop.f32.mrb[3].mxu1 }
 0x646   :  { %v8659_v49 = vadd.f32 %v10246_v61, %v15676_v52  ;;  %v10249_v28 = vadd.f32 %v10248_v63, %v10247_v46 }
 0x648   :  { %v8700_v18 = vmax.f32 %v8659_v49, 0.0  ;;  %v8662_v60 = vadd.f32 %v10249_v28, %v15676_v52 }
 0x64a   :  { %v8716_v0 = vsel %vm8691_vm4, %v8700_v18, %v8659_v49  ;;  %v8701_v14 = vmax.f32 %v8662_v60, 0.0 }
 0x64b   :  { %v8736_v11 = vadd.f32 %v15685_v31, %v8716_v0 }
 0x64c   :  { %v8717_v35 = vsel %vm8691_vm4, %v8701_v14, %v8662_v60 }
 0x64d   :  { %v8737_v20 = vadd.f32 %v15685_v31, %v8717_v35 }
 0x64f   :  { %v10180_v15 = vpack.c.bf16 %v8737_v20, %v8736_v11 }
 0x651   :  { %10200 = vst [vmem:[%s15776_s5 + $0x20] sm:$0xff] %v10180_v15  }
 0x652   :  { %v10250_v59 = vpop.f32.mrb[4].mxu1 }
 0x653   :  { %v10251_v39 = vpop.f32.mrb[5].mxu1 }
 0x654   :  { %v10252_v45 = vadd.f32 %v10251_v39, %v10250_v59  ;;  %v10253_v62 = vpop.f32.mrb[6].mxu1 }
 0x655   :  { %v10254_v43 = vpop.f32.mrb[7].mxu1 }
 0x656   :  { %v8667_v12 = vadd.f32 %v10252_v45, %v15676_v52  ;;  %v10255_v34 = vadd.f32 %v10254_v43, %v10253_v62 }
 0x658   :  { %v8702_v13 = vmax.f32 %v8667_v12, 0.0  ;;  %v8670_v38 = vadd.f32 %v10255_v34, %v15676_v52 }
 0x65a   :  { %v8718_v55 = vsel %vm8691_vm4, %v8702_v13, %v8667_v12  ;;  %v8703_v10 = vmax.f32 %v8670_v38, 0.0 }
 0x65b   :  { %v8738_v23 = vadd.f32 %v15685_v31, %v8718_v55 }
 0x65c   :  { %v8719_v5 = vsel %vm8691_vm4, %v8703_v10, %v8670_v38 }
 0x65d   :  { %v8739_v25 = vadd.f32 %v15685_v31, %v8719_v5 }
 0x65f   :  { %v10185_v41 = vpack.c.bf16 %v8739_v25, %v8738_v23 }
 0x661   :  { %10201 = vst [vmem:[%s15776_s5 + $0x28] sm:$0xff] %v10185_v41  }
 0x662   :  { %v10256_v9 = vpop.f32.mrb[8].mxu1 }
 0x663   :  { %v10257_v4 = vpop.f32.mrb[9].mxu1 }
 0x664   :  { %v10258_v24 = vadd.f32 %v10257_v4, %v10256_v9  ;;  %v10259_v16 = vpop.f32.mrb[10].mxu1 }
 0x665   :  { %v10260_v30 = vpop.f32.mrb[11].mxu1 }
 0x666   :  { %v8675_v36 = vadd.f32 %v10258_v24, %v15676_v52  ;;  %v10261_v8 = vadd.f32 %v10260_v30, %v10259_v16 }
 0x668   :  { %v8704_v6 = vmax.f32 %v8675_v36, 0.0  ;;  %v8678_v27 = vadd.f32 %v10261_v8, %v15676_v52 }
 0x66a   :  { %v8720_v19 = vsel %vm8691_vm4, %v8704_v6, %v8675_v36  ;;  %v8705_v56 = vmax.f32 %v8678_v27, 0.0 }
 0x66b   :  { %v8740_v51 = vadd.f32 %v15685_v31, %v8720_v19 }
 0x66c   :  { %v8721_v48 = vsel %vm8691_vm4, %v8705_v56, %v8678_v27 }
 0x66d   :  { %v8741_v7 = vadd.f32 %v15685_v31, %v8721_v48 }
 0x66f   :  { %v10190_v50 = vpack.c.bf16 %v8741_v7, %v8740_v51 }
 0x671   :  { %10202 = vst [vmem:[%s15776_s5 + $0x30] sm:$0xff] %v10190_v50  }
 0x672   :  { %v10262_v53 = vpop.f32.mrb[12].mxu1 }
 0x673   :  { %v10263_v37 = vpop.f32.mrb[13].mxu1 }
 0x674   :  { %v10264_v40 = vadd.f32 %v10263_v37, %v10262_v53  ;;  %v10265_v42 = vpop.f32.mrb[14].mxu1 }
 0x675   :  { %v10266_v21 = vpop.f32.mrb[15].mxu1 }
 0x676   :  { %v8683_v2 = vadd.f32 %v10264_v40, %v15676_v52  ;;  %v10267_v29 = vadd.f32 %v10266_v21, %v10265_v42 }
 0x678   :  { %v8706_v22 = vmax.f32 %v8683_v2, 0.0  ;;  %v8686_v1 = vadd.f32 %v10267_v29, %v15676_v52 }
 0x67a   :  { %v8722_v26 = vsel %vm8691_vm4, %v8706_v22, %v8683_v2  ;;  %v8707_v57 = vmax.f32 %v8686_v1, 0.0 }
 0x67b   :  { %v8742_v17 = vadd.f32 %v15685_v31, %v8722_v26 }
 0x67c   :  { %v8723_v47 = vsel %vm8691_vm4, %v8707_v57, %v8686_v1 }
 0x67d   :  { %v8743_v3 = vadd.f32 %v15685_v31, %v8723_v47 }
 0x67f   :  { %v10195_v54 = vpack.c.bf16 %v8743_v3, %v8742_v17 }
 0x681   :  { %10203 = vst [vmem:[%s15776_s5 + $0x38] sm:$0xff] %v10195_v54  }

// kernel: bbpred_forward.1
= control target key start
LH: loop header
LB: loop body
LE: loop exit
PB: predicated region body
PF: predicated region fallthrough
CT: control target
= control target key end

     0   :  { %vm5668_vm0 = vcmask 1046528   ;;  %vm8204_vm1 = vcmask 1045504   ;;  %s15771_s1 = inlined_call_operand.vmem [shape: bf16[3,1536,256], index: 1, kind: input, shape index: {}]   ;;  %s15772_s0 = inlined_call_operand.vmem [shape: bf16[2,10,16,512], index: 0, kind: input, shape index: {}]   ;;  %s15773_s3 = inlined_call_operand.vmem [shape: bf16[256,128], index: 3, kind: input, shape index: {}]   ;;  %s15774_s2 = inlined_call_operand.vmem [shape: f32[1,256], index: 2, kind: input, shape index: {}]   ;;  %s15775_s4 = inlined_call_operand.vmem [shape: f32[1,128], index: 4, kind: input, shape index: {}]   ;;  %s15776_s5 = inlined_call_operand.vmem [shape: bf16[2,64,128], index: 5, kind: output, shape index: {}]  }
   0x1   :  { %v10925_v0 = vld [vmem:[%s15771_s1 + $0x4] ss:$8 sps:$4 sm:$0xff]   ;;  %v10929_v2 = vld [vmem:[%s15771_s1] ss:$8 sps:$4 sm:$0xff]   ;;  %v10931_v4 = vld [vmem:[%s15771_s1 + $0x14] ss:$8 sps:$4 sm:$0xff]  }
   0x2   :  { %v10927_v1 = vld [vmem:[%s15771_s1 + $0x104] ss:$8 sps:$4 sm:$0xff]   ;;  %2327 = vmatprep.subr.bf16.mxu0 %v10925_v0  ;;  %v10930_v3 = vld [vmem:[%s15771_s1 + $0x100] ss:$8 sps:$4 sm:$0xff]   ;;  %v10933_v5 = vld [vmem:[%s15771_s1 + $0x114] ss:$8 sps:$4 sm:$0xff]  }
   0x3   :  { %2488 = vmatprep.subr.bf16.mxu1 %v10927_v1  ;;  %2328 = vmatpush1.bf16.msra.mxu0 %v10929_v2  ;;  %v10935_v6 = vld [vmem:[%s15771_s1 + $0x10] ss:$8 sps:$4 sm:$0xff]   ;;  %v10937_v8 = vld [vmem:[%s15771_s1 + $0x24] ss:$8 sps:$4 sm:$0xff]   ;;  %v10941_v10 = vld [vmem:[%s15771_s1 + $0x20] ss:$8 sps:$4 sm:$0xff]  }
   0x4   :  { %2489 = vmatpush1.bf16.msra.mxu1 %v10930_v3  ;;  %2329 = vmatprep.subr.bf16.mxu0 %v10931_v4  ;;  %v10936_v7 = vld [vmem:[%s15771_s1 + $0x110] ss:$8 sps:$4 sm:$0xff]   ;;  %v10939_v9 = vld [vmem:[%s15771_s1 + $0x124] ss:$8 sps:$4 sm:$0xff]   ;;  %v10942_v11 = vld [vmem:[%s15771_s1 + $0x120] ss:$8 sps:$4 sm:$0xff]  }
   0x5   :  { %2490 = vmatprep.subr.bf16.mxu1 %v10933_v5  ;;  %v10943_v12 = vld [vmem:[%s15771_s1 + $0x34] ss:$8 sps:$4 sm:$0xff]   ;;  %v10947_v14 = vld [vmem:[%s15771_s1 + $0x30] ss:$8 sps:$4 sm:$0xff]   ;;  %v10949_v16 = vld [vmem:[%s15771_s1 + $0x44] ss:$8 sps:$4 sm:$0xff]  }
   0x6   :  { %v10945_v13 = vld [vmem:[%s15771_s1 + $0x134] ss:$8 sps:$4 sm:$0xff]   ;;  %v10948_v15 = vld [vmem:[%s15771_s1 + $0x130] ss:$8 sps:$4 sm:$0xff]   ;;  %v10951_v17 = vld [vmem:[%s15771_s1 + $0x144] ss:$8 sps:$4 sm:$0xff]  }
   0x7   :  { %2330 = vmatpush1.bf16.msra.mxu0 %v10935_v6  ;;  %v10953_v18 = vld [vmem:[%s15771_s1 + $0x40] ss:$8 sps:$4 sm:$0xff]   ;;  %v10955_v20 = vld [vmem:[%s15771_s1 + $0x54] ss:$8 sps:$4 sm:$0xff]   ;;  %v10959_v22 = vld [vmem:[%s15771_s1 + $0x50] ss:$8 sps:$4 sm:$0xff]  }
   0x8   :  { %2491 = vmatpush1.bf16.msra.mxu1 %v10936_v7  ;;  %2331 = vmatprep.subr.bf16.mxu0 %v10937_v8  ;;  %v10954_v19 = vld [vmem:[%s15771_s1 + $0x140] ss:$8 sps:$4 sm:$0xff]   ;;  %v10957_v21 = vld [vmem:[%s15771_s1 + $0x154] ss:$8 sps:$4 sm:$0xff]   ;;  %v10960_v23 = vld [vmem:[%s15771_s1 + $0x150] ss:$8 sps:$4 sm:$0xff]  }
   0x9   :  { %2492 = vmatprep.subr.bf16.mxu1 %v10939_v9  ;;  %v10961_v24 = vld [vmem:[%s15771_s1 + $0x64] ss:$8 sps:$4 sm:$0xff]   ;;  %v10965_v26 = vld [vmem:[%s15771_s1 + $0x60] ss:$8 sps:$4 sm:$0xff]   ;;  %v10967_v28 = vld [vmem:[%s15771_s1 + $0x74] ss:$8 sps:$4 sm:$0xff]  }
   0xa   :  { %v10963_v25 = vld [vmem:[%s15771_s1 + $0x164] ss:$8 sps:$4 sm:$0xff]   ;;  %v10966_v27 = vld [vmem:[%s15771_s1 + $0x160] ss:$8 sps:$4 sm:$0xff]   ;;  %v10969_v29 = vld [vmem:[%s15771_s1 + $0x174] ss:$8 sps:$4 sm:$0xff]  }
   0xb   :  { %2332 = vmatpush1.bf16.msra.mxu0 %v10941_v10  ;;  %v10971_v30 = vld [vmem:[%s15771_s1 + $0x70] ss:$8 sps:$4 sm:$0xff]   ;;  %v10973_v32 = vld [vmem:[%s15771_s1 + $0x84] ss:$8 sps:$4 sm:$0xff]   ;;  %v10977_v34 = vld [vmem:[%s15771_s1 + $0x80] ss:$8 sps:$4 sm:$0xff]  }
   0xc   :  { %2493 = vmatpush1.bf16.msra.mxu1 %v10942_v11  ;;  %2333 = vmatprep.subr.bf16.mxu0 %v10943_v12  ;;  %v10972_v31 = vld [vmem:[%s15771_s1 + $0x170] ss:$8 sps:$4 sm:$0xff]   ;;  %v10975_v33 = vld [vmem:[%s15771_s1 + $0x184] ss:$8 sps:$4 sm:$0xff]   ;;  %v10978_v35 = vld [vmem:[%s15771_s1 + $0x180] ss:$8 sps:$4 sm:$0xff]  }
   0xd   :  { %2494 = vmatprep.subr.bf16.mxu1 %v10945_v13  ;;  %v10979_v36 = vld [vmem:[%s15771_s1 + $0x94] ss:$8 sps:$4 sm:$0xff]   ;;  %v10983_v38 = vld [vmem:[%s15771_s1 + $0x90] ss:$8 sps:$4 sm:$0xff]   ;;  %v10985_v40 = vld [vmem:[%s15771_s1 + $0xa4] ss:$8 sps:$4 sm:$0xff]  }
   0xe   :  { %v10981_v37 = vld [vmem:[%s15771_s1 + $0x194] ss:$8 sps:$4 sm:$0xff]   ;;  %v10984_v39 = vld [vmem:[%s15771_s1 + $0x190] ss:$8 sps:$4 sm:$0xff]   ;;  %v10987_v41 = vld [vmem:[%s15771_s1 + $0x1a4] ss:$8 sps:$4 sm:$0xff]  }
   0xf   :  { %2334 = vmatpush1.bf16.msra.mxu0 %v10947_v14  ;;  %v10989_v42 = vld [vmem:[%s15771_s1 + $0xa0] ss:$8 sps:$4 sm:$0xff]   ;;  %v10991_v44 = vld [vmem:[%s15771_s1 + $0xb4] ss:$8 sps:$4 sm:$0xff]   ;;  %v10995_v46 = vld [vmem:[%s15771_s1 + $0xb0] ss:$8 sps:$4 sm:$0xff]  }
  0x10   :  { %2495 = vmatpush1.bf16.msra.mxu1 %v10948_v15  ;;  %2335 = vmatprep.subr.bf16.mxu0 %v10949_v16  ;;  %v10990_v43 = vld [vmem:[%s15771_s1 + $0x1a0] ss:$8 sps:$4 sm:$0xff]   ;;  %v10993_v45 = vld [vmem:[%s15771_s1 + $0x1b4] ss:$8 sps:$4 sm:$0xff]   ;;  %v10996_v47 = vld [vmem:[%s15771_s1 + $0x1b0] ss:$8 sps:$4 sm:$0xff]  }
  0x11   :  { %2496 = vmatprep.subr.bf16.mxu1 %v10951_v17  ;;  %v11021_v48 = vld [vmem:[%s15772_s0 + $0x4] ss:$16 sps:$4 sm:$0xff]   ;;  %v11023_v50 = vld [vmem:[%s15772_s0 + $0xc] ss:$16 sps:$4 sm:$0xff]   ;;  %v11001_v52 = vld [vmem:[%s15771_s1 + $0xc0] ss:$8 sps:$4 sm:$0xff]  }
  0x12   :  { %v10997_v49 = vld [vmem:[%s15771_s1 + $0xc4] ss:$8 sps:$4 sm:$0xff]   ;;  %2359 = vmatprep.mubr.bf16.mxu0 %v11021_v48  ;;  %2520 = vmatprep.mubr.bf16.mxu1 %v11023_v50  ;;  %v11002_v53 = vld [vmem:[%s15771_s1 + $0x1c0] ss:$8 sps:$4 sm:$0xff]   ;;  %v11003_v54 = vld [vmem:[%s15771_s1 + $0xd4] ss:$8 sps:$4 sm:$0xff]  }
  0x13   :  { %2336 = vmatpush1.bf16.msra.mxu0 %v10953_v18  ;;  %v10999_v51 = vld [vmem:[%s15771_s1 + $0x1c4] ss:$8 sps:$4 sm:$0xff]   ;;  %v11005_v55 = vld [vmem:[%s15771_s1 + $0x1d4] ss:$8 sps:$4 sm:$0xff]   ;;  %v11007_v56 = vld [vmem:[%s15771_s1 + $0xd0] ss:$8 sps:$4 sm:$0xff]  }
  0x14   :  { %2497 = vmatpush1.bf16.msra.mxu1 %v10954_v19  ;;  %2337 = vmatprep.subr.bf16.mxu0 %v10955_v20  ;;  %v11008_v57 = vld [vmem:[%s15771_s1 + $0x1d0] ss:$8 sps:$4 sm:$0xff]   ;;  %v11009_v58 = vld [vmem:[%s15771_s1 + $0xe4] ss:$8 sps:$4 sm:$0xff]   ;;  %v11013_v60 = vld [vmem:[%s15771_s1 + $0xe0] ss:$8 sps:$4 sm:$0xff]  }
  0x15   :  { %2498 = vmatprep.subr.bf16.mxu1 %v10957_v21  ;;  %v11011_v59 = vld [vmem:[%s15771_s1 + $0x1e4] ss:$8 sps:$4 sm:$0xff]   ;;  %v11014_v61 = vld [vmem:[%s15771_s1 + $0x1e0] ss:$8 sps:$4 sm:$0xff]   ;;  %v11015_v62 = vld [vmem:[%s15771_s1 + $0xf4] ss:$8 sps:$4 sm:$0xff]  }
  0x16   :  { %v11017_v63 = vld [vmem:[%s15771_s1 + $0x1f4] ss:$8 sps:$4 sm:$0xff]   ;;  %v11019_v0 = vld [vmem:[%s15771_s1 + $0xf0] ss:$8 sps:$4 sm:$0xff]   ;;  %v11029_v2 = vld [vmem:[%s15771_s1 + $0x204] ss:$8 sps:$4 sm:$0xff]  }
  0x17   :  { %2338 = vmatpush1.bf16.msra.mxu0 %v10959_v22  ;;  %v11020_v1 = vld [vmem:[%s15771_s1 + $0x1f0] ss:$8 sps:$4 sm:$0xff]   ;;  %v11032_v3 = vld [vmem:[%s15771_s1 + $0x304] ss:$8 sps:$4 sm:$0xff]   ;;  %v11027_v6 = vld [vmem:[%s15771_s1 + $0x200] ss:$8 sps:$4 sm:$0xff]  }
  0x18   :  { %2499 = vmatpush1.bf16.msra.mxu1 %v10960_v23  ;;  %2339 = vmatprep.subr.bf16.mxu0 %v10961_v24  ;;  %v11025_v4 = vld [vmem:[%s15772_s0] ss:$16 sps:$4 sm:$0xff]   ;;  %v11026_v5 = vld [vmem:[%s15772_s0 + $0x8] ss:$16 sps:$4 sm:$0xff]   ;;  %v12417_v8 = vld [vmem:[%s15772_s0 + $0x24] ss:$16 sps:$4 sm:$0xff]  }
  0x19   :  { %2500 = vmatprep.subr.bf16.mxu1 %v10963_v25  ;;  %v11030_v7 = vld [vmem:[%s15771_s1 + $0x300] ss:$8 sps:$4 sm:$0xff]   ;;  %v12422_v9 = vld [vmem:[%s15772_s0 + $0x2c] ss:$16 sps:$4 sm:$0xff]   ;;  %v11039_v12 = vld [vmem:[%s15771_s1 + $0x210] ss:$8 sps:$4 sm:$0xff]  }
  0x1a   :  { %v11041_v10 = vld [vmem:[%s15771_s1 + $0x214] ss:$8 sps:$4 sm:$0xff]   ;;  %v11042_v13 = vld [vmem:[%s15771_s1 + $0x310] ss:$8 sps:$4 sm:$0xff]   ;;  %v11053_v14 = vld [vmem:[%s15771_s1 + $0x224] ss:$8 sps:$4 sm:$0xff]  }
  0x1b   :  { %2340 = vmatpush1.bf16.msra.mxu0 %v10965_v26  ;;  %v11044_v11 = vld [vmem:[%s15771_s1 + $0x314] ss:$8 sps:$4 sm:$0xff]   ;;  %v11056_v15 = vld [vmem:[%s15771_s1 + $0x324] ss:$8 sps:$4 sm:$0xff]   ;;  %v12447_v16 = vld [vmem:[%s15772_s0 + $0x20] ss:$16 sps:$4 sm:$0xff]  }
  0x1c   :  { %2501 = vmatpush1.bf16.msra.mxu1 %v10966_v27  ;;  %2341 = vmatprep.subr.bf16.mxu0 %v10967_v28  ;;  %v12452_v17 = vld [vmem:[%s15772_s0 + $0x28] ss:$16 sps:$4 sm:$0xff]   ;;  %v12457_v18 = vld [vmem:[%s15772_s0 + $0x44] ss:$16 sps:$4 sm:$0xff]   ;;  %v12462_v19 = vld [vmem:[%s15772_s0 + $0x4c] ss:$16 sps:$4 sm:$0xff]  }
  0x1d   :  { %2502 = vmatprep.subr.bf16.mxu1 %v10969_v29  ;;  %v11051_v20 = vld [vmem:[%s15771_s1 + $0x220] ss:$8 sps:$4 sm:$0xff]   ;;  %v11065_v22 = vld [vmem:[%s15771_s1 + $0x234] ss:$8 sps:$4 sm:$0xff]   ;;  %v11063_v24 = vld [vmem:[%s15771_s1 + $0x230] ss:$8 sps:$4 sm:$0xff]  }
  0x1e   :  { %v11054_v21 = vld [vmem:[%s15771_s1 + $0x320] ss:$8 sps:$4 sm:$0xff]   ;;  %v11068_v23 = vld [vmem:[%s15771_s1 + $0x334] ss:$8 sps:$4 sm:$0xff]   ;;  %v11066_v27 = vld [vmem:[%s15771_s1 + $0x330] ss:$8 sps:$4 sm:$0xff]  }
  0x1f   :  { %2342 = vmatpush1.bf16.msra.mxu0 %v10971_v30  ;;  %v12486_v25 = vld [vmem:[%s15772_s0 + $0x40] ss:$16 sps:$4 sm:$0xff]   ;;  %v12491_v26 = vld [vmem:[%s15772_s0 + $0x48] ss:$16 sps:$4 sm:$0xff]   ;;  %v11077_v28 = vld [vmem:[%s15771_s1 + $0x244] ss:$8 sps:$4 sm:$0xff]  }
  0x20   :  { %2503 = vmatpush1.bf16.msra.mxu1 %v10972_v31  ;;  %2343 = vmatprep.subr.bf16.mxu0 %v10973_v32  ;;  %v11080_v29 = vld [vmem:[%s15771_s1 + $0x344] ss:$8 sps:$4 sm:$0xff]   ;;  %v11075_v32 = vld [vmem:[%s15771_s1 + $0x240] ss:$8 sps:$4 sm:$0xff]   ;;  %v11111_v48 = vld [vmem:[%s15771_s1 + $0x270] ss:$8 sps:$4 sm:$0xff]  }
  0x21   :  { %2504 = vmatprep.subr.bf16.mxu1 %v10975_v33  ;;  %v12505_v30 = vld [vmem:[%s15772_s0 + $0x64] ss:$16 sps:$4 sm:$0xff]   ;;  %v12510_v31 = vld [vmem:[%s15772_s0 + $0x6c] ss:$16 sps:$4 sm:$0xff]   ;;  %v11078_v33 = vld [vmem:[%s15771_s1 + $0x340] ss:$8 sps:$4 sm:$0xff]  }
  0x22   :  { %v12587_v50 = vld [vmem:[%s15772_s0 + $0x88] ss:$16 sps:$4 sm:$0xff]  }
  0x23   :  { %2344 = vmatpush1.bf16.msra.mxu0 %v10977_v34  ;;  %v11089_v34 = vld [vmem:[%s15771_s1 + $0x254] ss:$8 sps:$4 sm:$0xff]  }
  0x24   :  { %2505 = vmatpush1.bf16.msra.mxu1 %v10978_v35  ;;  %2345 = vmatprep.subr.bf16.mxu0 %v10979_v36  ;;  %v11092_v35 = vld [vmem:[%s15771_s1 + $0x354] ss:$8 sps:$4 sm:$0xff]   ;;  %v11087_v36 = vld [vmem:[%s15771_s1 + $0x250] ss:$8 sps:$4 sm:$0xff]  }
  0x25   :  { %2506 = vmatprep.subr.bf16.mxu1 %v10981_v37  ;;  %v11090_v37 = vld [vmem:[%s15771_s1 + $0x350] ss:$8 sps:$4 sm:$0xff]  }
  0x27   :  { %2346 = vmatpush1.bf16.msra.mxu0 %v10983_v38  ;;  %v12537_v38 = vld [vmem:[%s15772_s0 + $0x60] ss:$16 sps:$4 sm:$0xff]  }
  0x28   :  { %2507 = vmatpush1.bf16.msra.mxu1 %v10984_v39  ;;  %2347 = vmatprep.subr.bf16.mxu0 %v10985_v40  ;;  %v11101_v39 = vld [vmem:[%s15771_s1 + $0x264] ss:$8 sps:$4 sm:$0xff]  }
  0x29   :  { %2508 = vmatprep.subr.bf16.mxu1 %v10987_v41  ;;  %v11104_v40 = vld [vmem:[%s15771_s1 + $0x364] ss:$8 sps:$4 sm:$0xff]   ;;  %v12548_v41 = vld [vmem:[%s15772_s0 + $0x68] ss:$16 sps:$4 sm:$0xff]  }
  0x2b   :  { %2348 = vmatpush1.bf16.msra.mxu0 %v10989_v42  ;;  %v12553_v42 = vld [vmem:[%s15772_s0 + $0x84] ss:$16 sps:$4 sm:$0xff]  }
  0x2c   :  { %2509 = vmatpush1.bf16.msra.mxu1 %v10990_v43  ;;  %2349 = vmatprep.subr.bf16.mxu0 %v10991_v44  ;;  %v12558_v43 = vld [vmem:[%s15772_s0 + $0x8c] ss:$16 sps:$4 sm:$0xff]   ;;  %v11099_v44 = vld [vmem:[%s15771_s1 + $0x260] ss:$8 sps:$4 sm:$0xff]  }
  0x2d   :  { %2510 = vmatprep.subr.bf16.mxu1 %v10993_v45  ;;  %v11102_v45 = vld [vmem:[%s15771_s1 + $0x360] ss:$8 sps:$4 sm:$0xff]  }
  0x2f   :  { %2350 = vmatpush1.bf16.msra.mxu0 %v10995_v46  ;;  %v11113_v46 = vld [vmem:[%s15771_s1 + $0x274] ss:$8 sps:$4 sm:$0xff]  }
  0x30   :  { %2511 = vmatpush1.bf16.msra.mxu1 %v10996_v47  ;;  %2351 = vmatprep.subr.bf16.mxu0 %v10997_v49  ;;  %v11116_v47 = vld [vmem:[%s15771_s1 + $0x374] ss:$8 sps:$4 sm:$0xff]   ;;  %v12582_v49 = vld [vmem:[%s15772_s0 + $0x80] ss:$16 sps:$4 sm:$0xff]  }
  0x31   :  { %2512 = vmatprep.subr.bf16.mxu1 %v10999_v51  ;;  %v11114_v51 = vld [vmem:[%s15771_s1 + $0x370] ss:$8 sps:$4 sm:$0xff]  }
  0x33   :  { %2352 = vmatpush1.bf16.msra.mxu0 %v11001_v52  ;;  %v11125_v52 = vld [vmem:[%s15771_s1 + $0x284] ss:$8 sps:$4 sm:$0xff]  }
  0x34   :  { %2513 = vmatpush1.bf16.msra.mxu1 %v11002_v53  ;;  %2353 = vmatprep.subr.bf16.mxu0 %v11003_v54  ;;  %v11128_v53 = vld [vmem:[%s15771_s1 + $0x384] ss:$8 sps:$4 sm:$0xff]  }
  0x35   :  { %2514 = vmatprep.subr.bf16.mxu1 %v11005_v55  ;;  %v12601_v54 = vld [vmem:[%s15772_s0 + $0xa4] ss:$16 sps:$4 sm:$0xff]   ;;  %v12606_v55 = vld [vmem:[%s15772_s0 + $0xac] ss:$16 sps:$4 sm:$0xff]  }
  0x37   :  { %2354 = vmatpush1.bf16.msra.mxu0 %v11007_v56  ;;  %v11123_v56 = vld [vmem:[%s15771_s1 + $0x280] ss:$8 sps:$4 sm:$0xff]  }
  0x38   :  { %2515 = vmatpush1.bf16.msra.mxu1 %v11008_v57  ;;  %2355 = vmatprep.subr.bf16.mxu0 %v11009_v58  ;;  %v11126_v57 = vld [vmem:[%s15771_s1 + $0x380] ss:$8 sps:$4 sm:$0xff]   ;;  %v11137_v58 = vld [vmem:[%s15771_s1 + $0x294] ss:$8 sps:$4 sm:$0xff]  }
  0x39   :  { %2516 = vmatprep.subr.bf16.mxu1 %v11011_v59  ;;  %v11140_v59 = vld [vmem:[%s15771_s1 + $0x394] ss:$8 sps:$4 sm:$0xff]  }
  0x3b   :  { %2356 = vmatpush1.bf16.msra.mxu0 %v11013_v60  ;;  %v11135_v60 = vld [vmem:[%s15771_s1 + $0x290] ss:$8 sps:$4 sm:$0xff]  }
  0x3c   :  { %2517 = vmatpush1.bf16.msra.mxu1 %v11014_v61  ;;  %2357 = vmatprep.subr.bf16.mxu0 %v11015_v62  ;;  %v11138_v61 = vld [vmem:[%s15771_s1 + $0x390] ss:$8 sps:$4 sm:$0xff]  }
  0x3d   :  { %2518 = vmatprep.subr.bf16.mxu1 %v11017_v63  ;;  %v12633_v62 = vld [vmem:[%s15772_s0 + $0xa0] ss:$16 sps:$4 sm:$0xff]   ;;  %v11149_v63 = vld [vmem:[%s15771_s1 + $0x2a4] ss:$8 sps:$4 sm:$0xff]  }
  0x3f   :  { %2358 = vmatpush1.bf16.msra.mxu0 %v11019_v0  ;;  %v11152_v0 = vld [vmem:[%s15771_s1 + $0x3a4] ss:$8 sps:$4 sm:$0xff]  }
  0x40   :  { %2519 = vmatpush1.bf16.msra.mxu1 %v11020_v1  ;;  %2649 = vmatprep.subr.bf16.mxu0 %v11029_v2  ;;  %v12644_v1 = vld [vmem:[%s15772_s0 + $0xa8] ss:$16 sps:$4 sm:$0xff]   ;;  %v12649_v2 = vld [vmem:[%s15772_s0 + $0xc4] ss:$16 sps:$4 sm:$0xff]  }
  0x41   :  { %2810 = vmatprep.subr.bf16.mxu1 %v11032_v3  ;;  %v12654_v3 = vld [vmem:[%s15772_s0 + $0xcc] ss:$16 sps:$4 sm:$0xff]  }
  0x42   :  { %2360 = vmatmul.mubr.bf16.vlgmr.msra.gmra.mrb[0].mxu0 %v11025_v4  ;;  %v11147_v4 = vld [vmem:[%s15771_s1 + $0x2a0] ss:$8 sps:$4 sm:$0xff]  }
  0x43   :  { %2521 = vmatmul.mubr.bf16.vlgmr.msra.gmra.mrb[0].mxu1 %v11026_v5  ;;  %2650 = vmatpush1.bf16.msra.mxu0 %v11027_v6  ;;  %v11150_v5 = vld [vmem:[%s15771_s1 + $0x3a0] ss:$8 sps:$4 sm:$0xff]   ;;  %v11161_v6 = vld [vmem:[%s15771_s1 + $0x2b4] ss:$8 sps:$4 sm:$0xff]  }
  0x44   :  { %2811 = vmatpush1.bf16.msra.mxu1 %v11030_v7  ;;  %2367 = vmatprep.mubr.bf16.mxu0 %v12417_v8  ;;  %v11164_v7 = vld [vmem:[%s15771_s1 + $0x3b4] ss:$8 sps:$4 sm:$0xff]  }
  0x45   :  { %2528 = vmatprep.mubr.bf16.mxu1 %v12422_v9  ;;  %2651 = vmatprep.subr.bf16.mxu0 %v11041_v10  ;;  %v11159_v10 = vld [vmem:[%s15771_s1 + $0x2b0] ss:$8 sps:$4 sm:$0xff]  }
  0x46   :  { %2812 = vmatprep.subr.bf16.mxu1 %v11044_v11  ;;  %v12678_v11 = vld [vmem:[%s15772_s0 + $0xc0] ss:$16 sps:$4 sm:$0xff]  }
  0x47   :  { %2652 = vmatpush1.bf16.msra.mxu0 %v11039_v12  ;;  %v12683_v12 = vld [vmem:[%s15772_s0 + $0xc8] ss:$16 sps:$4 sm:$0xff]  }
  0x48   :  { %2813 = vmatpush1.bf16.msra.mxu1 %v11042_v13  ;;  %2653 = vmatprep.subr.bf16.mxu0 %v11053_v14  ;;  %v11162_v13 = vld [vmem:[%s15771_s1 + $0x3b0] ss:$8 sps:$4 sm:$0xff]   ;;  %v12691_v14 = vld [vmem:[%s15772_s0 + $0xe4] ss:$16 sps:$4 sm:$0xff]  }
  0x49   :  { %2814 = vmatprep.subr.bf16.mxu1 %v11056_v15  ;;  %v11173_v15 = vld [vmem:[%s15771_s1 + $0x2c4] ss:$8 sps:$4 sm:$0xff]  }
  0x4a   :  { %2368 = vmatmul.mubr.bf16.gmra.mrb[4].mxu0 %v12447_v16 }
  0x4b   :  { %2529 = vmatmul.mubr.bf16.gmra.mrb[4].mxu1 %v12452_v17  ;;  %2375 = vmatprep.mubr.bf16.mxu0 %v12457_v18 }
  0x4c   :  { %2536 = vmatprep.mubr.bf16.mxu1 %v12462_v19  ;;  %2654 = vmatpush1.bf16.msra.mxu0 %v11051_v20  ;;  %v12699_v20 = vld [vmem:[%s15772_s0 + $0xec] ss:$16 sps:$4 sm:$0xff]  }
  0x4d   :  { %2815 = vmatpush1.bf16.msra.mxu1 %v11054_v21  ;;  %2655 = vmatprep.subr.bf16.mxu0 %v11065_v22  ;;  %v11176_v21 = vld [vmem:[%s15771_s1 + $0x3c4] ss:$8 sps:$4 sm:$0xff]   ;;  %v11171_v22 = vld [vmem:[%s15771_s1 + $0x2c0] ss:$8 sps:$4 sm:$0xff]  }
  0x4e   :  { %2816 = vmatprep.subr.bf16.mxu1 %v11068_v23  ;;  %v11174_v23 = vld [vmem:[%s15771_s1 + $0x3c0] ss:$8 sps:$4 sm:$0xff]  }
  0x50   :  { %2656 = vmatpush1.bf16.msra.mxu0 %v11063_v24  ;;  %v11183_v24 = vld [vmem:[%s15771_s1 + $0x2d0] ss:$8 sps:$4 sm:$0xff]  }
  0x51   :  { %2817 = vmatpush1.bf16.msra.mxu1 %v11066_v27  ;;  %2657 = vmatprep.subr.bf16.mxu0 %v11077_v28  ;;  %v11185_v27 = vld [vmem:[%s15771_s1 + $0x2d4] ss:$8 sps:$4 sm:$0xff]   ;;  %v11186_v28 = vld [vmem:[%s15771_s1 + $0x3d0] ss:$8 sps:$4 sm:$0xff]  }
  0x52   :  { %2818 = vmatprep.subr.bf16.mxu1 %v11080_v29  ;;  %2376 = vmatmul.mubr.bf16.gmra.mrb[8].mxu0 %v12486_v25  ;;  %v11188_v29 = vld [vmem:[%s15771_s1 + $0x3d4] ss:$8 sps:$4 sm:$0xff]  }
  0x53   :  { %2537 = vmatmul.mubr.bf16.gmra.mrb[8].mxu1 %v12491_v26  ;;  %2383 = vmatprep.mubr.bf16.mxu0 %v12505_v30 }
  0x54   :  { %2544 = vmatprep.mubr.bf16.mxu1 %v12510_v31  ;;  %2658 = vmatpush1.bf16.msra.mxu0 %v11075_v32  ;;  %v12729_v32 = vld [vmem:[%s15772_s0 + $0xe0] ss:$16 sps:$4 sm:$0xff]  }
  0x55   :  { %2819 = vmatpush1.bf16.msra.mxu1 %v11078_v33  ;;  %2659 = vmatprep.subr.bf16.mxu0 %v11089_v34  ;;  %v12734_v33 = vld [vmem:[%s15772_s0 + $0xe8] ss:$16 sps:$4 sm:$0xff]   ;;  %v11117_v34 = vld [vmem:[%s15772_s0 + $0x144] ss:$16 sps:$4 sm:$0xff]  }
  0x56   :  { %2820 = vmatprep.subr.bf16.mxu1 %v11092_v35  ;;  %v11119_v35 = vld [vmem:[%s15772_s0 + $0x14c] ss:$16 sps:$4 sm:$0xff]  }
  0x58   :  { %2660 = vmatpush1.bf16.msra.mxu0 %v11087_v36  ;;  %v11195_v36 = vld [vmem:[%s15771_s1 + $0x2e0] ss:$8 sps:$4 sm:$0xff]  }
  0x59   :  { %2821 = vmatpush1.bf16.msra.mxu1 %v11090_v37  ;;  %2661 = vmatprep.subr.bf16.mxu0 %v11101_v39  ;;  %v11197_v37 = vld [vmem:[%s15771_s1 + $0x2e4] ss:$8 sps:$4 sm:$0xff]   ;;  %v11198_v39 = vld [vmem:[%s15771_s1 + $0x3e0] ss:$8 sps:$4 sm:$0xff]  }
  0x5a   :  { %2822 = vmatprep.subr.bf16.mxu1 %v11104_v40  ;;  %2384 = vmatmul.mubr.bf16.gmra.mrb[12].mxu0 %v12537_v38  ;;  %v11200_v40 = vld [vmem:[%s15771_s1 + $0x3e4] ss:$8 sps:$4 sm:$0xff]  }
  0x5b   :  { %2545 = vmatmul.mubr.bf16.gmra.mrb[12].mxu1 %v12548_v41  ;;  %2391 = vmatprep.mubr.bf16.mxu0 %v12553_v42 }
  0x5c   :  { %2552 = vmatprep.mubr.bf16.mxu1 %v12558_v43  ;;  %2662 = vmatpush1.bf16.msra.mxu0 %v11099_v44  ;;  %v11121_v44 = vld [vmem:[%s15772_s0 + $0x140] ss:$16 sps:$4 sm:$0xff]  }
  0x5d   :  { %2823 = vmatpush1.bf16.msra.mxu1 %v11102_v45  ;;  %2663 = vmatprep.subr.bf16.mxu0 %v11113_v46  ;;  %v11122_v45 = vld [vmem:[%s15772_s0 + $0x148] ss:$16 sps:$4 sm:$0xff]   ;;  %v12765_v46 = vld [vmem:[%s15772_s0 + $0x164] ss:$16 sps:$4 sm:$0xff]  }
  0x5e   :  { %2824 = vmatprep.subr.bf16.mxu1 %v11116_v47  ;;  %v11207_v47 = vld [vmem:[%s15771_s1 + $0x2f0] ss:$8 sps:$4 sm:$0xff]  }
  0x60   :  { %2664 = vmatpush1.bf16.msra.mxu0 %v11111_v48  ;;  %v11209_v48 = vld [vmem:[%s15771_s1 + $0x2f4] ss:$8 sps:$4 sm:$0xff]  }
  0x61   :  { %2825 = vmatpush1.bf16.msra.mxu1 %v11114_v51  ;;  %2665 = vmatprep.subr.bf16.mxu0 %v11125_v52  ;;  %v11210_v51 = vld [vmem:[%s15771_s1 + $0x3f0] ss:$8 sps:$4 sm:$0xff]   ;;  %v11212_v52 = vld [vmem:[%s15771_s1 + $0x3f4] ss:$8 sps:$4 sm:$0xff]  }
  0x62   :  { %2826 = vmatprep.subr.bf16.mxu1 %v11128_v53  ;;  %2392 = vmatmul.mubr.bf16.gmra.mrb[16].mxu0 %v12582_v49  ;;  %v12782_v53 = vld [vmem:[%s15772_s0 + $0x16c] ss:$16 sps:$4 sm:$0xff]  }
  0x63   :  { %2553 = vmatmul.mubr.bf16.gmra.mrb[16].mxu1 %v12587_v50  ;;  %2399 = vmatprep.mubr.bf16.mxu0 %v12601_v54 }
  0x64   :  { %2560 = vmatprep.mubr.bf16.mxu1 %v12606_v55  ;;  %2666 = vmatpush1.bf16.msra.mxu0 %v11123_v56  ;;  %v11215_v56 = vld [vmem:[%s15771_s1 + $0x404] ss:$8 sps:$4 sm:$0xff]  }
  0x65   :  { %2827 = vmatpush1.bf16.msra.mxu1 %v11126_v57  ;;  %2667 = vmatprep.subr.bf16.mxu0 %v11137_v58  ;;  %v11218_v57 = vld [vmem:[%s15771_s1 + $0x504] ss:$8 sps:$4 sm:$0xff]   ;;  %v12795_v58 = vld [vmem:[%s15772_s0 + $0x160] ss:$16 sps:$4 sm:$0xff]  }
  0x66   :  { %2828 = vmatprep.subr.bf16.mxu1 %v11140_v59  ;;  %v12800_v59 = vld [vmem:[%s15772_s0 + $0x168] ss:$16 sps:$4 sm:$0xff]  }
  0x68   :  { %2668 = vmatpush1.bf16.msra.mxu0 %v11135_v60  ;;  %v12805_v60 = vld [vmem:[%s15772_s0 + $0x184] ss:$16 sps:$4 sm:$0xff]  }
  0x69   :  { %2829 = vmatpush1.bf16.msra.mxu1 %v11138_v61  ;;  %2669 = vmatprep.subr.bf16.mxu0 %v11149_v63  ;;  %v12810_v61 = vld [vmem:[%s15772_s0 + $0x18c] ss:$16 sps:$4 sm:$0xff]   ;;  %v12819_v63 = vld [vmem:[%s15772_s0 + $0x180] ss:$16 sps:$4 sm:$0xff]  }
  0x6a   :  { %2830 = vmatprep.subr.bf16.mxu1 %v11152_v0  ;;  %2400 = vmatmul.mubr.bf16.gmra.mrb[20].mxu0 %v12633_v62  ;;  %v12824_v0 = vld [vmem:[%s15772_s0 + $0x188] ss:$16 sps:$4 sm:$0xff]  }
  0x6b   :  { %2561 = vmatmul.mubr.bf16.gmra.mrb[20].mxu1 %v12644_v1  ;;  %2407 = vmatprep.mubr.bf16.mxu0 %v12649_v2 }
  0x6c   :  { %2568 = vmatprep.mubr.bf16.mxu1 %v12654_v3  ;;  %2670 = vmatpush1.bf16.msra.mxu0 %v11147_v4  ;;  %v12829_v4 = vld [vmem:[%s15772_s0 + $0x1a4] ss:$16 sps:$4 sm:$0xff]  }
  0x6d   :  { %2831 = vmatpush1.bf16.msra.mxu1 %v11150_v5  ;;  %2671 = vmatprep.subr.bf16.mxu0 %v11161_v6  ;;  %v12834_v5 = vld [vmem:[%s15772_s0 + $0x1ac] ss:$16 sps:$4 sm:$0xff]   ;;  %v12843_v6 = vld [vmem:[%s15772_s0 + $0x1a0] ss:$16 sps:$4 sm:$0xff]  }
  0x6e   :  { %2832 = vmatprep.subr.bf16.mxu1 %v11164_v7  ;;  %v12848_v7 = vld [vmem:[%s15772_s0 + $0x1a8] ss:$16 sps:$4 sm:$0xff]  }
  0x70   :  { %2672 = vmatpush1.bf16.msra.mxu0 %v11159_v10  ;;  %v12853_v10 = vld [vmem:[%s15772_s0 + $0x1c4] ss:$16 sps:$4 sm:$0xff]  }
  0x71   :  { %2833 = vmatpush1.bf16.msra.mxu1 %v11162_v13  ;;  %2673 = vmatprep.subr.bf16.mxu0 %v11173_v15  ;;  %v12858_v13 = vld [vmem:[%s15772_s0 + $0x1cc] ss:$16 sps:$4 sm:$0xff]   ;;  %v12867_v15 = vld [vmem:[%s15772_s0 + $0x1c0] ss:$16 sps:$4 sm:$0xff]  }
  0x72   :  { %2834 = vmatprep.subr.bf16.mxu1 %v11176_v21  ;;  %2408 = vmatmul.mubr.bf16.gmra.mrb[24].mxu0 %v12678_v11  ;;  %v12872_v21 = vld [vmem:[%s15772_s0 + $0x1c8] ss:$16 sps:$4 sm:$0xff]  }
  0x73   :  { %2569 = vmatmul.mubr.bf16.gmra.mrb[24].mxu1 %v12683_v12  ;;  %2415 = vmatprep.mubr.bf16.mxu0 %v12691_v14 }
  0x74   :  { %2576 = vmatprep.mubr.bf16.mxu1 %v12699_v20  ;;  %2674 = vmatpush1.bf16.msra.mxu0 %v11171_v22  ;;  %v12877_v22 = vld [vmem:[%s15772_s0 + $0x1e4] ss:$16 sps:$4 sm:$0xff]  }
  0x75   :  { %2835 = vmatpush1.bf16.msra.mxu1 %v11174_v23  ;;  %2675 = vmatprep.subr.bf16.mxu0 %v11185_v27  ;;  %v12882_v23 = vld [vmem:[%s15772_s0 + $0x1ec] ss:$16 sps:$4 sm:$0xff]   ;;  %v12896_v27 = vld [vmem:[%s15772_s0 + $0x1e8] ss:$16 sps:$4 sm:$0xff]  }
  0x76   :  { %2836 = vmatprep.subr.bf16.mxu1 %v11188_v29  ;;  %v12906_v29 = vld [vmem:[%s15772_s0 + $0x20c] ss:$16 sps:$4 sm:$0xff]  }
  0x78   :  { %2676 = vmatpush1.bf16.msra.mxu0 %v11183_v24  ;;  %v12891_v24 = vld [vmem:[%s15772_s0 + $0x1e0] ss:$16 sps:$4 sm:$0xff]  }
  0x79   :  { %2837 = vmatpush1.bf16.msra.mxu1 %v11186_v28  ;;  %2677 = vmatprep.subr.bf16.mxu0 %v11197_v37  ;;  %v12901_v28 = vld [vmem:[%s15772_s0 + $0x204] ss:$16 sps:$4 sm:$0xff]   ;;  %v12930_v37 = vld [vmem:[%s15772_s0 + $0x22c] ss:$16 sps:$4 sm:$0xff]  }
  0x7a   :  { %2416 = vmatmul.mubr.bf16.gmra.mrb[28].mxu0 %v12729_v32  ;;  %2838 = vmatprep.subr.bf16.mxu1 %v11200_v40  ;;  %v12944_v40 = vld [vmem:[%s15772_s0 + $0x228] ss:$16 sps:$4 sm:$0xff]  }
  0x7b   :  { %2577 = vmatmul.mubr.bf16.gmra.mrb[28].mxu1 %v12734_v33  ;;  %2423 = vmatprep.mubr.bf16.mxu0 %v11117_v34  ;;  %v12915_v34 = vld [vmem:[%s15772_s0 + $0x200] ss:$16 sps:$4 sm:$0xff]  }
  0x7c   :  { %2584 = vmatprep.mubr.bf16.mxu1 %v11119_v35  ;;  %2678 = vmatpush1.bf16.msra.mxu0 %v11195_v36  ;;  %v12920_v35 = vld [vmem:[%s15772_s0 + $0x208] ss:$16 sps:$4 sm:$0xff]   ;;  %v12925_v36 = vld [vmem:[%s15772_s0 + $0x224] ss:$16 sps:$4 sm:$0xff]  }
  0x7d   :  { %2839 = vmatpush1.bf16.msra.mxu1 %v11198_v39  ;;  %2679 = vmatprep.subr.bf16.mxu0 %v11209_v48  ;;  %v12939_v39 = vld [vmem:[%s15772_s0 + $0x220] ss:$16 sps:$4 sm:$0xff]   ;;  %v11224_v48 = vld [vmem:[%s15771_s1 + $0x514] ss:$8 sps:$4 sm:$0xff]  }
  0x7e   :  { %2840 = vmatprep.subr.bf16.mxu1 %v11212_v52  ;;  %v11228_v52 = vld [vmem:[%s15771_s1 + $0x520] ss:$8 sps:$4 sm:$0xff]  }
  0x80   :  { %2680 = vmatpush1.bf16.msra.mxu0 %v11207_v47  ;;  %v11221_v47 = vld [vmem:[%s15771_s1 + $0x414] ss:$8 sps:$4 sm:$0xff]  }
  0x81   :  { %2841 = vmatpush1.bf16.msra.mxu1 %v11210_v51  ;;  %2971 = vmatprep.subr.bf16.mxu0 %v11215_v56  ;;  %v11227_v51 = vld [vmem:[%s15771_s1 + $0x424] ss:$8 sps:$4 sm:$0xff]   ;;  %v11231_v56 = vld [vmem:[%s15771_s1 + $0x430] ss:$8 sps:$4 sm:$0xff]  }
  0x82   :  { %2424 = vmatmul.mubr.bf16.gmra.mrb[32].mxu0 %v11121_v44  ;;  %3132 = vmatprep.subr.bf16.mxu1 %v11218_v57  ;;  %v11213_v44 = vld [vmem:[%s15771_s1 + $0x400] ss:$8 sps:$4 sm:$0xff]   ;;  %v11234_v57 = vld [vmem:[%s15771_s1 + $0x530] ss:$8 sps:$4 sm:$0xff]  }
  0x83   :  { %2585 = vmatmul.mubr.bf16.gmra.mrb[32].mxu1 %v11122_v45  ;;  %2431 = vmatprep.mubr.bf16.mxu0 %v12765_v46  ;;  %v11216_v45 = vld [vmem:[%s15771_s1 + $0x500] ss:$8 sps:$4 sm:$0xff]  }
  0x84   :  { %2592 = vmatprep.mubr.bf16.mxu1 %v12782_v53 }
  0x8a   :  { %2432 = vmatmul.mubr.bf16.gmra.mrb[36].mxu0 %v12795_v58 }
  0x8b   :  { %2593 = vmatmul.mubr.bf16.gmra.mrb[36].mxu1 %v12800_v59  ;;  %2439 = vmatprep.mubr.bf16.mxu0 %v12805_v60 }
  0x8c   :  { %2600 = vmatprep.mubr.bf16.mxu1 %v12810_v61 }
  0x92   :  { %2440 = vmatmul.mubr.bf16.gmra.mrb[40].mxu0 %v12819_v63 }
  0x93   :  { %2601 = vmatmul.mubr.bf16.gmra.mrb[40].mxu1 %v12824_v0  ;;  %2447 = vmatprep.mubr.bf16.mxu0 %v12829_v4 }
  0x94   :  { %2608 = vmatprep.mubr.bf16.mxu1 %v12834_v5 }
  0x9a   :  { %2448 = vmatmul.mubr.bf16.gmra.mrb[44].mxu0 %v12843_v6 }
  0x9b   :  { %2609 = vmatmul.mubr.bf16.gmra.mrb[44].mxu1 %v12848_v7  ;;  %2455 = vmatprep.mubr.bf16.mxu0 %v12853_v10 }
  0x9c   :  { %2616 = vmatprep.mubr.bf16.mxu1 %v12858_v13 }
  0xa2   :  { %2456 = vmatmul.mubr.bf16.gmra.mrb[48].mxu0 %v12867_v15 }
  0xa3   :  { %2617 = vmatmul.mubr.bf16.gmra.mrb[48].mxu1 %v12872_v21  ;;  %2463 = vmatprep.mubr.bf16.mxu0 %v12877_v22 }
  0xa4   :  { %2624 = vmatprep.mubr.bf16.mxu1 %v12882_v23 }
  0xaa   :  { %2464 = vmatmul.mubr.bf16.gmra.mrb[52].mxu0 %v12891_v24 }
  0xab   :  { %2625 = vmatmul.mubr.bf16.gmra.mrb[52].mxu1 %v12896_v27  ;;  %2471 = vmatprep.mubr.bf16.mxu0 %v12901_v28 }
  0xac   :  { %2632 = vmatprep.mubr.bf16.mxu1 %v12906_v29 }
  0xb2   :  { %2472 = vmatmul.mubr.bf16.gmra.mrb[56].mxu0 %v12915_v34 }
  0xb3   :  { %2633 = vmatmul.mubr.bf16.gmra.mrb[56].mxu1 %v12920_v35  ;;  %2479 = vmatprep.mubr.bf16.mxu0 %v12925_v36 }
  0xb4   :  { %2640 = vmatprep.mubr.bf16.mxu1 %v12930_v37 }
  0xba   :  { %2480 = vmatmul.mubr.bf16.gmra.mrb[60].mxu0 %v12939_v39 }
  0xbb   :  { %2641 = vmatmul.mubr.bf16.gmra.mrb[60].mxu1 %v12944_v40  ;;  %2681 = vmatprep.mubr.bf16.mxu0 %v12417_v8  ;;  %v11219_v8 = vld [vmem:[%s15771_s1 + $0x410] ss:$8 sps:$4 sm:$0xff]  }
  0xbc   :  { %2842 = vmatprep.mubr.bf16.mxu1 %v12422_v9  ;;  %v11222_v9 = vld [vmem:[%s15771_s1 + $0x510] ss:$8 sps:$4 sm:$0xff]  }
  0xc2   :  { %2682 = vmatmul.mubr.bf16.vlgmr.msra.gmra.mrb[64].mxu0 %v12447_v16  ;;  %v11230_v16 = vld [vmem:[%s15771_s1 + $0x524] ss:$8 sps:$4 sm:$0xff]  }
  0xc3   :  { %2843 = vmatmul.mubr.bf16.vlgmr.msra.gmra.mrb[64].mxu1 %v12452_v17  ;;  %2972 = vmatpush1.bf16.msra.mxu0 %v11213_v44  ;;  %v11225_v17 = vld [vmem:[%s15771_s1 + $0x420] ss:$8 sps:$4 sm:$0xff]   ;;  %v11239_v44 = vld [vmem:[%s15771_s1 + $0x444] ss:$8 sps:$4 sm:$0xff]  }
  0xc4   :  { %3133 = vmatpush1.bf16.msra.mxu1 %v11216_v45  ;;  %2689 = vmatprep.mubr.bf16.mxu0 %v12457_v18  ;;  %v11233_v18 = vld [vmem:[%s15771_s1 + $0x434] ss:$8 sps:$4 sm:$0xff]  }
  0xc5   :  { %2850 = vmatprep.mubr.bf16.mxu1 %v12462_v19  ;;  %2973 = vmatprep.subr.bf16.mxu0 %v11221_v47  ;;  %v11236_v19 = vld [vmem:[%s15771_s1 + $0x534] ss:$8 sps:$4 sm:$0xff]   ;;  %v11243_v47 = vld [vmem:[%s15771_s1 + $0x450] ss:$8 sps:$4 sm:$0xff]  }
  0xc6   :  { %3134 = vmatprep.subr.bf16.mxu1 %v11224_v48  ;;  %v11248_v45 = vld [vmem:[%s15771_s1 + $0x554] ss:$8 sps:$4 sm:$0xff]   ;;  %v11246_v48 = vld [vmem:[%s15771_s1 + $0x550] ss:$8 sps:$4 sm:$0xff]  }
  0xc7   :  { %2974 = vmatpush1.bf16.msra.mxu0 %v11219_v8  ;;  %v11251_v8 = vld [vmem:[%s15771_s1 + $0x464] ss:$8 sps:$4 sm:$0xff]  }
  0xc8   :  { %3135 = vmatpush1.bf16.msra.mxu1 %v11222_v9  ;;  %2975 = vmatprep.subr.bf16.mxu0 %v11227_v51  ;;  %v11266_v9 = vld [vmem:[%s15771_s1 + $0x574] ss:$8 sps:$4 sm:$0xff]   ;;  %v11261_v51 = vld [vmem:[%s15771_s1 + $0x470] ss:$8 sps:$4 sm:$0xff]  }
  0xc9   :  { %3136 = vmatprep.subr.bf16.mxu1 %v11230_v16  ;;  %v11264_v16 = vld [vmem:[%s15771_s1 + $0x570] ss:$8 sps:$4 sm:$0xff]  }
  0xca   :  { %2690 = vmatmul.mubr.bf16.gmra.mrb[68].mxu0 %v12486_v25  ;;  %v11242_v25 = vld [vmem:[%s15771_s1 + $0x544] ss:$8 sps:$4 sm:$0xff]  }
  0xcb   :  { %2851 = vmatmul.mubr.bf16.gmra.mrb[68].mxu1 %v12491_v26  ;;  %2697 = vmatprep.mubr.bf16.mxu0 %v12505_v30  ;;  %v11237_v26 = vld [vmem:[%s15771_s1 + $0x440] ss:$8 sps:$4 sm:$0xff]  }
  0xcc   :  { %2858 = vmatprep.mubr.bf16.mxu1 %v12510_v31  ;;  %2976 = vmatpush1.bf16.msra.mxu0 %v11225_v17  ;;  %v11240_v30 = vld [vmem:[%s15771_s1 + $0x540] ss:$8 sps:$4 sm:$0xff]   ;;  %v11245_v31 = vld [vmem:[%s15771_s1 + $0x454] ss:$8 sps:$4 sm:$0xff]   ;;  %v11269_v17 = vld [vmem:[%s15771_s1 + $0x484] ss:$8 sps:$4 sm:$0xff]  }
  0xcd   :  { %3137 = vmatpush1.bf16.msra.mxu1 %v11228_v52  ;;  %2977 = vmatprep.subr.bf16.mxu0 %v11233_v18  ;;  %v11278_v52 = vld [vmem:[%s15771_s1 + $0x594] ss:$8 sps:$4 sm:$0xff]   ;;  %v11273_v18 = vld [vmem:[%s15771_s1 + $0x490] ss:$8 sps:$4 sm:$0xff]  }
  0xce   :  { %3138 = vmatprep.subr.bf16.mxu1 %v11236_v19  ;;  %v11276_v19 = vld [vmem:[%s15771_s1 + $0x590] ss:$8 sps:$4 sm:$0xff]  }
  0xd0   :  { %2978 = vmatpush1.bf16.msra.mxu0 %v11231_v56  ;;  %v11281_v56 = vld [vmem:[%s15771_s1 + $0x4a4] ss:$8 sps:$4 sm:$0xff]  }
  0xd1   :  { %3139 = vmatpush1.bf16.msra.mxu1 %v11234_v57  ;;  %2979 = vmatprep.subr.bf16.mxu0 %v11239_v44  ;;  %v11290_v57 = vld [vmem:[%s15771_s1 + $0x5b4] ss:$8 sps:$4 sm:$0xff]   ;;  %v11285_v44 = vld [vmem:[%s15771_s1 + $0x4b0] ss:$8 sps:$4 sm:$0xff]  }
  0xd2   :  { %3140 = vmatprep.subr.bf16.mxu1 %v11242_v25  ;;  %2698 = vmatmul.mubr.bf16.gmra.mrb[72].mxu0 %v12537_v38  ;;  %v11254_v38 = vld [vmem:[%s15771_s1 + $0x564] ss:$8 sps:$4 sm:$0xff]   ;;  %v11288_v25 = vld [vmem:[%s15771_s1 + $0x5b0] ss:$8 sps:$4 sm:$0xff]  }
  0xd3   :  { %2859 = vmatmul.mubr.bf16.gmra.mrb[72].mxu1 %v12548_v41  ;;  %2705 = vmatprep.mubr.bf16.mxu0 %v12553_v42  ;;  %v11249_v41 = vld [vmem:[%s15771_s1 + $0x460] ss:$8 sps:$4 sm:$0xff]  }
  0xd4   :  { %2866 = vmatprep.mubr.bf16.mxu1 %v12558_v43  ;;  %2980 = vmatpush1.bf16.msra.mxu0 %v11237_v26  ;;  %v11252_v42 = vld [vmem:[%s15771_s1 + $0x560] ss:$8 sps:$4 sm:$0xff]   ;;  %v11263_v43 = vld [vmem:[%s15771_s1 + $0x474] ss:$8 sps:$4 sm:$0xff]   ;;  %v11293_v26 = vld [vmem:[%s15771_s1 + $0x4c4] ss:$8 sps:$4 sm:$0xff]  }
  0xd5   :  { %3141 = vmatpush1.bf16.msra.mxu1 %v11240_v30  ;;  %2981 = vmatprep.subr.bf16.mxu0 %v11245_v31  ;;  %v11294_v30 = vld [vmem:[%s15771_s1 + $0x5c0] ss:$8 sps:$4 sm:$0xff]   ;;  %v11299_v31 = vld [vmem:[%s15771_s1 + $0x4d4] ss:$8 sps:$4 sm:$0xff]  }
  0xd6   :  { %3142 = vmatprep.subr.bf16.mxu1 %v11248_v45  ;;  %v11302_v45 = vld [vmem:[%s15771_s1 + $0x5d4] ss:$8 sps:$4 sm:$0xff]  }
  0xd8   :  { %2982 = vmatpush1.bf16.msra.mxu0 %v11243_v47  ;;  %v11297_v47 = vld [vmem:[%s15771_s1 + $0x4d0] ss:$8 sps:$4 sm:$0xff]  }
  0xd9   :  { %3143 = vmatpush1.bf16.msra.mxu1 %v11246_v48  ;;  %2983 = vmatprep.subr.bf16.mxu0 %v11251_v8  ;;  %v11300_v48 = vld [vmem:[%s15771_s1 + $0x5d0] ss:$8 sps:$4 sm:$0xff]   ;;  %v11305_v8 = vld [vmem:[%s15771_s1 + $0x4e4] ss:$8 sps:$4 sm:$0xff]  }
  0xda   :  { %3144 = vmatprep.subr.bf16.mxu1 %v11254_v38  ;;  %2706 = vmatmul.mubr.bf16.gmra.mrb[76].mxu0 %v12582_v49  ;;  %v11272_v49 = vld [vmem:[%s15771_s1 + $0x584] ss:$8 sps:$4 sm:$0xff]   ;;  %v11260_v38 = vld [vmem:[%s15772_s0 + $0x108] ss:$16 sps:$4 sm:$0xff]  }
  0xdb   :  { %2867 = vmatmul.mubr.bf16.gmra.mrb[76].mxu1 %v12587_v50  ;;  %2713 = vmatprep.mubr.bf16.mxu0 %v12601_v54  ;;  %v11267_v50 = vld [vmem:[%s15771_s1 + $0x480] ss:$8 sps:$4 sm:$0xff]  }
  0xdc   :  { %2874 = vmatprep.mubr.bf16.mxu1 %v12606_v55  ;;  %2984 = vmatpush1.bf16.msra.mxu0 %v11249_v41  ;;  %v11270_v54 = vld [vmem:[%s15771_s1 + $0x580] ss:$8 sps:$4 sm:$0xff]   ;;  %v11275_v55 = vld [vmem:[%s15771_s1 + $0x494] ss:$8 sps:$4 sm:$0xff]  }
  0xdd   :  { %3145 = vmatpush1.bf16.msra.mxu1 %v11252_v42  ;;  %2985 = vmatprep.subr.bf16.mxu0 %v11263_v43  ;;  %v11303_v41 = vld [vmem:[%s15771_s1 + $0x4e0] ss:$8 sps:$4 sm:$0xff]   ;;  %v11317_v43 = vld [vmem:[%s15771_s1 + $0x4f4] ss:$8 sps:$4 sm:$0xff]  }
  0xde   :  { %3146 = vmatprep.subr.bf16.mxu1 %v11266_v9  ;;  %v11306_v42 = vld [vmem:[%s15771_s1 + $0x5e0] ss:$8 sps:$4 sm:$0xff]   ;;  %v11320_v9 = vld [vmem:[%s15771_s1 + $0x5f4] ss:$8 sps:$4 sm:$0xff]  }
  0xe0   :  { %2986 = vmatpush1.bf16.msra.mxu0 %v11261_v51  ;;  %v11315_v51 = vld [vmem:[%s15771_s1 + $0x4f0] ss:$8 sps:$4 sm:$0xff]  }
  0xe1   :  { %3147 = vmatpush1.bf16.msra.mxu1 %v11264_v16  ;;  %2987 = vmatprep.subr.bf16.mxu0 %v11269_v17  ;;  %v11318_v16 = vld [vmem:[%s15771_s1 + $0x5f0] ss:$8 sps:$4 sm:$0xff]   ;;  %v11329_v17 = vld [vmem:[%s15771_s1 + $0x604] ss:$8 sps:$4 sm:$0xff]  }
  0xe2   :  { %3148 = vmatprep.subr.bf16.mxu1 %v11272_v49  ;;  %2714 = vmatmul.mubr.bf16.gmra.mrb[80].mxu0 %v12633_v62  ;;  %v11284_v62 = vld [vmem:[%s15771_s1 + $0x5a4] ss:$8 sps:$4 sm:$0xff]  }
  0xe3   :  { %2875 = vmatmul.mubr.bf16.gmra.mrb[80].mxu1 %v12644_v1  ;;  %2721 = vmatprep.mubr.bf16.mxu0 %v12649_v2  ;;  %v11279_v1 = vld [vmem:[%s15771_s1 + $0x4a0] ss:$8 sps:$4 sm:$0xff]   ;;  %v11332_v49 = vld [vmem:[%s15771_s1 + $0xc04] ss:$8 sps:$4 sm:$0xff]  }
  0xe4   :  { %2882 = vmatprep.mubr.bf16.mxu1 %v12654_v3  ;;  %2988 = vmatpush1.bf16.msra.mxu0 %v11267_v50  ;;  %v11282_v2 = vld [vmem:[%s15771_s1 + $0x5a0] ss:$8 sps:$4 sm:$0xff]   ;;  %v11287_v3 = vld [vmem:[%s15771_s1 + $0x4b4] ss:$8 sps:$4 sm:$0xff]  }
  0xe5   :  { %3149 = vmatpush1.bf16.msra.mxu1 %v11270_v54  ;;  %2989 = vmatprep.subr.bf16.mxu0 %v11275_v55 }
  0xe6   :  { %3150 = vmatprep.subr.bf16.mxu1 %v11278_v52 }
  0xe8   :  { %2990 = vmatpush1.bf16.msra.mxu0 %v11273_v18 }
  0xe9   :  { %3151 = vmatpush1.bf16.msra.mxu1 %v11276_v19  ;;  %2991 = vmatprep.subr.bf16.mxu0 %v11281_v56 }
  0xea   :  { %3152 = vmatprep.subr.bf16.mxu1 %v11284_v62  ;;  %2722 = vmatmul.mubr.bf16.gmra.mrb[84].mxu0 %v12678_v11  ;;  %v11296_v11 = vld [vmem:[%s15771_s1 + $0x5c4] ss:$8 sps:$4 sm:$0xff]  }
  0xeb   :  { %2883 = vmatmul.mubr.bf16.gmra.mrb[84].mxu1 %v12683_v12  ;;  %2729 = vmatprep.mubr.bf16.mxu0 %v12691_v14  ;;  %v11255_v12 = vld [vmem:[%s15772_s0 + $0x104] ss:$16 sps:$4 sm:$0xff]   ;;  %v11257_v14 = vld [vmem:[%s15772_s0 + $0x10c] ss:$16 sps:$4 sm:$0xff]  }
  0xec   :  { %2890 = vmatprep.mubr.bf16.mxu1 %v12699_v20  ;;  %2992 = vmatpush1.bf16.msra.mxu0 %v11279_v1  ;;  %v11291_v20 = vld [vmem:[%s15771_s1 + $0x4c0] ss:$8 sps:$4 sm:$0xff]  }
  0xed   :  { %3153 = vmatpush1.bf16.msra.mxu1 %v11282_v2  ;;  %2993 = vmatprep.subr.bf16.mxu0 %v11287_v3 }
  0xee   :  { %3154 = vmatprep.subr.bf16.mxu1 %v11290_v57 }
  0xf0   :  { %2994 = vmatpush1.bf16.msra.mxu0 %v11285_v44 }
  0xf1   :  { %3155 = vmatpush1.bf16.msra.mxu1 %v11288_v25  ;;  %2995 = vmatprep.subr.bf16.mxu0 %v11293_v26 }
  0xf2   :  { %3156 = vmatprep.subr.bf16.mxu1 %v11296_v11  ;;  %2730 = vmatmul.mubr.bf16.gmra.mrb[88].mxu0 %v12729_v32  ;;  %v11308_v32 = vld [vmem:[%s15771_s1 + $0x5e4] ss:$8 sps:$4 sm:$0xff]  }
  0xf3   :  { %2891 = vmatmul.mubr.bf16.gmra.mrb[88].mxu1 %v12734_v33  ;;  %2737 = vmatprep.mubr.bf16.mxu0 %v11255_v12  ;;  %v11259_v33 = vld [vmem:[%s15772_s0 + $0x100] ss:$16 sps:$4 sm:$0xff]   ;;  %v11309_v11 = vld [vmem:[%s15772_s0 + $0x244] ss:$16 sps:$4 sm:$0xff]  }
  0xf4   :  { %2898 = vmatprep.mubr.bf16.mxu1 %v11257_v14  ;;  %2996 = vmatpush1.bf16.msra.mxu0 %v11291_v20  ;;  %v11313_v12 = vld [vmem:[%s15772_s0 + $0x240] ss:$16 sps:$4 sm:$0xff]   ;;  %v11314_v14 = vld [vmem:[%s15772_s0 + $0x248] ss:$16 sps:$4 sm:$0xff]  }
  0xf5   :  { %3157 = vmatpush1.bf16.msra.mxu1 %v11294_v30  ;;  %2997 = vmatprep.subr.bf16.mxu0 %v11299_v31 }
  0xf6   :  { %3158 = vmatprep.subr.bf16.mxu1 %v11302_v45 }
  0xf8   :  { %2998 = vmatpush1.bf16.msra.mxu0 %v11297_v47 }
  0xf9   :  { %3159 = vmatpush1.bf16.msra.mxu1 %v11300_v48  ;;  %2999 = vmatprep.subr.bf16.mxu0 %v11305_v8  ;;  %v11323_v8 = vld [vmem:[%s15772_s0 + $0x44] ss:$16 sps:$4 sm:$0xff]  }
  0xfa   :  { %3160 = vmatprep.subr.bf16.mxu1 %v11308_v32  ;;  %2738 = vmatmul.mubr.bf16.gmra.mrb[92].mxu0 %v11259_v33  ;;  %v11326_v32 = vld [vmem:[%s15772_s0 + $0x4c] ss:$16 sps:$4 sm:$0xff]  }
  0xfb   :  { %2899 = vmatmul.mubr.bf16.gmra.mrb[92].mxu1 %v11260_v38  ;;  %2745 = vmatprep.mubr.bf16.mxu0 %v12765_v46 }
  0xfc   :  { %2906 = vmatprep.mubr.bf16.mxu1 %v12782_v53  ;;  %3000 = vmatpush1.bf16.msra.mxu0 %v11303_v41  ;;  %v11321_v41 = vld [vmem:[%s15772_s0 + $0x40] ss:$16 sps:$4 sm:$0xff]  }
  0xfd   :  { %3161 = vmatpush1.bf16.msra.mxu1 %v11306_v42  ;;  %3001 = vmatprep.subr.bf16.mxu0 %v11317_v43  ;;  %v11324_v42 = vld [vmem:[%s15772_s0 + $0x48] ss:$16 sps:$4 sm:$0xff]  }
  0xfe   :  { %3162 = vmatprep.subr.bf16.mxu1 %v11320_v9 }
 0x100   :  { %3002 = vmatpush1.bf16.msra.mxu0 %v11315_v51  ;;  %v11327_v51 = vld [vmem:[%s15771_s1 + $0x600] ss:$8 sps:$4 sm:$0xff]  }
 0x101   :  { %3163 = vmatpush1.bf16.msra.mxu1 %v11318_v16  ;;  %4446 = vmatprep.subr.bf16.mxu0 %v11329_v17  ;;  %v11330_v16 = vld [vmem:[%s15771_s1 + $0xc00] ss:$8 sps:$4 sm:$0xff]  }
 0x102   :  { %6982 = vmatprep.subr.bf16.mxu1 %v11332_v49  ;;  %2746 = vmatmul.mubr.bf16.gmra.mrb[96].mxu0 %v12795_v58 }
 0x103   :  { %2907 = vmatmul.mubr.bf16.gmra.mrb[96].mxu1 %v12800_v59  ;;  %2753 = vmatprep.mubr.bf16.mxu0 %v12805_v60 }
 0x104   :  { %2914 = vmatprep.mubr.bf16.mxu1 %v12810_v61 }
 0x10a   :  { %2754 = vmatmul.mubr.bf16.gmra.mrb[100].mxu0 %v12819_v63 }
 0x10b   :  { %2915 = vmatmul.mubr.bf16.gmra.mrb[100].mxu1 %v12824_v0  ;;  %2761 = vmatprep.mubr.bf16.mxu0 %v12829_v4 }
 0x10c   :  { %2922 = vmatprep.mubr.bf16.mxu1 %v12834_v5 }
 0x112   :  { %2762 = vmatmul.mubr.bf16.gmra.mrb[104].mxu0 %v12843_v6 }
 0x113   :  { %2923 = vmatmul.mubr.bf16.gmra.mrb[104].mxu1 %v12848_v7  ;;  %2769 = vmatprep.mubr.bf16.mxu0 %v12853_v10 }
 0x114   :  { %2930 = vmatprep.mubr.bf16.mxu1 %v12858_v13 }
 0x115   :  { %v2361_v46 = vpop.f32.mrb[0].mxu0 }
 0x116   :  { %v2522_v53 = vpop.f32.mrb[0].mxu1  ;;  %v2363_v58 = vpop.f32.mrb[1].mxu0 }
 0x117   :  { %v2524_v59 = vpop.f32.mrb[1].mxu1  ;;  %v13194_v60 = vadd.f32 %v2522_v53, %v2361_v46  ;;  %v2365_v61 = vpop.f32.mrb[2].mxu0  ;;  %v11333_v53 = vld [vmem:[%s15772_s0 + $0x64] ss:$16 sps:$4 sm:$0xff]  }
 0x118   :  { %v2526_v63 = vpop.f32.mrb[2].mxu1  ;;  %v13196_v0 = vadd.f32 %v2524_v59, %v2363_v58  ;;  %v2366_v4 = vpop.f32.mrb[3].mxu0  ;;  %v11335_v58 = vld [vmem:[%s15772_s0 + $0x6c] ss:$16 sps:$4 sm:$0xff]  }
 0x119   :  { %v2527_v5 = vpop.f32.mrb[3].mxu1  ;;  %v11341_v4 = vld [vmem:[%s15771_s1 + $0x614] ss:$8 sps:$4 sm:$0xff]  }
 0x11a   :  { %2770 = vmatmul.mubr.bf16.gmra.mrb[108].mxu0 %v12867_v15  ;;  %v11344_v5 = vld [vmem:[%s15771_s1 + $0xc14] ss:$8 sps:$4 sm:$0xff]  }
 0x11b   :  { %2931 = vmatmul.mubr.bf16.gmra.mrb[108].mxu1 %v12872_v21  ;;  %2777 = vmatprep.mubr.bf16.mxu0 %v12877_v22 }
 0x11c   :  { %2938 = vmatprep.mubr.bf16.mxu1 %v12882_v23 }
 0x11d   :  { %v2369_v6 = vpop.f32.mrb[4].mxu0 }
 0x11e   :  { %v2530_v7 = vpop.f32.mrb[4].mxu1  ;;  %v2371_v10 = vpop.f32.mrb[5].mxu0 }
 0x11f   :  { %v2532_v13 = vpop.f32.mrb[5].mxu1  ;;  %v13202_v50 = vadd.f32 %v2530_v7, %v2369_v6  ;;  %v2373_v54 = vpop.f32.mrb[6].mxu0 }
 0x120   :  { %v2534_v55 = vpop.f32.mrb[6].mxu1  ;;  %v13204_v52 = vadd.f32 %v2532_v13, %v2371_v10  ;;  %v2374_v18 = vpop.f32.mrb[7].mxu0  ;;  %v11339_v10 = vld [vmem:[%s15771_s1 + $0x610] ss:$8 sps:$4 sm:$0xff]   ;;  %v11353_v54 = vld [vmem:[%s15771_s1 + $0x624] ss:$8 sps:$4 sm:$0xff]  }
 0x121   :  { %v2535_v19 = vpop.f32.mrb[7].mxu1  ;;  %v11342_v13 = vld [vmem:[%s15771_s1 + $0xc10] ss:$8 sps:$4 sm:$0xff]   ;;  %v11356_v55 = vld [vmem:[%s15771_s1 + $0xc24] ss:$8 sps:$4 sm:$0xff]  }
 0x122   :  { %2778 = vmatmul.mubr.bf16.gmra.mrb[112].mxu0 %v12891_v24  ;;  %v11337_v18 = vld [vmem:[%s15772_s0 + $0x60] ss:$16 sps:$4 sm:$0xff]   ;;  %v11338_v19 = vld [vmem:[%s15772_s0 + $0x68] ss:$16 sps:$4 sm:$0xff]  }
 0x123   :  { %2939 = vmatmul.mubr.bf16.gmra.mrb[112].mxu1 %v12896_v27  ;;  %2785 = vmatprep.mubr.bf16.mxu0 %v12901_v28 }
 0x124   :  { %2946 = vmatprep.mubr.bf16.mxu1 %v12906_v29 }
 0x125   :  { %v2377_v15 = vpop.f32.mrb[8].mxu0 }
 0x126   :  { %v2538_v21 = vpop.f32.mrb[8].mxu1  ;;  %v2379_v22 = vpop.f32.mrb[9].mxu0 }
 0x127   :  { %v2540_v23 = vpop.f32.mrb[9].mxu1  ;;  %v13210_v56 = vadd.f32 %v2538_v21, %v2377_v15  ;;  %v2381_v62 = vpop.f32.mrb[10].mxu0 }
 0x128   :  { %v2542_v1 = vpop.f32.mrb[10].mxu1  ;;  %v13212_v2 = vadd.f32 %v2540_v23, %v2379_v22  ;;  %v2382_v3 = vpop.f32.mrb[11].mxu0  ;;  %v11345_v22 = vld [vmem:[%s15772_s0 + $0x84] ss:$16 sps:$4 sm:$0xff]   ;;  %v11347_v23 = vld [vmem:[%s15772_s0 + $0x8c] ss:$16 sps:$4 sm:$0xff]  }
 0x129   :  { %v2543_v57 = vpop.f32.mrb[11].mxu1 }
 0x12a   :  { %2786 = vmatmul.mubr.bf16.gmra.mrb[116].mxu0 %v12915_v34  ;;  %v11311_v34 = vld [vmem:[%s15772_s0 + $0x24c] ss:$16 sps:$4 sm:$0xff]   ;;  %v11351_v57 = vld [vmem:[%s15771_s1 + $0x620] ss:$8 sps:$4 sm:$0xff]  }
 0x12b   :  { %2947 = vmatmul.mubr.bf16.gmra.mrb[116].mxu1 %v12920_v35  ;;  %2793 = vmatprep.mubr.bf16.mxu0 %v12925_v36 }
 0x12c   :  { %2954 = vmatprep.mubr.bf16.mxu1 %v12930_v37 }
 0x12d   :  { %v2385_v24 = vpop.f32.mrb[12].mxu0 }
 0x12e   :  { %v2546_v27 = vpop.f32.mrb[12].mxu1  ;;  %v2387_v28 = vpop.f32.mrb[13].mxu0 }
 0x12f   :  { %v2548_v29 = vpop.f32.mrb[13].mxu1  ;;  %v13218_v44 = vadd.f32 %v2546_v27, %v2385_v24  ;;  %v2389_v25 = vpop.f32.mrb[14].mxu0  ;;  %v11354_v24 = vld [vmem:[%s15771_s1 + $0xc20] ss:$8 sps:$4 sm:$0xff]  }
 0x130   :  { %v2550_v26 = vpop.f32.mrb[14].mxu1  ;;  %v13226_v35 = vadd.f32 %v2548_v29, %v2387_v28  ;;  %v2390_v36 = vpop.f32.mrb[15].mxu0  ;;  %v11365_v25 = vld [vmem:[%s15771_s1 + $0x634] ss:$8 sps:$4 sm:$0xff]  }
 0x131   :  { %v2551_v37 = vpop.f32.mrb[15].mxu1  ;;  %v11368_v26 = vld [vmem:[%s15771_s1 + $0xc34] ss:$8 sps:$4 sm:$0xff]   ;;  %v11363_v36 = vld [vmem:[%s15771_s1 + $0x630] ss:$8 sps:$4 sm:$0xff]  }
 0x132   :  { %2794 = vmatmul.mubr.bf16.gmra.mrb[120].mxu0 %v12939_v39  ;;  %v11366_v37 = vld [vmem:[%s15771_s1 + $0xc30] ss:$8 sps:$4 sm:$0xff]  }
 0x133   :  { %2955 = vmatmul.mubr.bf16.gmra.mrb[120].mxu1 %v12944_v40  ;;  %2801 = vmatprep.mubr.bf16.mxu0 %v11309_v11 }
 0x134   :  { %2962 = vmatprep.mubr.bf16.mxu1 %v11311_v34 }
 0x135   :  { %v2393_v20 = vpop.f32.mrb[16].mxu0 }
 0x136   :  { %v2554_v30 = vpop.f32.mrb[16].mxu1  ;;  %v2395_v45 = vpop.f32.mrb[17].mxu0 }
 0x137   :  { %v13236_v31 = vadd.f32 %v2554_v30, %v2393_v20  ;;  %v2556_v47 = vpop.f32.mrb[17].mxu1  ;;  %v2397_v39 = vpop.f32.mrb[18].mxu0  ;;  %v11349_v20 = vld [vmem:[%s15772_s0 + $0x80] ss:$16 sps:$4 sm:$0xff]   ;;  %v11350_v30 = vld [vmem:[%s15772_s0 + $0x88] ss:$16 sps:$4 sm:$0xff]  }
 0x138   :  { %v13238_v48 = vadd.f32 %v2556_v47, %v2395_v45  ;;  %v2558_v40 = vpop.f32.mrb[18].mxu1  ;;  %v2398_v33 = vpop.f32.mrb[19].mxu0  ;;  %v11357_v39 = vld [vmem:[%s15772_s0 + $0xa4] ss:$16 sps:$4 sm:$0xff]  }
 0x139   :  { %v2559_v38 = vpop.f32.mrb[19].mxu1  ;;  %v11359_v40 = vld [vmem:[%s15772_s0 + $0xac] ss:$16 sps:$4 sm:$0xff]  }
 0x13a   :  { %2802 = vmatmul.mubr.bf16.gmra.mrb[124].mxu0 %v11313_v12  ;;  %v11377_v12 = vld [vmem:[%s15771_s1 + $0x644] ss:$8 sps:$4 sm:$0xff]   ;;  %v11375_v38 = vld [vmem:[%s15771_s1 + $0x640] ss:$8 sps:$4 sm:$0xff]  }
 0x13b   :  { %2963 = vmatmul.mubr.bf16.gmra.mrb[124].mxu1 %v11314_v14  ;;  %3003 = vmatprep.mubr.bf16.mxu0 %v11323_v8  ;;  %v11380_v14 = vld [vmem:[%s15771_s1 + $0xc44] ss:$8 sps:$4 sm:$0xff]  }
 0x13c   :  { %3164 = vmatprep.mubr.bf16.mxu1 %v11326_v32 }
 0x13d   :  { %v2401_v43 = vpop.f32.mrb[20].mxu0 }
 0x13e   :  { %v2562_v9 = vpop.f32.mrb[20].mxu1  ;;  %v2403_v49 = vpop.f32.mrb[21].mxu0 }
 0x13f   :  { %v13258_v17 = vadd.f32 %v2562_v9, %v2401_v43  ;;  %v2564_v46 = vpop.f32.mrb[21].mxu1  ;;  %v2405_v61 = vpop.f32.mrb[22].mxu0 }
 0x140   :  { %v13266_v59 = vadd.f32 %v2564_v46, %v2403_v49  ;;  %v2566_v63 = vpop.f32.mrb[22].mxu1  ;;  %v2406_v6 = vpop.f32.mrb[23].mxu0  ;;  %v11395_v61 = vld [vmem:[%s15771_s1 + $0x664] ss:$8 sps:$4 sm:$0xff]  }
 0x141   :  { %v2567_v7 = vpop.f32.mrb[23].mxu1  ;;  %v11398_v63 = vld [vmem:[%s15771_s1 + $0xc64] ss:$8 sps:$4 sm:$0xff]  }
 0x142   :  { %3004 = vmatmul.mubr.bf16.vlgmr.msra.gmra.mrb[128].mxu0 %v11321_v41  ;;  %v11378_v41 = vld [vmem:[%s15771_s1 + $0xc40] ss:$8 sps:$4 sm:$0xff]  }
 0x143   :  { %3165 = vmatmul.mubr.bf16.vlgmr.msra.gmra.mrb[128].mxu1 %v11324_v42  ;;  %4447 = vmatpush1.bf16.msra.mxu0 %v11327_v51  ;;  %v11389_v51 = vld [vmem:[%s15771_s1 + $0x654] ss:$8 sps:$4 sm:$0xff]  }
 0x144   :  { %6983 = vmatpush1.bf16.msra.mxu1 %v11330_v16  ;;  %3011 = vmatprep.mubr.bf16.mxu0 %v11333_v53  ;;  %v11392_v16 = vld [vmem:[%s15771_s1 + $0xc54] ss:$8 sps:$4 sm:$0xff]   ;;  %v11387_v53 = vld [vmem:[%s15771_s1 + $0x650] ss:$8 sps:$4 sm:$0xff]  }
 0x145   :  { %3172 = vmatprep.mubr.bf16.mxu1 %v11335_v58  ;;  %v2409_v15 = vpop.f32.mrb[24].mxu0  ;;  %4448 = vmatprep.subr.bf16.mxu0 %v11341_v4  ;;  %v11390_v58 = vld [vmem:[%s15771_s1 + $0xc50] ss:$8 sps:$4 sm:$0xff]  }
 0x146   :  { %v2570_v21 = vpop.f32.mrb[24].mxu1  ;;  %6984 = vmatprep.subr.bf16.mxu1 %v11344_v5  ;;  %v2411_v1 = vpop.f32.mrb[25].mxu0  ;;  %v11361_v4 = vld [vmem:[%s15772_s0 + $0xa0] ss:$16 sps:$4 sm:$0xff]   ;;  %v11362_v5 = vld [vmem:[%s15772_s0 + $0xa8] ss:$16 sps:$4 sm:$0xff]  }
 0x147   :  { %v13298_v62 = vadd.f32 %v2570_v21, %v2409_v15  ;;  %v2572_v3 = vpop.f32.mrb[25].mxu1  ;;  %v2413_v28 = vpop.f32.mrb[26].mxu0  ;;  %4449 = vmatpush1.bf16.msra.mxu0 %v11339_v10  ;;  %v11369_v10 = vld [vmem:[%s15772_s0 + $0xc4] ss:$16 sps:$4 sm:$0xff]   ;;  %v11396_v15 = vld [vmem:[%s15771_s1 + $0xc60] ss:$8 sps:$4 sm:$0xff]  }
 0x148   :  { %v13306_v27 = vadd.f32 %v2572_v3, %v2411_v1  ;;  %v2574_v29 = vpop.f32.mrb[26].mxu1  ;;  %6985 = vmatpush1.bf16.msra.mxu1 %v11342_v13  ;;  %v2414_v11 = vpop.f32.mrb[27].mxu0  ;;  %4450 = vmatprep.subr.bf16.mxu0 %v11353_v54  ;;  %v11371_v13 = vld [vmem:[%s15772_s0 + $0xcc] ss:$16 sps:$4 sm:$0xff]   ;;  %v11405_v28 = vld [vmem:[%s15771_s1 + $0x670] ss:$8 sps:$4 sm:$0xff]  }
 0x149   :  { %v2575_v34 = vpop.f32.mrb[27].mxu1  ;;  %6986 = vmatprep.subr.bf16.mxu1 %v11356_v55  ;;  %v11407_v1 = vld [vmem:[%s15771_s1 + $0x674] ss:$8 sps:$4 sm:$0xff]   ;;  %v11408_v29 = vld [vmem:[%s15771_s1 + $0xc70] ss:$8 sps:$4 sm:$0xff]  }
 0x14a   :  { %3012 = vmatmul.mubr.bf16.gmra.mrb[132].mxu0 %v11337_v18  ;;  %v11410_v3 = vld [vmem:[%s15771_s1 + $0xc74] ss:$8 sps:$4 sm:$0xff]   ;;  %v11373_v11 = vld [vmem:[%s15772_s0 + $0xc0] ss:$16 sps:$4 sm:$0xff]   ;;  %v11374_v34 = vld [vmem:[%s15772_s0 + $0xc8] ss:$16 sps:$4 sm:$0xff]  }
 0x14b   :  { %3173 = vmatmul.mubr.bf16.gmra.mrb[132].mxu1 %v11338_v19  ;;  %3019 = vmatprep.mubr.bf16.mxu0 %v11345_v22  ;;  %v11393_v19 = vld [vmem:[%s15771_s1 + $0x660] ss:$8 sps:$4 sm:$0xff]  }
 0x14c   :  { %3180 = vmatprep.mubr.bf16.mxu1 %v11347_v23  ;;  %4451 = vmatpush1.bf16.msra.mxu0 %v11351_v57 }
 0x14d   :  { %6987 = vmatpush1.bf16.msra.mxu1 %v11354_v24  ;;  %v2417_v45 = vpop.f32.mrb[28].mxu0  ;;  %4452 = vmatprep.subr.bf16.mxu0 %v11365_v25  ;;  %v11419_v25 = vld [vmem:[%s15771_s1 + $0x684] ss:$8 sps:$4 sm:$0xff]  }
 0x14e   :  { %v2578_v47 = vpop.f32.mrb[28].mxu1  ;;  %6988 = vmatprep.subr.bf16.mxu1 %v11368_v26  ;;  %v2419_v32 = vpop.f32.mrb[29].mxu0  ;;  %v11422_v26 = vld [vmem:[%s15771_s1 + $0xc84] ss:$8 sps:$4 sm:$0xff]  }
 0x14f   :  { %v13338_v8 = vadd.f32 %v2578_v47, %v2417_v45  ;;  %v2580_v33 = vpop.f32.mrb[29].mxu1  ;;  %v2421_v43 = vpop.f32.mrb[30].mxu0  ;;  %v11417_v47 = vld [vmem:[%s15771_s1 + $0x680] ss:$8 sps:$4 sm:$0xff]  }
 0x150   :  { %v13346_v42 = vadd.f32 %v2580_v33, %v2419_v32  ;;  %v2582_v9 = vpop.f32.mrb[30].mxu1  ;;  %v2422_v49 = vpop.f32.mrb[31].mxu0  ;;  %4453 = vmatpush1.bf16.msra.mxu0 %v11363_v36 }
 0x151   :  { %v2583_v46 = vpop.f32.mrb[31].mxu1  ;;  %6989 = vmatpush1.bf16.msra.mxu1 %v11366_v37  ;;  %4454 = vmatprep.subr.bf16.mxu0 %v11377_v12  ;;  %v11381_v12 = vld [vmem:[%s15772_s0 + $0xe4] ss:$16 sps:$4 sm:$0xff]  }
 0x152   :  { %6990 = vmatprep.subr.bf16.mxu1 %v11380_v14  ;;  %3020 = vmatmul.mubr.bf16.gmra.mrb[136].mxu0 %v11349_v20  ;;  %v11383_v14 = vld [vmem:[%s15772_s0 + $0xec] ss:$16 sps:$4 sm:$0xff]  }
 0x153   :  { %3181 = vmatmul.mubr.bf16.gmra.mrb[136].mxu1 %v11350_v30  ;;  %3027 = vmatprep.mubr.bf16.mxu0 %v11357_v39  ;;  %v11420_v39 = vld [vmem:[%s15771_s1 + $0xc80] ss:$8 sps:$4 sm:$0xff]   ;;  %v11443_v49 = vld [vmem:[%s15771_s1 + $0x6a4] ss:$8 sps:$4 sm:$0xff]  }
 0x154   :  { %3188 = vmatprep.mubr.bf16.mxu1 %v11359_v40  ;;  %4455 = vmatpush1.bf16.msra.mxu0 %v11375_v38  ;;  %v11431_v38 = vld [vmem:[%s15771_s1 + $0x694] ss:$8 sps:$4 sm:$0xff]   ;;  %v11446_v46 = vld [vmem:[%s15771_s1 + $0xca4] ss:$8 sps:$4 sm:$0xff]  }
 0x155   :  { %6991 = vmatpush1.bf16.msra.mxu1 %v11378_v41  ;;  %v2425_v6 = vpop.f32.mrb[32].mxu0  ;;  %4456 = vmatprep.subr.bf16.mxu0 %v11389_v51  ;;  %v11434_v41 = vld [vmem:[%s15771_s1 + $0xc94] ss:$8 sps:$4 sm:$0xff]   ;;  %v11429_v51 = vld [vmem:[%s15771_s1 + $0x690] ss:$8 sps:$4 sm:$0xff]  }
 0x156   :  { %v2586_v7 = vpop.f32.mrb[32].mxu1  ;;  %6992 = vmatprep.subr.bf16.mxu1 %v11392_v16  ;;  %v2427_v55 = vpop.f32.mrb[33].mxu0  ;;  %v11432_v16 = vld [vmem:[%s15771_s1 + $0xc90] ss:$8 sps:$4 sm:$0xff]  }
 0x157   :  { %v13378_v54 = vadd.f32 %v2586_v7, %v2425_v6  ;;  %v2588_v18 = vpop.f32.mrb[33].mxu1  ;;  %v2429_v22 = vpop.f32.mrb[34].mxu0  ;;  %v11441_v7 = vld [vmem:[%s15771_s1 + $0x6a0] ss:$8 sps:$4 sm:$0xff]  }
 0x158   :  { %v13386_v21 = vadd.f32 %v2588_v18, %v2427_v55  ;;  %v2590_v23 = vpop.f32.mrb[34].mxu1  ;;  %v2430_v57 = vpop.f32.mrb[35].mxu0  ;;  %4457 = vmatpush1.bf16.msra.mxu0 %v11387_v53  ;;  %v11385_v53 = vld [vmem:[%s15772_s0 + $0xe0] ss:$16 sps:$4 sm:$0xff]  }
 0x159   :  { %v2591_v24 = vpop.f32.mrb[35].mxu1  ;;  %6993 = vmatpush1.bf16.msra.mxu1 %v11390_v58  ;;  %4458 = vmatprep.subr.bf16.mxu0 %v11395_v61  ;;  %v11386_v58 = vld [vmem:[%s15772_s0 + $0xe8] ss:$16 sps:$4 sm:$0xff]   ;;  %v12003_v57 = vld [vmem:[%s15772_s0 + $0x104] ss:$16 sps:$4 sm:$0xff]  }
 0x15a   :  { %6994 = vmatprep.subr.bf16.mxu1 %v11398_v63  ;;  %3028 = vmatmul.mubr.bf16.gmra.mrb[140].mxu0 %v11361_v4  ;;  %v12004_v24 = vld [vmem:[%s15772_s0 + $0x10c] ss:$16 sps:$4 sm:$0xff]  }
 0x15b   :  { %3189 = vmatmul.mubr.bf16.gmra.mrb[140].mxu1 %v11362_v5  ;;  %3035 = vmatprep.mubr.bf16.mxu0 %v11369_v10  ;;  %v11444_v10 = vld [vmem:[%s15771_s1 + $0xca0] ss:$8 sps:$4 sm:$0xff]  }
 0x15c   :  { %3196 = vmatprep.mubr.bf16.mxu1 %v11371_v13  ;;  %4459 = vmatpush1.bf16.msra.mxu0 %v11393_v19  ;;  %v11455_v19 = vld [vmem:[%s15771_s1 + $0x6b4] ss:$8 sps:$4 sm:$0xff]  }
 0x15d   :  { %6995 = vmatpush1.bf16.msra.mxu1 %v11396_v15  ;;  %v2433_v36 = vpop.f32.mrb[36].mxu0  ;;  %4460 = vmatprep.subr.bf16.mxu0 %v11407_v1  ;;  %v11458_v15 = vld [vmem:[%s15771_s1 + $0xcb4] ss:$8 sps:$4 sm:$0xff]   ;;  %v11453_v1 = vld [vmem:[%s15771_s1 + $0x6b0] ss:$8 sps:$4 sm:$0xff]  }
 0x15e   :  { %v2594_v37 = vpop.f32.mrb[36].mxu1  ;;  %6996 = vmatprep.subr.bf16.mxu1 %v11410_v3  ;;  %v2435_v30 = vpop.f32.mrb[37].mxu0  ;;  %v11456_v3 = vld [vmem:[%s15771_s1 + $0xcb0] ss:$8 sps:$4 sm:$0xff]  }
 0x15f   :  { %v13418_v20 = vadd.f32 %v2594_v37, %v2433_v36  ;;  %v2596_v45 = vpop.f32.mrb[37].mxu1  ;;  %v2437_v32 = vpop.f32.mrb[38].mxu0 }
 0x160   :  { %v13426_v40 = vadd.f32 %v2596_v45, %v2435_v30  ;;  %v2598_v33 = vpop.f32.mrb[38].mxu1  ;;  %v2438_v43 = vpop.f32.mrb[39].mxu0  ;;  %4461 = vmatpush1.bf16.msra.mxu0 %v11405_v28  ;;  %v11467_v28 = vld [vmem:[%s15771_s1 + $0x6c4] ss:$8 sps:$4 sm:$0xff]   ;;  %v11468_v30 = vld [vmem:[%s15771_s1 + $0xcc0] ss:$8 sps:$4 sm:$0xff]  }
 0x161   :  { %v2599_v9 = vpop.f32.mrb[39].mxu1  ;;  %6997 = vmatpush1.bf16.msra.mxu1 %v11408_v29  ;;  %4462 = vmatprep.subr.bf16.mxu0 %v11419_v25  ;;  %v11470_v29 = vld [vmem:[%s15771_s1 + $0xcc4] ss:$8 sps:$4 sm:$0xff]   ;;  %v11479_v32 = vld [vmem:[%s15771_s1 + $0x6d4] ss:$8 sps:$4 sm:$0xff]  }
 0x162   :  { %6998 = vmatprep.subr.bf16.mxu1 %v11422_v26  ;;  %3036 = vmatmul.mubr.bf16.gmra.mrb[144].mxu0 %v11373_v11  ;;  %v11399_v11 = vld [vmem:[%s15772_s0 + $0x124] ss:$16 sps:$4 sm:$0xff]   ;;  %v12005_v43 = vld [vmem:[%s15772_s0 + $0x100] ss:$16 sps:$4 sm:$0xff]   ;;  %v12006_v9 = vld [vmem:[%s15772_s0 + $0x108] ss:$16 sps:$4 sm:$0xff]  }
 0x163   :  { %3197 = vmatmul.mubr.bf16.gmra.mrb[144].mxu1 %v11374_v34  ;;  %3043 = vmatprep.mubr.bf16.mxu0 %v11381_v12  ;;  %v11401_v34 = vld [vmem:[%s15772_s0 + $0x12c] ss:$16 sps:$4 sm:$0xff]  }
 0x164   :  { %3204 = vmatprep.mubr.bf16.mxu1 %v11383_v14  ;;  %4463 = vmatpush1.bf16.msra.mxu0 %v11417_v47  ;;  %v11465_v14 = vld [vmem:[%s15771_s1 + $0x6c0] ss:$8 sps:$4 sm:$0xff]   ;;  %v11482_v33 = vld [vmem:[%s15771_s1 + $0xcd4] ss:$8 sps:$4 sm:$0xff]  }
 0x165   :  { %6999 = vmatpush1.bf16.msra.mxu1 %v11420_v39  ;;  %v2441_v61 = vpop.f32.mrb[40].mxu0  ;;  %4464 = vmatprep.subr.bf16.mxu0 %v11431_v38 }
 0x166   :  { %v2602_v63 = vpop.f32.mrb[40].mxu1  ;;  %7000 = vmatprep.subr.bf16.mxu1 %v11434_v41  ;;  %v2443_v5 = vpop.f32.mrb[41].mxu0 }
 0x167   :  { %v13452_v4 = vadd.f32 %v2602_v63, %v2441_v61  ;;  %v2604_v6 = vpop.f32.mrb[41].mxu1  ;;  %v2445_v55 = vpop.f32.mrb[42].mxu0 }
 0x168   :  { %v13460_v13 = vadd.f32 %v2604_v6, %v2443_v5  ;;  %v2606_v18 = vpop.f32.mrb[42].mxu1  ;;  %v2446_v22 = vpop.f32.mrb[43].mxu0  ;;  %4465 = vmatpush1.bf16.msra.mxu0 %v11429_v51  ;;  %v11477_v51 = vld [vmem:[%s15771_s1 + $0x6d0] ss:$8 sps:$4 sm:$0xff]   ;;  %v11411_v5 = vld [vmem:[%s15772_s0 + $0x184] ss:$16 sps:$4 sm:$0xff]  }
 0x169   :  { %v2607_v23 = vpop.f32.mrb[43].mxu1  ;;  %7001 = vmatpush1.bf16.msra.mxu1 %v11432_v16  ;;  %4466 = vmatprep.subr.bf16.mxu0 %v11443_v49  ;;  %v11480_v16 = vld [vmem:[%s15771_s1 + $0xcd0] ss:$8 sps:$4 sm:$0xff]   ;;  %v11491_v49 = vld [vmem:[%s15771_s1 + $0x6e4] ss:$8 sps:$4 sm:$0xff]  }
 0x16a   :  { %7002 = vmatprep.subr.bf16.mxu1 %v11446_v46  ;;  %3044 = vmatmul.mubr.bf16.gmra.mrb[148].mxu0 %v11385_v53  ;;  %v11494_v46 = vld [vmem:[%s15771_s1 + $0xce4] ss:$8 sps:$4 sm:$0xff]   ;;  %v11403_v53 = vld [vmem:[%s15772_s0 + $0x120] ss:$16 sps:$4 sm:$0xff]  }
 0x16b   :  { %3205 = vmatmul.mubr.bf16.gmra.mrb[148].mxu1 %v11386_v58  ;;  %3051 = vmatprep.mubr.bf16.mxu0 %v12003_v57  ;;  %v11404_v58 = vld [vmem:[%s15772_s0 + $0x128] ss:$16 sps:$4 sm:$0xff]   ;;  %v11413_v6 = vld [vmem:[%s15772_s0 + $0x18c] ss:$16 sps:$4 sm:$0xff]  }
 0x16c   :  { %3212 = vmatprep.mubr.bf16.mxu1 %v12004_v24  ;;  %4467 = vmatpush1.bf16.msra.mxu0 %v11441_v7  ;;  %v11489_v18 = vld [vmem:[%s15771_s1 + $0x6e0] ss:$8 sps:$4 sm:$0xff]   ;;  %v11503_v57 = vld [vmem:[%s15771_s1 + $0x6f4] ss:$8 sps:$4 sm:$0xff]  }
 0x16d   :  { %7003 = vmatpush1.bf16.msra.mxu1 %v11444_v10  ;;  %v2449_v25 = vpop.f32.mrb[44].mxu0  ;;  %4468 = vmatprep.subr.bf16.mxu0 %v11455_v19  ;;  %v11492_v19 = vld [vmem:[%s15771_s1 + $0xce0] ss:$8 sps:$4 sm:$0xff]   ;;  %v11506_v24 = vld [vmem:[%s15771_s1 + $0xcf4] ss:$8 sps:$4 sm:$0xff]  }
 0x16e   :  { %v2610_v26 = vpop.f32.mrb[44].mxu1  ;;  %7004 = vmatprep.subr.bf16.mxu1 %v11458_v15  ;;  %v2451_v37 = vpop.f32.mrb[45].mxu0 }
 0x16f   :  { %v13492_v36 = vadd.f32 %v2610_v26, %v2449_v25  ;;  %v2612_v12 = vpop.f32.mrb[45].mxu1  ;;  %v2453_v47 = vpop.f32.mrb[46].mxu0 }
 0x170   :  { %v13500_v45 = vadd.f32 %v2612_v12, %v2451_v37  ;;  %v2614_v39 = vpop.f32.mrb[46].mxu1  ;;  %v2454_v38 = vpop.f32.mrb[47].mxu0  ;;  %4469 = vmatpush1.bf16.msra.mxu0 %v11453_v1  ;;  %v11416_v47 = vld [vmem:[%s15772_s0 + $0x188] ss:$16 sps:$4 sm:$0xff]  }
 0x171   :  { %v2615_v41 = vpop.f32.mrb[47].mxu1  ;;  %7005 = vmatpush1.bf16.msra.mxu1 %v11456_v3  ;;  %4470 = vmatprep.subr.bf16.mxu0 %v11467_v28  ;;  %v11501_v28 = vld [vmem:[%s15771_s1 + $0x6f0] ss:$8 sps:$4 sm:$0xff]   ;;  %v11423_v38 = vld [vmem:[%s15772_s0 + $0x1a4] ss:$16 sps:$4 sm:$0xff]  }
 0x172   :  { %7006 = vmatprep.subr.bf16.mxu1 %v11470_v29  ;;  %3052 = vmatmul.mubr.bf16.gmra.mrb[152].mxu0 %v12005_v43  ;;  %v11504_v29 = vld [vmem:[%s15771_s1 + $0xcf0] ss:$8 sps:$4 sm:$0xff]   ;;  %v11425_v41 = vld [vmem:[%s15772_s0 + $0x1ac] ss:$16 sps:$4 sm:$0xff]  }
 0x173   :  { %3213 = vmatmul.mubr.bf16.gmra.mrb[152].mxu1 %v12006_v9  ;;  %3059 = vmatprep.mubr.bf16.mxu0 %v11399_v11  ;;  %v11509_v11 = vld [vmem:[%s15771_s1 + $0x704] ss:$8 sps:$4 sm:$0xff]  }
 0x174   :  { %3220 = vmatprep.mubr.bf16.mxu1 %v11401_v34  ;;  %4471 = vmatpush1.bf16.msra.mxu0 %v11465_v14  ;;  %v11512_v34 = vld [vmem:[%s15771_s1 + $0xd04] ss:$8 sps:$4 sm:$0xff]  }
 0x175   :  { %7007 = vmatpush1.bf16.msra.mxu1 %v11468_v30  ;;  %v2457_v61 = vpop.f32.mrb[48].mxu0  ;;  %4472 = vmatprep.subr.bf16.mxu0 %v11479_v32  ;;  %v11415_v30 = vld [vmem:[%s15772_s0 + $0x180] ss:$16 sps:$4 sm:$0xff]  }
 0x176   :  { %v2618_v63 = vpop.f32.mrb[48].mxu1  ;;  %7008 = vmatprep.subr.bf16.mxu1 %v11482_v33  ;;  %v2459_v10 = vpop.f32.mrb[49].mxu0 }
 0x177   :  { %v13538_v7 = vadd.f32 %v2618_v63, %v2457_v61  ;;  %v2620_v55 = vpop.f32.mrb[49].mxu1  ;;  %v2461_v22 = vpop.f32.mrb[50].mxu0  ;;  %v11428_v61 = vld [vmem:[%s15772_s0 + $0x1a8] ss:$16 sps:$4 sm:$0xff]  }
 0x178   :  { %v13546_v15 = vadd.f32 %v2620_v55, %v2459_v10  ;;  %v2622_v23 = vpop.f32.mrb[50].mxu1  ;;  %v2462_v1 = vpop.f32.mrb[51].mxu0  ;;  %4473 = vmatpush1.bf16.msra.mxu0 %v11477_v51  ;;  %v11435_v10 = vld [vmem:[%s15772_s0 + $0x1c4] ss:$16 sps:$4 sm:$0xff]   ;;  %v11437_v55 = vld [vmem:[%s15772_s0 + $0x1cc] ss:$16 sps:$4 sm:$0xff]  }
 0x179   :  { %v2623_v3 = vpop.f32.mrb[51].mxu1  ;;  %7009 = vmatpush1.bf16.msra.mxu1 %v11480_v16  ;;  %4474 = vmatprep.subr.bf16.mxu0 %v11491_v49 }
 0x17a   :  { %7010 = vmatprep.subr.bf16.mxu1 %v11494_v46  ;;  %3060 = vmatmul.mubr.bf16.gmra.mrb[156].mxu0 %v11403_v53 }
 0x17b   :  { %3221 = vmatmul.mubr.bf16.gmra.mrb[156].mxu1 %v11404_v58  ;;  %3067 = vmatprep.mubr.bf16.mxu0 %v11411_v5  ;;  %v11427_v58 = vld [vmem:[%s15772_s0 + $0x1a0] ss:$16 sps:$4 sm:$0xff]  }
 0x17c   :  { %3228 = vmatprep.mubr.bf16.mxu1 %v11413_v6  ;;  %4475 = vmatpush1.bf16.msra.mxu0 %v11489_v18 }
 0x17d   :  { %7011 = vmatpush1.bf16.msra.mxu1 %v11492_v19  ;;  %v2465_v25 = vpop.f32.mrb[52].mxu0  ;;  %4476 = vmatprep.subr.bf16.mxu0 %v11503_v57 }
 0x17e   :  { %v2626_v26 = vpop.f32.mrb[52].mxu1  ;;  %7012 = vmatprep.subr.bf16.mxu1 %v11506_v24  ;;  %v2467_v12 = vpop.f32.mrb[53].mxu0  ;;  %v11439_v24 = vld [vmem:[%s15772_s0 + $0x1c0] ss:$16 sps:$4 sm:$0xff]  }
 0x17f   :  { %v13566_v37 = vadd.f32 %v2626_v26, %v2465_v25  ;;  %v2628_v14 = vpop.f32.mrb[53].mxu1  ;;  %v2469_v32 = vpop.f32.mrb[54].mxu0 }
 0x180   :  { %v13574_v39 = vadd.f32 %v2628_v14, %v2467_v12  ;;  %v2630_v33 = vpop.f32.mrb[54].mxu1  ;;  %v2470_v43 = vpop.f32.mrb[55].mxu0  ;;  %4477 = vmatpush1.bf16.msra.mxu0 %v11501_v28  ;;  %v11440_v28 = vld [vmem:[%s15772_s0 + $0x1c8] ss:$16 sps:$4 sm:$0xff]  }
 0x181   :  { %v2631_v9 = vpop.f32.mrb[55].mxu1  ;;  %7013 = vmatpush1.bf16.msra.mxu1 %v11504_v29  ;;  %4639 = vmatprep.subr.bf16.mxu0 %v11509_v11  ;;  %v11447_v11 = vld [vmem:[%s15772_s0 + $0x1e4] ss:$16 sps:$4 sm:$0xff]   ;;  %v11452_v43 = vld [vmem:[%s15772_s0 + $0x1e8] ss:$16 sps:$4 sm:$0xff]  }
 0x182   :  { %7175 = vmatprep.subr.bf16.mxu1 %v11512_v34  ;;  %3068 = vmatmul.mubr.bf16.gmra.mrb[160].mxu0 %v11415_v30  ;;  %v11449_v34 = vld [vmem:[%s15772_s0 + $0x1ec] ss:$16 sps:$4 sm:$0xff]  }
 0x183   :  { %3229 = vmatmul.mubr.bf16.gmra.mrb[160].mxu1 %v11416_v47  ;;  %3075 = vmatprep.mubr.bf16.mxu0 %v11423_v38 }
 0x184   :  { %3236 = vmatprep.mubr.bf16.mxu1 %v11425_v41  ;;  %v11451_v41 = vld [vmem:[%s15772_s0 + $0x1e0] ss:$16 sps:$4 sm:$0xff]  }
 0x185   :  { %v2473_v51 = vpop.f32.mrb[56].mxu0 }
 0x186   :  { %v2634_v16 = vpop.f32.mrb[56].mxu1  ;;  %v2475_v46 = vpop.f32.mrb[57].mxu0 }
 0x187   :  { %v13582_v49 = vadd.f32 %v2634_v16, %v2473_v51  ;;  %v2636_v53 = vpop.f32.mrb[57].mxu1  ;;  %v2477_v5 = vpop.f32.mrb[58].mxu0 }
 0x188   :  { %v13590_v63 = vadd.f32 %v2636_v53, %v2475_v46  ;;  %v2638_v6 = vpop.f32.mrb[58].mxu1  ;;  %v2478_v18 = vpop.f32.mrb[59].mxu0  ;;  %v11459_v46 = vld [vmem:[%s15772_s0 + $0x204] ss:$16 sps:$4 sm:$0xff]  }
 0x189   :  { %v2639_v19 = vpop.f32.mrb[59].mxu1 }
 0x18a   :  { %3076 = vmatmul.mubr.bf16.gmra.mrb[164].mxu0 %v11427_v58  ;;  %v11463_v19 = vld [vmem:[%s15772_s0 + $0x200] ss:$16 sps:$4 sm:$0xff]  }
 0x18b   :  { %3237 = vmatmul.mubr.bf16.gmra.mrb[164].mxu1 %v11428_v61  ;;  %3083 = vmatprep.mubr.bf16.mxu0 %v11435_v10 }
 0x18c   :  { %3244 = vmatprep.mubr.bf16.mxu1 %v11437_v55 }
 0x18d   :  { %v2481_v22 = vpop.f32.mrb[60].mxu0 }
 0x18e   :  { %v2642_v23 = vpop.f32.mrb[60].mxu1  ;;  %v2483_v3 = vpop.f32.mrb[61].mxu0 }
 0x18f   :  { %v13598_v1 = vadd.f32 %v2642_v23, %v2481_v22  ;;  %v2644_v57 = vpop.f32.mrb[61].mxu1  ;;  %v2485_v25 = vpop.f32.mrb[62].mxu0  ;;  %v11464_v22 = vld [vmem:[%s15772_s0 + $0x208] ss:$16 sps:$4 sm:$0xff]  }
 0x190   :  { %v13606_v29 = vadd.f32 %v2644_v57, %v2483_v3  ;;  %v2646_v26 = vpop.f32.mrb[62].mxu1  ;;  %v2486_v12 = vpop.f32.mrb[63].mxu0 }
 0x191   :  { %v2647_v14 = vpop.f32.mrb[63].mxu1 }
 0x192   :  { %3084 = vmatmul.mubr.bf16.gmra.mrb[168].mxu0 %v11439_v24  ;;  %v11471_v24 = vld [vmem:[%s15772_s0 + $0x224] ss:$16 sps:$4 sm:$0xff]  }
 0x193   :  { %3245 = vmatmul.mubr.bf16.gmra.mrb[168].mxu1 %v11440_v28  ;;  %3091 = vmatprep.mubr.bf16.mxu0 %v11447_v11 }
 0x194   :  { %3252 = vmatprep.mubr.bf16.mxu1 %v11449_v34 }
 0x195   :  { %v2683_v30 = vpop.f32.mrb[64].mxu0 }
 0x196   :  { %v2844_v47 = vpop.f32.mrb[64].mxu1  ;;  %v2684_v32 = vadd.f32 %v2683_v30, %v13194_v60  ;;  %v2685_v33 = vpop.f32.mrb[65].mxu0  ;;  %v11461_v60 = vld [vmem:[%s15772_s0 + $0x20c] ss:$16 sps:$4 sm:$0xff]  }
 0x197   :  { %v2846_v38 = vpop.f32.mrb[65].mxu1  ;;  %v2686_v9 = vadd.f32 %v2685_v33, %v13196_v0  ;;  %v2687_v51 = vpop.f32.mrb[66].mxu0 }
 0x198   :  { %v2848_v16 = vpop.f32.mrb[66].mxu1  ;;  %v13628_v53 = vadd.f32 %v2844_v47, %v2684_v32  ;;  %v2688_v58 = vpop.f32.mrb[67].mxu0  ;;  %v11475_v47 = vld [vmem:[%s15772_s0 + $0x220] ss:$16 sps:$4 sm:$0xff]   ;;  %v11476_v32 = vld [vmem:[%s15772_s0 + $0x228] ss:$16 sps:$4 sm:$0xff]  }
 0x199   :  { %v2849_v61 = vpop.f32.mrb[67].mxu1  ;;  %v13630_v5 = vadd.f32 %v2846_v38, %v2686_v9 }
 0x19a   :  { %3092 = vmatmul.mubr.bf16.gmra.mrb[172].mxu0 %v11451_v41 }
 0x19b   :  { %3253 = vmatmul.mubr.bf16.gmra.mrb[172].mxu1 %v11452_v43  ;;  %3099 = vmatprep.mubr.bf16.mxu0 %v11459_v46  ;;  %v11483_v43 = vld [vmem:[%s15772_s0 + $0x244] ss:$16 sps:$4 sm:$0xff]  }
 0x19c   :  { %3260 = vmatprep.mubr.bf16.mxu1 %v11461_v60 }
 0x19d   :  { %v2691_v0 = vpop.f32.mrb[68].mxu0 }
 0x19e   :  { %v2852_v6 = vpop.f32.mrb[68].mxu1  ;;  %v2692_v10 = vadd.f32 %v2691_v0, %v13202_v50  ;;  %v2693_v55 = vpop.f32.mrb[69].mxu0  ;;  %v11473_v50 = vld [vmem:[%s15772_s0 + $0x22c] ss:$16 sps:$4 sm:$0xff]  }
 0x19f   :  { %v2854_v18 = vpop.f32.mrb[69].mxu1  ;;  %v2694_v23 = vadd.f32 %v2693_v55, %v13204_v52  ;;  %v2695_v3 = vpop.f32.mrb[70].mxu0 }
 0x1a0   :  { %v2856_v57 = vpop.f32.mrb[70].mxu1  ;;  %v13646_v28 = vadd.f32 %v2852_v6, %v2692_v10  ;;  %v2696_v25 = vpop.f32.mrb[71].mxu0  ;;  %v11487_v6 = vld [vmem:[%s15772_s0 + $0x240] ss:$16 sps:$4 sm:$0xff]   ;;  %v11488_v10 = vld [vmem:[%s15772_s0 + $0x248] ss:$16 sps:$4 sm:$0xff]  }
 0x1a1   :  { %v2857_v26 = vpop.f32.mrb[71].mxu1  ;;  %v13648_v11 = vadd.f32 %v2854_v18, %v2694_v23 }
 0x1a2   :  { %3100 = vmatmul.mubr.bf16.gmra.mrb[176].mxu0 %v11463_v19 }
 0x1a3   :  { %3261 = vmatmul.mubr.bf16.gmra.mrb[176].mxu1 %v11464_v22  ;;  %3107 = vmatprep.mubr.bf16.mxu0 %v11471_v24  ;;  %v11495_v22 = vld [vmem:[%s15772_s0 + $0x264] ss:$16 sps:$4 sm:$0xff]  }
 0x1a4   :  { %3268 = vmatprep.mubr.bf16.mxu1 %v11473_v50 }
 0x1a5   :  { %v2699_v52 = vpop.f32.mrb[72].mxu0 }
 0x1a6   :  { %v2860_v34 = vpop.f32.mrb[72].mxu1  ;;  %v2700_v12 = vadd.f32 %v2699_v52, %v13210_v56  ;;  %v2701_v14 = vpop.f32.mrb[73].mxu0  ;;  %v11485_v56 = vld [vmem:[%s15772_s0 + $0x24c] ss:$16 sps:$4 sm:$0xff]  }
 0x1a7   :  { %v2862_v30 = vpop.f32.mrb[73].mxu1  ;;  %v2702_v33 = vadd.f32 %v2701_v14, %v13212_v2  ;;  %v2703_v38 = vpop.f32.mrb[74].mxu0 }
 0x1a8   :  { %v2864_v41 = vpop.f32.mrb[74].mxu1  ;;  %v13664_v9 = vadd.f32 %v2860_v34, %v2700_v12  ;;  %v2704_v51 = vpop.f32.mrb[75].mxu0  ;;  %v11499_v34 = vld [vmem:[%s15772_s0 + $0x260] ss:$16 sps:$4 sm:$0xff]   ;;  %v11500_v12 = vld [vmem:[%s15772_s0 + $0x268] ss:$16 sps:$4 sm:$0xff]  }
 0x1a9   :  { %v2865_v16 = vpop.f32.mrb[75].mxu1  ;;  %v13666_v46 = vadd.f32 %v2862_v30, %v2702_v33 }
 0x1aa   :  { %3108 = vmatmul.mubr.bf16.gmra.mrb[180].mxu0 %v11475_v47 }
 0x1ab   :  { %3269 = vmatmul.mubr.bf16.gmra.mrb[180].mxu1 %v11476_v32  ;;  %3115 = vmatprep.mubr.bf16.mxu0 %v11483_v43 }
 0x1ac   :  { %3276 = vmatprep.mubr.bf16.mxu1 %v11485_v56 }
 0x1ad   :  { %v2707_v2 = vpop.f32.mrb[76].mxu0 }
 0x1ae   :  { %v2868_v60 = vpop.f32.mrb[76].mxu1  ;;  %v2708_v58 = vadd.f32 %v2707_v2, %v13218_v44  ;;  %v2709_v61 = vpop.f32.mrb[77].mxu0  ;;  %v11497_v44 = vld [vmem:[%s15772_s0 + $0x26c] ss:$16 sps:$4 sm:$0xff]  }
 0x1af   :  { %v2870_v0 = vpop.f32.mrb[77].mxu1  ;;  %v2710_v55 = vadd.f32 %v2709_v61, %v13226_v35  ;;  %v2711_v18 = vpop.f32.mrb[78].mxu0  ;;  %v11507_v61 = vld [vmem:[%s15771_s1 + $0x700] ss:$8 sps:$4 sm:$0xff]  }
 0x1b0   :  { %v2872_v19 = vpop.f32.mrb[78].mxu1  ;;  %v13682_v23 = vadd.f32 %v2868_v60, %v2708_v58  ;;  %v2712_v3 = vpop.f32.mrb[79].mxu0 }
 0x1b1   :  { %v2873_v57 = vpop.f32.mrb[79].mxu1  ;;  %v13684_v24 = vadd.f32 %v2870_v0, %v2710_v55  ;;  %v11510_v0 = vld [vmem:[%s15771_s1 + $0xd00] ss:$8 sps:$4 sm:$0xff]   ;;  %v12009_v3 = vld [vmem:[%s15772_s0 + $0x24] ss:$16 sps:$4 sm:$0xff]  }
 0x1b2   :  { %3116 = vmatmul.mubr.bf16.gmra.mrb[184].mxu0 %v11487_v6  ;;  %v12008_v19 = vld [vmem:[%s15772_s0] ss:$16 sps:$4 sm:$0xff]   ;;  %v11521_v57 = vld [vmem:[%s15771_s1 + $0x724] ss:$8 sps:$4 sm:$0xff]  }
 0x1b3   :  { %3277 = vmatmul.mubr.bf16.gmra.mrb[184].mxu1 %v11488_v10  ;;  %3123 = vmatprep.mubr.bf16.mxu0 %v11495_v22  ;;  %v11513_v22 = vld [vmem:[%s15771_s1 + $0x710] ss:$8 sps:$4 sm:$0xff]  }
 0x1b4   :  { %3284 = vmatprep.mubr.bf16.mxu1 %v11497_v44  ;;  %v11516_v44 = vld [vmem:[%s15771_s1 + $0xd10] ss:$8 sps:$4 sm:$0xff]  }
 0x1b5   :  { %v2715_v35 = vpop.f32.mrb[80].mxu0 }
 0x1b6   :  { %v2876_v50 = vpop.f32.mrb[80].mxu1  ;;  %v2716_v25 = vadd.f32 %v2715_v35, %v13236_v31  ;;  %v2717_v26 = vpop.f32.mrb[81].mxu0  ;;  %v12007_v31 = vld [vmem:[%s15772_s0 + $0x4] ss:$16 sps:$4 sm:$0xff]  }
 0x1b7   :  { %v2878_v52 = vpop.f32.mrb[81].mxu1  ;;  %v2718_v14 = vadd.f32 %v2717_v26, %v13238_v48  ;;  %v2719_v30 = vpop.f32.mrb[82].mxu0  ;;  %v11524_v35 = vld [vmem:[%s15771_s1 + $0xd24] ss:$8 sps:$4 sm:$0xff]  }
 0x1b8   :  { %v2880_v47 = vpop.f32.mrb[82].mxu1  ;;  %v13694_v32 = vadd.f32 %v2876_v50, %v2716_v25  ;;  %v2720_v33 = vpop.f32.mrb[83].mxu0 }
 0x1b9   :  { %v2881_v38 = vpop.f32.mrb[83].mxu1  ;;  %v13696_v41 = vadd.f32 %v2878_v52, %v2718_v14 }
 0x1ba   :  { %3124 = vmatmul.mubr.bf16.gmra.mrb[188].mxu0 %v11499_v34 }
 0x1bb   :  { %3285 = vmatmul.mubr.bf16.gmra.mrb[188].mxu1 %v11500_v12  ;;  %4478 = vmatprep.mubr.bf16.mxu0 %v12007_v31 }
 0x1bc   :  { %7014 = vmatprep.mubr.bf16.mxu1 %v12007_v31  ;;  %v11519_v31 = vld [vmem:[%s15771_s1 + $0x720] ss:$8 sps:$4 sm:$0xff]  }
 0x1bd   :  { %v2723_v43 = vpop.f32.mrb[84].mxu0 }
 0x1be   :  { %v2884_v56 = vpop.f32.mrb[84].mxu1  ;;  %v2724_v48 = vadd.f32 %v2723_v43, %v13258_v17  ;;  %v2725_v51 = vpop.f32.mrb[85].mxu0  ;;  %v11515_v17 = vld [vmem:[%s15771_s1 + $0x714] ss:$8 sps:$4 sm:$0xff]  }
 0x1bf   :  { %v2886_v16 = vpop.f32.mrb[85].mxu1  ;;  %v2726_v2 = vadd.f32 %v2725_v51, %v13266_v59  ;;  %v2727_v60 = vpop.f32.mrb[86].mxu0  ;;  %v11518_v59 = vld [vmem:[%s15771_s1 + $0xd14] ss:$8 sps:$4 sm:$0xff]  }
 0x1c0   :  { %v2888_v58 = vpop.f32.mrb[86].mxu1  ;;  %v13709_v6 = vadd.f32 %v2884_v56, %v2724_v48  ;;  %v2728_v10 = vpop.f32.mrb[87].mxu0  ;;  %v11530_v56 = vld [vmem:[%s15771_s1 + $0xd34] ss:$8 sps:$4 sm:$0xff]   ;;  %v12010_v48 = vld [vmem:[%s15772_s0 + $0x20] ss:$16 sps:$4 sm:$0xff]  }
 0x1c1   :  { %v2889_v55 = vpop.f32.mrb[87].mxu1  ;;  %v13711_v18 = vadd.f32 %v2886_v16, %v2726_v2  ;;  %v12011_v51 = vld [vmem:[%s15772_s0 + $0x44] ss:$16 sps:$4 sm:$0xff]   ;;  %v11525_v16 = vld [vmem:[%s15771_s1 + $0x730] ss:$8 sps:$4 sm:$0xff]  }
 0x1c2   :  { %4479 = vmatmul.mubr.bf16.vlgmr.msra.gmra.mrb[192].mxu0 %v12008_v19  ;;  %v11528_v2 = vld [vmem:[%s15771_s1 + $0xd30] ss:$8 sps:$4 sm:$0xff]  }
 0x1c3   :  { %7015 = vmatmul.mubr.bf16.vlgmr.msra.gmra.mrb[192].mxu1 %v12008_v19  ;;  %4640 = vmatpush1.bf16.msra.mxu0 %v11507_v61  ;;  %v11533_v61 = vld [vmem:[%s15771_s1 + $0x744] ss:$8 sps:$4 sm:$0xff]  }
 0x1c4   :  { %7176 = vmatpush1.bf16.msra.mxu1 %v11510_v0  ;;  %4488 = vmatprep.mubr.bf16.mxu0 %v12009_v3  ;;  %v11536_v0 = vld [vmem:[%s15771_s1 + $0xd44] ss:$8 sps:$4 sm:$0xff]  }
 0x1c5   :  { %7024 = vmatprep.mubr.bf16.mxu1 %v12009_v3  ;;  %v2731_v50 = vpop.f32.mrb[88].mxu0  ;;  %4641 = vmatprep.subr.bf16.mxu0 %v11515_v17 }
 0x1c6   :  { %v2892_v25 = vpop.f32.mrb[88].mxu1  ;;  %7177 = vmatprep.subr.bf16.mxu1 %v11518_v59  ;;  %v2732_v26 = vadd.f32 %v2731_v50, %v13298_v62  ;;  %v2733_v52 = vpop.f32.mrb[89].mxu0  ;;  %v11522_v62 = vld [vmem:[%s15771_s1 + $0xd20] ss:$8 sps:$4 sm:$0xff]  }
 0x1c7   :  { %v2894_v34 = vpop.f32.mrb[89].mxu1  ;;  %v2734_v12 = vadd.f32 %v2733_v52, %v13306_v27  ;;  %v2735_v14 = vpop.f32.mrb[90].mxu0  ;;  %4642 = vmatpush1.bf16.msra.mxu0 %v11513_v22  ;;  %v11527_v27 = vld [vmem:[%s15771_s1 + $0x734] ss:$8 sps:$4 sm:$0xff]  }
 0x1c8   :  { %v2896_v30 = vpop.f32.mrb[90].mxu1  ;;  %7178 = vmatpush1.bf16.msra.mxu1 %v11516_v44  ;;  %v13739_v47 = vadd.f32 %v2892_v25, %v2732_v26  ;;  %v2736_v33 = vpop.f32.mrb[91].mxu0  ;;  %4643 = vmatprep.subr.bf16.mxu0 %v11521_v57  ;;  %v11542_v25 = vld [vmem:[%s15771_s1 + $0xd54] ss:$8 sps:$4 sm:$0xff]   ;;  %v12012_v26 = vld [vmem:[%s15772_s0 + $0x40] ss:$16 sps:$4 sm:$0xff]  }
 0x1c9   :  { %v2897_v38 = vpop.f32.mrb[91].mxu1  ;;  %7179 = vmatprep.subr.bf16.mxu1 %v11524_v35  ;;  %v13747_v43 = vadd.f32 %v2894_v34, %v2734_v12  ;;  %v11531_v35 = vld [vmem:[%s15771_s1 + $0x740] ss:$8 sps:$4 sm:$0xff]   ;;  %v12013_v52 = vld [vmem:[%s15772_s0 + $0x64] ss:$16 sps:$4 sm:$0xff]  }
 0x1ca   :  { %4489 = vmatmul.mubr.bf16.gmra.mrb[196].mxu0 %v12010_v48  ;;  %v11537_v34 = vld [vmem:[%s15771_s1 + $0x750] ss:$8 sps:$4 sm:$0xff]   ;;  %v11545_v33 = vld [vmem:[%s15771_s1 + $0x764] ss:$8 sps:$4 sm:$0xff]  }
 0x1cb   :  { %7025 = vmatmul.mubr.bf16.gmra.mrb[196].mxu1 %v12010_v48  ;;  %4498 = vmatprep.mubr.bf16.mxu0 %v12011_v51  ;;  %v11540_v12 = vld [vmem:[%s15771_s1 + $0xd50] ss:$8 sps:$4 sm:$0xff]   ;;  %v11548_v38 = vld [vmem:[%s15771_s1 + $0xd64] ss:$8 sps:$4 sm:$0xff]  }
 0x1cc   :  { %7034 = vmatprep.mubr.bf16.mxu1 %v12011_v51  ;;  %4644 = vmatpush1.bf16.msra.mxu0 %v11519_v31 }
 0x1cd   :  { %7180 = vmatpush1.bf16.msra.mxu1 %v11522_v62  ;;  %v2739_v60 = vpop.f32.mrb[92].mxu0  ;;  %4645 = vmatprep.subr.bf16.mxu0 %v11527_v27 }
 0x1ce   :  { %v2900_v58 = vpop.f32.mrb[92].mxu1  ;;  %7181 = vmatprep.subr.bf16.mxu1 %v11530_v56  ;;  %v2740_v10 = vadd.f32 %v2739_v60, %v13338_v8  ;;  %v2741_v55 = vpop.f32.mrb[93].mxu0  ;;  %v11534_v8 = vld [vmem:[%s15771_s1 + $0xd40] ss:$8 sps:$4 sm:$0xff]  }
 0x1cf   :  { %v2902_v17 = vpop.f32.mrb[93].mxu1  ;;  %v2742_v59 = vadd.f32 %v2741_v55, %v13346_v42  ;;  %v2743_v19 = vpop.f32.mrb[94].mxu0  ;;  %v11539_v42 = vld [vmem:[%s15771_s1 + $0x754] ss:$8 sps:$4 sm:$0xff]  }
 0x1d0   :  { %v2904_v22 = vpop.f32.mrb[94].mxu1  ;;  %v13775_v44 = vadd.f32 %v2900_v58, %v2740_v10  ;;  %v2744_v3 = vpop.f32.mrb[95].mxu0  ;;  %4646 = vmatpush1.bf16.msra.mxu0 %v11525_v16  ;;  %v11543_v58 = vld [vmem:[%s15771_s1 + $0x760] ss:$8 sps:$4 sm:$0xff]   ;;  %v12015_v55 = vld [vmem:[%s15772_s0 + $0x84] ss:$16 sps:$4 sm:$0xff]  }
 0x1d1   :  { %v2905_v57 = vpop.f32.mrb[95].mxu1  ;;  %7182 = vmatpush1.bf16.msra.mxu1 %v11528_v2  ;;  %v13783_v50 = vadd.f32 %v2902_v17, %v2742_v59  ;;  %4647 = vmatprep.subr.bf16.mxu0 %v11533_v61  ;;  %v12014_v10 = vld [vmem:[%s15772_s0 + $0x60] ss:$16 sps:$4 sm:$0xff]   ;;  %v11557_v3 = vld [vmem:[%s15771_s1 + $0x784] ss:$8 sps:$4 sm:$0xff]  }
 0x1d2   :  { %7183 = vmatprep.subr.bf16.mxu1 %v11536_v0  ;;  %4499 = vmatmul.mubr.bf16.gmra.mrb[200].mxu0 %v12012_v26  ;;  %v11554_v0 = vld [vmem:[%s15771_s1 + $0xd74] ss:$8 sps:$4 sm:$0xff]   ;;  %v11549_v17 = vld [vmem:[%s15771_s1 + $0x770] ss:$8 sps:$4 sm:$0xff]   ;;  %v11560_v57 = vld [vmem:[%s15771_s1 + $0xd84] ss:$8 sps:$4 sm:$0xff]  }
 0x1d3   :  { %7035 = vmatmul.mubr.bf16.gmra.mrb[200].mxu1 %v12012_v26  ;;  %4508 = vmatprep.mubr.bf16.mxu0 %v12013_v52  ;;  %v11552_v59 = vld [vmem:[%s15771_s1 + $0xd70] ss:$8 sps:$4 sm:$0xff]  }
 0x1d4   :  { %7044 = vmatprep.mubr.bf16.mxu1 %v12013_v52  ;;  %4648 = vmatpush1.bf16.msra.mxu0 %v11531_v35 }
 0x1d5   :  { %7184 = vmatpush1.bf16.msra.mxu1 %v11534_v8  ;;  %v2747_v14 = vpop.f32.mrb[96].mxu0  ;;  %4649 = vmatprep.subr.bf16.mxu0 %v11539_v42 }
 0x1d6   :  { %v2908_v30 = vpop.f32.mrb[96].mxu1  ;;  %7185 = vmatprep.subr.bf16.mxu1 %v11542_v25  ;;  %v2748_v31 = vadd.f32 %v2747_v14, %v13378_v54  ;;  %v2749_v62 = vpop.f32.mrb[97].mxu0  ;;  %v11546_v54 = vld [vmem:[%s15771_s1 + $0xd60] ss:$8 sps:$4 sm:$0xff]  }
 0x1d7   :  { %v2910_v27 = vpop.f32.mrb[97].mxu1  ;;  %v2750_v56 = vadd.f32 %v2749_v62, %v13386_v21  ;;  %v2751_v48 = vpop.f32.mrb[98].mxu0  ;;  %v11551_v21 = vld [vmem:[%s15771_s1 + $0x774] ss:$8 sps:$4 sm:$0xff]  }
 0x1d8   :  { %v2912_v51 = vpop.f32.mrb[98].mxu1  ;;  %v13811_v16 = vadd.f32 %v2908_v30, %v2748_v31  ;;  %v2752_v2 = vpop.f32.mrb[99].mxu0  ;;  %4650 = vmatpush1.bf16.msra.mxu0 %v11537_v34  ;;  %v11555_v30 = vld [vmem:[%s15771_s1 + $0x780] ss:$8 sps:$4 sm:$0xff]   ;;  %v12017_v62 = vld [vmem:[%s15772_s0 + $0xa4] ss:$16 sps:$4 sm:$0xff]  }
 0x1d9   :  { %v2913_v60 = vpop.f32.mrb[99].mxu1  ;;  %7186 = vmatpush1.bf16.msra.mxu1 %v11540_v12  ;;  %v13819_v61 = vadd.f32 %v2910_v27, %v2750_v56  ;;  %4651 = vmatprep.subr.bf16.mxu0 %v11545_v33  ;;  %v12016_v31 = vld [vmem:[%s15772_s0 + $0x80] ss:$16 sps:$4 sm:$0xff]   ;;  %v11569_v2 = vld [vmem:[%s15771_s1 + $0x7a4] ss:$8 sps:$4 sm:$0xff]  }
 0x1da   :  { %7187 = vmatprep.subr.bf16.mxu1 %v11548_v38  ;;  %4509 = vmatmul.mubr.bf16.gmra.mrb[204].mxu0 %v12014_v10  ;;  %v11566_v38 = vld [vmem:[%s15771_s1 + $0xd94] ss:$8 sps:$4 sm:$0xff]   ;;  %v11561_v27 = vld [vmem:[%s15771_s1 + $0x790] ss:$8 sps:$4 sm:$0xff]   ;;  %v11572_v60 = vld [vmem:[%s15771_s1 + $0xda4] ss:$8 sps:$4 sm:$0xff]  }
 0x1db   :  { %7045 = vmatmul.mubr.bf16.gmra.mrb[204].mxu1 %v12014_v10  ;;  %4518 = vmatprep.mubr.bf16.mxu0 %v12015_v55  ;;  %v11564_v56 = vld [vmem:[%s15771_s1 + $0xd90] ss:$8 sps:$4 sm:$0xff]  }
 0x1dc   :  { %7054 = vmatprep.mubr.bf16.mxu1 %v12015_v55  ;;  %4652 = vmatpush1.bf16.msra.mxu0 %v11543_v58 }
 0x1dd   :  { %7188 = vmatpush1.bf16.msra.mxu1 %v11546_v54  ;;  %v2755_v19 = vpop.f32.mrb[100].mxu0  ;;  %4653 = vmatprep.subr.bf16.mxu0 %v11551_v21 }
 0x1de   :  { %v2916_v22 = vpop.f32.mrb[100].mxu1  ;;  %7189 = vmatprep.subr.bf16.mxu1 %v11554_v0  ;;  %v2756_v35 = vadd.f32 %v2755_v19, %v13418_v20  ;;  %v2757_v8 = vpop.f32.mrb[101].mxu0  ;;  %v11558_v20 = vld [vmem:[%s15771_s1 + $0xd80] ss:$8 sps:$4 sm:$0xff]  }
 0x1df   :  { %v2918_v42 = vpop.f32.mrb[101].mxu1  ;;  %v2758_v25 = vadd.f32 %v2757_v8, %v13426_v40  ;;  %v2759_v26 = vpop.f32.mrb[102].mxu0  ;;  %v11563_v40 = vld [vmem:[%s15771_s1 + $0x794] ss:$8 sps:$4 sm:$0xff]  }
 0x1e0   :  { %v2920_v52 = vpop.f32.mrb[102].mxu1  ;;  %v13847_v34 = vadd.f32 %v2916_v22, %v2756_v35  ;;  %v2760_v12 = vpop.f32.mrb[103].mxu0  ;;  %4654 = vmatpush1.bf16.msra.mxu0 %v11549_v17  ;;  %v11567_v22 = vld [vmem:[%s15771_s1 + $0x7a0] ss:$8 sps:$4 sm:$0xff]   ;;  %v12019_v8 = vld [vmem:[%s15772_s0 + $0xc4] ss:$16 sps:$4 sm:$0xff]  }
 0x1e1   :  { %v2921_v14 = vpop.f32.mrb[103].mxu1  ;;  %7190 = vmatpush1.bf16.msra.mxu1 %v11552_v59  ;;  %v13855_v33 = vadd.f32 %v2918_v42, %v2758_v25  ;;  %4655 = vmatprep.subr.bf16.mxu0 %v11557_v3  ;;  %v12018_v35 = vld [vmem:[%s15772_s0 + $0xa0] ss:$16 sps:$4 sm:$0xff]   ;;  %v11581_v12 = vld [vmem:[%s15771_s1 + $0x7c4] ss:$8 sps:$4 sm:$0xff]  }
 0x1e2   :  { %7191 = vmatprep.subr.bf16.mxu1 %v11560_v57  ;;  %4519 = vmatmul.mubr.bf16.gmra.mrb[208].mxu0 %v12016_v31  ;;  %v11578_v57 = vld [vmem:[%s15771_s1 + $0xdb4] ss:$8 sps:$4 sm:$0xff]   ;;  %v11573_v42 = vld [vmem:[%s15771_s1 + $0x7b0] ss:$8 sps:$4 sm:$0xff]   ;;  %v11584_v14 = vld [vmem:[%s15771_s1 + $0xdc4] ss:$8 sps:$4 sm:$0xff]  }
 0x1e3   :  { %7055 = vmatmul.mubr.bf16.gmra.mrb[208].mxu1 %v12016_v31  ;;  %4528 = vmatprep.mubr.bf16.mxu0 %v12017_v62  ;;  %v11576_v25 = vld [vmem:[%s15771_s1 + $0xdb0] ss:$8 sps:$4 sm:$0xff]  }
 0x1e4   :  { %7064 = vmatprep.mubr.bf16.mxu1 %v12017_v62  ;;  %4656 = vmatpush1.bf16.msra.mxu0 %v11555_v30 }
 0x1e5   :  { %7192 = vmatpush1.bf16.msra.mxu1 %v11558_v20  ;;  %v2763_v48 = vpop.f32.mrb[104].mxu0  ;;  %4657 = vmatprep.subr.bf16.mxu0 %v11563_v40 }
 0x1e6   :  { %v2924_v51 = vpop.f32.mrb[104].mxu1  ;;  %7193 = vmatprep.subr.bf16.mxu1 %v11566_v38  ;;  %v2764_v58 = vadd.f32 %v2763_v48, %v13452_v4  ;;  %v2765_v54 = vpop.f32.mrb[105].mxu0  ;;  %v11570_v4 = vld [vmem:[%s15771_s1 + $0xda0] ss:$8 sps:$4 sm:$0xff]  }
 0x1e7   :  { %v2926_v21 = vpop.f32.mrb[105].mxu1  ;;  %v2766_v0 = vadd.f32 %v2765_v54, %v13460_v13  ;;  %v2767_v10 = vpop.f32.mrb[106].mxu0  ;;  %v11575_v13 = vld [vmem:[%s15771_s1 + $0x7b4] ss:$8 sps:$4 sm:$0xff]  }
 0x1e8   :  { %v2928_v55 = vpop.f32.mrb[106].mxu1  ;;  %v13883_v17 = vadd.f32 %v2924_v51, %v2764_v58  ;;  %v2768_v59 = vpop.f32.mrb[107].mxu0  ;;  %4658 = vmatpush1.bf16.msra.mxu0 %v11561_v27  ;;  %v11579_v51 = vld [vmem:[%s15771_s1 + $0x7c0] ss:$8 sps:$4 sm:$0xff]   ;;  %v12021_v54 = vld [vmem:[%s15772_s0 + $0xe4] ss:$16 sps:$4 sm:$0xff]  }
 0x1e9   :  { %v2929_v19 = vpop.f32.mrb[107].mxu1  ;;  %7194 = vmatpush1.bf16.msra.mxu1 %v11564_v56  ;;  %v13891_v3 = vadd.f32 %v2926_v21, %v2766_v0  ;;  %4659 = vmatprep.subr.bf16.mxu0 %v11569_v2  ;;  %v12020_v58 = vld [vmem:[%s15772_s0 + $0xc0] ss:$16 sps:$4 sm:$0xff]   ;;  %v11593_v59 = vld [vmem:[%s15771_s1 + $0x7e4] ss:$8 sps:$4 sm:$0xff]  }
 0x1ea   :  { %7195 = vmatprep.subr.bf16.mxu1 %v11572_v60  ;;  %4529 = vmatmul.mubr.bf16.gmra.mrb[212].mxu0 %v12018_v35  ;;  %v11590_v60 = vld [vmem:[%s15771_s1 + $0xdd4] ss:$8 sps:$4 sm:$0xff]   ;;  %v11585_v21 = vld [vmem:[%s15771_s1 + $0x7d0] ss:$8 sps:$4 sm:$0xff]   ;;  %v11596_v19 = vld [vmem:[%s15771_s1 + $0xde4] ss:$8 sps:$4 sm:$0xff]  }
 0x1eb   :  { %7065 = vmatmul.mubr.bf16.gmra.mrb[212].mxu1 %v12018_v35  ;;  %4538 = vmatprep.mubr.bf16.mxu0 %v12019_v8  ;;  %v11588_v0 = vld [vmem:[%s15771_s1 + $0xdd0] ss:$8 sps:$4 sm:$0xff]  }
 0x1ec   :  { %7074 = vmatprep.mubr.bf16.mxu1 %v12019_v8  ;;  %4660 = vmatpush1.bf16.msra.mxu0 %v11567_v22 }
 0x1ed   :  { %7196 = vmatpush1.bf16.msra.mxu1 %v11570_v4  ;;  %v2771_v26 = vpop.f32.mrb[108].mxu0  ;;  %4661 = vmatprep.subr.bf16.mxu0 %v11575_v13 }
 0x1ee   :  { %v2932_v52 = vpop.f32.mrb[108].mxu1  ;;  %7197 = vmatprep.subr.bf16.mxu1 %v11578_v57  ;;  %v2772_v30 = vadd.f32 %v2771_v26, %v13492_v36  ;;  %v2773_v20 = vpop.f32.mrb[109].mxu0  ;;  %v11582_v36 = vld [vmem:[%s15771_s1 + $0xdc0] ss:$8 sps:$4 sm:$0xff]  }
 0x1ef   :  { %v2934_v40 = vpop.f32.mrb[109].mxu1  ;;  %v2774_v38 = vadd.f32 %v2773_v20, %v13500_v45  ;;  %v2775_v31 = vpop.f32.mrb[110].mxu0  ;;  %v11587_v45 = vld [vmem:[%s15771_s1 + $0x7d4] ss:$8 sps:$4 sm:$0xff]  }
 0x1f0   :  { %v2936_v62 = vpop.f32.mrb[110].mxu1  ;;  %v13919_v27 = vadd.f32 %v2932_v52, %v2772_v30  ;;  %v2776_v56 = vpop.f32.mrb[111].mxu0  ;;  %4662 = vmatpush1.bf16.msra.mxu0 %v11573_v42  ;;  %v11591_v52 = vld [vmem:[%s15771_s1 + $0x7e0] ss:$8 sps:$4 sm:$0xff]   ;;  %v12023_v20 = vld [vmem:[%s15772_s0 + $0x144] ss:$16 sps:$4 sm:$0xff]  }
 0x1f1   :  { %v2937_v48 = vpop.f32.mrb[111].mxu1  ;;  %7198 = vmatpush1.bf16.msra.mxu1 %v11576_v25  ;;  %v13927_v2 = vadd.f32 %v2934_v40, %v2774_v38  ;;  %4663 = vmatprep.subr.bf16.mxu0 %v11581_v12  ;;  %v12022_v30 = vld [vmem:[%s15772_s0 + $0xe0] ss:$16 sps:$4 sm:$0xff]   ;;  %v11605_v56 = vld [vmem:[%s15771_s1 + $0x804] ss:$8 sps:$4 sm:$0xff]  }
 0x1f2   :  { %7199 = vmatprep.subr.bf16.mxu1 %v11584_v14  ;;  %4539 = vmatmul.mubr.bf16.gmra.mrb[216].mxu0 %v12020_v58  ;;  %v11602_v14 = vld [vmem:[%s15771_s1 + $0xdf4] ss:$8 sps:$4 sm:$0xff]   ;;  %v11597_v40 = vld [vmem:[%s15771_s1 + $0x7f0] ss:$8 sps:$4 sm:$0xff]   ;;  %v11608_v48 = vld [vmem:[%s15771_s1 + $0xe04] ss:$8 sps:$4 sm:$0xff]  }
 0x1f3   :  { %7075 = vmatmul.mubr.bf16.gmra.mrb[216].mxu1 %v12020_v58  ;;  %4548 = vmatprep.mubr.bf16.mxu0 %v12021_v54  ;;  %v11600_v38 = vld [vmem:[%s15771_s1 + $0xdf0] ss:$8 sps:$4 sm:$0xff]  }
 0x1f4   :  { %7084 = vmatprep.mubr.bf16.mxu1 %v12021_v54  ;;  %4664 = vmatpush1.bf16.msra.mxu0 %v11579_v51 }
 0x1f5   :  { %7200 = vmatpush1.bf16.msra.mxu1 %v11582_v36  ;;  %v2779_v10 = vpop.f32.mrb[112].mxu0  ;;  %4665 = vmatprep.subr.bf16.mxu0 %v11587_v45 }
 0x1f6   :  { %v2940_v55 = vpop.f32.mrb[112].mxu1  ;;  %7201 = vmatprep.subr.bf16.mxu1 %v11590_v60  ;;  %v2780_v22 = vadd.f32 %v2779_v10, %v13538_v7  ;;  %v2781_v4 = vpop.f32.mrb[113].mxu0  ;;  %v11594_v7 = vld [vmem:[%s15771_s1 + $0xde0] ss:$8 sps:$4 sm:$0xff]  }
 0x1f7   :  { %v2942_v13 = vpop.f32.mrb[113].mxu1  ;;  %v2782_v57 = vadd.f32 %v2781_v4, %v13546_v15  ;;  %v2783_v35 = vpop.f32.mrb[114].mxu0  ;;  %v11599_v15 = vld [vmem:[%s15771_s1 + $0x7f4] ss:$8 sps:$4 sm:$0xff]  }
 0x1f8   :  { %v2944_v8 = vpop.f32.mrb[114].mxu1  ;;  %v13955_v42 = vadd.f32 %v2940_v55, %v2780_v22  ;;  %v2784_v25 = vpop.f32.mrb[115].mxu0  ;;  %4666 = vmatpush1.bf16.msra.mxu0 %v11585_v21 }
 0x1f9   :  { %v2945_v26 = vpop.f32.mrb[115].mxu1  ;;  %7202 = vmatpush1.bf16.msra.mxu1 %v11588_v0  ;;  %v13963_v12 = vadd.f32 %v2942_v13, %v2782_v57  ;;  %4667 = vmatprep.subr.bf16.mxu0 %v11593_v59 }
 0x1fa   :  { %7203 = vmatprep.subr.bf16.mxu1 %v11596_v19  ;;  %4549 = vmatmul.mubr.bf16.gmra.mrb[220].mxu0 %v12022_v30 }
 0x1fb   :  { %7085 = vmatmul.mubr.bf16.gmra.mrb[220].mxu1 %v12022_v30  ;;  %4558 = vmatprep.mubr.bf16.mxu0 %v12023_v20 }
 0x1fc   :  { %7094 = vmatprep.mubr.bf16.mxu1 %v12023_v20  ;;  %4668 = vmatpush1.bf16.msra.mxu0 %v11591_v52 }
 0x1fd   :  { %7204 = vmatpush1.bf16.msra.mxu1 %v11594_v7  ;;  %v2787_v31 = vpop.f32.mrb[116].mxu0  ;;  %4669 = vmatprep.subr.bf16.mxu0 %v11599_v15  ;;  %v12026_v15 = vld [vmem:[%s15772_s0 + $0x160] ss:$16 sps:$4 sm:$0xff]  }
 0x1fe   :  { %v2948_v62 = vpop.f32.mrb[116].mxu1  ;;  %7205 = vmatprep.subr.bf16.mxu1 %v11602_v14  ;;  %v2788_v51 = vadd.f32 %v2787_v31, %v13566_v37  ;;  %v2789_v36 = vpop.f32.mrb[117].mxu0  ;;  %v12024_v37 = vld [vmem:[%s15772_s0 + $0x140] ss:$16 sps:$4 sm:$0xff]  }
 0x1ff   :  { %v2950_v45 = vpop.f32.mrb[117].mxu1  ;;  %v2790_v60 = vadd.f32 %v2789_v36, %v13574_v39  ;;  %v2791_v58 = vpop.f32.mrb[118].mxu0  ;;  %v12025_v39 = vld [vmem:[%s15772_s0 + $0x164] ss:$16 sps:$4 sm:$0xff]  }
 0x200   :  { %v2952_v54 = vpop.f32.mrb[118].mxu1  ;;  %v13991_v21 = vadd.f32 %v2948_v62, %v2788_v51  ;;  %v2792_v0 = vpop.f32.mrb[119].mxu0  ;;  %4670 = vmatpush1.bf16.msra.mxu0 %v11597_v40 }
 0x201   :  { %v2953_v10 = vpop.f32.mrb[119].mxu1  ;;  %7206 = vmatpush1.bf16.msra.mxu1 %v11600_v38  ;;  %v13993_v55 = vadd.f32 %v2950_v45, %v2790_v60  ;;  %4832 = vmatprep.subr.bf16.mxu0 %v11605_v56  ;;  %v12028_v45 = vld [vmem:[%s15772_s0 + $0x180] ss:$16 sps:$4 sm:$0xff]  }
 0x202   :  { %7368 = vmatprep.subr.bf16.mxu1 %v11608_v48  ;;  %4559 = vmatmul.mubr.bf16.gmra.mrb[224].mxu0 %v12024_v37 }
 0x203   :  { %7095 = vmatmul.mubr.bf16.gmra.mrb[224].mxu1 %v12024_v37  ;;  %4568 = vmatprep.mubr.bf16.mxu0 %v12025_v39 }
 0x204   :  { %7104 = vmatprep.mubr.bf16.mxu1 %v12025_v39 }
 0x205   :  { %v2795_v59 = vpop.f32.mrb[120].mxu0 }
 0x206   :  { %v2956_v19 = vpop.f32.mrb[120].mxu1  ;;  %v2796_v22 = vadd.f32 %v2795_v59, %v13582_v49  ;;  %v2797_v4 = vpop.f32.mrb[121].mxu0  ;;  %v12027_v49 = vld [vmem:[%s15772_s0 + $0x184] ss:$16 sps:$4 sm:$0xff]  }
 0x207   :  { %v2958_v13 = vpop.f32.mrb[121].mxu1  ;;  %v2798_v57 = vadd.f32 %v2797_v4, %v13590_v63  ;;  %v2799_v35 = vpop.f32.mrb[122].mxu0 }
 0x208   :  { %v2960_v8 = vpop.f32.mrb[122].mxu1  ;;  %v14003_v25 = vadd.f32 %v2956_v19, %v2796_v22  ;;  %v2800_v26 = vpop.f32.mrb[123].mxu0 }
 0x209   :  { %v2961_v52 = vpop.f32.mrb[123].mxu1  ;;  %v14005_v7 = vadd.f32 %v2958_v13, %v2798_v57  ;;  %v12030_v13 = vld [vmem:[%s15772_s0 + $0x1a0] ss:$16 sps:$4 sm:$0xff]  }
 0x20a   :  { %4569 = vmatmul.mubr.bf16.gmra.mrb[228].mxu0 %v12026_v15 }
 0x20b   :  { %7105 = vmatmul.mubr.bf16.gmra.mrb[228].mxu1 %v12026_v15  ;;  %4578 = vmatprep.mubr.bf16.mxu0 %v12027_v49 }
 0x20c   :  { %7114 = vmatprep.mubr.bf16.mxu1 %v12027_v49 }
 0x20d   :  { %v2803_v63 = vpop.f32.mrb[124].mxu0 }
 0x20e   :  { %v2964_v14 = vpop.f32.mrb[124].mxu1  ;;  %v2804_v30 = vadd.f32 %v2803_v63, %v13598_v1  ;;  %v2805_v20 = vpop.f32.mrb[125].mxu0  ;;  %v12029_v1 = vld [vmem:[%s15772_s0 + $0x1a4] ss:$16 sps:$4 sm:$0xff]  }
 0x20f   :  { %v2966_v40 = vpop.f32.mrb[125].mxu1  ;;  %v2806_v38 = vadd.f32 %v2805_v20, %v13606_v29  ;;  %v2807_v31 = vpop.f32.mrb[126].mxu0 }
 0x210   :  { %v2968_v62 = vpop.f32.mrb[126].mxu1  ;;  %v14015_v56 = vadd.f32 %v2964_v14, %v2804_v30  ;;  %v2808_v48 = vpop.f32.mrb[127].mxu0 }
 0x211   :  { %v2969_v51 = vpop.f32.mrb[127].mxu1  ;;  %v14017_v36 = vadd.f32 %v2966_v40, %v2806_v38  ;;  %v12032_v40 = vld [vmem:[%s15772_s0 + $0x1c0] ss:$16 sps:$4 sm:$0xff]  }
 0x212   :  { %4579 = vmatmul.mubr.bf16.gmra.mrb[232].mxu0 %v12028_v45 }
 0x213   :  { %7115 = vmatmul.mubr.bf16.gmra.mrb[232].mxu1 %v12028_v45  ;;  %4588 = vmatprep.mubr.bf16.mxu0 %v12029_v1 }
 0x214   :  { %7124 = vmatprep.mubr.bf16.mxu1 %v12029_v1 }
 0x215   :  { %v3005_v29 = vpop.f32.mrb[128].mxu0 }
 0x216   :  { %v3166_v60 = vpop.f32.mrb[128].mxu1  ;;  %v3006_v58 = vadd.f32 %v3005_v29, %v13628_v53  ;;  %v3007_v54 = vpop.f32.mrb[129].mxu0  ;;  %v12031_v53 = vld [vmem:[%s15772_s0 + $0x1c4] ss:$16 sps:$4 sm:$0xff]  }
 0x217   :  { %v3168_v0 = vpop.f32.mrb[129].mxu1  ;;  %v3008_v10 = vadd.f32 %v3007_v54, %v13630_v5  ;;  %v3009_v37 = vpop.f32.mrb[130].mxu0 }
 0x218   :  { %v3170_v39 = vpop.f32.mrb[130].mxu1  ;;  %v14027_v59 = vadd.f32 %v3166_v60, %v3006_v58  ;;  %v3010_v19 = vpop.f32.mrb[131].mxu0 }
 0x219   :  { %v3171_v22 = vpop.f32.mrb[131].mxu1  ;;  %v14029_v4 = vadd.f32 %v3168_v0, %v3008_v10  ;;  %v12034_v0 = vld [vmem:[%s15772_s0 + $0x1e0] ss:$16 sps:$4 sm:$0xff]  }
 0x21a   :  { %4589 = vmatmul.mubr.bf16.gmra.mrb[236].mxu0 %v12030_v13 }
 0x21b   :  { %7125 = vmatmul.mubr.bf16.gmra.mrb[236].mxu1 %v12030_v13  ;;  %4598 = vmatprep.mubr.bf16.mxu0 %v12031_v53 }
 0x21c   :  { %7134 = vmatprep.mubr.bf16.mxu1 %v12031_v53 }
 0x21d   :  { %v3013_v5 = vpop.f32.mrb[132].mxu0 }
 0x21e   :  { %v3174_v57 = vpop.f32.mrb[132].mxu1  ;;  %v3014_v35 = vadd.f32 %v3013_v5, %v13646_v28  ;;  %v3015_v8 = vpop.f32.mrb[133].mxu0  ;;  %v12033_v28 = vld [vmem:[%s15772_s0 + $0x1e4] ss:$16 sps:$4 sm:$0xff]  }
 0x21f   :  { %v3176_v26 = vpop.f32.mrb[133].mxu1  ;;  %v3016_v52 = vadd.f32 %v3015_v8, %v13648_v11  ;;  %v3017_v15 = vpop.f32.mrb[134].mxu0 }
 0x220   :  { %v3178_v49 = vpop.f32.mrb[134].mxu1  ;;  %v14039_v63 = vadd.f32 %v3174_v57, %v3014_v35  ;;  %v3018_v14 = vpop.f32.mrb[135].mxu0 }
 0x221   :  { %v3179_v30 = vpop.f32.mrb[135].mxu1  ;;  %v14041_v20 = vadd.f32 %v3176_v26, %v3016_v52  ;;  %v12036_v26 = vld [vmem:[%s15772_s0 + $0x200] ss:$16 sps:$4 sm:$0xff]  }
 0x222   :  { %4599 = vmatmul.mubr.bf16.gmra.mrb[240].mxu0 %v12032_v40 }
 0x223   :  { %7135 = vmatmul.mubr.bf16.gmra.mrb[240].mxu1 %v12032_v40  ;;  %4608 = vmatprep.mubr.bf16.mxu0 %v12033_v28 }
 0x224   :  { %7144 = vmatprep.mubr.bf16.mxu1 %v12033_v28 }
 0x225   :  { %v3021_v11 = vpop.f32.mrb[136].mxu0 }
 0x226   :  { %v3182_v38 = vpop.f32.mrb[136].mxu1  ;;  %v3022_v31 = vadd.f32 %v3021_v11, %v13664_v9  ;;  %v3023_v62 = vpop.f32.mrb[137].mxu0  ;;  %v12035_v9 = vld [vmem:[%s15772_s0 + $0x204] ss:$16 sps:$4 sm:$0xff]  }
 0x227   :  { %v3184_v48 = vpop.f32.mrb[137].mxu1  ;;  %v3024_v51 = vadd.f32 %v3023_v62, %v13666_v46  ;;  %v3025_v45 = vpop.f32.mrb[138].mxu0 }
 0x228   :  { %v3186_v1 = vpop.f32.mrb[138].mxu1  ;;  %v14051_v29 = vadd.f32 %v3182_v38, %v3022_v31  ;;  %v3026_v60 = vpop.f32.mrb[139].mxu0 }
 0x229   :  { %v3187_v58 = vpop.f32.mrb[139].mxu1  ;;  %v14053_v54 = vadd.f32 %v3184_v48, %v3024_v51  ;;  %v12038_v48 = vld [vmem:[%s15772_s0 + $0x220] ss:$16 sps:$4 sm:$0xff]  }
 0x22a   :  { %4609 = vmatmul.mubr.bf16.gmra.mrb[244].mxu0 %v12034_v0 }
 0x22b   :  { %7145 = vmatmul.mubr.bf16.gmra.mrb[244].mxu1 %v12034_v0  ;;  %4618 = vmatprep.mubr.bf16.mxu0 %v12035_v9 }
 0x22c   :  { %7154 = vmatprep.mubr.bf16.mxu1 %v12035_v9 }
 0x22d   :  { %v3029_v46 = vpop.f32.mrb[140].mxu0 }
 0x22e   :  { %v3190_v10 = vpop.f32.mrb[140].mxu1  ;;  %v3030_v37 = vadd.f32 %v3029_v46, %v13682_v23  ;;  %v3031_v39 = vpop.f32.mrb[141].mxu0  ;;  %v12037_v23 = vld [vmem:[%s15772_s0 + $0x224] ss:$16 sps:$4 sm:$0xff]   ;;  %v11603_v46 = vld [vmem:[%s15771_s1 + $0x800] ss:$8 sps:$4 sm:$0xff]  }
 0x22f   :  { %v3192_v19 = vpop.f32.mrb[141].mxu1  ;;  %v3032_v22 = vadd.f32 %v3031_v39, %v13684_v24  ;;  %v3033_v13 = vpop.f32.mrb[142].mxu0 }
 0x230   :  { %v3194_v53 = vpop.f32.mrb[142].mxu1  ;;  %v14063_v5 = vadd.f32 %v3190_v10, %v3030_v37  ;;  %v3034_v57 = vpop.f32.mrb[143].mxu0  ;;  %v11606_v10 = vld [vmem:[%s15771_s1 + $0xe00] ss:$8 sps:$4 sm:$0xff]  }
 0x231   :  { %v3195_v35 = vpop.f32.mrb[143].mxu1  ;;  %v14065_v8 = vadd.f32 %v3192_v19, %v3032_v22  ;;  %v12040_v13 = vld [vmem:[%s15772_s0 + $0x8] ss:$16 sps:$4 sm:$0xff]  }
 0x232   :  { %4619 = vmatmul.mubr.bf16.gmra.mrb[248].mxu0 %v12036_v26  ;;  %v11609_v53 = vld [vmem:[%s15771_s1 + $0x810] ss:$8 sps:$4 sm:$0xff]   ;;  %v14115_v35 = vld [vmem:[%s15772_s0 + $0x2c] ss:$16 sps:$4 sm:$0xff]  }
 0x233   :  { %7155 = vmatmul.mubr.bf16.gmra.mrb[248].mxu1 %v12036_v26  ;;  %4628 = vmatprep.mubr.bf16.mxu0 %v12037_v23  ;;  %v11612_v57 = vld [vmem:[%s15771_s1 + $0xe10] ss:$8 sps:$4 sm:$0xff]   ;;  %v11617_v26 = vld [vmem:[%s15771_s1 + $0x824] ss:$8 sps:$4 sm:$0xff]  }
 0x234   :  { %7164 = vmatprep.mubr.bf16.mxu1 %v12037_v23  ;;  %v11620_v23 = vld [vmem:[%s15771_s1 + $0xe24] ss:$8 sps:$4 sm:$0xff]  }
 0x235   :  { %v3037_v24 = vpop.f32.mrb[144].mxu0 }
 0x236   :  { %v3198_v52 = vpop.f32.mrb[144].mxu1  ;;  %v3038_v15 = vadd.f32 %v3037_v24, %v13694_v32  ;;  %v3039_v49 = vpop.f32.mrb[145].mxu0  ;;  %v12039_v32 = vld [vmem:[%s15772_s0 + $0xc] ss:$16 sps:$4 sm:$0xff]  }
 0x237   :  { %v3200_v14 = vpop.f32.mrb[145].mxu1  ;;  %v3040_v30 = vadd.f32 %v3039_v49, %v13696_v41  ;;  %v3041_v40 = vpop.f32.mrb[146].mxu0 }
 0x238   :  { %v3202_v28 = vpop.f32.mrb[146].mxu1  ;;  %v14075_v11 = vadd.f32 %v3198_v52, %v3038_v15  ;;  %v3042_v38 = vpop.f32.mrb[147].mxu0 }
 0x239   :  { %v3203_v31 = vpop.f32.mrb[147].mxu1  ;;  %v14077_v62 = vadd.f32 %v3200_v14, %v3040_v30 }
 0x23a   :  { %4629 = vmatmul.mubr.bf16.gmra.mrb[252].mxu0 %v12038_v48 }
 0x23b   :  { %7165 = vmatmul.mubr.bf16.gmra.mrb[252].mxu1 %v12038_v48  ;;  %4671 = vmatprep.mubr.bf16.mxu0 %v12039_v32 }
 0x23c   :  { %7207 = vmatprep.mubr.bf16.mxu1 %v12039_v32  ;;  %v11615_v32 = vld [vmem:[%s15771_s1 + $0x820] ss:$8 sps:$4 sm:$0xff]  }
 0x23d   :  { %v3045_v41 = vpop.f32.mrb[148].mxu0 }
 0x23e   :  { %v3206_v51 = vpop.f32.mrb[148].mxu1  ;;  %v3046_v45 = vadd.f32 %v3045_v41, %v13709_v6  ;;  %v3047_v1 = vpop.f32.mrb[149].mxu0  ;;  %v11611_v6 = vld [vmem:[%s15771_s1 + $0x814] ss:$8 sps:$4 sm:$0xff]  }
 0x23f   :  { %v3208_v60 = vpop.f32.mrb[149].mxu1  ;;  %v3048_v58 = vadd.f32 %v3047_v1, %v13711_v18  ;;  %v3049_v0 = vpop.f32.mrb[150].mxu0  ;;  %v11614_v18 = vld [vmem:[%s15771_s1 + $0xe14] ss:$8 sps:$4 sm:$0xff]  }
 0x240   :  { %v3210_v9 = vpop.f32.mrb[150].mxu1  ;;  %v14093_v37 = vadd.f32 %v3206_v51, %v3046_v45  ;;  %v3050_v39 = vpop.f32.mrb[151].mxu0  ;;  %v11626_v51 = vld [vmem:[%s15771_s1 + $0xe34] ss:$8 sps:$4 sm:$0xff]   ;;  %v14146_v45 = vld [vmem:[%s15772_s0 + $0x28] ss:$16 sps:$4 sm:$0xff]  }
 0x241   :  { %v3211_v19 = vpop.f32.mrb[151].mxu1  ;;  %v14095_v22 = vadd.f32 %v3208_v60, %v3048_v58  ;;  %v14153_v1 = vld [vmem:[%s15772_s0 + $0x4c] ss:$16 sps:$4 sm:$0xff]   ;;  %v11621_v60 = vld [vmem:[%s15771_s1 + $0x830] ss:$8 sps:$4 sm:$0xff]  }
 0x242   :  { %4672 = vmatmul.mubr.bf16.vlgmr.msra.gmra.mrb[192].mxu0 %v12040_v13  ;;  %v11624_v58 = vld [vmem:[%s15771_s1 + $0xe30] ss:$8 sps:$4 sm:$0xff]  }
 0x243   :  { %7208 = vmatmul.mubr.bf16.vlgmr.msra.gmra.mrb[192].mxu1 %v12040_v13  ;;  %4833 = vmatpush1.bf16.msra.mxu0 %v11603_v46  ;;  %v11629_v46 = vld [vmem:[%s15771_s1 + $0x844] ss:$8 sps:$4 sm:$0xff]  }
 0x244   :  { %7369 = vmatpush1.bf16.msra.mxu1 %v11606_v10  ;;  %4681 = vmatprep.mubr.bf16.mxu0 %v14115_v35  ;;  %v11632_v10 = vld [vmem:[%s15771_s1 + $0xe44] ss:$8 sps:$4 sm:$0xff]  }
 0x245   :  { %7217 = vmatprep.mubr.bf16.mxu1 %v14115_v35  ;;  %v3053_v24 = vpop.f32.mrb[152].mxu0  ;;  %4834 = vmatprep.subr.bf16.mxu0 %v11611_v6 }
 0x246   :  { %v3214_v52 = vpop.f32.mrb[152].mxu1  ;;  %7370 = vmatprep.subr.bf16.mxu1 %v11614_v18  ;;  %v3054_v15 = vadd.f32 %v3053_v24, %v13739_v47  ;;  %v3055_v49 = vpop.f32.mrb[153].mxu0  ;;  %v11618_v47 = vld [vmem:[%s15771_s1 + $0xe20] ss:$8 sps:$4 sm:$0xff]  }
 0x247   :  { %v3216_v14 = vpop.f32.mrb[153].mxu1  ;;  %v3056_v30 = vadd.f32 %v3055_v49, %v13747_v43  ;;  %v3057_v40 = vpop.f32.mrb[154].mxu0  ;;  %4835 = vmatpush1.bf16.msra.mxu0 %v11609_v53  ;;  %v11623_v43 = vld [vmem:[%s15771_s1 + $0x834] ss:$8 sps:$4 sm:$0xff]   ;;  %v11627_v24 = vld [vmem:[%s15771_s1 + $0x840] ss:$8 sps:$4 sm:$0xff]  }
 0x248   :  { %v3218_v28 = vpop.f32.mrb[154].mxu1  ;;  %7371 = vmatpush1.bf16.msra.mxu1 %v11612_v57  ;;  %v14127_v38 = vadd.f32 %v3214_v52, %v3054_v15  ;;  %v3058_v31 = vpop.f32.mrb[155].mxu0  ;;  %4836 = vmatprep.subr.bf16.mxu0 %v11617_v26  ;;  %v11638_v15 = vld [vmem:[%s15771_s1 + $0xe54] ss:$8 sps:$4 sm:$0xff]   ;;  %v14190_v49 = vld [vmem:[%s15772_s0 + $0x48] ss:$16 sps:$4 sm:$0xff]  }
 0x249   :  { %v3219_v48 = vpop.f32.mrb[155].mxu1  ;;  %7372 = vmatprep.subr.bf16.mxu1 %v11620_v23  ;;  %v14135_v41 = vadd.f32 %v3216_v14, %v3056_v30  ;;  %v14197_v14 = vld [vmem:[%s15772_s0 + $0x6c] ss:$16 sps:$4 sm:$0xff]   ;;  %v11633_v30 = vld [vmem:[%s15771_s1 + $0x850] ss:$8 sps:$4 sm:$0xff]  }
 0x24a   :  { %4682 = vmatmul.mubr.bf16.gmra.mrb[196].mxu0 %v14146_v45  ;;  %v11636_v40 = vld [vmem:[%s15771_s1 + $0xe50] ss:$8 sps:$4 sm:$0xff]   ;;  %v11641_v48 = vld [vmem:[%s15771_s1 + $0x864] ss:$8 sps:$4 sm:$0xff]  }
 0x24b   :  { %7218 = vmatmul.mubr.bf16.gmra.mrb[196].mxu1 %v14146_v45  ;;  %4691 = vmatprep.mubr.bf16.mxu0 %v14153_v1 }
 0x24c   :  { %7227 = vmatprep.mubr.bf16.mxu1 %v14153_v1  ;;  %4837 = vmatpush1.bf16.msra.mxu0 %v11615_v32  ;;  %v11644_v32 = vld [vmem:[%s15771_s1 + $0xe64] ss:$8 sps:$4 sm:$0xff]  }
 0x24d   :  { %7373 = vmatpush1.bf16.msra.mxu1 %v11618_v47  ;;  %v3061_v0 = vpop.f32.mrb[156].mxu0  ;;  %4838 = vmatprep.subr.bf16.mxu0 %v11623_v43 }
 0x24e   :  { %v3222_v9 = vpop.f32.mrb[156].mxu1  ;;  %7374 = vmatprep.subr.bf16.mxu1 %v11626_v51  ;;  %v3062_v39 = vadd.f32 %v3061_v0, %v13775_v44  ;;  %v3063_v19 = vpop.f32.mrb[157].mxu0  ;;  %v11630_v44 = vld [vmem:[%s15771_s1 + $0xe40] ss:$8 sps:$4 sm:$0xff]  }
 0x24f   :  { %v3224_v6 = vpop.f32.mrb[157].mxu1  ;;  %v3064_v18 = vadd.f32 %v3063_v19, %v13783_v50  ;;  %v3065_v13 = vpop.f32.mrb[158].mxu0  ;;  %v11635_v50 = vld [vmem:[%s15771_s1 + $0x854] ss:$8 sps:$4 sm:$0xff]  }
 0x250   :  { %v3226_v53 = vpop.f32.mrb[158].mxu1  ;;  %v14171_v57 = vadd.f32 %v3222_v9, %v3062_v39  ;;  %v3066_v26 = vpop.f32.mrb[159].mxu0  ;;  %4839 = vmatpush1.bf16.msra.mxu0 %v11621_v60  ;;  %v11639_v39 = vld [vmem:[%s15771_s1 + $0x860] ss:$8 sps:$4 sm:$0xff]   ;;  %v14241_v13 = vld [vmem:[%s15772_s0 + $0x8c] ss:$16 sps:$4 sm:$0xff]  }
 0x251   :  { %v3227_v23 = vpop.f32.mrb[159].mxu1  ;;  %7375 = vmatpush1.bf16.msra.mxu1 %v11624_v58  ;;  %v14179_v52 = vadd.f32 %v3224_v6, %v3064_v18  ;;  %4840 = vmatprep.subr.bf16.mxu0 %v11629_v46  ;;  %v11650_v6 = vld [vmem:[%s15771_s1 + $0xe74] ss:$8 sps:$4 sm:$0xff]   ;;  %v14234_v18 = vld [vmem:[%s15772_s0 + $0x68] ss:$16 sps:$4 sm:$0xff]  }
 0x252   :  { %7376 = vmatprep.subr.bf16.mxu1 %v11632_v10  ;;  %4692 = vmatmul.mubr.bf16.gmra.mrb[200].mxu0 %v14190_v49  ;;  %v11645_v53 = vld [vmem:[%s15771_s1 + $0x870] ss:$8 sps:$4 sm:$0xff]  }
 0x253   :  { %7228 = vmatmul.mubr.bf16.gmra.mrb[200].mxu1 %v14190_v49  ;;  %4701 = vmatprep.mubr.bf16.mxu0 %v14197_v14  ;;  %v11648_v26 = vld [vmem:[%s15771_s1 + $0xe70] ss:$8 sps:$4 sm:$0xff]  }
 0x254   :  { %7237 = vmatprep.mubr.bf16.mxu1 %v14197_v14  ;;  %4841 = vmatpush1.bf16.msra.mxu0 %v11627_v24 }
 0x255   :  { %7377 = vmatpush1.bf16.msra.mxu1 %v11630_v44  ;;  %v3069_v28 = vpop.f32.mrb[160].mxu0  ;;  %4842 = vmatprep.subr.bf16.mxu0 %v11635_v50  ;;  %v11653_v44 = vld [vmem:[%s15771_s1 + $0x884] ss:$8 sps:$4 sm:$0xff]  }
 0x256   :  { %v3230_v31 = vpop.f32.mrb[160].mxu1  ;;  %7378 = vmatprep.subr.bf16.mxu1 %v11638_v15  ;;  %v3070_v47 = vadd.f32 %v3069_v28, %v13811_v16  ;;  %v3071_v43 = vpop.f32.mrb[161].mxu0  ;;  %v11642_v16 = vld [vmem:[%s15771_s1 + $0xe60] ss:$8 sps:$4 sm:$0xff]   ;;  %v11656_v50 = vld [vmem:[%s15771_s1 + $0xe84] ss:$8 sps:$4 sm:$0xff]  }
 0x257   :  { %v3232_v51 = vpop.f32.mrb[161].mxu1  ;;  %v3072_v60 = vadd.f32 %v3071_v43, %v13819_v61  ;;  %v3073_v58 = vpop.f32.mrb[162].mxu0  ;;  %v11647_v61 = vld [vmem:[%s15771_s1 + $0x874] ss:$8 sps:$4 sm:$0xff]  }
 0x258   :  { %v3234_v0 = vpop.f32.mrb[162].mxu1  ;;  %v14215_v9 = vadd.f32 %v3230_v31, %v3070_v47  ;;  %v3074_v46 = vpop.f32.mrb[163].mxu0  ;;  %4843 = vmatpush1.bf16.msra.mxu0 %v11633_v30  ;;  %v11662_v58 = vld [vmem:[%s15771_s1 + $0xe94] ss:$8 sps:$4 sm:$0xff]  }
 0x259   :  { %v3235_v10 = vpop.f32.mrb[163].mxu1  ;;  %7379 = vmatpush1.bf16.msra.mxu1 %v11636_v40  ;;  %v14223_v19 = vadd.f32 %v3232_v51, %v3072_v60  ;;  %4844 = vmatprep.subr.bf16.mxu0 %v11641_v48  ;;  %v11651_v51 = vld [vmem:[%s15771_s1 + $0x880] ss:$8 sps:$4 sm:$0xff]   ;;  %v14285_v46 = vld [vmem:[%s15772_s0 + $0xac] ss:$16 sps:$4 sm:$0xff]  }
 0x25a   :  { %7380 = vmatprep.subr.bf16.mxu1 %v11644_v32  ;;  %4702 = vmatmul.mubr.bf16.gmra.mrb[204].mxu0 %v14234_v18  ;;  %v14278_v0 = vld [vmem:[%s15772_s0 + $0x88] ss:$16 sps:$4 sm:$0xff]  }
 0x25b   :  { %7238 = vmatmul.mubr.bf16.gmra.mrb[204].mxu1 %v14234_v18  ;;  %4711 = vmatprep.mubr.bf16.mxu0 %v14241_v13  ;;  %v11657_v10 = vld [vmem:[%s15771_s1 + $0x890] ss:$8 sps:$4 sm:$0xff]  }
 0x25c   :  { %7247 = vmatprep.mubr.bf16.mxu1 %v14241_v13  ;;  %4845 = vmatpush1.bf16.msra.mxu0 %v11639_v39  ;;  %v11660_v39 = vld [vmem:[%s15771_s1 + $0xe90] ss:$8 sps:$4 sm:$0xff]  }
 0x25d   :  { %7381 = vmatpush1.bf16.msra.mxu1 %v11642_v16  ;;  %v3077_v23 = vpop.f32.mrb[164].mxu0  ;;  %4846 = vmatprep.subr.bf16.mxu0 %v11647_v61 }
 0x25e   :  { %v3238_v24 = vpop.f32.mrb[164].mxu1  ;;  %7382 = vmatprep.subr.bf16.mxu1 %v11650_v6  ;;  %v3078_v15 = vadd.f32 %v3077_v23, %v13847_v34  ;;  %v3079_v30 = vpop.f32.mrb[165].mxu0  ;;  %v11654_v34 = vld [vmem:[%s15771_s1 + $0xe80] ss:$8 sps:$4 sm:$0xff]   ;;  %v11665_v6 = vld [vmem:[%s15771_s1 + $0x8a4] ss:$8 sps:$4 sm:$0xff]  }
 0x25f   :  { %v3240_v40 = vpop.f32.mrb[165].mxu1  ;;  %v3080_v28 = vadd.f32 %v3079_v30, %v13855_v33  ;;  %v3081_v31 = vpop.f32.mrb[166].mxu0  ;;  %v11659_v33 = vld [vmem:[%s15771_s1 + $0x894] ss:$8 sps:$4 sm:$0xff]  }
 0x260   :  { %v3242_v48 = vpop.f32.mrb[166].mxu1  ;;  %v14259_v32 = vadd.f32 %v3238_v24, %v3078_v15  ;;  %v3082_v47 = vpop.f32.mrb[167].mxu0  ;;  %4847 = vmatpush1.bf16.msra.mxu0 %v11645_v53  ;;  %v11668_v53 = vld [vmem:[%s15771_s1 + $0xea4] ss:$8 sps:$4 sm:$0xff]   ;;  %v11663_v31 = vld [vmem:[%s15771_s1 + $0x8a0] ss:$8 sps:$4 sm:$0xff]  }
 0x261   :  { %v3243_v43 = vpop.f32.mrb[167].mxu1  ;;  %7383 = vmatpush1.bf16.msra.mxu1 %v11648_v26  ;;  %v14267_v60 = vadd.f32 %v3240_v40, %v3080_v28  ;;  %4848 = vmatprep.subr.bf16.mxu0 %v11653_v44  ;;  %v11674_v47 = vld [vmem:[%s15771_s1 + $0xeb4] ss:$8 sps:$4 sm:$0xff]  }
 0x262   :  { %7384 = vmatprep.subr.bf16.mxu1 %v11656_v50  ;;  %4712 = vmatmul.mubr.bf16.gmra.mrb[208].mxu0 %v14278_v0  ;;  %v14322_v43 = vld [vmem:[%s15772_s0 + $0xa8] ss:$16 sps:$4 sm:$0xff]  }
 0x263   :  { %7248 = vmatmul.mubr.bf16.gmra.mrb[208].mxu1 %v14278_v0  ;;  %4721 = vmatprep.mubr.bf16.mxu0 %v14285_v46 }
 0x264   :  { %7257 = vmatprep.mubr.bf16.mxu1 %v14285_v46  ;;  %4849 = vmatpush1.bf16.msra.mxu0 %v11651_v51  ;;  %v14329_v51 = vld [vmem:[%s15772_s0 + $0xcc] ss:$16 sps:$4 sm:$0xff]  }
 0x265   :  { %7385 = vmatpush1.bf16.msra.mxu1 %v11654_v34  ;;  %v3085_v16 = vpop.f32.mrb[168].mxu0  ;;  %4850 = vmatprep.subr.bf16.mxu0 %v11659_v33  ;;  %v11669_v34 = vld [vmem:[%s15771_s1 + $0x8b0] ss:$8 sps:$4 sm:$0xff]  }
 0x266   :  { %v3246_v61 = vpop.f32.mrb[168].mxu1  ;;  %7386 = vmatprep.subr.bf16.mxu1 %v11662_v58  ;;  %v3086_v26 = vadd.f32 %v3085_v16, %v13883_v17  ;;  %v3087_v23 = vpop.f32.mrb[169].mxu0  ;;  %v11666_v17 = vld [vmem:[%s15771_s1 + $0xea0] ss:$8 sps:$4 sm:$0xff]   ;;  %v11672_v33 = vld [vmem:[%s15771_s1 + $0xeb0] ss:$8 sps:$4 sm:$0xff]  }
 0x267   :  { %v3248_v24 = vpop.f32.mrb[169].mxu1  ;;  %v3088_v44 = vadd.f32 %v3087_v23, %v13891_v3  ;;  %v3089_v50 = vpop.f32.mrb[170].mxu0  ;;  %v11671_v3 = vld [vmem:[%s15771_s1 + $0x8b4] ss:$8 sps:$4 sm:$0xff]   ;;  %v11680_v16 = vld [vmem:[%s15771_s1 + $0xec4] ss:$8 sps:$4 sm:$0xff]  }
 0x268   :  { %v3250_v15 = vpop.f32.mrb[170].mxu1  ;;  %v14303_v30 = vadd.f32 %v3246_v61, %v3086_v26  ;;  %v3090_v40 = vpop.f32.mrb[171].mxu0  ;;  %4851 = vmatpush1.bf16.msra.mxu0 %v11657_v10 }
 0x269   :  { %v3251_v28 = vpop.f32.mrb[171].mxu1  ;;  %7387 = vmatpush1.bf16.msra.mxu1 %v11660_v39  ;;  %v14311_v48 = vadd.f32 %v3248_v24, %v3088_v44  ;;  %4852 = vmatprep.subr.bf16.mxu0 %v11665_v6  ;;  %v11677_v39 = vld [vmem:[%s15771_s1 + $0x8c4] ss:$8 sps:$4 sm:$0xff]   ;;  %v11675_v40 = vld [vmem:[%s15771_s1 + $0x8c0] ss:$8 sps:$4 sm:$0xff]  }
 0x26a   :  { %7388 = vmatprep.subr.bf16.mxu1 %v11668_v53  ;;  %4722 = vmatmul.mubr.bf16.gmra.mrb[212].mxu0 %v14322_v43 }
 0x26b   :  { %7258 = vmatmul.mubr.bf16.gmra.mrb[212].mxu1 %v14322_v43  ;;  %4731 = vmatprep.mubr.bf16.mxu0 %v14329_v51 }
 0x26c   :  { %7267 = vmatprep.mubr.bf16.mxu1 %v14329_v51  ;;  %4853 = vmatpush1.bf16.msra.mxu0 %v11663_v31  ;;  %v11686_v31 = vld [vmem:[%s15771_s1 + $0xed4] ss:$8 sps:$4 sm:$0xff]  }
 0x26d   :  { %7389 = vmatpush1.bf16.msra.mxu1 %v11666_v17  ;;  %v3093_v58 = vpop.f32.mrb[172].mxu0  ;;  %4854 = vmatprep.subr.bf16.mxu0 %v11671_v3  ;;  %v14366_v17 = vld [vmem:[%s15772_s0 + $0xc8] ss:$16 sps:$4 sm:$0xff]   ;;  %v14373_v3 = vld [vmem:[%s15772_s0 + $0xec] ss:$16 sps:$4 sm:$0xff]  }
 0x26e   :  { %v3254_v10 = vpop.f32.mrb[172].mxu1  ;;  %7390 = vmatprep.subr.bf16.mxu1 %v11674_v47  ;;  %v3094_v61 = vadd.f32 %v3093_v58, %v13919_v27  ;;  %v3095_v6 = vpop.f32.mrb[173].mxu0  ;;  %v11678_v27 = vld [vmem:[%s15771_s1 + $0xec0] ss:$8 sps:$4 sm:$0xff]   ;;  %v11681_v47 = vld [vmem:[%s15771_s1 + $0x8d0] ss:$8 sps:$4 sm:$0xff]  }
 0x26f   :  { %v3256_v53 = vpop.f32.mrb[173].mxu1  ;;  %v3096_v26 = vadd.f32 %v3095_v6, %v13927_v2  ;;  %v3097_v23 = vpop.f32.mrb[174].mxu0  ;;  %v11683_v2 = vld [vmem:[%s15771_s1 + $0x8d4] ss:$8 sps:$4 sm:$0xff]  }
 0x270   :  { %v3258_v24 = vpop.f32.mrb[174].mxu1  ;;  %v14347_v44 = vadd.f32 %v3254_v10, %v3094_v61  ;;  %v3098_v50 = vpop.f32.mrb[175].mxu0  ;;  %4855 = vmatpush1.bf16.msra.mxu0 %v11669_v34  ;;  %v11684_v34 = vld [vmem:[%s15771_s1 + $0xed0] ss:$8 sps:$4 sm:$0xff]   ;;  %v11689_v10 = vld [vmem:[%s15771_s1 + $0x8e4] ss:$8 sps:$4 sm:$0xff]  }
 0x271   :  { %v3259_v15 = vpop.f32.mrb[175].mxu1  ;;  %7391 = vmatpush1.bf16.msra.mxu1 %v11672_v33  ;;  %v14355_v28 = vadd.f32 %v3256_v53, %v3096_v26  ;;  %4856 = vmatprep.subr.bf16.mxu0 %v11677_v39  ;;  %v11692_v39 = vld [vmem:[%s15771_s1 + $0xee4] ss:$8 sps:$4 sm:$0xff]  }
 0x272   :  { %7392 = vmatprep.subr.bf16.mxu1 %v11680_v16  ;;  %4732 = vmatmul.mubr.bf16.gmra.mrb[216].mxu0 %v14366_v17 }
 0x273   :  { %7268 = vmatmul.mubr.bf16.gmra.mrb[216].mxu1 %v14366_v17  ;;  %4741 = vmatprep.mubr.bf16.mxu0 %v14373_v3 }
 0x274   :  { %7277 = vmatprep.mubr.bf16.mxu1 %v14373_v3  ;;  %4857 = vmatpush1.bf16.msra.mxu0 %v11675_v40  ;;  %v11687_v40 = vld [vmem:[%s15771_s1 + $0x8e0] ss:$8 sps:$4 sm:$0xff]  }
 0x275   :  { %7393 = vmatpush1.bf16.msra.mxu1 %v11678_v27  ;;  %v3101_v33 = vpop.f32.mrb[176].mxu0  ;;  %4858 = vmatprep.subr.bf16.mxu0 %v11683_v2  ;;  %v11698_v2 = vld [vmem:[%s15771_s1 + $0xef4] ss:$8 sps:$4 sm:$0xff]  }
 0x276   :  { %v3262_v58 = vpop.f32.mrb[176].mxu1  ;;  %7394 = vmatprep.subr.bf16.mxu1 %v11686_v31  ;;  %v3102_v16 = vadd.f32 %v3101_v33, %v13955_v42  ;;  %v3103_v61 = vpop.f32.mrb[177].mxu0  ;;  %v11690_v42 = vld [vmem:[%s15771_s1 + $0xee0] ss:$8 sps:$4 sm:$0xff]   ;;  %v11696_v33 = vld [vmem:[%s15771_s1 + $0xef0] ss:$8 sps:$4 sm:$0xff]  }
 0x277   :  { %v3264_v6 = vpop.f32.mrb[177].mxu1  ;;  %v3104_v53 = vadd.f32 %v3103_v61, %v13963_v12  ;;  %v3105_v26 = vpop.f32.mrb[178].mxu0  ;;  %v11695_v12 = vld [vmem:[%s15771_s1 + $0x8f4] ss:$8 sps:$4 sm:$0xff]   ;;  %v14410_v31 = vld [vmem:[%s15772_s0 + $0xe8] ss:$16 sps:$4 sm:$0xff]  }
 0x278   :  { %v3266_v23 = vpop.f32.mrb[178].mxu1  ;;  %v14391_v24 = vadd.f32 %v3262_v58, %v3102_v16  ;;  %v3106_v50 = vpop.f32.mrb[179].mxu0  ;;  %4859 = vmatpush1.bf16.msra.mxu0 %v11681_v47  ;;  %v12055_v47 = vld [vmem:[%s15772_s0 + $0x14c] ss:$16 sps:$4 sm:$0xff]  }
 0x279   :  { %v3267_v15 = vpop.f32.mrb[179].mxu1  ;;  %7395 = vmatpush1.bf16.msra.mxu1 %v11684_v34  ;;  %v14399_v27 = vadd.f32 %v3264_v6, %v3104_v53  ;;  %4860 = vmatprep.subr.bf16.mxu0 %v11689_v10  ;;  %v11693_v34 = vld [vmem:[%s15771_s1 + $0x8f0] ss:$8 sps:$4 sm:$0xff]   ;;  %v11704_v16 = vld [vmem:[%s15771_s1 + $0xf04] ss:$8 sps:$4 sm:$0xff]  }
 0x27a   :  { %7396 = vmatprep.subr.bf16.mxu1 %v11692_v39  ;;  %4742 = vmatmul.mubr.bf16.gmra.mrb[220].mxu0 %v14410_v31  ;;  %v11701_v39 = vld [vmem:[%s15771_s1 + $0x904] ss:$8 sps:$4 sm:$0xff]  }
 0x27b   :  { %7278 = vmatmul.mubr.bf16.gmra.mrb[220].mxu1 %v14410_v31  ;;  %4751 = vmatprep.mubr.bf16.mxu0 %v12055_v47 }
 0x27c   :  { %7287 = vmatprep.mubr.bf16.mxu1 %v12055_v47  ;;  %4861 = vmatpush1.bf16.msra.mxu0 %v11687_v40 }
 0x27d   :  { %7397 = vmatpush1.bf16.msra.mxu1 %v11690_v42  ;;  %v3109_v58 = vpop.f32.mrb[180].mxu0  ;;  %4862 = vmatprep.subr.bf16.mxu0 %v11695_v12 }
 0x27e   :  { %v3270_v10 = vpop.f32.mrb[180].mxu1  ;;  %7398 = vmatprep.subr.bf16.mxu1 %v11698_v2  ;;  %v3110_v61 = vadd.f32 %v3109_v58, %v13991_v21  ;;  %v3111_v6 = vpop.f32.mrb[181].mxu0  ;;  %v12056_v21 = vld [vmem:[%s15772_s0 + $0x148] ss:$16 sps:$4 sm:$0xff]  }
 0x27f   :  { %v3272_v53 = vpop.f32.mrb[181].mxu1  ;;  %v3112_v26 = vadd.f32 %v3111_v6, %v13993_v55  ;;  %v3113_v23 = vpop.f32.mrb[182].mxu0  ;;  %v14441_v55 = vld [vmem:[%s15772_s0 + $0x16c] ss:$16 sps:$4 sm:$0xff]  }
 0x280   :  { %v3274_v50 = vpop.f32.mrb[182].mxu1  ;;  %v14431_v15 = vadd.f32 %v3270_v10, %v3110_v61  ;;  %v3114_v40 = vpop.f32.mrb[183].mxu0  ;;  %4863 = vmatpush1.bf16.msra.mxu0 %v11693_v34  ;;  %v14454_v23 = vld [vmem:[%s15772_s0 + $0x168] ss:$16 sps:$4 sm:$0xff]  }
 0x281   :  { %v3275_v42 = vpop.f32.mrb[183].mxu1  ;;  %7399 = vmatpush1.bf16.msra.mxu1 %v11696_v33  ;;  %v14433_v12 = vadd.f32 %v3272_v53, %v3112_v26  ;;  %5025 = vmatprep.subr.bf16.mxu0 %v11701_v39 }
 0x282   :  { %15777 = vst [vmem:[#allocation2_spill] sm:$0xff] %v14431_v15  ;;  %7561 = vmatprep.subr.bf16.mxu1 %v11704_v16  ;;  %4752 = vmatmul.mubr.bf16.gmra.mrb[224].mxu0 %v12056_v21  ;;  %v11797_v15 = vld [vmem:[%s15771_s1 + $0xa04] ss:$8 sps:$4 sm:$0xff]  }
 0x283   :  { %15778 = vst [vmem:[#allocation3_spill] sm:$0xff] %v14433_v12  ;;  %7288 = vmatmul.mubr.bf16.gmra.mrb[224].mxu1 %v12056_v21  ;;  %4761 = vmatprep.mubr.bf16.mxu0 %v14441_v55  ;;  %v11719_v12 = vld [vmem:[%s15771_s1 + $0x934] ss:$8 sps:$4 sm:$0xff]  }
 0x284   :  { %7297 = vmatprep.mubr.bf16.mxu1 %v14441_v55 }
 0x285   :  { %v3117_v2 = vpop.f32.mrb[184].mxu0 }
 0x286   :  { %v3278_v47 = vpop.f32.mrb[184].mxu1  ;;  %v3118_v34 = vadd.f32 %v3117_v2, %v14003_v25  ;;  %v3119_v33 = vpop.f32.mrb[185].mxu0  ;;  %v14461_v25 = vld [vmem:[%s15772_s0 + $0x18c] ss:$16 sps:$4 sm:$0xff]  }
 0x287   :  { %v3280_v58 = vpop.f32.mrb[185].mxu1  ;;  %v3120_v10 = vadd.f32 %v3119_v33, %v14005_v7  ;;  %v3121_v39 = vpop.f32.mrb[186].mxu0 }
 0x288   :  { %v3282_v16 = vpop.f32.mrb[186].mxu1  ;;  %v14447_v61 = vadd.f32 %v3278_v47, %v3118_v34  ;;  %v3122_v6 = vpop.f32.mrb[187].mxu0 }
 0x289   :  { %v3283_v53 = vpop.f32.mrb[187].mxu1  ;;  %v14449_v26 = vadd.f32 %v3280_v58, %v3120_v10  ;;  %v14474_v16 = vld [vmem:[%s15772_s0 + $0x188] ss:$16 sps:$4 sm:$0xff]   ;;  %v14495_v6 = vld [vmem:[%s15772_s0 + $0x1cc] ss:$16 sps:$4 sm:$0xff]  }
 0x28a   :  { %15779 = vst [vmem:[#allocation4_spill] sm:$0xff] %v14447_v61  ;;  %4762 = vmatmul.mubr.bf16.gmra.mrb[228].mxu0 %v14454_v23  ;;  %v14502_v53 = vld [vmem:[%s15772_s0 + $0x1c8] ss:$16 sps:$4 sm:$0xff]   ;;  %v12073_v61 = vld [vmem:[%s15772_s0 + $0x44] ss:$16 sps:$4 sm:$0xff]  }
 0x28b   :  { %15780 = vst [vmem:[#allocation5_spill] sm:$0xff] %v14449_v26  ;;  %7298 = vmatmul.mubr.bf16.gmra.mrb[228].mxu1 %v14454_v23  ;;  %4771 = vmatprep.mubr.bf16.mxu0 %v14461_v25  ;;  %v11708_v26 = vld [vmem:[%s15771_s1 + $0xf10] ss:$8 sps:$4 sm:$0xff]  }
 0x28c   :  { %7307 = vmatprep.mubr.bf16.mxu1 %v14461_v25 }
 0x28d   :  { %v3125_v7 = vpop.f32.mrb[188].mxu0 }
 0x28e   :  { %v3286_v50 = vpop.f32.mrb[188].mxu1  ;;  %v3126_v40 = vadd.f32 %v3125_v7, %v14015_v56  ;;  %v3127_v42 = vpop.f32.mrb[189].mxu0  ;;  %v14481_v56 = vld [vmem:[%s15772_s0 + $0x1ac] ss:$16 sps:$4 sm:$0xff]  }
 0x28f   :  { %v3288_v21 = vpop.f32.mrb[189].mxu1  ;;  %v3128_v2 = vadd.f32 %v3127_v42, %v14017_v36  ;;  %v3129_v47 = vpop.f32.mrb[190].mxu0  ;;  %v14488_v36 = vld [vmem:[%s15772_s0 + $0x1a8] ss:$16 sps:$4 sm:$0xff]   ;;  %v14509_v7 = vld [vmem:[%s15772_s0 + $0x1ec] ss:$16 sps:$4 sm:$0xff]  }
 0x290   :  { %v3290_v34 = vpop.f32.mrb[190].mxu1  ;;  %v14467_v33 = vadd.f32 %v3286_v50, %v3126_v40  ;;  %v3130_v58 = vpop.f32.mrb[191].mxu0  ;;  %v14516_v50 = vld [vmem:[%s15772_s0 + $0x1e8] ss:$16 sps:$4 sm:$0xff]   ;;  %v14523_v40 = vld [vmem:[%s15772_s0 + $0x20c] ss:$16 sps:$4 sm:$0xff]  }
 0x291   :  { %v3291_v10 = vpop.f32.mrb[191].mxu1  ;;  %v14469_v39 = vadd.f32 %v3288_v21, %v3128_v2  ;;  %v14530_v42 = vld [vmem:[%s15772_s0 + $0x208] ss:$16 sps:$4 sm:$0xff]   ;;  %v14537_v21 = vld [vmem:[%s15772_s0 + $0x22c] ss:$16 sps:$4 sm:$0xff]  }
 0x292   :  { %15781 = vst [vmem:[#allocation6_spill] sm:$0xff] %v14467_v33  ;;  %4772 = vmatmul.mubr.bf16.gmra.mrb[232].mxu0 %v14474_v16  ;;  %v14544_v2 = vld [vmem:[%s15772_s0 + $0x228] ss:$16 sps:$4 sm:$0xff]   ;;  %v12071_v47 = vld [vmem:[%s15772_s0 + $0x24] ss:$16 sps:$4 sm:$0xff]  }
 0x293   :  { %15782 = vst [vmem:[#allocation7_spill] sm:$0xff] %v14469_v39  ;;  %7308 = vmatmul.mubr.bf16.gmra.mrb[232].mxu1 %v14474_v16  ;;  %4781 = vmatprep.mubr.bf16.mxu0 %v14481_v56  ;;  %v11699_v34 = vld [vmem:[%s15771_s1 + $0x900] ss:$8 sps:$4 sm:$0xff]   ;;  %v11707_v10 = vld [vmem:[%s15771_s1 + $0x914] ss:$8 sps:$4 sm:$0xff]  }
 0x294   :  { %7317 = vmatprep.mubr.bf16.mxu1 %v14481_v56  ;;  %v11702_v58 = vld [vmem:[%s15771_s1 + $0xf00] ss:$8 sps:$4 sm:$0xff]   ;;  %v11710_v39 = vld [vmem:[%s15771_s1 + $0xf14] ss:$8 sps:$4 sm:$0xff]   ;;  %v11705_v33 = vld [vmem:[%s15771_s1 + $0x910] ss:$8 sps:$4 sm:$0xff]  }
 0x29a   :  { %4782 = vmatmul.mubr.bf16.gmra.mrb[236].mxu0 %v14488_v36 }
 0x29b   :  { %7318 = vmatmul.mubr.bf16.gmra.mrb[236].mxu1 %v14488_v36  ;;  %4791 = vmatprep.mubr.bf16.mxu0 %v14495_v6 }
 0x29c   :  { %7327 = vmatprep.mubr.bf16.mxu1 %v14495_v6 }
 0x2a2   :  { %4792 = vmatmul.mubr.bf16.gmra.mrb[240].mxu0 %v14502_v53 }
 0x2a3   :  { %7328 = vmatmul.mubr.bf16.gmra.mrb[240].mxu1 %v14502_v53  ;;  %4801 = vmatprep.mubr.bf16.mxu0 %v14509_v7 }
 0x2a4   :  { %7337 = vmatprep.mubr.bf16.mxu1 %v14509_v7 }
 0x2aa   :  { %4802 = vmatmul.mubr.bf16.gmra.mrb[244].mxu0 %v14516_v50 }
 0x2ab   :  { %7338 = vmatmul.mubr.bf16.gmra.mrb[244].mxu1 %v14516_v50  ;;  %4811 = vmatprep.mubr.bf16.mxu0 %v14523_v40 }
 0x2ac   :  { %7347 = vmatprep.mubr.bf16.mxu1 %v14523_v40 }
 0x2b2   :  { %4812 = vmatmul.mubr.bf16.gmra.mrb[248].mxu0 %v14530_v42 }
 0x2b3   :  { %7348 = vmatmul.mubr.bf16.gmra.mrb[248].mxu1 %v14530_v42  ;;  %4821 = vmatprep.mubr.bf16.mxu0 %v14537_v21 }
 0x2b4   :  { %7357 = vmatprep.mubr.bf16.mxu1 %v14537_v21 }
 0x2ba   :  { %4822 = vmatmul.mubr.bf16.gmra.mrb[252].mxu0 %v14544_v2 }
 0x2bb   :  { %7358 = vmatmul.mubr.bf16.gmra.mrb[252].mxu1 %v14544_v2  ;;  %4864 = vmatprep.mubr.bf16.mxu0 %v12071_v47 }
 0x2bc   :  { %7400 = vmatprep.mubr.bf16.mxu1 %v12071_v47  ;;  %v12072_v47 = vld [vmem:[%s15772_s0 + $0x20] ss:$16 sps:$4 sm:$0xff]  }
 0x2c2   :  { %4865 = vmatmul.mubr.bf16.vlgmr.msra.gmra.mrb[192].mxu0 %v12072_v47 }
 0x2c3   :  { %7401 = vmatmul.mubr.bf16.vlgmr.msra.gmra.mrb[192].mxu1 %v12072_v47  ;;  %5026 = vmatpush1.bf16.msra.mxu0 %v11699_v34  ;;  %v11713_v47 = vld [vmem:[%s15771_s1 + $0x924] ss:$8 sps:$4 sm:$0xff]  }
 0x2c4   :  { %7562 = vmatpush1.bf16.msra.mxu1 %v11702_v58  ;;  %4874 = vmatprep.mubr.bf16.mxu0 %v12073_v61  ;;  %v11716_v34 = vld [vmem:[%s15771_s1 + $0xf24] ss:$8 sps:$4 sm:$0xff]   ;;  %v11711_v58 = vld [vmem:[%s15771_s1 + $0x920] ss:$8 sps:$4 sm:$0xff]  }
 0x2c5   :  { %7410 = vmatprep.mubr.bf16.mxu1 %v12073_v61  ;;  %5027 = vmatprep.subr.bf16.mxu0 %v11707_v10  ;;  %v11714_v61 = vld [vmem:[%s15771_s1 + $0xf20] ss:$8 sps:$4 sm:$0xff]   ;;  %v11717_v10 = vld [vmem:[%s15771_s1 + $0x930] ss:$8 sps:$4 sm:$0xff]  }
 0x2c6   :  { %7563 = vmatprep.subr.bf16.mxu1 %v11710_v39  ;;  %v11722_v39 = vld [vmem:[%s15771_s1 + $0xf34] ss:$8 sps:$4 sm:$0xff]  }
 0x2c7   :  { %5028 = vmatpush1.bf16.msra.mxu0 %v11705_v33  ;;  %v12075_v33 = vld [vmem:[%s15772_s0 + $0x64] ss:$16 sps:$4 sm:$0xff]  }
 0x2c8   :  { %7564 = vmatpush1.bf16.msra.mxu1 %v11708_v26  ;;  %5029 = vmatprep.subr.bf16.mxu0 %v11713_v47  ;;  %v12074_v26 = vld [vmem:[%s15772_s0 + $0x40] ss:$16 sps:$4 sm:$0xff]  }
 0x2c9   :  { %7565 = vmatprep.subr.bf16.mxu1 %v11716_v34  ;;  %v11720_v47 = vld [vmem:[%s15771_s1 + $0xf30] ss:$8 sps:$4 sm:$0xff]   ;;  %v11725_v34 = vld [vmem:[%s15771_s1 + $0x944] ss:$8 sps:$4 sm:$0xff]  }
 0x2ca   :  { %4875 = vmatmul.mubr.bf16.gmra.mrb[196].mxu0 %v12074_v26 }
 0x2cb   :  { %7411 = vmatmul.mubr.bf16.gmra.mrb[196].mxu1 %v12074_v26  ;;  %4884 = vmatprep.mubr.bf16.mxu0 %v12075_v33  ;;  %v11728_v26 = vld [vmem:[%s15771_s1 + $0xf44] ss:$8 sps:$4 sm:$0xff]  }
 0x2cc   :  { %7420 = vmatprep.mubr.bf16.mxu1 %v12075_v33  ;;  %5030 = vmatpush1.bf16.msra.mxu0 %v11711_v58  ;;  %v11723_v58 = vld [vmem:[%s15771_s1 + $0x940] ss:$8 sps:$4 sm:$0xff]  }
 0x2cd   :  { %7566 = vmatpush1.bf16.msra.mxu1 %v11714_v61  ;;  %5031 = vmatprep.subr.bf16.mxu0 %v11719_v12  ;;  %v11726_v61 = vld [vmem:[%s15771_s1 + $0xf40] ss:$8 sps:$4 sm:$0xff]   ;;  %v11731_v12 = vld [vmem:[%s15771_s1 + $0x954] ss:$8 sps:$4 sm:$0xff]  }
 0x2ce   :  { %7567 = vmatprep.subr.bf16.mxu1 %v11722_v39  ;;  %v11734_v39 = vld [vmem:[%s15771_s1 + $0xf54] ss:$8 sps:$4 sm:$0xff]   ;;  %v12076_v33 = vld [vmem:[%s15772_s0 + $0x60] ss:$16 sps:$4 sm:$0xff]  }
 0x2d0   :  { %5032 = vmatpush1.bf16.msra.mxu0 %v11717_v10  ;;  %v12077_v10 = vld [vmem:[%s15772_s0 + $0x84] ss:$16 sps:$4 sm:$0xff]  }
 0x2d1   :  { %7568 = vmatpush1.bf16.msra.mxu1 %v11720_v47  ;;  %5033 = vmatprep.subr.bf16.mxu0 %v11725_v34  ;;  %v11729_v47 = vld [vmem:[%s15771_s1 + $0x950] ss:$8 sps:$4 sm:$0xff]  }
 0x2d2   :  { %7569 = vmatprep.subr.bf16.mxu1 %v11728_v26  ;;  %4885 = vmatmul.mubr.bf16.gmra.mrb[200].mxu0 %v12076_v33  ;;  %v11732_v34 = vld [vmem:[%s15771_s1 + $0xf50] ss:$8 sps:$4 sm:$0xff]   ;;  %v11737_v26 = vld [vmem:[%s15771_s1 + $0x964] ss:$8 sps:$4 sm:$0xff]  }
 0x2d3   :  { %7421 = vmatmul.mubr.bf16.gmra.mrb[200].mxu1 %v12076_v33  ;;  %4894 = vmatprep.mubr.bf16.mxu0 %v12077_v10  ;;  %v11740_v33 = vld [vmem:[%s15771_s1 + $0xf64] ss:$8 sps:$4 sm:$0xff]  }
 0x2d4   :  { %7430 = vmatprep.mubr.bf16.mxu1 %v12077_v10  ;;  %5034 = vmatpush1.bf16.msra.mxu0 %v11723_v58  ;;  %v11735_v58 = vld [vmem:[%s15771_s1 + $0x960] ss:$8 sps:$4 sm:$0xff]  }
 0x2d5   :  { %7570 = vmatpush1.bf16.msra.mxu1 %v11726_v61  ;;  %5035 = vmatprep.subr.bf16.mxu0 %v11731_v12  ;;  %v11738_v61 = vld [vmem:[%s15771_s1 + $0xf60] ss:$8 sps:$4 sm:$0xff]   ;;  %v11743_v12 = vld [vmem:[%s15771_s1 + $0x974] ss:$8 sps:$4 sm:$0xff]  }
 0x2d6   :  { %7571 = vmatprep.subr.bf16.mxu1 %v11734_v39  ;;  %v11746_v39 = vld [vmem:[%s15771_s1 + $0xf74] ss:$8 sps:$4 sm:$0xff]   ;;  %v12078_v10 = vld [vmem:[%s15772_s0 + $0x80] ss:$16 sps:$4 sm:$0xff]  }
 0x2d8   :  { %5036 = vmatpush1.bf16.msra.mxu0 %v11729_v47  ;;  %v12079_v47 = vld [vmem:[%s15772_s0 + $0xa4] ss:$16 sps:$4 sm:$0xff]  }
 0x2d9   :  { %7572 = vmatpush1.bf16.msra.mxu1 %v11732_v34  ;;  %5037 = vmatprep.subr.bf16.mxu0 %v11737_v26  ;;  %v11741_v34 = vld [vmem:[%s15771_s1 + $0x970] ss:$8 sps:$4 sm:$0xff]  }
 0x2da   :  { %7573 = vmatprep.subr.bf16.mxu1 %v11740_v33  ;;  %4895 = vmatmul.mubr.bf16.gmra.mrb[204].mxu0 %v12078_v10  ;;  %v11744_v26 = vld [vmem:[%s15771_s1 + $0xf70] ss:$8 sps:$4 sm:$0xff]   ;;  %v11749_v33 = vld [vmem:[%s15771_s1 + $0x984] ss:$8 sps:$4 sm:$0xff]  }
 0x2db   :  { %7431 = vmatmul.mubr.bf16.gmra.mrb[204].mxu1 %v12078_v10  ;;  %4904 = vmatprep.mubr.bf16.mxu0 %v12079_v47  ;;  %v11752_v10 = vld [vmem:[%s15771_s1 + $0xf84] ss:$8 sps:$4 sm:$0xff]  }
 0x2dc   :  { %7440 = vmatprep.mubr.bf16.mxu1 %v12079_v47  ;;  %5038 = vmatpush1.bf16.msra.mxu0 %v11735_v58  ;;  %v11747_v58 = vld [vmem:[%s15771_s1 + $0x980] ss:$8 sps:$4 sm:$0xff]  }
 0x2dd   :  { %7574 = vmatpush1.bf16.msra.mxu1 %v11738_v61  ;;  %5039 = vmatprep.subr.bf16.mxu0 %v11743_v12  ;;  %v11750_v61 = vld [vmem:[%s15771_s1 + $0xf80] ss:$8 sps:$4 sm:$0xff]   ;;  %v11755_v12 = vld [vmem:[%s15771_s1 + $0x994] ss:$8 sps:$4 sm:$0xff]  }
 0x2de   :  { %7575 = vmatprep.subr.bf16.mxu1 %v11746_v39  ;;  %v11758_v39 = vld [vmem:[%s15771_s1 + $0xf94] ss:$8 sps:$4 sm:$0xff]   ;;  %v12080_v47 = vld [vmem:[%s15772_s0 + $0xa0] ss:$16 sps:$4 sm:$0xff]  }
 0x2e0   :  { %5040 = vmatpush1.bf16.msra.mxu0 %v11741_v34  ;;  %v12081_v34 = vld [vmem:[%s15772_s0 + $0xc4] ss:$16 sps:$4 sm:$0xff]  }
 0x2e1   :  { %7576 = vmatpush1.bf16.msra.mxu1 %v11744_v26  ;;  %5041 = vmatprep.subr.bf16.mxu0 %v11749_v33  ;;  %v11753_v26 = vld [vmem:[%s15771_s1 + $0x990] ss:$8 sps:$4 sm:$0xff]  }
 0x2e2   :  { %7577 = vmatprep.subr.bf16.mxu1 %v11752_v10  ;;  %4905 = vmatmul.mubr.bf16.gmra.mrb[208].mxu0 %v12080_v47  ;;  %v11756_v33 = vld [vmem:[%s15771_s1 + $0xf90] ss:$8 sps:$4 sm:$0xff]   ;;  %v11761_v10 = vld [vmem:[%s15771_s1 + $0x9a4] ss:$8 sps:$4 sm:$0xff]  }
 0x2e3   :  { %7441 = vmatmul.mubr.bf16.gmra.mrb[208].mxu1 %v12080_v47  ;;  %4914 = vmatprep.mubr.bf16.mxu0 %v12081_v34  ;;  %v11764_v47 = vld [vmem:[%s15771_s1 + $0xfa4] ss:$8 sps:$4 sm:$0xff]  }
 0x2e4   :  { %7450 = vmatprep.mubr.bf16.mxu1 %v12081_v34  ;;  %5042 = vmatpush1.bf16.msra.mxu0 %v11747_v58  ;;  %v11759_v58 = vld [vmem:[%s15771_s1 + $0x9a0] ss:$8 sps:$4 sm:$0xff]  }
 0x2e5   :  { %7578 = vmatpush1.bf16.msra.mxu1 %v11750_v61  ;;  %5043 = vmatprep.subr.bf16.mxu0 %v11755_v12  ;;  %v11762_v61 = vld [vmem:[%s15771_s1 + $0xfa0] ss:$8 sps:$4 sm:$0xff]   ;;  %v11767_v12 = vld [vmem:[%s15771_s1 + $0x9b4] ss:$8 sps:$4 sm:$0xff]  }
 0x2e6   :  { %7579 = vmatprep.subr.bf16.mxu1 %v11758_v39  ;;  %v11770_v39 = vld [vmem:[%s15771_s1 + $0xfb4] ss:$8 sps:$4 sm:$0xff]   ;;  %v12082_v34 = vld [vmem:[%s15772_s0 + $0xc0] ss:$16 sps:$4 sm:$0xff]  }
 0x2e8   :  { %5044 = vmatpush1.bf16.msra.mxu0 %v11753_v26  ;;  %v12083_v26 = vld [vmem:[%s15772_s0 + $0xe4] ss:$16 sps:$4 sm:$0xff]  }
 0x2e9   :  { %7580 = vmatpush1.bf16.msra.mxu1 %v11756_v33  ;;  %5045 = vmatprep.subr.bf16.mxu0 %v11761_v10  ;;  %v11765_v33 = vld [vmem:[%s15771_s1 + $0x9b0] ss:$8 sps:$4 sm:$0xff]  }
 0x2ea   :  { %7581 = vmatprep.subr.bf16.mxu1 %v11764_v47  ;;  %4915 = vmatmul.mubr.bf16.gmra.mrb[212].mxu0 %v12082_v34  ;;  %v11768_v10 = vld [vmem:[%s15771_s1 + $0xfb0] ss:$8 sps:$4 sm:$0xff]   ;;  %v11773_v47 = vld [vmem:[%s15771_s1 + $0x9c4] ss:$8 sps:$4 sm:$0xff]  }
 0x2eb   :  { %7451 = vmatmul.mubr.bf16.gmra.mrb[212].mxu1 %v12082_v34  ;;  %4924 = vmatprep.mubr.bf16.mxu0 %v12083_v26  ;;  %v11776_v34 = vld [vmem:[%s15771_s1 + $0xfc4] ss:$8 sps:$4 sm:$0xff]  }
 0x2ec   :  { %7460 = vmatprep.mubr.bf16.mxu1 %v12083_v26  ;;  %5046 = vmatpush1.bf16.msra.mxu0 %v11759_v58  ;;  %v11771_v58 = vld [vmem:[%s15771_s1 + $0x9c0] ss:$8 sps:$4 sm:$0xff]  }
 0x2ed   :  { %7582 = vmatpush1.bf16.msra.mxu1 %v11762_v61  ;;  %5047 = vmatprep.subr.bf16.mxu0 %v11767_v12  ;;  %v11774_v61 = vld [vmem:[%s15771_s1 + $0xfc0] ss:$8 sps:$4 sm:$0xff]   ;;  %v11779_v12 = vld [vmem:[%s15771_s1 + $0x9d4] ss:$8 sps:$4 sm:$0xff]  }
 0x2ee   :  { %7583 = vmatprep.subr.bf16.mxu1 %v11770_v39  ;;  %v11782_v39 = vld [vmem:[%s15771_s1 + $0xfd4] ss:$8 sps:$4 sm:$0xff]   ;;  %v12084_v26 = vld [vmem:[%s15772_s0 + $0xe0] ss:$16 sps:$4 sm:$0xff]  }
 0x2f0   :  { %5048 = vmatpush1.bf16.msra.mxu0 %v11765_v33  ;;  %v14749_v33 = vld [vmem:[%s15772_s0 + $0x104] ss:$16 sps:$4 sm:$0xff]  }
 0x2f1   :  { %7584 = vmatpush1.bf16.msra.mxu1 %v11768_v10  ;;  %5049 = vmatprep.subr.bf16.mxu0 %v11773_v47  ;;  %v11777_v10 = vld [vmem:[%s15771_s1 + $0x9d0] ss:$8 sps:$4 sm:$0xff]  }
 0x2f2   :  { %7585 = vmatprep.subr.bf16.mxu1 %v11776_v34  ;;  %4925 = vmatmul.mubr.bf16.gmra.mrb[216].mxu0 %v12084_v26  ;;  %v11780_v47 = vld [vmem:[%s15771_s1 + $0xfd0] ss:$8 sps:$4 sm:$0xff]   ;;  %v11785_v34 = vld [vmem:[%s15771_s1 + $0x9e4] ss:$8 sps:$4 sm:$0xff]  }
 0x2f3   :  { %7461 = vmatmul.mubr.bf16.gmra.mrb[216].mxu1 %v12084_v26  ;;  %4934 = vmatprep.mubr.bf16.mxu0 %v14749_v33  ;;  %v11788_v26 = vld [vmem:[%s15771_s1 + $0xfe4] ss:$8 sps:$4 sm:$0xff]  }
 0x2f4   :  { %7470 = vmatprep.mubr.bf16.mxu1 %v14749_v33  ;;  %5050 = vmatpush1.bf16.msra.mxu0 %v11771_v58  ;;  %v11783_v58 = vld [vmem:[%s15771_s1 + $0x9e0] ss:$8 sps:$4 sm:$0xff]  }
 0x2f5   :  { %7586 = vmatpush1.bf16.msra.mxu1 %v11774_v61  ;;  %5051 = vmatprep.subr.bf16.mxu0 %v11779_v12  ;;  %v11786_v61 = vld [vmem:[%s15771_s1 + $0xfe0] ss:$8 sps:$4 sm:$0xff]   ;;  %v11791_v12 = vld [vmem:[%s15771_s1 + $0x9f4] ss:$8 sps:$4 sm:$0xff]  }
 0x2f6   :  { %7587 = vmatprep.subr.bf16.mxu1 %v11782_v39  ;;  %v11794_v39 = vld [vmem:[%s15771_s1 + $0xff4] ss:$8 sps:$4 sm:$0xff]  }
 0x2f8   :  { %5052 = vmatpush1.bf16.msra.mxu0 %v11777_v10  ;;  %v14780_v10 = vld [vmem:[%s15772_s0 + $0x100] ss:$16 sps:$4 sm:$0xff]  }
 0x2f9   :  { %7588 = vmatpush1.bf16.msra.mxu1 %v11780_v47  ;;  %5053 = vmatprep.subr.bf16.mxu0 %v11785_v34  ;;  %v12087_v47 = vld [vmem:[%s15772_s0 + $0x164] ss:$16 sps:$4 sm:$0xff]   ;;  %v11789_v34 = vld [vmem:[%s15771_s1 + $0x9f0] ss:$8 sps:$4 sm:$0xff]  }
 0x2fa   :  { %7589 = vmatprep.subr.bf16.mxu1 %v11788_v26  ;;  %4935 = vmatmul.mubr.bf16.gmra.mrb[220].mxu0 %v14780_v10  ;;  %v11792_v26 = vld [vmem:[%s15771_s1 + $0xff0] ss:$8 sps:$4 sm:$0xff]  }
 0x2fb   :  { %7471 = vmatmul.mubr.bf16.gmra.mrb[220].mxu1 %v14780_v10  ;;  %4944 = vmatprep.mubr.bf16.mxu0 %v12087_v47 }
 0x2fc   :  { %7480 = vmatprep.mubr.bf16.mxu1 %v12087_v47  ;;  %5054 = vmatpush1.bf16.msra.mxu0 %v11783_v58  ;;  %v11800_v47 = vld [vmem:[%s15771_s1 + $0x1004] ss:$8 sps:$4 sm:$0xff]   ;;  %v12088_v58 = vld [vmem:[%s15772_s0 + $0x160] ss:$16 sps:$4 sm:$0xff]  }
 0x2fd   :  { %7590 = vmatpush1.bf16.msra.mxu1 %v11786_v61  ;;  %5055 = vmatprep.subr.bf16.mxu0 %v11791_v12  ;;  %v12089_v61 = vld [vmem:[%s15772_s0 + $0x184] ss:$16 sps:$4 sm:$0xff]   ;;  %v12090_v12 = vld [vmem:[%s15772_s0 + $0x180] ss:$16 sps:$4 sm:$0xff]  }
 0x2fe   :  { %7591 = vmatprep.subr.bf16.mxu1 %v11794_v39  ;;  %v12092_v39 = vld [vmem:[%s15772_s0 + $0x1a0] ss:$16 sps:$4 sm:$0xff]  }
 0x300   :  { %5056 = vmatpush1.bf16.msra.mxu0 %v11789_v34  ;;  %v12093_v34 = vld [vmem:[%s15772_s0 + $0x1c4] ss:$16 sps:$4 sm:$0xff]  }
 0x301   :  { %7592 = vmatpush1.bf16.msra.mxu1 %v11792_v26  ;;  %5218 = vmatprep.subr.bf16.mxu0 %v11797_v15  ;;  %v12091_v15 = vld [vmem:[%s15772_s0 + $0x1a4] ss:$16 sps:$4 sm:$0xff]   ;;  %v12094_v26 = vld [vmem:[%s15772_s0 + $0x1c0] ss:$16 sps:$4 sm:$0xff]  }
 0x302   :  { %7754 = vmatprep.subr.bf16.mxu1 %v11800_v47  ;;  %4945 = vmatmul.mubr.bf16.gmra.mrb[224].mxu0 %v12088_v58  ;;  %v12095_v47 = vld [vmem:[%s15772_s0 + $0x1e4] ss:$16 sps:$4 sm:$0xff]  }
 0x303   :  { %7481 = vmatmul.mubr.bf16.gmra.mrb[224].mxu1 %v12088_v58  ;;  %4954 = vmatprep.mubr.bf16.mxu0 %v12089_v61  ;;  %v12096_v58 = vld [vmem:[%s15772_s0 + $0x1e0] ss:$16 sps:$4 sm:$0xff]  }
 0x304   :  { %7490 = vmatprep.mubr.bf16.mxu1 %v12089_v61  ;;  %v12097_v61 = vld [vmem:[%s15772_s0 + $0x204] ss:$16 sps:$4 sm:$0xff]  }
 0x30a   :  { %4955 = vmatmul.mubr.bf16.gmra.mrb[228].mxu0 %v12090_v12 }
 0x30b   :  { %7491 = vmatmul.mubr.bf16.gmra.mrb[228].mxu1 %v12090_v12  ;;  %4964 = vmatprep.mubr.bf16.mxu0 %v12091_v15  ;;  %v12098_v12 = vld [vmem:[%s15772_s0 + $0x200] ss:$16 sps:$4 sm:$0xff]  }
 0x30c   :  { %7500 = vmatprep.mubr.bf16.mxu1 %v12091_v15  ;;  %v12099_v15 = vld [vmem:[%s15772_s0 + $0x224] ss:$16 sps:$4 sm:$0xff]  }
 0x312   :  { %4965 = vmatmul.mubr.bf16.gmra.mrb[232].mxu0 %v12092_v39 }
 0x313   :  { %7501 = vmatmul.mubr.bf16.gmra.mrb[232].mxu1 %v12092_v39  ;;  %4974 = vmatprep.mubr.bf16.mxu0 %v12093_v34  ;;  %v12100_v39 = vld [vmem:[%s15772_s0 + $0x220] ss:$16 sps:$4 sm:$0xff]  }
 0x314   :  { %7510 = vmatprep.mubr.bf16.mxu1 %v12093_v34  ;;  %v12101_v34 = vld [vmem:[%s15772_s0 + $0x244] ss:$16 sps:$4 sm:$0xff]  }
 0x31a   :  { %4975 = vmatmul.mubr.bf16.gmra.mrb[236].mxu0 %v12094_v26 }
 0x31b   :  { %7511 = vmatmul.mubr.bf16.gmra.mrb[236].mxu1 %v12094_v26  ;;  %4984 = vmatprep.mubr.bf16.mxu0 %v12095_v47  ;;  %v12102_v26 = vld [vmem:[%s15772_s0 + $0x240] ss:$16 sps:$4 sm:$0xff]  }
 0x31c   :  { %7520 = vmatprep.mubr.bf16.mxu1 %v12095_v47  ;;  %v11795_v47 = vld [vmem:[%s15771_s1 + $0xa00] ss:$8 sps:$4 sm:$0xff]  }
 0x322   :  { %4985 = vmatmul.mubr.bf16.gmra.mrb[240].mxu0 %v12096_v58 }
 0x323   :  { %7521 = vmatmul.mubr.bf16.gmra.mrb[240].mxu1 %v12096_v58  ;;  %4994 = vmatprep.mubr.bf16.mxu0 %v12097_v61  ;;  %v11798_v58 = vld [vmem:[%s15771_s1 + $0x1000] ss:$8 sps:$4 sm:$0xff]  }
 0x324   :  { %7530 = vmatprep.mubr.bf16.mxu1 %v12097_v61  ;;  %v11803_v61 = vld [vmem:[%s15771_s1 + $0xa14] ss:$8 sps:$4 sm:$0xff]  }
 0x32a   :  { %4995 = vmatmul.mubr.bf16.gmra.mrb[244].mxu0 %v12098_v12 }
 0x32b   :  { %7531 = vmatmul.mubr.bf16.gmra.mrb[244].mxu1 %v12098_v12  ;;  %5004 = vmatprep.mubr.bf16.mxu0 %v12099_v15  ;;  %v11806_v12 = vld [vmem:[%s15771_s1 + $0x1014] ss:$8 sps:$4 sm:$0xff]  }
 0x32c   :  { %7540 = vmatprep.mubr.bf16.mxu1 %v12099_v15  ;;  %v11804_v15 = vld [vmem:[%s15771_s1 + $0x1010] ss:$8 sps:$4 sm:$0xff]  }
 0x332   :  { %5005 = vmatmul.mubr.bf16.gmra.mrb[248].mxu0 %v12100_v39 }
 0x333   :  { %7541 = vmatmul.mubr.bf16.gmra.mrb[248].mxu1 %v12100_v39  ;;  %5014 = vmatprep.mubr.bf16.mxu0 %v12101_v34  ;;  %v11809_v39 = vld [vmem:[%s15771_s1 + $0xa24] ss:$8 sps:$4 sm:$0xff]  }
 0x334   :  { %7550 = vmatprep.mubr.bf16.mxu1 %v12101_v34  ;;  %v11807_v34 = vld [vmem:[%s15771_s1 + $0xa20] ss:$8 sps:$4 sm:$0xff]  }
 0x33a   :  { %5015 = vmatmul.mubr.bf16.gmra.mrb[252].mxu0 %v12102_v26 }
 0x33b   :  { %7551 = vmatmul.mubr.bf16.gmra.mrb[252].mxu1 %v12102_v26  ;;  %5057 = vmatprep.mubr.bf16.mxu0 %v14115_v35  ;;  %v11815_v26 = vld [vmem:[%s15771_s1 + $0xa34] ss:$8 sps:$4 sm:$0xff]  }
 0x33c   :  { %7593 = vmatprep.mubr.bf16.mxu1 %v14115_v35  ;;  %v11801_v35 = vld [vmem:[%s15771_s1 + $0xa10] ss:$8 sps:$4 sm:$0xff]  }
 0x342   :  { %5058 = vmatmul.mubr.bf16.vlgmr.msra.gmra.mrb[192].mxu0 %v14146_v45 }
 0x343   :  { %7594 = vmatmul.mubr.bf16.vlgmr.msra.gmra.mrb[192].mxu1 %v14146_v45  ;;  %5219 = vmatpush1.bf16.msra.mxu0 %v11795_v47  ;;  %v11812_v45 = vld [vmem:[%s15771_s1 + $0x1024] ss:$8 sps:$4 sm:$0xff]   ;;  %v11818_v47 = vld [vmem:[%s15771_s1 + $0x1034] ss:$8 sps:$4 sm:$0xff]  }
 0x344   :  { %7755 = vmatpush1.bf16.msra.mxu1 %v11798_v58  ;;  %5067 = vmatprep.mubr.bf16.mxu0 %v14153_v1  ;;  %v11813_v58 = vld [vmem:[%s15771_s1 + $0xa30] ss:$8 sps:$4 sm:$0xff]  }
 0x345   :  { %7603 = vmatprep.mubr.bf16.mxu1 %v14153_v1  ;;  %5220 = vmatprep.subr.bf16.mxu0 %v11803_v61  ;;  %v11810_v1 = vld [vmem:[%s15771_s1 + $0x1020] ss:$8 sps:$4 sm:$0xff]   ;;  %v11816_v61 = vld [vmem:[%s15771_s1 + $0x1030] ss:$8 sps:$4 sm:$0xff]  }
 0x346   :  { %7756 = vmatprep.subr.bf16.mxu1 %v11806_v12  ;;  %v11819_v12 = vld [vmem:[%s15771_s1 + $0xa40] ss:$8 sps:$4 sm:$0xff]  }
 0x347   :  { %5221 = vmatpush1.bf16.msra.mxu0 %v11801_v35  ;;  %v11822_v35 = vld [vmem:[%s15771_s1 + $0x1040] ss:$8 sps:$4 sm:$0xff]  }
 0x348   :  { %7757 = vmatpush1.bf16.msra.mxu1 %v11804_v15  ;;  %5222 = vmatprep.subr.bf16.mxu0 %v11809_v39  ;;  %v11827_v15 = vld [vmem:[%s15771_s1 + $0xa54] ss:$8 sps:$4 sm:$0xff]  }
 0x349   :  { %7758 = vmatprep.subr.bf16.mxu1 %v11812_v45  ;;  %v11830_v39 = vld [vmem:[%s15771_s1 + $0x1054] ss:$8 sps:$4 sm:$0xff]   ;;  %v11825_v45 = vld [vmem:[%s15771_s1 + $0xa50] ss:$8 sps:$4 sm:$0xff]  }
 0x34a   :  { %5068 = vmatmul.mubr.bf16.gmra.mrb[196].mxu0 %v14190_v49 }
 0x34b   :  { %7604 = vmatmul.mubr.bf16.gmra.mrb[196].mxu1 %v14190_v49  ;;  %5077 = vmatprep.mubr.bf16.mxu0 %v14197_v14  ;;  %v11821_v49 = vld [vmem:[%s15771_s1 + $0xa44] ss:$8 sps:$4 sm:$0xff]  }
 0x34c   :  { %7613 = vmatprep.mubr.bf16.mxu1 %v14197_v14  ;;  %5223 = vmatpush1.bf16.msra.mxu0 %v11807_v34  ;;  %v11824_v14 = vld [vmem:[%s15771_s1 + $0x1044] ss:$8 sps:$4 sm:$0xff]   ;;  %v11828_v34 = vld [vmem:[%s15771_s1 + $0x1050] ss:$8 sps:$4 sm:$0xff]  }
 0x34d   :  { %7759 = vmatpush1.bf16.msra.mxu1 %v11810_v1  ;;  %5224 = vmatprep.subr.bf16.mxu0 %v11815_v26  ;;  %v11831_v1 = vld [vmem:[%s15771_s1 + $0xa60] ss:$8 sps:$4 sm:$0xff]  }
 0x34e   :  { %7760 = vmatprep.subr.bf16.mxu1 %v11818_v47  ;;  %v11834_v26 = vld [vmem:[%s15771_s1 + $0x1060] ss:$8 sps:$4 sm:$0xff]   ;;  %v11839_v47 = vld [vmem:[%s15771_s1 + $0xa74] ss:$8 sps:$4 sm:$0xff]  }
 0x350   :  { %5225 = vmatpush1.bf16.msra.mxu0 %v11813_v58  ;;  %v11842_v58 = vld [vmem:[%s15771_s1 + $0x1074] ss:$8 sps:$4 sm:$0xff]  }
 0x351   :  { %7761 = vmatpush1.bf16.msra.mxu1 %v11816_v61  ;;  %5226 = vmatprep.subr.bf16.mxu0 %v11821_v49  ;;  %v11837_v61 = vld [vmem:[%s15771_s1 + $0xa70] ss:$8 sps:$4 sm:$0xff]  }
 0x352   :  { %7762 = vmatprep.subr.bf16.mxu1 %v11824_v14  ;;  %5078 = vmatmul.mubr.bf16.gmra.mrb[200].mxu0 %v14234_v18  ;;  %v11840_v49 = vld [vmem:[%s15771_s1 + $0x1070] ss:$8 sps:$4 sm:$0xff]   ;;  %v11843_v14 = vld [vmem:[%s15771_s1 + $0xa80] ss:$8 sps:$4 sm:$0xff]  }
 0x353   :  { %7614 = vmatmul.mubr.bf16.gmra.mrb[200].mxu1 %v14234_v18  ;;  %5087 = vmatprep.mubr.bf16.mxu0 %v14241_v13  ;;  %v11833_v18 = vld [vmem:[%s15771_s1 + $0xa64] ss:$8 sps:$4 sm:$0xff]  }
 0x354   :  { %7623 = vmatprep.mubr.bf16.mxu1 %v14241_v13  ;;  %5227 = vmatpush1.bf16.msra.mxu0 %v11819_v12  ;;  %v11836_v13 = vld [vmem:[%s15771_s1 + $0x1064] ss:$8 sps:$4 sm:$0xff]   ;;  %v11846_v12 = vld [vmem:[%s15771_s1 + $0x1080] ss:$8 sps:$4 sm:$0xff]  }
 0x355   :  { %7763 = vmatpush1.bf16.msra.mxu1 %v11822_v35  ;;  %5228 = vmatprep.subr.bf16.mxu0 %v11827_v15  ;;  %v11851_v35 = vld [vmem:[%s15771_s1 + $0xa94] ss:$8 sps:$4 sm:$0xff]  }
 0x356   :  { %7764 = vmatprep.subr.bf16.mxu1 %v11830_v39  ;;  %v11854_v15 = vld [vmem:[%s15771_s1 + $0x1094] ss:$8 sps:$4 sm:$0xff]   ;;  %v11849_v39 = vld [vmem:[%s15771_s1 + $0xa90] ss:$8 sps:$4 sm:$0xff]  }
 0x358   :  { %5229 = vmatpush1.bf16.msra.mxu0 %v11825_v45  ;;  %v11852_v45 = vld [vmem:[%s15771_s1 + $0x1090] ss:$8 sps:$4 sm:$0xff]  }
 0x359   :  { %7765 = vmatpush1.bf16.msra.mxu1 %v11828_v34  ;;  %5230 = vmatprep.subr.bf16.mxu0 %v11833_v18  ;;  %v11855_v34 = vld [vmem:[%s15771_s1 + $0xaa0] ss:$8 sps:$4 sm:$0xff]  }
 0x35a   :  { %7766 = vmatprep.subr.bf16.mxu1 %v11836_v13  ;;  %5088 = vmatmul.mubr.bf16.gmra.mrb[204].mxu0 %v14278_v0  ;;  %v11858_v18 = vld [vmem:[%s15771_s1 + $0x10a0] ss:$8 sps:$4 sm:$0xff]   ;;  %v11863_v13 = vld [vmem:[%s15771_s1 + $0xab4] ss:$8 sps:$4 sm:$0xff]  }
 0x35b   :  { %7624 = vmatmul.mubr.bf16.gmra.mrb[204].mxu1 %v14278_v0  ;;  %5097 = vmatprep.mubr.bf16.mxu0 %v14285_v46  ;;  %v11845_v0 = vld [vmem:[%s15771_s1 + $0xa84] ss:$8 sps:$4 sm:$0xff]  }
 0x35c   :  { %7633 = vmatprep.mubr.bf16.mxu1 %v14285_v46  ;;  %5231 = vmatpush1.bf16.msra.mxu0 %v11831_v1  ;;  %v11848_v46 = vld [vmem:[%s15771_s1 + $0x1084] ss:$8 sps:$4 sm:$0xff]   ;;  %v11866_v1 = vld [vmem:[%s15771_s1 + $0x10b4] ss:$8 sps:$4 sm:$0xff]  }
 0x35d   :  { %7767 = vmatpush1.bf16.msra.mxu1 %v11834_v26  ;;  %5232 = vmatprep.subr.bf16.mxu0 %v11839_v47  ;;  %v11861_v26 = vld [vmem:[%s15771_s1 + $0xab0] ss:$8 sps:$4 sm:$0xff]  }
 0x35e   :  { %7768 = vmatprep.subr.bf16.mxu1 %v11842_v58  ;;  %v11864_v47 = vld [vmem:[%s15771_s1 + $0x10b0] ss:$8 sps:$4 sm:$0xff]   ;;  %v11867_v58 = vld [vmem:[%s15771_s1 + $0xac0] ss:$8 sps:$4 sm:$0xff]  }
 0x360   :  { %5233 = vmatpush1.bf16.msra.mxu0 %v11837_v61  ;;  %v11870_v61 = vld [vmem:[%s15771_s1 + $0x10c0] ss:$8 sps:$4 sm:$0xff]  }
 0x361   :  { %7769 = vmatpush1.bf16.msra.mxu1 %v11840_v49  ;;  %5234 = vmatprep.subr.bf16.mxu0 %v11845_v0  ;;  %v11875_v49 = vld [vmem:[%s15771_s1 + $0xad4] ss:$8 sps:$4 sm:$0xff]  }
 0x362   :  { %7770 = vmatprep.subr.bf16.mxu1 %v11848_v46  ;;  %5098 = vmatmul.mubr.bf16.gmra.mrb[208].mxu0 %v14322_v43  ;;  %v11878_v0 = vld [vmem:[%s15771_s1 + $0x10d4] ss:$8 sps:$4 sm:$0xff]  }
 0x363   :  { %7634 = vmatmul.mubr.bf16.gmra.mrb[208].mxu1 %v14322_v43  ;;  %5107 = vmatprep.mubr.bf16.mxu0 %v14329_v51  ;;  %v11857_v43 = vld [vmem:[%s15771_s1 + $0xaa4] ss:$8 sps:$4 sm:$0xff]  }
 0x364   :  { %7643 = vmatprep.mubr.bf16.mxu1 %v14329_v51  ;;  %5235 = vmatpush1.bf16.msra.mxu0 %v11843_v14  ;;  %v11860_v51 = vld [vmem:[%s15771_s1 + $0x10a4] ss:$8 sps:$4 sm:$0xff]   ;;  %v11873_v14 = vld [vmem:[%s15771_s1 + $0xad0] ss:$8 sps:$4 sm:$0xff]  }
 0x365   :  { %7771 = vmatpush1.bf16.msra.mxu1 %v11846_v12  ;;  %5236 = vmatprep.subr.bf16.mxu0 %v11851_v35  ;;  %v15031_v46 = vld [vmem:[%s15772_s0 + $0x10c] ss:$16 sps:$4 sm:$0xff]   ;;  %v11876_v12 = vld [vmem:[%s15771_s1 + $0x10d0] ss:$8 sps:$4 sm:$0xff]  }
 0x366   :  { %7772 = vmatprep.subr.bf16.mxu1 %v11854_v15  ;;  %v11884_v35 = vld [vmem:[%s15771_s1 + $0x10e4] ss:$8 sps:$4 sm:$0xff]   ;;  %v11879_v15 = vld [vmem:[%s15771_s1 + $0xae0] ss:$8 sps:$4 sm:$0xff]  }
 0x368   :  { %5237 = vmatpush1.bf16.msra.mxu0 %v11849_v39  ;;  %v11882_v39 = vld [vmem:[%s15771_s1 + $0x10e0] ss:$8 sps:$4 sm:$0xff]  }
 0x369   :  { %7773 = vmatpush1.bf16.msra.mxu1 %v11852_v45  ;;  %5238 = vmatprep.subr.bf16.mxu0 %v11857_v43  ;;  %v11887_v45 = vld [vmem:[%s15771_s1 + $0xaf4] ss:$8 sps:$4 sm:$0xff]  }
 0x36a   :  { %7774 = vmatprep.subr.bf16.mxu1 %v11860_v51  ;;  %5108 = vmatmul.mubr.bf16.gmra.mrb[212].mxu0 %v14366_v17  ;;  %v11890_v43 = vld [vmem:[%s15771_s1 + $0x10f4] ss:$8 sps:$4 sm:$0xff]   ;;  %v15062_v51 = vld [vmem:[%s15772_s0 + $0x108] ss:$16 sps:$4 sm:$0xff]  }
 0x36b   :  { %7644 = vmatmul.mubr.bf16.gmra.mrb[212].mxu1 %v14366_v17  ;;  %5117 = vmatprep.mubr.bf16.mxu0 %v14373_v3  ;;  %v11869_v17 = vld [vmem:[%s15771_s1 + $0xac4] ss:$8 sps:$4 sm:$0xff]  }
 0x36c   :  { %7653 = vmatprep.mubr.bf16.mxu1 %v14373_v3  ;;  %5239 = vmatpush1.bf16.msra.mxu0 %v11855_v34  ;;  %v11872_v3 = vld [vmem:[%s15771_s1 + $0x10c4] ss:$8 sps:$4 sm:$0xff]   ;;  %v11885_v34 = vld [vmem:[%s15771_s1 + $0xaf0] ss:$8 sps:$4 sm:$0xff]  }
 0x36d   :  { %7775 = vmatpush1.bf16.msra.mxu1 %v11858_v18  ;;  %5240 = vmatprep.subr.bf16.mxu0 %v11863_v13  ;;  %v11888_v18 = vld [vmem:[%s15771_s1 + $0x10f0] ss:$8 sps:$4 sm:$0xff]   ;;  %v11893_v13 = vld [vmem:[%s15771_s1 + $0xb04] ss:$8 sps:$4 sm:$0xff]  }
 0x36e   :  { %7776 = vmatprep.subr.bf16.mxu1 %v11866_v1  ;;  %v11903_v1 = vld [vmem:[%s15771_s1 + $0xb20] ss:$8 sps:$4 sm:$0xff]  }
 0x370   :  { %5241 = vmatpush1.bf16.msra.mxu0 %v11861_v26  ;;  %v11906_v26 = vld [vmem:[%s15771_s1 + $0x1120] ss:$8 sps:$4 sm:$0xff]  }
 0x371   :  { %7777 = vmatpush1.bf16.msra.mxu1 %v11864_v47  ;;  %5242 = vmatprep.subr.bf16.mxu0 %v11869_v17  ;;  %v11911_v47 = vld [vmem:[%s15771_s1 + $0xb34] ss:$8 sps:$4 sm:$0xff]  }
 0x372   :  { %7778 = vmatprep.subr.bf16.mxu1 %v11872_v3  ;;  %5118 = vmatmul.mubr.bf16.gmra.mrb[216].mxu0 %v14410_v31  ;;  %v11914_v17 = vld [vmem:[%s15771_s1 + $0x1134] ss:$8 sps:$4 sm:$0xff]   ;;  %v12110_v3 = vld [vmem:[%s15772_s0 + $0x60] ss:$16 sps:$4 sm:$0xff]  }
 0x373   :  { %7654 = vmatmul.mubr.bf16.gmra.mrb[216].mxu1 %v14410_v31  ;;  %5127 = vmatprep.mubr.bf16.mxu0 %v15031_v46  ;;  %v11881_v31 = vld [vmem:[%s15771_s1 + $0xae4] ss:$8 sps:$4 sm:$0xff]  }
 0x374   :  { %7663 = vmatprep.mubr.bf16.mxu1 %v15031_v46  ;;  %5243 = vmatpush1.bf16.msra.mxu0 %v11867_v58  ;;  %v12111_v58 = vld [vmem:[%s15772_s0 + $0x84] ss:$16 sps:$4 sm:$0xff]  }
 0x375   :  { %7779 = vmatpush1.bf16.msra.mxu1 %v11870_v61  ;;  %5244 = vmatprep.subr.bf16.mxu0 %v11875_v49  ;;  %v11909_v61 = vld [vmem:[%s15771_s1 + $0xb30] ss:$8 sps:$4 sm:$0xff]  }
 0x376   :  { %7780 = vmatprep.subr.bf16.mxu1 %v11878_v0  ;;  %v11912_v49 = vld [vmem:[%s15771_s1 + $0x1130] ss:$8 sps:$4 sm:$0xff]   ;;  %v11917_v0 = vld [vmem:[%s15771_s1 + $0xb44] ss:$8 sps:$4 sm:$0xff]  }
 0x378   :  { %5245 = vmatpush1.bf16.msra.mxu0 %v11873_v14  ;;  %v11920_v14 = vld [vmem:[%s15771_s1 + $0x1144] ss:$8 sps:$4 sm:$0xff]  }
 0x379   :  { %7781 = vmatpush1.bf16.msra.mxu1 %v11876_v12  ;;  %5246 = vmatprep.subr.bf16.mxu0 %v11881_v31  ;;  %v11915_v12 = vld [vmem:[%s15771_s1 + $0xb40] ss:$8 sps:$4 sm:$0xff]  }
 0x37a   :  { %7782 = vmatprep.subr.bf16.mxu1 %v11884_v35  ;;  %5128 = vmatmul.mubr.bf16.gmra.mrb[220].mxu0 %v15062_v51  ;;  %v11918_v31 = vld [vmem:[%s15771_s1 + $0x1140] ss:$8 sps:$4 sm:$0xff]   ;;  %v11923_v35 = vld [vmem:[%s15771_s1 + $0xb54] ss:$8 sps:$4 sm:$0xff]  }
 0x37b   :  { %7664 = vmatmul.mubr.bf16.gmra.mrb[220].mxu1 %v15062_v51  ;;  %5137 = vmatprep.mubr.bf16.mxu0 %v14441_v55 }
 0x37c   :  { %7673 = vmatprep.mubr.bf16.mxu1 %v14441_v55  ;;  %5247 = vmatpush1.bf16.msra.mxu0 %v11879_v15  ;;  %v11896_v55 = vld [vmem:[%s15771_s1 + $0x1104] ss:$8 sps:$4 sm:$0xff]   ;;  %v11926_v15 = vld [vmem:[%s15771_s1 + $0x1154] ss:$8 sps:$4 sm:$0xff]  }
 0x37d   :  { %7783 = vmatpush1.bf16.msra.mxu1 %v11882_v39  ;;  %5248 = vmatprep.subr.bf16.mxu0 %v11887_v45  ;;  %v12112_v39 = vld [vmem:[%s15772_s0 + $0x80] ss:$16 sps:$4 sm:$0xff]   ;;  %v12113_v45 = vld [vmem:[%s15772_s0 + $0xa4] ss:$16 sps:$4 sm:$0xff]  }
 0x37e   :  { %7784 = vmatprep.subr.bf16.mxu1 %v11890_v43  ;;  %v11921_v43 = vld [vmem:[%s15771_s1 + $0xb50] ss:$8 sps:$4 sm:$0xff]  }
 0x380   :  { %5249 = vmatpush1.bf16.msra.mxu0 %v11885_v34  ;;  %v11924_v34 = vld [vmem:[%s15771_s1 + $0x1150] ss:$8 sps:$4 sm:$0xff]  }
 0x381   :  { %7785 = vmatpush1.bf16.msra.mxu1 %v11888_v18  ;;  %5411 = vmatprep.subr.bf16.mxu0 %v11893_v13  ;;  %v11929_v18 = vld [vmem:[%s15771_s1 + $0xb64] ss:$8 sps:$4 sm:$0xff]  }
 0x382   :  { %7947 = vmatprep.subr.bf16.mxu1 %v11896_v55  ;;  %5138 = vmatmul.mubr.bf16.gmra.mrb[224].mxu0 %v14454_v23  ;;  %v11932_v13 = vld [vmem:[%s15771_s1 + $0x1164] ss:$8 sps:$4 sm:$0xff]   ;;  %v11927_v55 = vld [vmem:[%s15771_s1 + $0xb60] ss:$8 sps:$4 sm:$0xff]  }
 0x383   :  { %7674 = vmatmul.mubr.bf16.gmra.mrb[224].mxu1 %v14454_v23  ;;  %5147 = vmatprep.mubr.bf16.mxu0 %v14461_v25  ;;  %v12105_v23 = vld [vmem:[%s15772_s0 + $0x24c] ss:$16 sps:$4 sm:$0xff]  }
 0x384   :  { %7683 = vmatprep.mubr.bf16.mxu1 %v14461_v25  ;;  %v12106_v25 = vld [vmem:[%s15772_s0 + $0x248] ss:$16 sps:$4 sm:$0xff]  }
 0x38a   :  { %5148 = vmatmul.mubr.bf16.gmra.mrb[228].mxu0 %v14474_v16 }
 0x38b   :  { %7684 = vmatmul.mubr.bf16.gmra.mrb[228].mxu1 %v14474_v16  ;;  %5157 = vmatprep.mubr.bf16.mxu0 %v14481_v56  ;;  %v12107_v16 = vld [vmem:[%s15772_s0 + $0x44] ss:$16 sps:$4 sm:$0xff]  }
 0x38c   :  { %7693 = vmatprep.mubr.bf16.mxu1 %v14481_v56  ;;  %v11891_v56 = vld [vmem:[%s15771_s1 + $0xb00] ss:$8 sps:$4 sm:$0xff]  }
 0x392   :  { %5158 = vmatmul.mubr.bf16.gmra.mrb[232].mxu0 %v14488_v36 }
 0x393   :  { %7694 = vmatmul.mubr.bf16.gmra.mrb[232].mxu1 %v14488_v36  ;;  %5167 = vmatprep.mubr.bf16.mxu0 %v14495_v6  ;;  %v11894_v36 = vld [vmem:[%s15771_s1 + $0x1100] ss:$8 sps:$4 sm:$0xff]  }
 0x394   :  { %7703 = vmatprep.mubr.bf16.mxu1 %v14495_v6  ;;  %v11899_v6 = vld [vmem:[%s15771_s1 + $0xb14] ss:$8 sps:$4 sm:$0xff]  }
 0x39a   :  { %5168 = vmatmul.mubr.bf16.gmra.mrb[236].mxu0 %v14502_v53 }
 0x39b   :  { %7704 = vmatmul.mubr.bf16.gmra.mrb[236].mxu1 %v14502_v53  ;;  %5177 = vmatprep.mubr.bf16.mxu0 %v14509_v7  ;;  %v11902_v53 = vld [vmem:[%s15771_s1 + $0x1114] ss:$8 sps:$4 sm:$0xff]  }
 0x39c   :  { %7713 = vmatprep.mubr.bf16.mxu1 %v14509_v7  ;;  %v12108_v7 = vld [vmem:[%s15772_s0 + $0x40] ss:$16 sps:$4 sm:$0xff]  }
 0x3a2   :  { %5178 = vmatmul.mubr.bf16.gmra.mrb[240].mxu0 %v14516_v50 }
 0x3a3   :  { %7714 = vmatmul.mubr.bf16.gmra.mrb[240].mxu1 %v14516_v50  ;;  %5187 = vmatprep.mubr.bf16.mxu0 %v14523_v40  ;;  %v11897_v50 = vld [vmem:[%s15771_s1 + $0xb10] ss:$8 sps:$4 sm:$0xff]  }
 0x3a4   :  { %7723 = vmatprep.mubr.bf16.mxu1 %v14523_v40  ;;  %v11900_v40 = vld [vmem:[%s15771_s1 + $0x1110] ss:$8 sps:$4 sm:$0xff]  }
 0x3aa   :  { %5188 = vmatmul.mubr.bf16.gmra.mrb[244].mxu0 %v14530_v42 }
 0x3ab   :  { %7724 = vmatmul.mubr.bf16.gmra.mrb[244].mxu1 %v14530_v42  ;;  %5197 = vmatprep.mubr.bf16.mxu0 %v14537_v21  ;;  %v12109_v42 = vld [vmem:[%s15772_s0 + $0x64] ss:$16 sps:$4 sm:$0xff]  }
 0x3ac   :  { %7733 = vmatprep.mubr.bf16.mxu1 %v14537_v21  ;;  %v11905_v21 = vld [vmem:[%s15771_s1 + $0xb24] ss:$8 sps:$4 sm:$0xff]  }
 0x3b2   :  { %5198 = vmatmul.mubr.bf16.gmra.mrb[248].mxu0 %v14544_v2 }
 0x3b3   :  { %7734 = vmatmul.mubr.bf16.gmra.mrb[248].mxu1 %v14544_v2  ;;  %5207 = vmatprep.mubr.bf16.mxu0 %v12105_v23  ;;  %v11908_v2 = vld [vmem:[%s15771_s1 + $0x1124] ss:$8 sps:$4 sm:$0xff]  }
 0x3b4   :  { %7743 = vmatprep.mubr.bf16.mxu1 %v12105_v23  ;;  %v11930_v23 = vld [vmem:[%s15771_s1 + $0x1160] ss:$8 sps:$4 sm:$0xff]  }
 0x3ba   :  { %5208 = vmatmul.mubr.bf16.gmra.mrb[252].mxu0 %v12106_v25 }
 0x3bb   :  { %7744 = vmatmul.mubr.bf16.gmra.mrb[252].mxu1 %v12106_v25  ;;  %5250 = vmatprep.mubr.bf16.mxu0 %v12107_v16  ;;  %v11935_v25 = vld [vmem:[%s15771_s1 + $0xb74] ss:$8 sps:$4 sm:$0xff]  }
 0x3bc   :  { %7786 = vmatprep.mubr.bf16.mxu1 %v12107_v16  ;;  %v11938_v16 = vld [vmem:[%s15771_s1 + $0x1174] ss:$8 sps:$4 sm:$0xff]  }
 0x3c2   :  { %5251 = vmatmul.mubr.bf16.vlgmr.msra.gmra.mrb[192].mxu0 %v12108_v7 }
 0x3c3   :  { %7787 = vmatmul.mubr.bf16.vlgmr.msra.gmra.mrb[192].mxu1 %v12108_v7  ;;  %5412 = vmatpush1.bf16.msra.mxu0 %v11891_v56  ;;  %v12114_v56 = vld [vmem:[%s15772_s0 + $0xa0] ss:$16 sps:$4 sm:$0xff]   ;;  %v11941_v7 = vld [vmem:[%s15771_s1 + $0xb84] ss:$8 sps:$4 sm:$0xff]  }
 0x3c4   :  { %7948 = vmatpush1.bf16.msra.mxu1 %v11894_v36  ;;  %5260 = vmatprep.mubr.bf16.mxu0 %v12109_v42  ;;  %v12115_v36 = vld [vmem:[%s15772_s0 + $0xc4] ss:$16 sps:$4 sm:$0xff]  }
 0x3c5   :  { %7796 = vmatprep.mubr.bf16.mxu1 %v12109_v42  ;;  %5413 = vmatprep.subr.bf16.mxu0 %v11899_v6  ;;  %v11933_v6 = vld [vmem:[%s15771_s1 + $0xb70] ss:$8 sps:$4 sm:$0xff]   ;;  %v11942_v42 = vld [vmem:[%s15771_s1 + $0x1180] ss:$8 sps:$4 sm:$0xff]  }
 0x3c6   :  { %7949 = vmatprep.subr.bf16.mxu1 %v11902_v53  ;;  %v11936_v53 = vld [vmem:[%s15771_s1 + $0x1170] ss:$8 sps:$4 sm:$0xff]  }
 0x3c7   :  { %5414 = vmatpush1.bf16.msra.mxu0 %v11897_v50  ;;  %v11944_v50 = vld [vmem:[%s15771_s1 + $0x1184] ss:$8 sps:$4 sm:$0xff]  }
 0x3c8   :  { %7950 = vmatpush1.bf16.msra.mxu1 %v11900_v40  ;;  %5415 = vmatprep.subr.bf16.mxu0 %v11905_v21  ;;  %v11939_v40 = vld [vmem:[%s15771_s1 + $0xb80] ss:$8 sps:$4 sm:$0xff]   ;;  %v11947_v21 = vld [vmem:[%s15771_s1 + $0xb94] ss:$8 sps:$4 sm:$0xff]  }
 0x3c9   :  { %7951 = vmatprep.subr.bf16.mxu1 %v11908_v2  ;;  %v11950_v2 = vld [vmem:[%s15771_s1 + $0x1194] ss:$8 sps:$4 sm:$0xff]  }
 0x3ca   :  { %5261 = vmatmul.mubr.bf16.gmra.mrb[196].mxu0 %v12110_v3 }
 0x3cb   :  { %7797 = vmatmul.mubr.bf16.gmra.mrb[196].mxu1 %v12110_v3  ;;  %5270 = vmatprep.mubr.bf16.mxu0 %v12111_v58  ;;  %v11953_v3 = vld [vmem:[%s15771_s1 + $0xba4] ss:$8 sps:$4 sm:$0xff]  }
 0x3cc   :  { %7806 = vmatprep.mubr.bf16.mxu1 %v12111_v58  ;;  %5416 = vmatpush1.bf16.msra.mxu0 %v11903_v1  ;;  %v12116_v1 = vld [vmem:[%s15772_s0 + $0xc0] ss:$16 sps:$4 sm:$0xff]   ;;  %v11956_v58 = vld [vmem:[%s15771_s1 + $0x11a4] ss:$8 sps:$4 sm:$0xff]  }
 0x3cd   :  { %7952 = vmatpush1.bf16.msra.mxu1 %v11906_v26  ;;  %5417 = vmatprep.subr.bf16.mxu0 %v11911_v47  ;;  %v12117_v26 = vld [vmem:[%s15772_s0 + $0xe4] ss:$16 sps:$4 sm:$0xff]   ;;  %v11945_v47 = vld [vmem:[%s15771_s1 + $0xb90] ss:$8 sps:$4 sm:$0xff]  }
 0x3ce   :  { %7953 = vmatprep.subr.bf16.mxu1 %v11914_v17  ;;  %v11948_v17 = vld [vmem:[%s15771_s1 + $0x1190] ss:$8 sps:$4 sm:$0xff]  }
 0x3d0   :  { %5418 = vmatpush1.bf16.msra.mxu0 %v11909_v61  ;;  %v11951_v61 = vld [vmem:[%s15771_s1 + $0xba0] ss:$8 sps:$4 sm:$0xff]  }
 0x3d1   :  { %7954 = vmatpush1.bf16.msra.mxu1 %v11912_v49  ;;  %5419 = vmatprep.subr.bf16.mxu0 %v11917_v0  ;;  %v11954_v49 = vld [vmem:[%s15771_s1 + $0x11a0] ss:$8 sps:$4 sm:$0xff]   ;;  %v11959_v0 = vld [vmem:[%s15771_s1 + $0xbb4] ss:$8 sps:$4 sm:$0xff]  }
 0x3d2   :  { %7955 = vmatprep.subr.bf16.mxu1 %v11920_v14  ;;  %5271 = vmatmul.mubr.bf16.gmra.mrb[200].mxu0 %v12112_v39  ;;  %v11962_v14 = vld [vmem:[%s15771_s1 + $0x11b4] ss:$8 sps:$4 sm:$0xff]  }
 0x3d3   :  { %7807 = vmatmul.mubr.bf16.gmra.mrb[200].mxu1 %v12112_v39  ;;  %5280 = vmatprep.mubr.bf16.mxu0 %v12113_v45  ;;  %v11963_v39 = vld [vmem:[%s15771_s1 + $0xbc0] ss:$8 sps:$4 sm:$0xff]  }
 0x3d4   :  { %7816 = vmatprep.mubr.bf16.mxu1 %v12113_v45  ;;  %5420 = vmatpush1.bf16.msra.mxu0 %v11915_v12  ;;  %v12118_v12 = vld [vmem:[%s15772_s0 + $0xe0] ss:$16 sps:$4 sm:$0xff]  }
 0x3d5   :  { %7956 = vmatpush1.bf16.msra.mxu1 %v11918_v31  ;;  %5421 = vmatprep.subr.bf16.mxu0 %v11923_v35  ;;  %v11957_v31 = vld [vmem:[%s15771_s1 + $0xbb0] ss:$8 sps:$4 sm:$0xff]   ;;  %v11966_v45 = vld [vmem:[%s15771_s1 + $0x11c0] ss:$8 sps:$4 sm:$0xff]  }
 0x3d6   :  { %7957 = vmatprep.subr.bf16.mxu1 %v11926_v15  ;;  %v11960_v35 = vld [vmem:[%s15771_s1 + $0x11b0] ss:$8 sps:$4 sm:$0xff]   ;;  %v11965_v15 = vld [vmem:[%s15771_s1 + $0xbc4] ss:$8 sps:$4 sm:$0xff]  }
 0x3d8   :  { %5422 = vmatpush1.bf16.msra.mxu0 %v11921_v43  ;;  %v11971_v43 = vld [vmem:[%s15771_s1 + $0xbd4] ss:$8 sps:$4 sm:$0xff]  }
 0x3d9   :  { %7958 = vmatpush1.bf16.msra.mxu1 %v11924_v34  ;;  %5423 = vmatprep.subr.bf16.mxu0 %v11929_v18  ;;  %v11974_v34 = vld [vmem:[%s15771_s1 + $0x11d4] ss:$8 sps:$4 sm:$0xff]  }
 0x3da   :  { %7959 = vmatprep.subr.bf16.mxu1 %v11932_v13  ;;  %5281 = vmatmul.mubr.bf16.gmra.mrb[204].mxu0 %v12114_v56  ;;  %v12119_v18 = vld [vmem:[%s15772_s0 + $0x124] ss:$16 sps:$4 sm:$0xff]   ;;  %v11969_v13 = vld [vmem:[%s15771_s1 + $0xbd0] ss:$8 sps:$4 sm:$0xff]  }
 0x3db   :  { %7817 = vmatmul.mubr.bf16.gmra.mrb[204].mxu1 %v12114_v56  ;;  %5290 = vmatprep.mubr.bf16.mxu0 %v12115_v36  ;;  %v11983_v56 = vld [vmem:[%s15771_s1 + $0xbf4] ss:$8 sps:$4 sm:$0xff]  }
 0x3dc   :  { %7826 = vmatprep.mubr.bf16.mxu1 %v12115_v36  ;;  %5424 = vmatpush1.bf16.msra.mxu0 %v11927_v55  ;;  %v11972_v55 = vld [vmem:[%s15771_s1 + $0x11d0] ss:$8 sps:$4 sm:$0xff]   ;;  %v11986_v36 = vld [vmem:[%s15771_s1 + $0x11f4] ss:$8 sps:$4 sm:$0xff]  }
 0x3dd   :  { %7960 = vmatpush1.bf16.msra.mxu1 %v11930_v23  ;;  %5425 = vmatprep.subr.bf16.mxu0 %v11935_v25  ;;  %v11980_v23 = vld [vmem:[%s15771_s1 + $0x11e4] ss:$8 sps:$4 sm:$0xff]   ;;  %v11975_v25 = vld [vmem:[%s15771_s1 + $0xbe0] ss:$8 sps:$4 sm:$0xff]  }
 0x3de   :  { %7961 = vmatprep.subr.bf16.mxu1 %v11938_v16  ;;  %v11978_v16 = vld [vmem:[%s15771_s1 + $0x11e0] ss:$8 sps:$4 sm:$0xff]  }
 0x3e0   :  { %5426 = vmatpush1.bf16.msra.mxu0 %v11933_v6  ;;  %v12120_v6 = vld [vmem:[%s15772_s0 + $0x120] ss:$16 sps:$4 sm:$0xff]  }
 0x3e1   :  { %7962 = vmatpush1.bf16.msra.mxu1 %v11936_v53  ;;  %5427 = vmatprep.subr.bf16.mxu0 %v11941_v7  ;;  %v12121_v53 = vld [vmem:[%s15772_s0 + $0x184] ss:$16 sps:$4 sm:$0xff]   ;;  %v11981_v7 = vld [vmem:[%s15771_s1 + $0xbf0] ss:$8 sps:$4 sm:$0xff]  }
 0x3e2   :  { %7963 = vmatprep.subr.bf16.mxu1 %v11944_v50  ;;  %5291 = vmatmul.mubr.bf16.gmra.mrb[208].mxu0 %v12116_v1  ;;  %v11984_v50 = vld [vmem:[%s15771_s1 + $0x11f0] ss:$8 sps:$4 sm:$0xff]  }
 0x3e3   :  { %7827 = vmatmul.mubr.bf16.gmra.mrb[208].mxu1 %v12116_v1  ;;  %5300 = vmatprep.mubr.bf16.mxu0 %v12117_v26  ;;  %v12126_v1 = vld [vmem:[%s15772_s0 + $0x1c0] ss:$16 sps:$4 sm:$0xff]  }
 0x3e4   :  { %7836 = vmatprep.mubr.bf16.mxu1 %v12117_v26  ;;  %5428 = vmatpush1.bf16.msra.mxu0 %v11939_v40  ;;  %v12122_v40 = vld [vmem:[%s15772_s0 + $0x180] ss:$16 sps:$4 sm:$0xff]   ;;  %v12127_v26 = vld [vmem:[%s15772_s0 + $0x1e4] ss:$16 sps:$4 sm:$0xff]  }
 0x3e5   :  { %7964 = vmatpush1.bf16.msra.mxu1 %v11942_v42  ;;  %5429 = vmatprep.subr.bf16.mxu0 %v11947_v21  ;;  %v12123_v42 = vld [vmem:[%s15772_s0 + $0x1a4] ss:$16 sps:$4 sm:$0xff]   ;;  %v12124_v21 = vld [vmem:[%s15772_s0 + $0x1a0] ss:$16 sps:$4 sm:$0xff]  }
 0x3e6   :  { %7965 = vmatprep.subr.bf16.mxu1 %v11950_v2  ;;  %v12125_v2 = vld [vmem:[%s15772_s0 + $0x1c4] ss:$16 sps:$4 sm:$0xff]  }
 0x3e8   :  { %5430 = vmatpush1.bf16.msra.mxu0 %v11945_v47  ;;  %v12128_v47 = vld [vmem:[%s15772_s0 + $0x1e0] ss:$16 sps:$4 sm:$0xff]  }
 0x3e9   :  { %7966 = vmatpush1.bf16.msra.mxu1 %v11948_v17  ;;  %5431 = vmatprep.subr.bf16.mxu0 %v11953_v3  ;;  %v12129_v17 = vld [vmem:[%s15772_s0 + $0x204] ss:$16 sps:$4 sm:$0xff]   ;;  %v12130_v3 = vld [vmem:[%s15772_s0 + $0x200] ss:$16 sps:$4 sm:$0xff]  }
 0x3ea   :  { %7967 = vmatprep.subr.bf16.mxu1 %v11956_v58  ;;  %5301 = vmatmul.mubr.bf16.gmra.mrb[212].mxu0 %v12118_v12  ;;  %v12131_v58 = vld [vmem:[%s15772_s0 + $0x224] ss:$16 sps:$4 sm:$0xff]  }
 0x3eb   :  { %7837 = vmatmul.mubr.bf16.gmra.mrb[212].mxu1 %v12118_v12  ;;  %5310 = vmatprep.mubr.bf16.mxu0 %v14749_v33  ;;  %v12136_v12 = vld [vmem:[%s15772_s0 + $0x260] ss:$16 sps:$4 sm:$0xff]  }
 0x3ec   :  { %7846 = vmatprep.mubr.bf16.mxu1 %v14749_v33  ;;  %5432 = vmatpush1.bf16.msra.mxu0 %v11951_v61  ;;  %v11968_v33 = vld [vmem:[%s15771_s1 + $0x11c4] ss:$8 sps:$4 sm:$0xff]   ;;  %v12132_v61 = vld [vmem:[%s15772_s0 + $0x220] ss:$16 sps:$4 sm:$0xff]  }
 0x3ed   :  { %7968 = vmatpush1.bf16.msra.mxu1 %v11954_v49  ;;  %5433 = vmatprep.subr.bf16.mxu0 %v11959_v0  ;;  %v12133_v49 = vld [vmem:[%s15772_s0 + $0x244] ss:$16 sps:$4 sm:$0xff]   ;;  %v12134_v0 = vld [vmem:[%s15772_s0 + $0x240] ss:$16 sps:$4 sm:$0xff]  }
 0x3ee   :  { %7969 = vmatprep.subr.bf16.mxu1 %v11962_v14  ;;  %v12135_v14 = vld [vmem:[%s15772_s0 + $0x264] ss:$16 sps:$4 sm:$0xff]  }
 0x3f0   :  { %5434 = vmatpush1.bf16.msra.mxu0 %v11957_v31  ;;  %v12137_v31 = vld [vmem:[%s15772_s0 + $0x4c] ss:$16 sps:$4 sm:$0xff]  }
 0x3f1   :  { %7970 = vmatpush1.bf16.msra.mxu1 %v11960_v35  ;;  %5435 = vmatprep.subr.bf16.mxu0 %v11965_v15  ;;  %v11987_v35 = vld [vmem:[%s15773_s3 + $0x40] sm:$0xff]  }
 0x3f2   :  { %7971 = vmatprep.subr.bf16.mxu1 %v11968_v33  ;;  %5311 = vmatmul.mubr.bf16.gmra.mrb[216].mxu0 %v14780_v10  ;;  %v11988_v15 = vld [vmem:[%s15773_s3] sm:$0xff]   ;;  %v11989_v33 = vld [vmem:[%s15773_s3 + $0x48] sm:$0xff]  }
 0x3f3   :  { %7847 = vmatmul.mubr.bf16.gmra.mrb[216].mxu1 %v14780_v10  ;;  %5320 = vmatprep.mubr.bf16.mxu0 %v12119_v18  ;;  %v11977_v10 = vld [vmem:[%s15771_s1 + $0xbe4] ss:$8 sps:$4 sm:$0xff]  }
 0x3f4   :  { %7856 = vmatprep.mubr.bf16.mxu1 %v12119_v18  ;;  %5436 = vmatpush1.bf16.msra.mxu0 %v11963_v39  ;;  %v12138_v39 = vld [vmem:[%s15772_s0 + $0x48] ss:$16 sps:$4 sm:$0xff]   ;;  %v12141_v18 = vld [vmem:[%s15772_s0 + $0x8c] ss:$16 sps:$4 sm:$0xff]  }
 0x3f5   :  { %7972 = vmatpush1.bf16.msra.mxu1 %v11966_v45  ;;  %5437 = vmatprep.subr.bf16.mxu0 %v11971_v43  ;;  %v11990_v45 = vld [vmem:[%s15773_s3 + $0x8] sm:$0xff]  }
 0x3f6   :  { %7973 = vmatprep.subr.bf16.mxu1 %v11974_v34  ;;  %v12139_v43 = vld [vmem:[%s15772_s0 + $0x6c] ss:$16 sps:$4 sm:$0xff]   ;;  %v12140_v34 = vld [vmem:[%s15772_s0 + $0x68] ss:$16 sps:$4 sm:$0xff]  }
 0x3f8   :  { %5438 = vmatpush1.bf16.msra.mxu0 %v11969_v13  ;;  %v12142_v13 = vld [vmem:[%s15772_s0 + $0x88] ss:$16 sps:$4 sm:$0xff]  }
 0x3f9   :  { %7974 = vmatpush1.bf16.msra.mxu1 %v11972_v55  ;;  %5439 = vmatprep.subr.bf16.mxu0 %v11977_v10  ;;  %v12143_v55 = vld [vmem:[%s15772_s0 + $0xac] ss:$16 sps:$4 sm:$0xff]   ;;  %v12144_v10 = vld [vmem:[%s15772_s0 + $0xa8] ss:$16 sps:$4 sm:$0xff]  }
 0x3fa   :  { %7975 = vmatprep.subr.bf16.mxu1 %v11980_v23  ;;  %5321 = vmatmul.mubr.bf16.gmra.mrb[220].mxu0 %v12120_v6  ;;  %v12145_v23 = vld [vmem:[%s15772_s0 + $0xcc] ss:$16 sps:$4 sm:$0xff]  }
 0x3fb   :  { %7857 = vmatmul.mubr.bf16.gmra.mrb[220].mxu1 %v12120_v6  ;;  %5330 = vmatprep.mubr.bf16.mxu0 %v12121_v53  ;;  %v12150_v6 = vld [vmem:[%s15772_s0 + $0x128] ss:$16 sps:$4 sm:$0xff]  }
 0x3fc   :  { %7866 = vmatprep.mubr.bf16.mxu1 %v12121_v53  ;;  %5440 = vmatpush1.bf16.msra.mxu0 %v11975_v25  ;;  %v12146_v25 = vld [vmem:[%s15772_s0 + $0xc8] ss:$16 sps:$4 sm:$0xff]   ;;  %v12153_v53 = vld [vmem:[%s15772_s0 + $0x1ac] ss:$16 sps:$4 sm:$0xff]  }
 0x3fd   :  { %7976 = vmatpush1.bf16.msra.mxu1 %v11978_v16  ;;  %5441 = vmatprep.subr.bf16.mxu0 %v11983_v56  ;;  %v12147_v16 = vld [vmem:[%s15772_s0 + $0xec] ss:$16 sps:$4 sm:$0xff]   ;;  %v12148_v56 = vld [vmem:[%s15772_s0 + $0xe8] ss:$16 sps:$4 sm:$0xff]  }
 0x3fe   :  { %7977 = vmatprep.subr.bf16.mxu1 %v11986_v36  ;;  %v12149_v36 = vld [vmem:[%s15772_s0 + $0x12c] ss:$16 sps:$4 sm:$0xff]  }
 0x400   :  { %5442 = vmatpush1.bf16.msra.mxu0 %v11981_v7  ;;  %v12154_v7 = vld [vmem:[%s15772_s0 + $0x1a8] ss:$16 sps:$4 sm:$0xff]  }
 0x401   :  { %7978 = vmatpush1.bf16.msra.mxu1 %v11984_v50  ;;  %10204 = vmatprep.subr.bf16.mxu0 %v11987_v35  ;;  %v12155_v50 = vld [vmem:[%s15772_s0 + $0x1cc] ss:$16 sps:$4 sm:$0xff]  }
 0x402   :  { %5331 = vmatmul.mubr.bf16.gmra.mrb[224].mxu0 %v12122_v40  ;;  %10268 = vmatprep.subr.bf16.mxu1 %v11987_v35  ;;  %v12001_v35 = vld [vmem:[%s15773_s3 + $0x78] sm:$0xff]  }
 0x403   :  { %7867 = vmatmul.mubr.bf16.gmra.mrb[224].mxu1 %v12122_v40  ;;  %5340 = vmatprep.mubr.bf16.mxu0 %v12123_v42  ;;  %v12156_v40 = vld [vmem:[%s15772_s0 + $0x1c8] ss:$16 sps:$4 sm:$0xff]  }
 0x404   :  { %7876 = vmatprep.mubr.bf16.mxu1 %v12123_v42  ;;  %v12157_v42 = vld [vmem:[%s15772_s0 + $0x1ec] ss:$16 sps:$4 sm:$0xff]  }
 0x40a   :  { %5341 = vmatmul.mubr.bf16.gmra.mrb[228].mxu0 %v12124_v21 }
 0x40b   :  { %7877 = vmatmul.mubr.bf16.gmra.mrb[228].mxu1 %v12124_v21  ;;  %5350 = vmatprep.mubr.bf16.mxu0 %v12125_v2  ;;  %v11991_v21 = vld [vmem:[%s15773_s3 + $0x50] sm:$0xff]  }
 0x40c   :  { %7886 = vmatprep.mubr.bf16.mxu1 %v12125_v2  ;;  %v11992_v2 = vld [vmem:[%s15773_s3 + $0x10] sm:$0xff]  }
 0x412   :  { %5351 = vmatmul.mubr.bf16.gmra.mrb[232].mxu0 %v12126_v1 }
 0x413   :  { %7887 = vmatmul.mubr.bf16.gmra.mrb[232].mxu1 %v12126_v1  ;;  %5360 = vmatprep.mubr.bf16.mxu0 %v12127_v26  ;;  %v11993_v1 = vld [vmem:[%s15773_s3 + $0x58] sm:$0xff]  }
 0x414   :  { %7896 = vmatprep.mubr.bf16.mxu1 %v12127_v26  ;;  %v12158_v26 = vld [vmem:[%s15772_s0 + $0x1e8] ss:$16 sps:$4 sm:$0xff]  }
 0x41a   :  { %5361 = vmatmul.mubr.bf16.gmra.mrb[236].mxu0 %v12128_v47 }
 0x41b   :  { %7897 = vmatmul.mubr.bf16.gmra.mrb[236].mxu1 %v12128_v47  ;;  %5370 = vmatprep.mubr.bf16.mxu0 %v12129_v17  ;;  %v11994_v47 = vld [vmem:[%s15773_s3 + $0x18] sm:$0xff]  }
 0x41c   :  { %7906 = vmatprep.mubr.bf16.mxu1 %v12129_v17  ;;  %v12159_v17 = vld [vmem:[%s15772_s0 + $0x20c] ss:$16 sps:$4 sm:$0xff]  }
 0x422   :  { %5371 = vmatmul.mubr.bf16.gmra.mrb[240].mxu0 %v12130_v3 }
 0x423   :  { %7907 = vmatmul.mubr.bf16.gmra.mrb[240].mxu1 %v12130_v3  ;;  %5380 = vmatprep.mubr.bf16.mxu0 %v12131_v58  ;;  %v11995_v3 = vld [vmem:[%s15773_s3 + $0x60] sm:$0xff]  }
 0x424   :  { %7916 = vmatprep.mubr.bf16.mxu1 %v12131_v58  ;;  %v11996_v58 = vld [vmem:[%s15773_s3 + $0x20] sm:$0xff]  }
 0x42a   :  { %5381 = vmatmul.mubr.bf16.gmra.mrb[244].mxu0 %v12132_v61 }
 0x42b   :  { %7917 = vmatmul.mubr.bf16.gmra.mrb[244].mxu1 %v12132_v61  ;;  %5390 = vmatprep.mubr.bf16.mxu0 %v12133_v49  ;;  %v11997_v61 = vld [vmem:[%s15773_s3 + $0x68] sm:$0xff]  }
 0x42c   :  { %7926 = vmatprep.mubr.bf16.mxu1 %v12133_v49  ;;  %v12160_v49 = vld [vmem:[%s15772_s0 + $0x208] ss:$16 sps:$4 sm:$0xff]  }
 0x432   :  { %5391 = vmatmul.mubr.bf16.gmra.mrb[248].mxu0 %v12134_v0 }
 0x433   :  { %7927 = vmatmul.mubr.bf16.gmra.mrb[248].mxu1 %v12134_v0  ;;  %5400 = vmatprep.mubr.bf16.mxu0 %v12135_v14  ;;  %v11998_v0 = vld [vmem:[%s15773_s3 + $0x28] sm:$0xff]  }
 0x434   :  { %7936 = vmatprep.mubr.bf16.mxu1 %v12135_v14  ;;  %v12161_v14 = vld [vmem:[%s15772_s0 + $0x22c] ss:$16 sps:$4 sm:$0xff]  }
 0x43a   :  { %5401 = vmatmul.mubr.bf16.gmra.mrb[252].mxu0 %v12136_v12 }
 0x43b   :  { %7937 = vmatmul.mubr.bf16.gmra.mrb[252].mxu1 %v12136_v12  ;;  %5443 = vmatprep.mubr.bf16.mxu0 %v12137_v31  ;;  %v11999_v12 = vld [vmem:[%s15773_s3 + $0x70] sm:$0xff]  }
 0x43c   :  { %7979 = vmatprep.mubr.bf16.mxu1 %v12137_v31  ;;  %v12000_v31 = vld [vmem:[%s15773_s3 + $0x30] sm:$0xff]  }
 0x442   :  { %5444 = vmatmul.mubr.bf16.vlgmr.msra.gmra.mrb[192].mxu0 %v12138_v39 }
 0x443   :  { %7980 = vmatmul.mubr.bf16.vlgmr.msra.gmra.mrb[192].mxu1 %v12138_v39  ;;  %5453 = vmatprep.mubr.bf16.mxu0 %v12139_v43  ;;  %v12163_v39 = vld [vmem:[%s15772_s0 + $0x24c] ss:$16 sps:$4 sm:$0xff]  }
 0x444   :  { %7989 = vmatprep.mubr.bf16.mxu1 %v12139_v43  ;;  %10205 = vmatpush3.bf16.msra.mxu0 %v11988_v15  ;;  %v12165_v43 = vld [vmem:[%s15772_s0 + $0x26c] ss:$16 sps:$4 sm:$0xff]  }
 0x445   :  { %10276 = vmatpush3.bf16.msra.mxu1 %v11988_v15  ;;  %10206 = vmatprep.subr.bf16.mxu0 %v11989_v33  ;;  %v12162_v15 = vld [vmem:[%s15772_s0 + $0x228] ss:$16 sps:$4 sm:$0xff]  }
 0x446   :  { %10269 = vmatprep.subr.bf16.mxu1 %v11989_v33  ;;  %v12002_v33 = vld [vmem:[%s15773_s3 + $0x38] sm:$0xff]  }
 0x448   :  { %10207 = vmatpush3.bf16.msra.mxu0 %v11990_v45 }
 0x449   :  { %10277 = vmatpush3.bf16.msra.mxu1 %v11990_v45  ;;  %10208 = vmatprep.subr.bf16.mxu0 %v11991_v21  ;;  %v12164_v45 = vld [vmem:[%s15772_s0 + $0x248] ss:$16 sps:$4 sm:$0xff]  }
 0x44a   :  { %5454 = vmatmul.mubr.bf16.gmra.mrb[196].mxu0 %v12140_v34  ;;  %10270 = vmatprep.subr.bf16.mxu1 %v11991_v21 }
 0x44b   :  { %7990 = vmatmul.mubr.bf16.gmra.mrb[196].mxu1 %v12140_v34  ;;  %5463 = vmatprep.mubr.bf16.mxu0 %v12141_v18  ;;  %v12166_v34 = vld [vmem:[%s15772_s0 + $0x268] ss:$16 sps:$4 sm:$0xff]  }
 0x44c   :  { %7999 = vmatprep.mubr.bf16.mxu1 %v12141_v18  ;;  %10209 = vmatpush3.bf16.msra.mxu0 %v11992_v2  ;;  %v8367_v18 = vlaneseq }
 0x44d   :  { %10278 = vmatpush3.bf16.msra.mxu1 %v11992_v2  ;;  %10210 = vmatprep.subr.bf16.mxu0 %v11993_v1 }
 0x44e   :  { %10271 = vmatprep.subr.bf16.mxu1 %v11993_v1 }
 0x450   :  { %10211 = vmatpush3.bf16.msra.mxu0 %v11994_v47 }
 0x451   :  { %10279 = vmatpush3.bf16.msra.mxu1 %v11994_v47  ;;  %10212 = vmatprep.subr.bf16.mxu0 %v11995_v3 }
 0x452   :  { %5464 = vmatmul.mubr.bf16.gmra.mrb[200].mxu0 %v12142_v13  ;;  %10272 = vmatprep.subr.bf16.mxu1 %v11995_v3 }
 0x453   :  { %8000 = vmatmul.mubr.bf16.gmra.mrb[200].mxu1 %v12142_v13  ;;  %5473 = vmatprep.mubr.bf16.mxu0 %v12143_v55 }
 0x454   :  { %8009 = vmatprep.mubr.bf16.mxu1 %v12143_v55  ;;  %10213 = vmatpush3.bf16.msra.mxu0 %v11996_v58 }
 0x455   :  { %10280 = vmatpush3.bf16.msra.mxu1 %v11996_v58  ;;  %10214 = vmatprep.subr.bf16.mxu0 %v11997_v61  ;;  %v8365_v58 = vld [vmem:[%s15774_s2] sm:$0x3] }
 0x456   :  { %10273 = vmatprep.subr.bf16.mxu1 %v11997_v61 }
 0x458   :  { %10215 = vmatpush3.bf16.msra.mxu0 %v11998_v0 }
 0x459   :  { %10281 = vmatpush3.bf16.msra.mxu1 %v11998_v0  ;;  %10216 = vmatprep.subr.bf16.mxu0 %v11999_v12 }
 0x45a   :  { %5474 = vmatmul.mubr.bf16.gmra.mrb[204].mxu0 %v12144_v10  ;;  %10274 = vmatprep.subr.bf16.mxu1 %v11999_v12 }
 0x45b   :  { %8010 = vmatmul.mubr.bf16.gmra.mrb[204].mxu1 %v12144_v10  ;;  %5483 = vmatprep.mubr.bf16.mxu0 %v12145_v23 }
 0x45c   :  { %8019 = vmatprep.mubr.bf16.mxu1 %v12145_v23  ;;  %10217 = vmatpush3.bf16.msra.mxu0 %v12000_v31 }
 0x45d   :  { %10282 = vmatpush3.bf16.msra.mxu1 %v12000_v31  ;;  %10218 = vmatprep.subr.bf16.mxu0 %v12001_v35 }
 0x45e   :  { %10275 = vmatprep.subr.bf16.mxu1 %v12001_v35 }
 0x460   :  { %10219 = vmatpush3.bf16.msra.mxu0 %v12002_v33 }
 0x461   :  { %10283 = vmatpush3.bf16.msra.mxu1 %v12002_v33 }
 0x462   :  { %5484 = vmatmul.mubr.bf16.gmra.mrb[208].mxu0 %v12146_v25 }
 0x463   :  { %8020 = vmatmul.mubr.bf16.gmra.mrb[208].mxu1 %v12146_v25  ;;  %5493 = vmatprep.mubr.bf16.mxu0 %v12147_v16 }
 0x464   :  { %8029 = vmatprep.mubr.bf16.mxu1 %v12147_v16 }
 0x46a   :  { %5494 = vmatmul.mubr.bf16.gmra.mrb[212].mxu0 %v12148_v56 }
 0x46b   :  { %8030 = vmatmul.mubr.bf16.gmra.mrb[212].mxu1 %v12148_v56  ;;  %5503 = vmatprep.mubr.bf16.mxu0 %v15031_v46  ;;  %v8368_v56 = vshrl.u32 %v8367_v18, 7 }
 0x46c   :  { %8039 = vmatprep.mubr.bf16.mxu1 %v15031_v46  ;;  %v12151_v46 = vld [vmem:[%s15772_s0 + $0x18c] ss:$16 sps:$4 sm:$0xff]  }
 0x46d   :  { %v8369_v47 = vsub.s32 0, %v8368_v56 }
 0x46f   :  { %v15544_v33 = vrot.slane %v8365_v58, %v8369_v47 }
 0x472   :  { %5504 = vmatmul.mubr.bf16.gmra.mrb[216].mxu0 %v15062_v51 }
 0x473   :  { %8040 = vmatmul.mubr.bf16.gmra.mrb[216].mxu1 %v15062_v51  ;;  %5513 = vmatprep.mubr.bf16.mxu0 %v12149_v36  ;;  %v12152_v51 = vld [vmem:[%s15772_s0 + $0x188] ss:$16 sps:$4 sm:$0xff]  }
 0x474   :  { %8049 = vmatprep.mubr.bf16.mxu1 %v12149_v36 }
 0x47a   :  { %5514 = vmatmul.mubr.bf16.gmra.mrb[220].mxu0 %v12150_v6 }
 0x47b   :  { %8050 = vmatmul.mubr.bf16.gmra.mrb[220].mxu1 %v12150_v6  ;;  %5523 = vmatprep.mubr.bf16.mxu0 %v12151_v46 }
 0x47c   :  { %8059 = vmatprep.mubr.bf16.mxu1 %v12151_v46 }
 0x482   :  { %5524 = vmatmul.mubr.bf16.gmra.mrb[224].mxu0 %v12152_v51 }
 0x483   :  { %8060 = vmatmul.mubr.bf16.gmra.mrb[224].mxu1 %v12152_v51  ;;  %5533 = vmatprep.mubr.bf16.mxu0 %v12153_v53 }
 0x484   :  { %8069 = vmatprep.mubr.bf16.mxu1 %v12153_v53 }
 0x48a   :  { %5534 = vmatmul.mubr.bf16.gmra.mrb[228].mxu0 %v12154_v7 }
 0x48b   :  { %8070 = vmatmul.mubr.bf16.gmra.mrb[228].mxu1 %v12154_v7  ;;  %5543 = vmatprep.mubr.bf16.mxu0 %v12155_v50 }
 0x48c   :  { %8079 = vmatprep.mubr.bf16.mxu1 %v12155_v50 }
 0x492   :  { %5544 = vmatmul.mubr.bf16.gmra.mrb[232].mxu0 %v12156_v40 }
 0x493   :  { %8080 = vmatmul.mubr.bf16.gmra.mrb[232].mxu1 %v12156_v40  ;;  %5553 = vmatprep.mubr.bf16.mxu0 %v12157_v42 }
 0x494   :  { %8089 = vmatprep.mubr.bf16.mxu1 %v12157_v42 }
 0x49a   :  { %5554 = vmatmul.mubr.bf16.gmra.mrb[236].mxu0 %v12158_v26 }
 0x49b   :  { %8090 = vmatmul.mubr.bf16.gmra.mrb[236].mxu1 %v12158_v26  ;;  %5563 = vmatprep.mubr.bf16.mxu0 %v12159_v17 }
 0x49c   :  { %8099 = vmatprep.mubr.bf16.mxu1 %v12159_v17 }
 0x4a2   :  { %5564 = vmatmul.mubr.bf16.gmra.mrb[240].mxu0 %v12160_v49 }
 0x4a3   :  { %8100 = vmatmul.mubr.bf16.gmra.mrb[240].mxu1 %v12160_v49  ;;  %5573 = vmatprep.mubr.bf16.mxu0 %v12161_v14 }
 0x4a4   :  { %8109 = vmatprep.mubr.bf16.mxu1 %v12161_v14 }
 0x4aa   :  { %5574 = vmatmul.mubr.bf16.gmra.mrb[244].mxu0 %v12162_v15 }
 0x4ab   :  { %8110 = vmatmul.mubr.bf16.gmra.mrb[244].mxu1 %v12162_v15  ;;  %5583 = vmatprep.mubr.bf16.mxu0 %v12163_v39  ;;  %v8373_v15 = vsub.s32 1, %v8368_v56 }
 0x4ac   :  { %8119 = vmatprep.mubr.bf16.mxu1 %v12163_v39 }
 0x4b2   :  { %5584 = vmatmul.mubr.bf16.gmra.mrb[248].mxu0 %v12164_v45 }
 0x4b3   :  { %8120 = vmatmul.mubr.bf16.gmra.mrb[248].mxu1 %v12164_v45  ;;  %5593 = vmatprep.mubr.bf16.mxu0 %v12165_v43 }
 0x4b4   :  { %8129 = vmatprep.mubr.bf16.mxu1 %v12165_v43 }
 0x4ba   :  { %5594 = vmatmul.mubr.bf16.gmra.mrb[252].mxu0 %v12166_v34 }
 0x4bb   :  { %8130 = vmatmul.mubr.bf16.gmra.mrb[252].mxu1 %v12166_v34 }
 0x515   :  { %v5445_v13 = vpop.f32.mrb[192].mxu0 }
 0x516   :  { %v7981_v55 = vpop.f32.mrb[192].mxu1  ;;  %v5447_v10 = vpop.f32.mrb[193].mxu0  ;;  %v5669_v36 = vrot.slane %v5445_v13, 1 }
 0x517   :  { %v7983_v23 = vpop.f32.mrb[193].mxu1  ;;  %v5449_v25 = vpop.f32.mrb[194].mxu0  ;;  %v8205_v6 = vrot.slane %v7981_v55, 2  ;;  %v5672_v50 = vrot.slane %v5447_v10, 1 }
 0x518   :  { %v7985_v16 = vpop.f32.mrb[194].mxu1  ;;  %v5670_v46 = vrot.slane %v5449_v25, 1  ;;  %v5451_v53 = vpop.f32.mrb[195].mxu0  ;;  %v8208_v40 = vrot.slane %v7983_v23, 2 }
 0x519   :  { %v8206_v51 = vrot.slane %v7985_v16, 2  ;;  %v7987_v7 = vpop.f32.mrb[195].mxu1  ;;  %v5673_v42 = vrot.slane %v5451_v53, 1 }
 0x51a   :  { %v8209_v21 = vrot.slane %v7987_v7, 2  ;;  %v5671_v2 = vsel %vm5668_vm0, %v5669_v36, %v5670_v46  ;;  %v15548_v46 = vrot.slane %v8365_v58, %v8373_v15 }
 0x51b   :  { %v8207_v1 = vsel %vm8204_vm1, %v8205_v6, %v8206_v51  ;;  %v5797_v26 = vadd.f32 %v5671_v2, %v14027_v59  ;;  %v5674_v17 = vsel %vm5668_vm0, %v5672_v50, %v5673_v42 }
 0x51c   :  { %v8210_v3 = vsel %vm8204_vm1, %v8208_v40, %v8209_v21  ;;  %v5798_v61 = vadd.f32 %v5674_v17, %v14029_v4 }
 0x51d   :  { %v8333_v49 = vadd.f32 %v8207_v1, %v5797_v26  ;;  %v5455_v0 = vpop.f32.mrb[196].mxu0 }
 0x51e   :  { %v7991_v14 = vpop.f32.mrb[196].mxu1  ;;  %v8334_v12 = vadd.f32 %v8210_v3, %v5798_v61  ;;  %v5457_v31 = vpop.f32.mrb[197].mxu0  ;;  %v5675_v45 = vrot.slane %v5455_v0, 1 }
 0x51f   :  { %v7993_v35 = vpop.f32.mrb[197].mxu1  ;;  %v5459_v59 = vpop.f32.mrb[198].mxu0  ;;  %v8211_v43 = vrot.slane %v7991_v14, 2  ;;  %v5678_v23 = vrot.slane %v5457_v31, 1  ;;  %v8377_v56 = vadd.f32 %v15544_v33, %v8333_v49 }
 0x520   :  { %v7995_v39 = vpop.f32.mrb[198].mxu1  ;;  %v5676_v34 = vrot.slane %v5459_v59, 1  ;;  %v5461_v55 = vpop.f32.mrb[199].mxu0  ;;  %v8214_v25 = vrot.slane %v7993_v35, 2  ;;  %v8378_v47 = vadd.f32 %v15548_v46, %v8334_v12 }
 0x521   :  { %v8212_v13 = vrot.slane %v7995_v39, 2  ;;  %v7997_v10 = vpop.f32.mrb[199].mxu1  ;;  %v5679_v4 = vrot.slane %v5461_v55, 1  ;;  %v8409_v17 = vmax.f32 %v8377_v56, 0.0 }
 0x522   :  { %v8215_v16 = vrot.slane %v7997_v10, 2  ;;  %v5677_v36 = vsel %vm5668_vm0, %v5675_v45, %v5676_v34 }
 0x523   :  { %v8213_v6 = vsel %vm8204_vm1, %v8211_v43, %v8212_v13  ;;  %v5799_v51 = vadd.f32 %v5677_v36, %v14039_v63  ;;  %v5680_v53 = vsel %vm5668_vm0, %v5678_v23, %v5679_v4  ;;  %v8410_v13 = vmax.f32 %v8378_v47, 0.0 }
 0x524   :  { %v8216_v7 = vsel %vm8204_vm1, %v8214_v25, %v8215_v16  ;;  %v5800_v50 = vadd.f32 %v5680_v53, %v14041_v20 }
 0x525   :  { %v8335_v40 = vadd.f32 %v8213_v6, %v5799_v51  ;;  %v5465_v42 = vpop.f32.mrb[200].mxu0 }
 0x526   :  { %v8001_v21 = vpop.f32.mrb[200].mxu1  ;;  %v8336_v2 = vadd.f32 %v8216_v7, %v5800_v50  ;;  %v5467_v1 = vpop.f32.mrb[201].mxu0  ;;  %v5681_v58 = vrot.slane %v5465_v42, 1 }
 0x527   :  { %v8003_v26 = vpop.f32.mrb[201].mxu1  ;;  %v8379_v3 = vadd.f32 %v15544_v33, %v8335_v40  ;;  %v8217_v61 = vrot.slane %v8001_v21, 2  ;;  %v5469_v63 = vpop.f32.mrb[202].mxu0  ;;  %v5684_v0 = vrot.slane %v5467_v1, 1 }
 0x528   :  { %v8005_v49 = vpop.f32.mrb[202].mxu1  ;;  %v5682_v14 = vrot.slane %v5469_v63, 1  ;;  %v5471_v35 = vpop.f32.mrb[203].mxu0  ;;  %v8380_v15 = vadd.f32 %v15548_v46, %v8336_v2  ;;  %v8220_v39 = vrot.slane %v8003_v26, 2 }
 0x529   :  { %v8218_v31 = vrot.slane %v8005_v49, 2  ;;  %v8007_v20 = vpop.f32.mrb[203].mxu1  ;;  %v8411_v59 = vmax.f32 %v8379_v3, 0.0  ;;  %v5685_v45 = vrot.slane %v5471_v35, 1 }
 0x52a   :  { %v8221_v43 = vrot.slane %v8007_v20, 2  ;;  %v5683_v12 = vsel %vm5668_vm0, %v5681_v58, %v5682_v14  ;;  %v8412_v55 = vmax.f32 %v8380_v15, 0.0 }
 0x52b   :  { %v8219_v34 = vsel %vm8204_vm1, %v8217_v61, %v8218_v31  ;;  %v8441_v10 = vpack.c.bf16 %v8411_v59, %v8409_v17  ;;  %v5801_v23 = vadd.f32 %v5683_v12, %v14051_v29  ;;  %v5686_v25 = vsel %vm5668_vm0, %v5684_v0, %v5685_v45 }
 0x52c   :  { %v8222_v4 = vsel %vm8204_vm1, %v8220_v39, %v8221_v43  ;;  %v5802_v16 = vadd.f32 %v5686_v25, %v14053_v54  ;;  %v8442_v36 = vpack.c.bf16 %v8412_v55, %v8410_v13 }
 0x52d   :  { %v8337_v6 = vadd.f32 %v8219_v34, %v5801_v23  ;;  %v5475_v56 = vpop.f32.mrb[204].mxu0 }
 0x52e   :  { %v8011_v51 = vpop.f32.mrb[204].mxu1  ;;  %v8338_v53 = vadd.f32 %v8222_v4, %v5802_v16  ;;  %v5477_v7 = vpop.f32.mrb[205].mxu0  ;;  %8624 = vmatprep.mubr.bf16.mxu0 %v8442_v36  ;;  %v5687_v21 = vrot.slane %v5475_v56, 1 }
 0x52f   :  { %v8013_v50 = vpop.f32.mrb[205].mxu1  ;;  %v5479_v40 = vpop.f32.mrb[206].mxu0  ;;  %8625 = vmatmul.mubr.bf16.vlgmr.msra.gmra.mrb[0].mxu0 %v8441_v10  ;;  %v8223_v2 = vrot.slane %v8011_v51, 2  ;;  %v5690_v17 = vrot.slane %v5477_v7, 1  ;;  %v8381_v49 = vadd.f32 %v15544_v33, %v8337_v6 }
 0x530   :  { %v8015_v42 = vpop.f32.mrb[206].mxu1  ;;  %v5688_v29 = vrot.slane %v5479_v40, 1  ;;  %v5481_v26 = vpop.f32.mrb[207].mxu0  ;;  %v8226_v3 = vrot.slane %v8013_v50, 2  ;;  %v8382_v12 = vadd.f32 %v15548_v46, %v8338_v53 }
 0x531   :  { %v8224_v1 = vrot.slane %v8015_v42, 2  ;;  %v8017_v47 = vpop.f32.mrb[207].mxu1  ;;  %v5691_v54 = vrot.slane %v5481_v26, 1  ;;  %v8413_v34 = vmax.f32 %v8381_v49, 0.0 }
 0x532   :  { %v8227_v58 = vrot.slane %v8017_v47, 2  ;;  %v5689_v61 = vsel %vm5668_vm0, %v5687_v21, %v5688_v29  ;;  %v8414_v42 = vmax.f32 %v8382_v12, 0.0 }
 0x533   :  { %v8225_v63 = vsel %vm8204_vm1, %v8223_v2, %v8224_v1  ;;  %v5803_v0 = vadd.f32 %v5689_v61, %v14063_v5  ;;  %v5692_v14 = vsel %vm5668_vm0, %v5690_v17, %v5691_v54 }
 0x534   :  { %v8228_v31 = vsel %vm8204_vm1, %v8226_v3, %v8227_v58  ;;  %v5804_v35 = vadd.f32 %v5692_v14, %v14065_v8 }
 0x535   :  { %v8339_v20 = vadd.f32 %v8225_v63, %v5803_v0  ;;  %v5485_v15 = vpop.f32.mrb[208].mxu0 }
 0x536   :  { %v8021_v59 = vpop.f32.mrb[208].mxu1  ;;  %v8340_v39 = vadd.f32 %v8228_v31, %v5804_v35  ;;  %v5487_v45 = vpop.f32.mrb[209].mxu0  ;;  %v5693_v55 = vrot.slane %v5485_v15, 1 }
 0x537   :  { %v8023_v43 = vpop.f32.mrb[209].mxu1  ;;  %v8383_v13 = vadd.f32 %v15544_v33, %v8339_v20  ;;  %v8229_v10 = vrot.slane %v8021_v59, 2  ;;  %v5489_v5 = vpop.f32.mrb[210].mxu0  ;;  %v5696_v25 = vrot.slane %v5487_v45, 1 }
 0x538   :  { %v8025_v23 = vpop.f32.mrb[210].mxu1  ;;  %v5694_v4 = vrot.slane %v5489_v5, 1  ;;  %v5491_v36 = vpop.f32.mrb[211].mxu0  ;;  %v8384_v6 = vadd.f32 %v15548_v46, %v8340_v39  ;;  %v8232_v51 = vrot.slane %v8023_v43, 2 }
 0x539   :  { %v8230_v16 = vrot.slane %v8025_v23, 2  ;;  %v8027_v8 = vpop.f32.mrb[211].mxu1  ;;  %v8415_v56 = vmax.f32 %v8383_v13, 0.0  ;;  %v5697_v7 = vrot.slane %v5491_v36, 1 }
 0x53a   :  { %v8233_v50 = vrot.slane %v8027_v8, 2  ;;  %v5695_v53 = vsel %vm5668_vm0, %v5693_v55, %v5694_v4  ;;  %v8416_v21 = vmax.f32 %v8384_v6, 0.0 }
 0x53b   :  { %v8231_v40 = vsel %vm8204_vm1, %v8229_v10, %v8230_v16  ;;  %v8443_v2 = vpack.c.bf16 %v8415_v56, %v8413_v34  ;;  %v5805_v29 = vadd.f32 %v5695_v53, %v14075_v11  ;;  %v5698_v1 = vsel %vm5668_vm0, %v5696_v25, %v5697_v7 }
 0x53c   :  { %v8234_v26 = vsel %vm8204_vm1, %v8232_v51, %v8233_v50  ;;  %v5806_v47 = vadd.f32 %v5698_v1, %v14077_v62  ;;  %v8444_v17 = vpack.c.bf16 %v8416_v21, %v8414_v42 }
 0x53d   :  { %v8341_v3 = vadd.f32 %v8231_v40, %v5805_v29  ;;  %v5495_v54 = vpop.f32.mrb[212].mxu0 }
 0x53e   :  { %v8031_v58 = vpop.f32.mrb[212].mxu1  ;;  %v8342_v61 = vadd.f32 %v8234_v26, %v5806_v47  ;;  %v5497_v63 = vpop.f32.mrb[213].mxu0  ;;  %8632 = vmatprep.mubr.bf16.mxu0 %v8444_v17  ;;  %v5699_v31 = vrot.slane %v5495_v54, 1 }
 0x53f   :  { %v8033_v49 = vpop.f32.mrb[213].mxu1  ;;  %v5499_v0 = vpop.f32.mrb[214].mxu0  ;;  %8633 = vmatmul.mubr.bf16.gmra.mrb[4].mxu0 %v8443_v2  ;;  %v8235_v35 = vrot.slane %v8031_v58, 2  ;;  %v5702_v39 = vrot.slane %v5497_v63, 1  ;;  %v8385_v13 = vadd.f32 %v15544_v33, %v8341_v3 }
 0x540   :  { %v8035_v14 = vpop.f32.mrb[214].mxu1  ;;  %v5700_v11 = vrot.slane %v5499_v0, 1  ;;  %v5501_v15 = vpop.f32.mrb[215].mxu0  ;;  %v8238_v45 = vrot.slane %v8033_v49, 2  ;;  %v8386_v56 = vadd.f32 %v15548_v46, %v8342_v61 }
 0x541   :  { %v8236_v20 = vrot.slane %v8035_v14, 2  ;;  %v8037_v59 = vpop.f32.mrb[215].mxu1  ;;  %v5703_v62 = vrot.slane %v5501_v15, 1  ;;  %v8417_v51 = vmax.f32 %v8385_v13, 0.0 }
 0x542   :  { %v8239_v43 = vrot.slane %v8037_v59, 2  ;;  %v5701_v12 = vsel %vm5668_vm0, %v5699_v31, %v5700_v11  ;;  %v8418_v61 = vmax.f32 %v8386_v56, 0.0 }
 0x543   :  { %v8237_v34 = vsel %vm8204_vm1, %v8235_v35, %v8236_v20  ;;  %v5807_v55 = vadd.f32 %v5701_v12, %v14093_v37  ;;  %v5704_v10 = vsel %vm5668_vm0, %v5702_v39, %v5703_v62 }
 0x544   :  { %v8240_v5 = vsel %vm8204_vm1, %v8238_v45, %v8239_v43  ;;  %v5808_v23 = vadd.f32 %v5704_v10, %v14095_v22 }
 0x545   :  { %v8343_v25 = vadd.f32 %v8237_v34, %v5807_v55  ;;  %v5505_v4 = vpop.f32.mrb[216].mxu0 }
 0x546   :  { %v8041_v16 = vpop.f32.mrb[216].mxu1  ;;  %v8344_v36 = vadd.f32 %v8240_v5, %v5808_v23  ;;  %v5507_v8 = vpop.f32.mrb[217].mxu0  ;;  %v5705_v50 = vrot.slane %v5505_v4, 1 }
 0x547   :  { %v8043_v6 = vpop.f32.mrb[217].mxu1  ;;  %v8387_v7 = vadd.f32 %v15544_v33, %v8343_v25  ;;  %v8241_v53 = vrot.slane %v8041_v16, 2  ;;  %v5509_v37 = vpop.f32.mrb[218].mxu0  ;;  %v5708_v42 = vrot.slane %v5507_v8, 1 }
 0x548   :  { %v8045_v40 = vpop.f32.mrb[218].mxu1  ;;  %v5706_v21 = vrot.slane %v5509_v37, 1  ;;  %v5511_v29 = vpop.f32.mrb[219].mxu0  ;;  %v8388_v1 = vadd.f32 %v15548_v46, %v8344_v36  ;;  %v8244_v47 = vrot.slane %v8043_v6, 2 }
 0x549   :  { %v8242_v2 = vrot.slane %v8045_v40, 2  ;;  %v8047_v22 = vpop.f32.mrb[219].mxu1  ;;  %v8419_v26 = vmax.f32 %v8387_v7, 0.0  ;;  %v5709_v17 = vrot.slane %v5511_v29, 1 }
 0x54a   :  { %v8245_v3 = vrot.slane %v8047_v22, 2  ;;  %v5707_v54 = vsel %vm5668_vm0, %v5705_v50, %v5706_v21  ;;  %v8420_v63 = vmax.f32 %v8388_v1, 0.0 }
 0x54b   :  { %v8243_v58 = vsel %vm8204_vm1, %v8241_v53, %v8242_v2  ;;  %v8445_v49 = vpack.c.bf16 %v8419_v26, %v8417_v51  ;;  %v5809_v0 = vadd.f32 %v5707_v54, %v14127_v38  ;;  %v5710_v14 = vsel %vm5668_vm0, %v5708_v42, %v5709_v17 }
 0x54c   :  { %v8246_v31 = vsel %vm8204_vm1, %v8244_v47, %v8245_v3  ;;  %v5810_v35 = vadd.f32 %v5710_v14, %v14135_v41  ;;  %v8446_v11 = vpack.c.bf16 %v8420_v63, %v8418_v61 }
 0x54d   :  { %v8345_v20 = vadd.f32 %v8243_v58, %v5809_v0  ;;  %v5515_v15 = vpop.f32.mrb[220].mxu0 }
 0x54e   :  { %v8051_v59 = vpop.f32.mrb[220].mxu1  ;;  %v8346_v39 = vadd.f32 %v8246_v31, %v5810_v35  ;;  %v5517_v45 = vpop.f32.mrb[221].mxu0  ;;  %8640 = vmatprep.mubr.bf16.mxu0 %v8446_v11  ;;  %v5711_v34 = vrot.slane %v5515_v15, 1 }
 0x54f   :  { %v8053_v62 = vpop.f32.mrb[221].mxu1  ;;  %v5519_v43 = vpop.f32.mrb[222].mxu0  ;;  %8641 = vmatmul.mubr.bf16.gmra.mrb[8].mxu0 %v8445_v49  ;;  %v8247_v13 = vrot.slane %v8051_v59, 2  ;;  %v5714_v23 = vrot.slane %v5517_v45, 1  ;;  %v8389_v8 = vadd.f32 %v15544_v33, %v8345_v20 }
 0x550   :  { %v8055_v12 = vpop.f32.mrb[222].mxu1  ;;  %v5712_v38 = vrot.slane %v5519_v43, 1  ;;  %v5521_v10 = vpop.f32.mrb[223].mxu0  ;;  %v8250_v25 = vrot.slane %v8053_v62, 2  ;;  %v8390_v2 = vadd.f32 %v15548_v46, %v8346_v39 }
 0x551   :  { %v8248_v55 = vrot.slane %v8055_v12, 2  ;;  %v8057_v5 = vpop.f32.mrb[223].mxu1  ;;  %v5715_v41 = vrot.slane %v5521_v10, 1  ;;  %v8421_v29 = vmax.f32 %v8389_v8, 0.0 }
 0x552   :  { %v8251_v4 = vrot.slane %v8057_v5, 2  ;;  %v5713_v16 = vsel %vm5668_vm0, %v5711_v34, %v5712_v38  ;;  %v8422_v11 = vmax.f32 %v8390_v2, 0.0 }
 0x553   :  { %v8249_v36 = vsel %vm8204_vm1, %v8247_v13, %v8248_v55  ;;  %v5811_v6 = vadd.f32 %v5713_v16, %v14171_v57  ;;  %v5716_v56 = vsel %vm5668_vm0, %v5714_v23, %v5715_v41 }
 0x554   :  { %v8252_v51 = vsel %vm8204_vm1, %v8250_v25, %v8251_v4  ;;  %v5812_v7 = vadd.f32 %v5716_v56, %v14179_v52 }
 0x555   :  { %v8347_v50 = vadd.f32 %v8249_v36, %v5811_v6  ;;  %v5525_v53 = vpop.f32.mrb[224].mxu0 }
 0x556   :  { %v8061_v37 = vpop.f32.mrb[224].mxu1  ;;  %v8348_v40 = vadd.f32 %v8252_v51, %v5812_v7  ;;  %v5527_v42 = vpop.f32.mrb[225].mxu0  ;;  %v5717_v1 = vrot.slane %v5525_v53, 1 }
 0x557   :  { %v8063_v21 = vpop.f32.mrb[225].mxu1  ;;  %v8391_v22 = vadd.f32 %v15544_v33, %v8347_v50  ;;  %v8253_v26 = vrot.slane %v8061_v37, 2  ;;  %v5529_v57 = vpop.f32.mrb[226].mxu0  ;;  %v5720_v17 = vrot.slane %v5527_v42, 1 }
 0x558   :  { %v8065_v47 = vpop.f32.mrb[226].mxu1  ;;  %v5718_v3 = vrot.slane %v5529_v57, 1  ;;  %v5531_v58 = vpop.f32.mrb[227].mxu0  ;;  %v8392_v61 = vadd.f32 %v15548_v46, %v8348_v40  ;;  %v8256_v49 = vrot.slane %v8063_v21, 2 }
 0x559   :  { %v8254_v54 = vrot.slane %v8065_v47, 2  ;;  %v8067_v52 = vpop.f32.mrb[227].mxu1  ;;  %v8423_v63 = vmax.f32 %v8391_v22, 0.0  ;;  %v5721_v0 = vrot.slane %v5531_v58, 1 }
 0x55a   :  { %v8257_v14 = vrot.slane %v8067_v52, 2  ;;  %v5719_v31 = vsel %vm5668_vm0, %v5717_v1, %v5718_v3  ;;  %v8424_v20 = vmax.f32 %v8392_v61, 0.0 }
 0x55b   :  { %v8255_v35 = vsel %vm8204_vm1, %v8253_v26, %v8254_v54  ;;  %v8447_v15 = vpack.c.bf16 %v8423_v63, %v8421_v29  ;;  %v5813_v59 = vadd.f32 %v5719_v31, %v14215_v9  ;;  %v5722_v39 = vsel %vm5668_vm0, %v5720_v17, %v5721_v0 }
 0x55c   :  { %v8258_v45 = vsel %vm8204_vm1, %v8256_v49, %v8257_v14  ;;  %v5814_v62 = vadd.f32 %v5722_v39, %v14223_v19  ;;  %v8448_v43 = vpack.c.bf16 %v8424_v20, %v8422_v11 }
 0x55d   :  { %v8349_v12 = vadd.f32 %v8255_v35, %v5813_v59  ;;  %v5535_v34 = vpop.f32.mrb[228].mxu0 }
 0x55e   :  { %v8071_v13 = vpop.f32.mrb[228].mxu1  ;;  %v8350_v38 = vadd.f32 %v8258_v45, %v5814_v62  ;;  %v5537_v55 = vpop.f32.mrb[229].mxu0  ;;  %8648 = vmatprep.mubr.bf16.mxu0 %v8448_v43  ;;  %v5723_v25 = vrot.slane %v5535_v34, 1 }
 0x55f   :  { %v8073_v10 = vpop.f32.mrb[229].mxu1  ;;  %v5539_v5 = vpop.f32.mrb[230].mxu0  ;;  %8649 = vmatmul.mubr.bf16.gmra.mrb[12].mxu0 %v8447_v15  ;;  %v8259_v41 = vrot.slane %v8071_v13, 2  ;;  %v5726_v8 = vrot.slane %v5537_v55, 1  ;;  %v8393_v50 = vadd.f32 %v15544_v33, %v8349_v12 }
 0x560   :  { %v8075_v23 = vpop.f32.mrb[230].mxu1  ;;  %v5724_v9 = vrot.slane %v5539_v5, 1  ;;  %v5541_v16 = vpop.f32.mrb[231].mxu0  ;;  %v8262_v6 = vrot.slane %v8073_v10, 2  ;;  %v8394_v57 = vadd.f32 %v15548_v46, %v8350_v38 }
 0x561   :  { %v8260_v4 = vrot.slane %v8075_v23, 2  ;;  %v8077_v36 = vpop.f32.mrb[231].mxu1  ;;  %v5727_v19 = vrot.slane %v5541_v16, 1  ;;  %v8425_v47 = vmax.f32 %v8393_v50, 0.0 }
 0x562   :  { %v8263_v56 = vrot.slane %v8077_v36, 2  ;;  %v5725_v51 = vsel %vm5668_vm0, %v5723_v25, %v5724_v9  ;;  %v8426_v59 = vmax.f32 %v8394_v57, 0.0 }
 0x563   :  { %v8261_v7 = vsel %vm8204_vm1, %v8259_v41, %v8260_v4  ;;  %v5815_v53 = vadd.f32 %v5725_v51, %v14259_v32  ;;  %v5728_v37 = vsel %vm5668_vm0, %v5726_v8, %v5727_v19 }
 0x564   :  { %v8264_v40 = vsel %vm8204_vm1, %v8262_v6, %v8263_v56  ;;  %v5816_v42 = vadd.f32 %v5728_v37, %v14267_v60 }
 0x565   :  { %v8351_v21 = vadd.f32 %v8261_v7, %v5815_v53  ;;  %v5545_v2 = vpop.f32.mrb[232].mxu0 }
 0x566   :  { %v8081_v29 = vpop.f32.mrb[232].mxu1  ;;  %v8352_v22 = vadd.f32 %v8264_v40, %v5816_v42  ;;  %v5547_v1 = vpop.f32.mrb[233].mxu0  ;;  %v5729_v3 = vrot.slane %v5545_v2, 1 }
 0x567   :  { %v8083_v26 = vpop.f32.mrb[233].mxu1  ;;  %v8395_v17 = vadd.f32 %v15544_v33, %v8351_v21  ;;  %v8265_v54 = vrot.slane %v8081_v29, 2  ;;  %v5549_v32 = vpop.f32.mrb[234].mxu0  ;;  %v5732_v52 = vrot.slane %v5547_v1, 1 }
 0x568   :  { %v8085_v58 = vpop.f32.mrb[234].mxu1  ;;  %v5730_v61 = vrot.slane %v5549_v32, 1  ;;  %v5551_v49 = vpop.f32.mrb[235].mxu0  ;;  %v8396_v0 = vadd.f32 %v15548_v46, %v8352_v22  ;;  %v8268_v31 = vrot.slane %v8083_v26, 2 }
 0x569   :  { %v8266_v63 = vrot.slane %v8085_v58, 2  ;;  %v8087_v60 = vpop.f32.mrb[235].mxu1  ;;  %v8427_v14 = vmax.f32 %v8395_v17, 0.0  ;;  %v5733_v35 = vrot.slane %v5551_v49, 1 }
 0x56a   :  { %v8269_v11 = vrot.slane %v8087_v60, 2  ;;  %v5731_v20 = vsel %vm5668_vm0, %v5729_v3, %v5730_v61  ;;  %v8428_v39 = vmax.f32 %v8396_v0, 0.0 }
 0x56b   :  { %v8267_v15 = vsel %vm8204_vm1, %v8265_v54, %v8266_v63  ;;  %v8449_v45 = vpack.c.bf16 %v8427_v14, %v8425_v47  ;;  %v5817_v62 = vadd.f32 %v5731_v20, %v14303_v30  ;;  %v5734_v43 = vsel %vm5668_vm0, %v5732_v52, %v5733_v35 }
 0x56c   :  { %v8270_v12 = vsel %vm8204_vm1, %v8268_v31, %v8269_v11  ;;  %v5818_v34 = vadd.f32 %v5734_v43, %v14311_v48  ;;  %v8450_v13 = vpack.c.bf16 %v8428_v39, %v8426_v59 }
 0x56d   :  { %v8353_v38 = vadd.f32 %v8267_v15, %v5817_v62  ;;  %v5555_v55 = vpop.f32.mrb[236].mxu0 }
 0x56e   :  { %v8091_v10 = vpop.f32.mrb[236].mxu1  ;;  %v8354_v5 = vadd.f32 %v8270_v12, %v5818_v34  ;;  %v5557_v23 = vpop.f32.mrb[237].mxu0  ;;  %8656 = vmatprep.mubr.bf16.mxu1 %v8450_v13  ;;  %v5735_v4 = vrot.slane %v5555_v55, 1 }
 0x56f   :  { %v8093_v25 = vpop.f32.mrb[237].mxu1  ;;  %v5559_v41 = vpop.f32.mrb[238].mxu0  ;;  %8657 = vmatmul.mubr.bf16.vlgmr.msra.gmra.mrb[0].mxu1 %v8449_v45  ;;  %v8271_v16 = vrot.slane %v8091_v10, 2  ;;  %v5738_v19 = vrot.slane %v5557_v23, 1  ;;  %v8397_v53 = vadd.f32 %v15544_v33, %v8353_v38 }
 0x570   :  { %v8095_v9 = vpop.f32.mrb[238].mxu1  ;;  %v5736_v30 = vrot.slane %v5559_v41, 1  ;;  %v5561_v8 = vpop.f32.mrb[239].mxu0  ;;  %v8274_v56 = vrot.slane %v8093_v25, 2  ;;  %v8398_v47 = vadd.f32 %v15548_v46, %v8354_v5 }
 0x571   :  { %v8272_v36 = vrot.slane %v8095_v9, 2  ;;  %v8097_v6 = vpop.f32.mrb[239].mxu1  ;;  %v5739_v48 = vrot.slane %v5561_v8, 1  ;;  %v8429_v17 = vmax.f32 %v8397_v53, 0.0 }
 0x572   :  { %v8275_v51 = vrot.slane %v8097_v6, 2  ;;  %v5737_v7 = vsel %vm5668_vm0, %v5735_v4, %v5736_v30  ;;  %v8430_v15 = vmax.f32 %v8398_v47, 0.0 }
 0x573   :  { %v8273_v50 = vsel %vm8204_vm1, %v8271_v16, %v8272_v36  ;;  %v5819_v37 = vadd.f32 %v5737_v7, %v14347_v44  ;;  %v5740_v40 = vsel %vm5668_vm0, %v5738_v19, %v5739_v48  ;;  %v15783_v7 = vld [vmem:[#allocation2_spill] sm:$0xff] }
 0x574   :  { %v8276_v42 = vsel %vm8204_vm1, %v8274_v56, %v8275_v51  ;;  %v5820_v21 = vadd.f32 %v5740_v40, %v14355_v28  ;;  %v15784_v40 = vld [vmem:[#allocation3_spill] sm:$0xff] }
 0x575   :  { %v8355_v2 = vadd.f32 %v8273_v50, %v5819_v37  ;;  %v5565_v29 = vpop.f32.mrb[240].mxu0 }
 0x576   :  { %v8101_v22 = vpop.f32.mrb[240].mxu1  ;;  %v8356_v1 = vadd.f32 %v8276_v42, %v5820_v21  ;;  %v5567_v26 = vpop.f32.mrb[241].mxu0  ;;  %v5741_v54 = vrot.slane %v5565_v29, 1 }
 0x577   :  { %v8103_v57 = vpop.f32.mrb[241].mxu1  ;;  %v8399_v3 = vadd.f32 %v15544_v33, %v8355_v2  ;;  %v8277_v32 = vrot.slane %v8101_v22, 2  ;;  %v5569_v44 = vpop.f32.mrb[242].mxu0  ;;  %v5744_v52 = vrot.slane %v5567_v26, 1 }
 0x578   :  { %v8105_v58 = vpop.f32.mrb[242].mxu1  ;;  %v5742_v61 = vrot.slane %v5569_v44, 1  ;;  %v5571_v49 = vpop.f32.mrb[243].mxu0  ;;  %v8400_v60 = vadd.f32 %v15548_v46, %v8356_v1  ;;  %v8280_v14 = vrot.slane %v8103_v57, 2 }
 0x579   :  { %v8278_v63 = vrot.slane %v8105_v58, 2  ;;  %v8107_v28 = vpop.f32.mrb[243].mxu1  ;;  %v8431_v0 = vmax.f32 %v8399_v3, 0.0  ;;  %v5745_v31 = vrot.slane %v5571_v49, 1 }
 0x57a   :  { %v8281_v35 = vrot.slane %v8107_v28, 2  ;;  %v5743_v11 = vsel %vm5668_vm0, %v5741_v54, %v5742_v61  ;;  %v8432_v59 = vmax.f32 %v8400_v60, 0.0 }
 0x57b   :  { %v8279_v20 = vsel %vm8204_vm1, %v8277_v32, %v8278_v63  ;;  %v8451_v39 = vpack.c.bf16 %v8431_v0, %v8429_v17  ;;  %v5821_v45 = vadd.f32 %v5743_v11, %v14391_v24  ;;  %v5746_v62 = vsel %vm5668_vm0, %v5744_v52, %v5745_v31 }
 0x57c   :  { %v8282_v43 = vsel %vm8204_vm1, %v8280_v14, %v8281_v35  ;;  %v5822_v12 = vadd.f32 %v5746_v62, %v14399_v27  ;;  %v8452_v34 = vpack.c.bf16 %v8432_v59, %v8430_v15 }
 0x57d   :  { %v8357_v13 = vadd.f32 %v8279_v20, %v5821_v45  ;;  %v5575_v38 = vpop.f32.mrb[244].mxu0 }
 0x57e   :  { %v8111_v55 = vpop.f32.mrb[244].mxu1  ;;  %v8358_v10 = vadd.f32 %v8282_v43, %v5822_v12  ;;  %v5577_v5 = vpop.f32.mrb[245].mxu0  ;;  %8664 = vmatprep.mubr.bf16.mxu1 %v8452_v34  ;;  %v5747_v9 = vrot.slane %v5575_v38, 1  ;;  %v15786_v12 = vld [vmem:[#allocation5_spill] sm:$0xff] }
 0x57f   :  { %v8113_v23 = vpop.f32.mrb[245].mxu1  ;;  %v5579_v25 = vpop.f32.mrb[246].mxu0  ;;  %8665 = vmatmul.mubr.bf16.gmra.mrb[4].mxu1 %v8451_v39  ;;  %v8283_v4 = vrot.slane %v8111_v55, 2  ;;  %v5750_v8 = vrot.slane %v5577_v5, 1  ;;  %v8401_v51 = vadd.f32 %v15544_v33, %v8357_v13  ;;  %v15785_v39 = vld [vmem:[#allocation4_spill] sm:$0xff] }
 0x580   :  { %v8115_v41 = vpop.f32.mrb[246].mxu1  ;;  %v5748_v24 = vrot.slane %v5579_v25, 1  ;;  %v5581_v30 = vpop.f32.mrb[247].mxu0  ;;  %v8286_v6 = vrot.slane %v8113_v23, 2  ;;  %v8402_v57 = vadd.f32 %v15548_v46, %v8358_v10 }
 0x581   :  { %v8284_v16 = vrot.slane %v8115_v41, 2  ;;  %v8117_v36 = vpop.f32.mrb[247].mxu1  ;;  %v5751_v27 = vrot.slane %v5581_v30, 1  ;;  %v8433_v47 = vmax.f32 %v8401_v51, 0.0 }
 0x582   :  { %v8287_v19 = vrot.slane %v8117_v36, 2  ;;  %v5749_v56 = vsel %vm5668_vm0, %v5747_v9, %v5748_v24  ;;  %v8434_v20 = vmax.f32 %v8402_v57, 0.0 }
 0x583   :  { %v8285_v48 = vsel %vm8204_vm1, %v8283_v4, %v8284_v16  ;;  %v5823_v50 = vadd.f32 %v5749_v56, %v15783_v7  ;;  %v5752_v53 = vsel %vm5668_vm0, %v5750_v8, %v5751_v27  ;;  %v15787_v7 = vld [vmem:[#allocation6_spill] sm:$0xff] }
 0x584   :  { %v8288_v37 = vsel %vm8204_vm1, %v8286_v6, %v8287_v19  ;;  %v5824_v42 = vadd.f32 %v5752_v53, %v15784_v40  ;;  %v15788_v40 = vld [vmem:[#allocation7_spill] sm:$0xff] }
 0x585   :  { %v8359_v21 = vadd.f32 %v8285_v48, %v5823_v50  ;;  %v5585_v2 = vpop.f32.mrb[248].mxu0 }
 0x586   :  { %v8121_v29 = vpop.f32.mrb[248].mxu1  ;;  %v8360_v22 = vadd.f32 %v8288_v37, %v5824_v42  ;;  %v5587_v1 = vpop.f32.mrb[249].mxu0  ;;  %v5753_v3 = vrot.slane %v5585_v2, 1 }
 0x587   :  { %v8123_v26 = vpop.f32.mrb[249].mxu1  ;;  %v8403_v17 = vadd.f32 %v15544_v33, %v8359_v21  ;;  %v8289_v54 = vrot.slane %v8121_v29, 2  ;;  %v5589_v32 = vpop.f32.mrb[250].mxu0  ;;  %v5756_v58 = vrot.slane %v5587_v1, 1 }
 0x588   :  { %v8125_v44 = vpop.f32.mrb[250].mxu1  ;;  %v5754_v52 = vrot.slane %v5589_v32, 1  ;;  %v5591_v63 = vpop.f32.mrb[251].mxu0  ;;  %v8404_v28 = vadd.f32 %v15548_v46, %v8360_v22  ;;  %v8292_v0 = vrot.slane %v8123_v26, 2 }
 0x589   :  { %v8290_v61 = vrot.slane %v8125_v44, 2  ;;  %v8127_v49 = vpop.f32.mrb[251].mxu1  ;;  %v8435_v60 = vmax.f32 %v8403_v17, 0.0  ;;  %v5757_v14 = vrot.slane %v5591_v63, 1  ;;  %v15671_v44 = vand.u32 127, %v8367_v18 }
 0x58a   :  { %v8293_v31 = vrot.slane %v8127_v49, 2  ;;  %v5755_v35 = vsel %vm5668_vm0, %v5753_v3, %v5754_v52  ;;  %v8436_v15 = vmax.f32 %v8404_v28, 0.0  ;;  %v15676_v52 = vld [vmem:[%s15775_s4] ss:$0 sm:$0xff] }
 0x58b   :  { %v8291_v11 = vsel %vm8204_vm1, %v8289_v54, %v8290_v61  ;;  %v8453_v59 = vpack.c.bf16 %v8435_v60, %v8433_v47  ;;  %v5825_v45 = vadd.f32 %v5755_v35, %v15785_v39  ;;  %v5758_v62 = vsel %vm5668_vm0, %v5756_v58, %v5757_v14 }
 0x58c   :  { %v8294_v43 = vsel %vm8204_vm1, %v8292_v0, %v8293_v31  ;;  %v5826_v34 = vadd.f32 %v5758_v62, %v15786_v12  ;;  %v8454_v13 = vpack.c.bf16 %v8436_v15, %v8434_v20  ;;  %vm8724_vm2 = vcmp.ge.s32.totalorder %v15671_v44, 16 }
 0x58d   :  { %v8361_v38 = vadd.f32 %v8291_v11, %v5825_v45  ;;  %v5595_v55 = vpop.f32.mrb[252].mxu0  ;;  %vm8725_vm3 = vcmp.lt.s32.totalorder %v15671_v44, 24  ;;  %vm8691_vm4 = vcmp.ge.s32.totalorder %v15671_v44, 8  ;;  %v12167_v14 = vmov 0.0  }
 0x58e   :  { %v8131_v10 = vpop.f32.mrb[252].mxu1  ;;  %v8362_v5 = vadd.f32 %v8294_v43, %v5826_v34  ;;  %v5597_v23 = vpop.f32.mrb[253].mxu0  ;;  %8672 = vmatprep.mubr.bf16.mxu1 %v8454_v13  ;;  %v5759_v4 = vrot.slane %v5595_v55, 1  ;;  %vm8726_vm5 = vmand %vm8724_vm2, %vm8725_vm3 }
 0x58f   :  { %v8133_v25 = vpop.f32.mrb[253].mxu1  ;;  %v5599_v41 = vpop.f32.mrb[254].mxu0  ;;  %8673 = vmatmul.mubr.bf16.gmra.mrb[8].mxu1 %v8453_v59  ;;  %v8295_v24 = vrot.slane %v8131_v10, 2  ;;  %v5762_v6 = vrot.slane %v5597_v23, 1  ;;  %v8405_v21 = vadd.f32 %v15544_v33, %v8361_v38  ;;  %v15685_v31 = vsel %vm8726_vm5, 0.001, %v12167_v14 }
 0x590   :  { %v8135_v9 = vpop.f32.mrb[254].mxu1  ;;  %v5760_v16 = vrot.slane %v5599_v41, 1  ;;  %v5601_v36 = vpop.f32.mrb[255].mxu0  ;;  %v8298_v27 = vrot.slane %v8133_v25, 2  ;;  %v8406_v22 = vadd.f32 %v15548_v46, %v8362_v5 }
 0x591   :  { %v8296_v30 = vrot.slane %v8135_v9, 2  ;;  %v8137_v8 = vpop.f32.mrb[255].mxu1  ;;  %v5763_v19 = vrot.slane %v5601_v36, 1  ;;  %v8437_v57 = vmax.f32 %v8405_v21, 0.0 }
 0x592   :  { %v8299_v56 = vrot.slane %v8137_v8, 2  ;;  %v5761_v48 = vsel %vm5668_vm0, %v5759_v4, %v5760_v16  ;;  %v8438_v17 = vmax.f32 %v8406_v22, 0.0 }
 0x593   :  { %v8297_v51 = vsel %vm8204_vm1, %v8295_v24, %v8296_v30  ;;  %v5827_v50 = vadd.f32 %v5761_v48, %v15787_v7  ;;  %v5764_v53 = vsel %vm5668_vm0, %v5762_v6, %v5763_v19 }
 0x594   :  { %v8300_v37 = vsel %vm8204_vm1, %v8298_v27, %v8299_v56  ;;  %v5828_v42 = vadd.f32 %v5764_v53, %v15788_v40 }
 0x595   :  { %v8363_v2 = vadd.f32 %v8297_v51, %v5827_v50 }
 0x596   :  { %v8364_v29 = vadd.f32 %v8300_v37, %v5828_v42 }
 0x597   :  { %v8407_v1 = vadd.f32 %v15544_v33, %v8363_v2 }
 0x598   :  { %v8408_v26 = vadd.f32 %v15548_v46, %v8364_v29 }
 0x599   :  { %v8439_v47 = vmax.f32 %v8407_v1, 0.0 }
 0x59a   :  { %v8440_v3 = vmax.f32 %v8408_v26, 0.0 }
 0x59b   :  { %v8455_v54 = vpack.c.bf16 %v8439_v47, %v8437_v57 }
 0x59c   :  { %v8456_v32 = vpack.c.bf16 %v8440_v3, %v8438_v17 }
 0x59e   :  { %8680 = vmatprep.mubr.bf16.mxu1 %v8456_v32 }
 0x59f   :  { %8681 = vmatmul.mubr.bf16.gmra.mrb[12].mxu1 %v8455_v54 }
 0x602   :  { %v10220_v58 = vpop.f32.mrb[0].mxu0 }
 0x603   :  { %v10221_v33 = vpop.f32.mrb[1].mxu0 }
 0x604   :  { %v10222_v61 = vadd.f32 %v10221_v33, %v10220_v58  ;;  %v10223_v46 = vpop.f32.mrb[2].mxu0 }
 0x605   :  { %v10224_v63 = vpop.f32.mrb[3].mxu0 }
 0x606   :  { %v8627_v49 = vadd.f32 %v10222_v61, %v15676_v52  ;;  %v10225_v28 = vadd.f32 %v10224_v63, %v10223_v46 }
 0x608   :  { %v8692_v18 = vmax.f32 %v8627_v49, 0.0  ;;  %v8630_v60 = vadd.f32 %v10225_v28, %v15676_v52 }
 0x60a   :  { %v8708_v0 = vsel %vm8691_vm4, %v8692_v18, %v8627_v49  ;;  %v8693_v35 = vmax.f32 %v8630_v60, 0.0 }
 0x60b   :  { %v8728_v20 = vadd.f32 %v15685_v31, %v8708_v0 }
 0x60c   :  { %v8709_v11 = vsel %vm8691_vm4, %v8693_v35, %v8630_v60 }
 0x60d   :  { %v8729_v15 = vadd.f32 %v15685_v31, %v8709_v11 }
 0x60f   :  { %v10160_v59 = vpack.c.bf16 %v8729_v15, %v8728_v20 }
 0x611   :  { %10161 = vst [vmem:[%s15776_s5] sm:$0xff] %v10160_v59  }
 0x612   :  { %v10226_v39 = vpop.f32.mrb[4].mxu0 }
 0x613   :  { %v10227_v45 = vpop.f32.mrb[5].mxu0 }
 0x614   :  { %v10228_v62 = vadd.f32 %v10227_v45, %v10226_v39  ;;  %v10229_v43 = vpop.f32.mrb[6].mxu0 }
 0x615   :  { %v10230_v12 = vpop.f32.mrb[7].mxu0 }
 0x616   :  { %v8635_v34 = vadd.f32 %v10228_v62, %v15676_v52  ;;  %v10231_v13 = vadd.f32 %v10230_v12, %v10229_v43 }
 0x618   :  { %v8694_v38 = vmax.f32 %v8635_v34, 0.0  ;;  %v8638_v55 = vadd.f32 %v10231_v13, %v15676_v52 }
 0x61a   :  { %v8710_v10 = vsel %vm8691_vm4, %v8694_v38, %v8635_v34  ;;  %v8695_v5 = vmax.f32 %v8638_v55, 0.0 }
 0x61b   :  { %v8730_v25 = vadd.f32 %v15685_v31, %v8710_v10 }
 0x61c   :  { %v8711_v23 = vsel %vm8691_vm4, %v8695_v5, %v8638_v55 }
 0x61d   :  { %v8731_v41 = vadd.f32 %v15685_v31, %v8711_v23 }
 0x61f   :  { %v10165_v9 = vpack.c.bf16 %v8731_v41, %v8730_v25 }
 0x621   :  { %10197 = vst [vmem:[%s15776_s5 + $0x8] sm:$0xff] %v10165_v9  }
 0x622   :  { %v10232_v4 = vpop.f32.mrb[8].mxu0 }
 0x623   :  { %v10233_v24 = vpop.f32.mrb[9].mxu0 }
 0x624   :  { %v10234_v16 = vadd.f32 %v10233_v24, %v10232_v4  ;;  %v10235_v30 = vpop.f32.mrb[10].mxu0 }
 0x625   :  { %v10236_v36 = vpop.f32.mrb[11].mxu0 }
 0x626   :  { %v8643_v8 = vadd.f32 %v10234_v16, %v15676_v52  ;;  %v10237_v6 = vadd.f32 %v10236_v36, %v10235_v30 }
 0x628   :  { %v8696_v27 = vmax.f32 %v8643_v8, 0.0  ;;  %v8646_v19 = vadd.f32 %v10237_v6, %v15676_v52 }
 0x62a   :  { %v8712_v56 = vsel %vm8691_vm4, %v8696_v27, %v8643_v8  ;;  %v8697_v48 = vmax.f32 %v8646_v19, 0.0 }
 0x62b   :  { %v8732_v7 = vadd.f32 %v15685_v31, %v8712_v56 }
 0x62c   :  { %v8713_v51 = vsel %vm8691_vm4, %v8697_v48, %v8646_v19 }
 0x62d   :  { %v8733_v50 = vadd.f32 %v15685_v31, %v8713_v51 }
 0x62f   :  { %v10170_v53 = vpack.c.bf16 %v8733_v50, %v8732_v7 }
 0x631   :  { %10198 = vst [vmem:[%s15776_s5 + $0x10] sm:$0xff] %v10170_v53  }
 0x632   :  { %v10238_v37 = vpop.f32.mrb[12].mxu0 }
 0x633   :  { %v10239_v40 = vpop.f32.mrb[13].mxu0 }
 0x634   :  { %v10240_v42 = vadd.f32 %v10239_v40, %v10238_v37  ;;  %v10241_v21 = vpop.f32.mrb[14].mxu0 }
 0x635   :  { %v10242_v2 = vpop.f32.mrb[15].mxu0 }
 0x636   :  { %v8651_v29 = vadd.f32 %v10240_v42, %v15676_v52  ;;  %v10243_v22 = vadd.f32 %v10242_v2, %v10241_v21 }
 0x638   :  { %v8698_v1 = vmax.f32 %v8651_v29, 0.0  ;;  %v8654_v26 = vadd.f32 %v10243_v22, %v15676_v52 }
 0x63a   :  { %v8714_v57 = vsel %vm8691_vm4, %v8698_v1, %v8651_v29  ;;  %v8699_v47 = vmax.f32 %v8654_v26, 0.0 }
 0x63b   :  { %v8734_v3 = vadd.f32 %v15685_v31, %v8714_v57 }
 0x63c   :  { %v8715_v17 = vsel %vm8691_vm4, %v8699_v47, %v8654_v26 }
 0x63d   :  { %v8735_v54 = vadd.f32 %v15685_v31, %v8715_v17 }
 0x63f   :  { %v10175_v32 = vpack.c.bf16 %v8735_v54, %v8734_v3 }
 0x641   :  { %10199 = vst [vmem:[%s15776_s5 + $0x18] sm:$0xff] %v10175_v32  }
 0x642   :  { %v10244_v58 = vpop.f32.mrb[0].mxu1 }
 0x643   :  { %v10245_v33 = vpop.f32.mrb[1].mxu1 }
 0x644   :  { %v10246_v61 = vadd.f32 %v10245_v33, %v10244_v58  ;;  %v10247_v46 = vpop.f32.mrb[2].mxu1 }
 0x645   :  { %v10248_v63 = vpop.f32.mrb[3].mxu1 }
 0x646   :  { %v8659_v49 = vadd.f32 %v10246_v61, %v15676_v52  ;;  %v10249_v28 = vadd.f32 %v10248_v63, %v10247_v46 }
 0x648   :  { %v8700_v18 = vmax.f32 %v8659_v49, 0.0  ;;  %v8662_v60 = vadd.f32 %v10249_v28, %v15676_v52 }
 0x64a   :  { %v8716_v0 = vsel %vm8691_vm4, %v8700_v18, %v8659_v49  ;;  %v8701_v14 = vmax.f32 %v8662_v60, 0.0 }
 0x64b   :  { %v8736_v11 = vadd.f32 %v15685_v31, %v8716_v0 }
 0x64c   :  { %v8717_v35 = vsel %vm8691_vm4, %v8701_v14, %v8662_v60 }
 0x64d   :  { %v8737_v20 = vadd.f32 %v15685_v31, %v8717_v35 }
 0x64f   :  { %v10180_v15 = vpack.c.bf16 %v8737_v20, %v8736_v11 }
 0x651   :  { %10200 = vst [vmem:[%s15776_s5 + $0x20] sm:$0xff] %v10180_v15  }
 0x652   :  { %v10250_v59 = vpop.f32.mrb[4].mxu1 }
 0x653   :  { %v10251_v39 = vpop.f32.mrb[5].mxu1 }
 0x654   :  { %v10252_v45 = vadd.f32 %v10251_v39, %v10250_v59  ;;  %v10253_v62 = vpop.f32.mrb[6].mxu1 }
 0x655   :  { %v10254_v43 = vpop.f32.mrb[7].mxu1 }
 0x656   :  { %v8667_v12 = vadd.f32 %v10252_v45, %v15676_v52  ;;  %v10255_v34 = vadd.f32 %v10254_v43, %v10253_v62 }
 0x658   :  { %v8702_v13 = vmax.f32 %v8667_v12, 0.0  ;;  %v8670_v38 = vadd.f32 %v10255_v34, %v15676_v52 }
 0x65a   :  { %v8718_v55 = vsel %vm8691_vm4, %v8702_v13, %v8667_v12  ;;  %v8703_v10 = vmax.f32 %v8670_v38, 0.0 }
 0x65b   :  { %v8738_v23 = vadd.f32 %v15685_v31, %v8718_v55 }
 0x65c   :  { %v8719_v5 = vsel %vm8691_vm4, %v8703_v10, %v8670_v38 }
 0x65d   :  { %v8739_v25 = vadd.f32 %v15685_v31, %v8719_v5 }
 0x65f   :  { %v10185_v41 = vpack.c.bf16 %v8739_v25, %v8738_v23 }
 0x661   :  { %10201 = vst [vmem:[%s15776_s5 + $0x28] sm:$0xff] %v10185_v41  }
 0x662   :  { %v10256_v9 = vpop.f32.mrb[8].mxu1 }
 0x663   :  { %v10257_v4 = vpop.f32.mrb[9].mxu1 }
 0x664   :  { %v10258_v24 = vadd.f32 %v10257_v4, %v10256_v9  ;;  %v10259_v16 = vpop.f32.mrb[10].mxu1 }
 0x665   :  { %v10260_v30 = vpop.f32.mrb[11].mxu1 }
 0x666   :  { %v8675_v36 = vadd.f32 %v10258_v24, %v15676_v52  ;;  %v10261_v8 = vadd.f32 %v10260_v30, %v10259_v16 }
 0x668   :  { %v8704_v6 = vmax.f32 %v8675_v36, 0.0  ;;  %v8678_v27 = vadd.f32 %v10261_v8, %v15676_v52 }
 0x66a   :  { %v8720_v19 = vsel %vm8691_vm4, %v8704_v6, %v8675_v36  ;;  %v8705_v56 = vmax.f32 %v8678_v27, 0.0 }
 0x66b   :  { %v8740_v51 = vadd.f32 %v15685_v31, %v8720_v19 }
 0x66c   :  { %v8721_v48 = vsel %vm8691_vm4, %v8705_v56, %v8678_v27 }
 0x66d   :  { %v8741_v7 = vadd.f32 %v15685_v31, %v8721_v48 }
 0x66f   :  { %v10190_v50 = vpack.c.bf16 %v8741_v7, %v8740_v51 }
 0x671   :  { %10202 = vst [vmem:[%s15776_s5 + $0x30] sm:$0xff] %v10190_v50  }
 0x672   :  { %v10262_v53 = vpop.f32.mrb[12].mxu1 }
 0x673   :  { %v10263_v37 = vpop.f32.mrb[13].mxu1 }
 0x674   :  { %v10264_v40 = vadd.f32 %v10263_v37, %v10262_v53  ;;  %v10265_v42 = vpop.f32.mrb[14].mxu1 }
 0x675   :  { %v10266_v21 = vpop.f32.mrb[15].mxu1 }
 0x676   :  { %v8683_v2 = vadd.f32 %v10264_v40, %v15676_v52  ;;  %v10267_v29 = vadd.f32 %v10266_v21, %v10265_v42 }
 0x678   :  { %v8706_v22 = vmax.f32 %v8683_v2, 0.0  ;;  %v8686_v1 = vadd.f32 %v10267_v29, %v15676_v52 }
 0x67a   :  { %v8722_v26 = vsel %vm8691_vm4, %v8706_v22, %v8683_v2  ;;  %v8707_v57 = vmax.f32 %v8686_v1, 0.0 }
 0x67b   :  { %v8742_v17 = vadd.f32 %v15685_v31, %v8722_v26 }
 0x67c   :  { %v8723_v47 = vsel %vm8691_vm4, %v8707_v57, %v8686_v1 }
 0x67d   :  { %v8743_v3 = vadd.f32 %v15685_v31, %v8723_v47 }
 0x67f   :  { %v10195_v54 = vpack.c.bf16 %v8743_v3, %v8742_v17 }
 0x681   :  { %10203 = vst [vmem:[%s15776_s5 + $0x38] sm:$0xff] %v10195_v54  }

</bundles_post_ra>
